<compile_context>
chip_gen: v7x
topology: tpu7x:2x2x1
jax: 0.10.0
libtpu: 0.0.40
codegen_flags: <defaults>
</compile_context>

<pallas_src>
import functools

import jax
import jax.numpy as jnp
from jax import lax
from jax.experimental import pallas as pl
from jax.experimental.pallas import tpu as pltpu


# ----------------------------------------------------------------------------
# Fused FALCON block kernel (one batch element per grid step):
#   [optional BN+ReLU of the previous block] -> 1x1 conv (both rank branches,
#   all 4 stride-2 phases, ONE matmul) -> 3x3 depthwise conv (stride 2, pad 1,
#   stride-free in phase space) -> branch sum -> raw output + BN stats.
# ----------------------------------------------------------------------------
def _falcon_conv_kernel(*refs, Ho, Wo, C2, Cout, rank, row_strip, has_bn):
    if has_bn:
        (x_ref, sc_ref, sh_ref, pww_ref, pwb_ref, dww_ref, dwb_ref,
         raw_ref, st_ref, scr_ref) = refs
    else:
        (x_ref, pww_ref, pwb_ref, dww_ref, dwb_ref,
         raw_ref, st_ref, scr_ref) = refs

    HW = Ho * Wo
    cin = x_ref.shape[-1]

    # ---- zero only the halo cells the depthwise taps read ------------------
    # Interior is stored at rows 1..Ho, cols 8..Wo+7; taps read rows 0..Ho and
    # cols 7..Wo+7, so the only halo cells ever read are row 0 and column 7.
    for p in range(4):
        scr_ref[p, 0:1, :, :] = jnp.zeros((1, Wo + 8, C2), jnp.float32)
        scr_ref[p, :, 7:8, :] = jnp.zeros((Ho + 1, 1, C2), jnp.float32)

    # ---- (fused BN + ReLU of previous block) + fused 1x1 conv --------------
    x = x_ref[...].reshape(4 * HW, cin)                  # all 4 phases at once
    if has_bn:
        x = jnp.maximum(x * sc_ref[...] + sh_ref[...], 0.0)
    x = x.astype(jnp.bfloat16)
    y = jnp.dot(x, pww_ref[...], preferred_element_type=jnp.float32)
    y = y + pwb_ref[...]                                 # (4*HW, C2) f32
    # Interior of the haloed phase slabs: row offset 1 (untiled axis) and
    # column offset 8 (sublane-tile aligned) -> clean, unshuffled stores.
    y4 = y.reshape(4, Ho, Wo, C2)
    for p in range(4):
        scr_ref[p, 1:Ho + 1, 8:Wo + 8, :] = y4[p]

    # ---- 3x3 depthwise conv, stride 2, pad 1 (stride-free in phase space) --
    # phase index: 0 = (odd rows, odd cols), 1 = (odd, even),
    #              2 = (even, odd),          3 = (even, even)
    # Output (ho, wo) reads original pixel (2*ho + kh - 1, 2*wo + kw - 1);
    # kh==0 / kw==0 shift through the zero halo row / column of the slab.
    w_taps = [dww_ref[k:k + 1, :] for k in range(9)]     # nine (1, C2) rows
    dwb = dwb_ref[...]                                   # (1, Cout)
    n_strips = Ho // row_strip

    def strip(i, carry):
        ssum, ssq = carry
        r = pl.multiple_of(i * row_strip, row_strip)
        acc = None
        for kh in range(3):
            r0 = 0 if kh == 0 else 1
            row_odd = kh != 1
            for kw in range(3):
                c0 = 7 if kw == 0 else 8
                col_odd = kw != 1
                p = (0 if row_odd else 2) + (0 if col_odd else 1)
                tap = scr_ref[p, pl.ds(r + r0, row_strip), c0:c0 + Wo, :]
                tap = tap * w_taps[kh * 3 + kw]
                acc = tap if acc is None else acc + tap   # (row_strip, Wo, C2)
        out = dwb
        for q in range(rank):                             # branch sum
            out = out + acc[:, :, q * Cout:(q + 1) * Cout]
        raw_ref[0, pl.ds(r, row_strip), :, :] = out       # pre-BN activation
        ssum = ssum + jnp.sum(out, axis=(0, 1)).reshape(1, Cout)
        ssq = ssq + jnp.sum(out * out, axis=(0, 1)).reshape(1, Cout)
        return ssum, ssq

    zero_c = jnp.zeros((1, Cout), jnp.float32)
    ssum, ssq = lax.fori_loop(0, n_strips, strip, (zero_c, zero_c), unroll=True)
    st_ref[0, 0:1, :] = ssum                              # BN batch statistics
    st_ref[0, 1:2, :] = ssq


def falcon_conv_pallas(phases, blk, *, ho, wo, bn=None, row_strip=4):
    """One FALCONRank block (pointwise+depthwise+branch-sum), batch-parallel.

    Returns (raw_out (N,ho,wo,Cout) pre-BN, stats (N,2,Cout) = per-element
    channel sum / sum-of-squares).  If `bn=(scale, shift)` is given, the
    previous block's BN+ReLU is applied to the input phases in the prologue.
    """
    # TODO(synk): only stride=2 (the value RankFALCONSimpleNet uses) is implemented.
    n, _, hw, cin = phases.shape
    c2 = blk["pw_w"].shape[1]
    cout = blk["dw_b"].shape[1]
    rank = c2 // cout
    rs = 4 if ho % 4 == 0 else (2 if ho % 2 == 0 else 1)
    rs = min(rs, row_strip)
    has_bn = bn is not None

    kern = functools.partial(_falcon_conv_kernel, Ho=ho, Wo=wo, C2=c2, Cout=cout,
                             rank=rank, row_strip=rs, has_bn=has_bn)

    in_specs = [pl.BlockSpec((1, 4, hw, cin), lambda i: (i, 0, 0, 0))]
    inputs = [phases]
    if has_bn:
        in_specs += [pl.BlockSpec((1, cin), lambda i: (0, 0)),
                     pl.BlockSpec((1, cin), lambda i: (0, 0))]
        inputs += [bn[0], bn[1]]
    in_specs += [pl.BlockSpec((cin, c2), lambda i: (0, 0)),
                 pl.BlockSpec((1, c2), lambda i: (0, 0)),
                 pl.BlockSpec((9, c2), lambda i: (0, 0)),
                 pl.BlockSpec((1, cout), lambda i: (0, 0))]
    inputs += [blk["pw_w"], blk["pw_b"], blk["dw_w"], blk["dw_b"]]

    return pl.pallas_call(
        kern,
        out_shape=(jax.ShapeDtypeStruct((n, ho, wo, cout), jnp.float32),
                   jax.ShapeDtypeStruct((n, 2, cout), jnp.float32)),
        grid=(n,),
        in_specs=in_specs,
        out_specs=(pl.BlockSpec((1, ho, wo, cout), lambda i: (i, 0, 0, 0)),
                   pl.BlockSpec((1, 2, cout), lambda i: (i, 0, 0))),
        scratch_shapes=[pltpu.VMEM((4, ho + 1, wo + 8, c2), jnp.float32)],
        compiler_params=pltpu.CompilerParams(dimension_semantics=("parallel",)),
    )(*inputs)


# ----------------------------------------------------------------------------
# Fused classifier head: BN2 + ReLU + fc1 + ReLU + fc2 + ReLU + fc3 + Softmax.
# ----------------------------------------------------------------------------
def _fc_fused_kernel(x_ref, s_ref, t_ref, w1_ref, b1_ref, w2_ref, b2_ref,
                     w3_ref, b3_ref, o_ref):
    # BN2 affine (per-channel scale/shift pre-tiled to the flattened feature
    # order in the wrapper) + ReLU, then the three dense layers on the MXU.
    h = jnp.maximum(x_ref[...] * s_ref[...] + t_ref[...], 0.0).astype(jnp.bfloat16)
    h = jnp.dot(h, w1_ref[...], preferred_element_type=jnp.float32) + b1_ref[...]
    h = jnp.maximum(h, 0.0).astype(jnp.bfloat16)
    h = jnp.dot(h, w2_ref[...], preferred_element_type=jnp.float32) + b2_ref[...]
    h = jnp.maximum(h, 0.0).astype(jnp.bfloat16)
    y = jnp.dot(h, w3_ref[...], preferred_element_type=jnp.float32) + b3_ref[...]
    y = y - jnp.max(y, axis=-1, keepdims=True)
    e = jnp.exp(y)
    inv = pl.reciprocal(jnp.sum(e, axis=-1, keepdims=True), approx=True)
    o_ref[...] = (e * inv).astype(o_ref.dtype)


def fc_fused_pallas(x, bn_scale, bn_shift, kp):
    # NOTE: cross-call prefetch of fc1_w (P10) is left to XLA's scheduler; the
    # 3 MB weight DMA overlaps the conv stages in practice.
    m, k1 = x.shape
    f1 = kp["fc1_w"].shape[1]
    f2 = kp["fc2_w"].shape[1]
    f3 = kp["fc3_w"].shape[1]
    return pl.pallas_call(
        _fc_fused_kernel,
        out_shape=jax.ShapeDtypeStruct((m, f3), jnp.float32),
        grid=(1,),
        in_specs=[pl.BlockSpec((m, k1), lambda i: (0, 0)),
                  pl.BlockSpec((1, k1), lambda i: (0, 0)),
                  pl.BlockSpec((1, k1), lambda i: (0, 0)),
                  pl.BlockSpec((k1, f1), lambda i: (0, 0)),
                  pl.BlockSpec((1, f1), lambda i: (0, 0)),
                  pl.BlockSpec((f1, f2), lambda i: (0, 0)),
                  pl.BlockSpec((1, f2), lambda i: (0, 0)),
                  pl.BlockSpec((f2, f3), lambda i: (0, 0)),
                  pl.BlockSpec((1, f3), lambda i: (0, 0))],
        out_specs=pl.BlockSpec((m, f3), lambda i: (0, 0)),
    )(x, bn_scale, bn_shift, kp["fc1_w"], kp["fc1_b"], kp["fc2_w"], kp["fc2_b"],
      kp["fc3_w"], kp["fc3_b"])


# ----------------------------------------------------------------------------
# Wrapper glue (XLA): phase decomposition, tiny BN-affine math, free reshapes.
# ----------------------------------------------------------------------------
def _make_phases(x_nhwc, *, out_dtype, pad_cin_to=None):
    """Even/odd row/col phase decomposition of an NHWC tensor.

    A 1x1 conv commutes with spatial subsampling, so the stride-2 depthwise
    conv becomes stride-free shifted adds on these phases inside the kernel.
    Phase order: (odd,odd), (odd,even), (even,odd), (even,even).
    """
    n, h, w, c = x_nhwc.shape
    if pad_cin_to is not None and pad_cin_to > c:
        x_nhwc = jnp.pad(x_nhwc, ((0, 0), (0, 0), (0, 0), (0, pad_cin_to - c)))
        c = pad_cin_to
    ph = jnp.stack([x_nhwc[:, 1::2, 1::2, :], x_nhwc[:, 1::2, 0::2, :],
                    x_nhwc[:, 0::2, 1::2, :], x_nhwc[:, 0::2, 0::2, :]], axis=1)
    return ph.reshape(n, 4, (h // 2) * (w // 2), c).astype(out_dtype)


def _bn_affine(stats, gamma, beta, count, eps=1e-5):
    """Training-mode BN affine (scale, shift) from per-element sum/sum-of-sq."""
    tot = jnp.sum(stats, axis=0)                         # (2, C), tiny
    mean = tot[0] / count
    var = tot[1] / count - mean * mean                   # biased variance
    scale = gamma.reshape(-1) * lax.rsqrt(var + eps)
    shift = beta.reshape(-1) - mean * scale
    return scale, shift


def rank_falcon_simplenet_forward(x_nchw, kp):
    n = x_nchw.shape[0]
    x = jnp.transpose(x_nchw, (0, 2, 3, 1))              # NCHW -> NHWC (boundary)
    h1, w1 = x.shape[1] // 2, x.shape[2] // 2

    # ---- block 1 -------------------------------------------------------------
    ph1 = _make_phases(x, out_dtype=jnp.bfloat16,
                       pad_cin_to=kp["conv1"]["pw_w"].shape[0])
    raw1, stats1 = falcon_conv_pallas(ph1, kp["conv1"], ho=h1, wo=w1)

    # ---- block 2 (BN1 + ReLU fused into its prologue) -------------------------
    scale1, shift1 = _bn_affine(stats1, kp["conv1"]["gamma"], kp["conv1"]["beta"],
                                float(n * h1 * w1))
    h2, w2 = h1 // 2, w1 // 2
    ph2 = _make_phases(raw1, out_dtype=jnp.float32)
    raw2, stats2 = falcon_conv_pallas(
        ph2, kp["conv2"], ho=h2, wo=w2,
        bn=(scale1.reshape(1, -1), shift1.reshape(1, -1)))

    # ---- classifier head (BN2 + ReLU fused into the fc kernel prologue) -------
    scale2, shift2 = _bn_affine(stats2, kp["conv2"]["gamma"], kp["conv2"]["beta"],
                                float(n * h2 * w2))
    # NHWC flatten is a free HBM view; channel index = flat % Cout, so the BN
    # affine is tiled HW times.  fc1's rows were permuted at pack time to match
    # PyTorch's NCHW view(N, -1) ordering.
    feats = raw2.reshape(n, -1)
    return fc_fused_pallas(feats,
                           jnp.tile(scale2, h2 * w2).reshape(1, -1),
                           jnp.tile(shift2, h2 * w2).reshape(1, -1), kp)


# ----------------------------------------------------------------------------
# Deterministic synthetic parameters (PyTorch-layout semantics), packing into
# kernel-ready arrays, and a pure-XLA f32 reference for validation.
# ----------------------------------------------------------------------------
def init_falcon_block(key, cin, cout, rank):
    keys = jax.random.split(key, rank * 4)
    branches = []
    for i in range(rank):
        k_pw, k_pwb, k_dw, k_dwb = keys[4 * i: 4 * i + 4]
        branches.append(dict(
            # 1x1 conv weight (out,in,1,1) stored as (in,out) for matmul use
            pw_w=jax.random.normal(k_pw, (cin, cout), jnp.float32) / jnp.sqrt(cin),
            pw_b=jax.random.normal(k_pwb, (cout,), jnp.float32) * 0.01,
            # depthwise weight (out,1,3,3) stored as (3,3,out)
            dw_w=jax.random.normal(k_dw, (3, 3, cout), jnp.float32) / 3.0,
            dw_b=jax.random.normal(k_dwb, (cout,), jnp.float32) * 0.01,
        ))
    return dict(branches=branches,
                gamma=jnp.ones((cout,), jnp.float32),     # BN default affine
                beta=jnp.zeros((cout,), jnp.float32))


def init_linear(key, fin, fout):
    kw, kb = jax.random.split(key)
    w = jax.random.normal(kw, (fin, fout), jnp.float32) / jnp.sqrt(fin)
    b = jax.random.normal(kb, (fout,), jnp.float32) * 0.01
    return w, b


def init_params(key, rank=2, num_classes=10):
    k1, k2, k3, k4, k5 = jax.random.split(key, 5)
    p = {
        "conv1": init_falcon_block(k1, 3, 64, rank),
        "conv2": init_falcon_block(k2, 64, 64, rank),
    }
    p["fc1_w"], p["fc1_b"] = init_linear(k3, 8 * 8 * 64, 384)
    p["fc2_w"], p["fc2_b"] = init_linear(k4, 384, 192)
    p["fc3_w"], p["fc3_b"] = init_linear(k5, 192, num_classes)
    return p


def pack_params(params, feat_hw=(8, 8)):
    """Convert reference-layout params into kernel-ready arrays."""
    def pack_block(blk):
        pw_w = jnp.concatenate([br["pw_w"] for br in blk["branches"]], axis=1)
        pw_b = jnp.concatenate([br["pw_b"] for br in blk["branches"]], axis=0)
        dw_w = jnp.concatenate([br["dw_w"] for br in blk["branches"]], axis=2)
        dw_b = sum(br["dw_b"] for br in blk["branches"])  # branch-summed bias
        cin, c2 = pw_w.shape
        cout = dw_b.shape[0]
        cin_p = -(-cin // 8) * 8                          # pad K to mult. of 8
        if cin_p != cin:
            pw_w = jnp.pad(pw_w, ((0, cin_p - cin), (0, 0)))
        return dict(
            pw_w=pw_w.astype(jnp.bfloat16),               # (Cin_pad, rank*Cout)
            pw_b=pw_b.reshape(1, c2).astype(jnp.float32),
            dw_w=dw_w.reshape(9, c2).astype(jnp.float32), # tap-major (kh*3+kw)
            dw_b=dw_b.reshape(1, cout).astype(jnp.float32),
            gamma=blk["gamma"].reshape(1, cout).astype(jnp.float32),
            beta=blk["beta"].reshape(1, cout).astype(jnp.float32),
        )

    hf, wf = feat_hw
    fin, f1 = params["fc1_w"].shape
    c = fin // (hf * wf)
    # PyTorch flattens NCHW (row index c*H*W + h*W + w); our activation is the
    # NHWC flatten (h*W*C + w*C + c); permute fc1's rows once instead of
    # transposing the activation every forward.
    fc1_w = params["fc1_w"].reshape(c, hf, wf, f1).transpose(1, 2, 0, 3).reshape(fin, f1)

    return dict(
        conv1=pack_block(params["conv1"]),
        conv2=pack_block(params["conv2"]),
        fc1_w=fc1_w.astype(jnp.bfloat16),
        fc1_b=params["fc1_b"].reshape(1, -1),
        fc2_w=params["fc2_w"].astype(jnp.bfloat16),
        fc2_b=params["fc2_b"].reshape(1, -1),
        fc3_w=params["fc3_w"].astype(jnp.bfloat16),
        fc3_b=params["fc3_b"].reshape(1, -1),
    )


def reference_forward(x_nchw, params, eps=1e-5):
    """Pure-XLA f32 reference with PyTorch semantics (training-mode BN)."""
    def falcon_block(x, blk):
        out = None
        for br in blk["branches"]:
            cout = br["dw_b"].shape[0]
            pw = jnp.einsum("nchw,cd->ndhw", x, br["pw_w"]) \
                + br["pw_b"][None, :, None, None]
            w = jnp.transpose(br["dw_w"], (2, 0, 1))[:, None, :, :]  # (cout,1,3,3)
            dw = lax.conv_general_dilated(
                pw, w, window_strides=(2, 2), padding=((1, 1), (1, 1)),
                dimension_numbers=("NCHW", "OIHW", "NCHW"),
                feature_group_count=cout) + br["dw_b"][None, :, None, None]
            out = dw if out is None else out + dw
        mean = jnp.mean(out, axis=(0, 2, 3), keepdims=True)
        var = jnp.mean((out - mean) ** 2, axis=(0, 2, 3), keepdims=True)
        g = blk["gamma"][None, :, None, None]
        b = blk["beta"][None, :, None, None]
        out = (out - mean) * lax.rsqrt(var + eps) * g + b
        return jnp.maximum(out, 0.0)

    out = falcon_block(x_nchw, params["conv1"])
    out = falcon_block(out, params["conv2"])
    feats = out.reshape(out.shape[0], -1)                 # NCHW flatten
    h = jnp.maximum(feats @ params["fc1_w"] + params["fc1_b"], 0.0)
    h = jnp.maximum(h @ params["fc2_w"] + params["fc2_b"], 0.0)
    y = h @ params["fc3_w"] + params["fc3_b"]
    return jax.nn.softmax(y, axis=-1)


if __name__ == "__main__":
    key = jax.random.PRNGKey(0)
    k_param, k_x = jax.random.split(key)
    params = init_params(k_param, rank=2, num_classes=10)
    kp = pack_params(params)

    # fc1 expects 8*8*64 features after two stride-2 stages => 32x32 input.
    x = jax.random.normal(k_x, (2, 3, 32, 32), dtype=jnp.float32)  # NCHW

    fwd = jax.jit(rank_falcon_simplenet_forward)
    out = jax.block_until_ready(fwd(x, kp))

    assert out.shape == (2, 10), out.shape
    row_sums = jnp.sum(out, axis=-1)
    assert bool(jnp.all(jnp.abs(row_sums - 1.0) < 1e-2)), row_sums

    # Tolerance comparison against a pure-XLA f32 reference (bf16 MXU operands
    # -> expect ~1e-2-scale deviations on logits, well under 0.05 on probs).
    ref = reference_forward(x, params)
    max_err = float(jnp.max(jnp.abs(out - ref)))
    assert max_err < 5e-2, max_err
    print("KERNEL_OK")
</pallas_src>

<mosaic_0001>
module attributes {stable_mosaic.version = 11 : i64} {
  func.func @_falcon_conv_kernel(%arg0: i32, %arg1: memref<1x4x256x8xbf16, #tpu.memory_space<vmem>>, %arg2: memref<8x128xbf16, #tpu.memory_space<vmem>>, %arg3: memref<1x128xf32, #tpu.memory_space<vmem>>, %arg4: memref<9x128xf32, #tpu.memory_space<vmem>>, %arg5: memref<1x64xf32, #tpu.memory_space<vmem>>, %arg6: memref<1x16x16x64xf32, #tpu.memory_space<vmem>>, %arg7: memref<1x2x64xf32, #tpu.memory_space<vmem>>, %arg8: memref<4x17x24x128xf32, #tpu.memory_space<vmem>>) attributes {dimension_semantics = [#tpu.dimension_semantics<parallel>], iteration_bounds = array<i64: 2>, scalar_prefetch = 0 : i64, scratch_operands = 1 : i64, tpu.core_type = #tpu.core_type<tc>, window_params = [{transform_indices = @transform_0, window_bounds = array<i64: 1, 4, 256, 8>}, {pipeline_mode = #tpu.pipeline_mode<synchronous>, transform_indices = @transform_1, window_bounds = array<i64: 8, 128>}, {pipeline_mode = #tpu.pipeline_mode<synchronous>, transform_indices = @transform_2, window_bounds = array<i64: 1, 128>}, {pipeline_mode = #tpu.pipeline_mode<synchronous>, transform_indices = @transform_3, window_bounds = array<i64: 9, 128>}, {pipeline_mode = #tpu.pipeline_mode<synchronous>, transform_indices = @transform_4, window_bounds = array<i64: 1, 64>}, {transform_indices = @transform_5, window_bounds = array<i64: 1, 16, 16, 64>}, {transform_indices = @transform_6, window_bounds = array<i64: 1, 2, 64>}]} {
    %cst = arith.constant 0.000000e+00 : f32
    %0 = vector.broadcast %cst : f32 to vector<1x24x128xf32>
    %c0 = arith.constant 0 : index
    %c0_0 = arith.constant 0 : index
    %c0_1 = arith.constant 0 : index
    %c0_2 = arith.constant 0 : index
    %1 = vector.load %arg8[%c0, %c0_0, %c0_1, %c0_2] : memref<4x17x24x128xf32, #tpu.memory_space<vmem>>, vector<1x1x24x128xf32>
    %2 = vector.shape_cast %1 : vector<1x1x24x128xf32> to vector<1x24x128xf32>
    %3 = vector.shape_cast %0 : vector<1x24x128xf32> to vector<1x1x24x128xf32>
    tpu.vector_store %arg8[%c0, %c0_0, %c0_1, %c0_2], %3 {strides = array<i32>} : memref<4x17x24x128xf32, #tpu.memory_space<vmem>>, vector<1x1x24x128xf32>,
    %cst_3 = arith.constant 0.000000e+00 : f32
    %4 = vector.broadcast %cst_3 : f32 to vector<17x1x128xf32>
    %c0_4 = arith.constant 0 : index
    %c0_5 = arith.constant 0 : index
    %c7 = arith.constant 7 : index
    %c0_6 = arith.constant 0 : index
    %5 = vector.load %arg8[%c0_4, %c0_5, %c7, %c0_6] : memref<4x17x24x128xf32, #tpu.memory_space<vmem>>, vector<1x17x1x128xf32>
    %6 = vector.shape_cast %5 : vector<1x17x1x128xf32> to vector<17x1x128xf32>
    %7 = vector.shape_cast %4 : vector<17x1x128xf32> to vector<1x17x1x128xf32>
    tpu.vector_store %arg8[%c0_4, %c0_5, %c7, %c0_6], %7 {strides = array<i32>} : memref<4x17x24x128xf32, #tpu.memory_space<vmem>>, vector<1x17x1x128xf32>,
    %cst_7 = arith.constant 0.000000e+00 : f32
    %8 = vector.broadcast %cst_7 : f32 to vector<1x24x128xf32>
    %c1 = arith.constant 1 : index
    %c0_8 = arith.constant 0 : index
    %c0_9 = arith.constant 0 : index
    %c0_10 = arith.constant 0 : index
    %9 = vector.load %arg8[%c1, %c0_8, %c0_9, %c0_10] : memref<4x17x24x128xf32, #tpu.memory_space<vmem>>, vector<1x1x24x128xf32>
    %10 = vector.shape_cast %9 : vector<1x1x24x128xf32> to vector<1x24x128xf32>
    %11 = vector.shape_cast %8 : vector<1x24x128xf32> to vector<1x1x24x128xf32>
    tpu.vector_store %arg8[%c1, %c0_8, %c0_9, %c0_10], %11 {strides = array<i32>} : memref<4x17x24x128xf32, #tpu.memory_space<vmem>>, vector<1x1x24x128xf32>,
    %cst_11 = arith.constant 0.000000e+00 : f32
    %12 = vector.broadcast %cst_11 : f32 to vector<17x1x128xf32>
    %c1_12 = arith.constant 1 : index
    %c0_13 = arith.constant 0 : index
    %c7_14 = arith.constant 7 : index
    %c0_15 = arith.constant 0 : index
    %13 = vector.load %arg8[%c1_12, %c0_13, %c7_14, %c0_15] : memref<4x17x24x128xf32, #tpu.memory_space<vmem>>, vector<1x17x1x128xf32>
    %14 = vector.shape_cast %13 : vector<1x17x1x128xf32> to vector<17x1x128xf32>
    %15 = vector.shape_cast %12 : vector<17x1x128xf32> to vector<1x17x1x128xf32>
    tpu.vector_store %arg8[%c1_12, %c0_13, %c7_14, %c0_15], %15 {strides = array<i32>} : memref<4x17x24x128xf32, #tpu.memory_space<vmem>>, vector<1x17x1x128xf32>,
    %cst_16 = arith.constant 0.000000e+00 : f32
    %16 = vector.broadcast %cst_16 : f32 to vector<1x24x128xf32>
    %c2 = arith.constant 2 : index
    %c0_17 = arith.constant 0 : index
    %c0_18 = arith.constant 0 : index
    %c0_19 = arith.constant 0 : index
    %17 = vector.load %arg8[%c2, %c0_17, %c0_18, %c0_19] : memref<4x17x24x128xf32, #tpu.memory_space<vmem>>, vector<1x1x24x128xf32>
    %18 = vector.shape_cast %17 : vector<1x1x24x128xf32> to vector<1x24x128xf32>
    %19 = vector.shape_cast %16 : vector<1x24x128xf32> to vector<1x1x24x128xf32>
    tpu.vector_store %arg8[%c2, %c0_17, %c0_18, %c0_19], %19 {strides = array<i32>} : memref<4x17x24x128xf32, #tpu.memory_space<vmem>>, vector<1x1x24x128xf32>,
    %cst_20 = arith.constant 0.000000e+00 : f32
    %20 = vector.broadcast %cst_20 : f32 to vector<17x1x128xf32>
    %c2_21 = arith.constant 2 : index
    %c0_22 = arith.constant 0 : index
    %c7_23 = arith.constant 7 : index
    %c0_24 = arith.constant 0 : index
    %21 = vector.load %arg8[%c2_21, %c0_22, %c7_23, %c0_24] : memref<4x17x24x128xf32, #tpu.memory_space<vmem>>, vector<1x17x1x128xf32>
    %22 = vector.shape_cast %21 : vector<1x17x1x128xf32> to vector<17x1x128xf32>
    %23 = vector.shape_cast %20 : vector<17x1x128xf32> to vector<1x17x1x128xf32>
    tpu.vector_store %arg8[%c2_21, %c0_22, %c7_23, %c0_24], %23 {strides = array<i32>} : memref<4x17x24x128xf32, #tpu.memory_space<vmem>>, vector<1x17x1x128xf32>,
    %cst_25 = arith.constant 0.000000e+00 : f32
    %24 = vector.broadcast %cst_25 : f32 to vector<1x24x128xf32>
    %c3 = arith.constant 3 : index
    %c0_26 = arith.constant 0 : index
    %c0_27 = arith.constant 0 : index
    %c0_28 = arith.constant 0 : index
    %25 = vector.load %arg8[%c3, %c0_26, %c0_27, %c0_28] : memref<4x17x24x128xf32, #tpu.memory_space<vmem>>, vector<1x1x24x128xf32>
    %26 = vector.shape_cast %25 : vector<1x1x24x128xf32> to vector<1x24x128xf32>
    %27 = vector.shape_cast %24 : vector<1x24x128xf32> to vector<1x1x24x128xf32>
    tpu.vector_store %arg8[%c3, %c0_26, %c0_27, %c0_28], %27 {strides = array<i32>} : memref<4x17x24x128xf32, #tpu.memory_space<vmem>>, vector<1x1x24x128xf32>,
    %cst_29 = arith.constant 0.000000e+00 : f32
    %28 = vector.broadcast %cst_29 : f32 to vector<17x1x128xf32>
    %c3_30 = arith.constant 3 : index
    %c0_31 = arith.constant 0 : index
    %c7_32 = arith.constant 7 : index
    %c0_33 = arith.constant 0 : index
    %29 = vector.load %arg8[%c3_30, %c0_31, %c7_32, %c0_33] : memref<4x17x24x128xf32, #tpu.memory_space<vmem>>, vector<1x17x1x128xf32>
    %30 = vector.shape_cast %29 : vector<1x17x1x128xf32> to vector<17x1x128xf32>
    %31 = vector.shape_cast %28 : vector<17x1x128xf32> to vector<1x17x1x128xf32>
    tpu.vector_store %arg8[%c3_30, %c0_31, %c7_32, %c0_33], %31 {strides = array<i32>} : memref<4x17x24x128xf32, #tpu.memory_space<vmem>>, vector<1x17x1x128xf32>,
    %c0_34 = arith.constant 0 : index
    %c0_35 = arith.constant 0 : index
    %c0_36 = arith.constant 0 : index
    %c0_37 = arith.constant 0 : index
    %32 = vector.load %arg1[%c0_34, %c0_35, %c0_36, %c0_37] : memref<1x4x256x8xbf16, #tpu.memory_space<vmem>>, vector<1x4x256x8xbf16>
    %33 = vector.shape_cast %32 : vector<1x4x256x8xbf16> to vector<1024x8xbf16>
    %c0_38 = arith.constant 0 : index
    %c0_39 = arith.constant 0 : index
    %34 = vector.load %arg2[%c0_38, %c0_39] : memref<8x128xbf16, #tpu.memory_space<vmem>>, vector<8x128xbf16>
    %cst_40 = arith.constant dense<0.000000e+00> : vector<1024x128xf32>
    %35 = tpu.matmul %33, %34, %cst_40 {dimension_numbers = #tpu.dot_dimension_numbers<[1], [0], [0], [1], [0, 0, 1, 1], [], []>} : vector<1024x8xbf16>, vector<8x128xbf16>, vector<1024x128xf32> -> vector<1024x128xf32>
    %c0_41 = arith.constant 0 : index
    %c0_42 = arith.constant 0 : index
    %36 = vector.load %arg3[%c0_41, %c0_42] : memref<1x128xf32, #tpu.memory_space<vmem>>, vector<1x128xf32>
    %37 = vector.broadcast %36 : vector<1x128xf32> to vector<1024x128xf32>
    %38 = arith.addf %35, %37 : vector<1024x128xf32>
    %39 = vector.shape_cast %38 : vector<1024x128xf32> to vector<4x16x16x128xf32>
    %40 = vector.extract_strided_slice %39 {offsets = [0, 0, 0, 0], sizes = [1, 16, 16, 128], strides = [1, 1, 1, 1]} : vector<4x16x16x128xf32> to vector<1x16x16x128xf32>
    %41 = vector.shape_cast %40 : vector<1x16x16x128xf32> to vector<16x16x128xf32>
    %c0_43 = arith.constant 0 : index
    %c1_44 = arith.constant 1 : index
    %c8 = arith.constant 8 : index
    %c0_45 = arith.constant 0 : index
    %42 = vector.load %arg8[%c0_43, %c1_44, %c8, %c0_45] : memref<4x17x24x128xf32, #tpu.memory_space<vmem>>, vector<1x16x16x128xf32>
    %43 = vector.shape_cast %42 : vector<1x16x16x128xf32> to vector<16x16x128xf32>
    %44 = vector.shape_cast %41 : vector<16x16x128xf32> to vector<1x16x16x128xf32>
    tpu.vector_store %arg8[%c0_43, %c1_44, %c8, %c0_45], %44 {strides = array<i32>} : memref<4x17x24x128xf32, #tpu.memory_space<vmem>>, vector<1x16x16x128xf32>,
    %45 = vector.extract_strided_slice %39 {offsets = [1, 0, 0, 0], sizes = [1, 16, 16, 128], strides = [1, 1, 1, 1]} : vector<4x16x16x128xf32> to vector<1x16x16x128xf32>
    %46 = vector.shape_cast %45 : vector<1x16x16x128xf32> to vector<16x16x128xf32>
    %c1_46 = arith.constant 1 : index
    %c1_47 = arith.constant 1 : index
    %c8_48 = arith.constant 8 : index
    %c0_49 = arith.constant 0 : index
    %47 = vector.load %arg8[%c1_46, %c1_47, %c8_48, %c0_49] : memref<4x17x24x128xf32, #tpu.memory_space<vmem>>, vector<1x16x16x128xf32>
    %48 = vector.shape_cast %47 : vector<1x16x16x128xf32> to vector<16x16x128xf32>
    %49 = vector.shape_cast %46 : vector<16x16x128xf32> to vector<1x16x16x128xf32>
    tpu.vector_store %arg8[%c1_46, %c1_47, %c8_48, %c0_49], %49 {strides = array<i32>} : memref<4x17x24x128xf32, #tpu.memory_space<vmem>>, vector<1x16x16x128xf32>,
    %50 = vector.extract_strided_slice %39 {offsets = [2, 0, 0, 0], sizes = [1, 16, 16, 128], strides = [1, 1, 1, 1]} : vector<4x16x16x128xf32> to vector<1x16x16x128xf32>
    %51 = vector.shape_cast %50 : vector<1x16x16x128xf32> to vector<16x16x128xf32>
    %c2_50 = arith.constant 2 : index
    %c1_51 = arith.constant 1 : index
    %c8_52 = arith.constant 8 : index
    %c0_53 = arith.constant 0 : index
    %52 = vector.load %arg8[%c2_50, %c1_51, %c8_52, %c0_53] : memref<4x17x24x128xf32, #tpu.memory_space<vmem>>, vector<1x16x16x128xf32>
    %53 = vector.shape_cast %52 : vector<1x16x16x128xf32> to vector<16x16x128xf32>
    %54 = vector.shape_cast %51 : vector<16x16x128xf32> to vector<1x16x16x128xf32>
    tpu.vector_store %arg8[%c2_50, %c1_51, %c8_52, %c0_53], %54 {strides = array<i32>} : memref<4x17x24x128xf32, #tpu.memory_space<vmem>>, vector<1x16x16x128xf32>,
    %55 = vector.extract_strided_slice %39 {offsets = [3, 0, 0, 0], sizes = [1, 16, 16, 128], strides = [1, 1, 1, 1]} : vector<4x16x16x128xf32> to vector<1x16x16x128xf32>
    %56 = vector.shape_cast %55 : vector<1x16x16x128xf32> to vector<16x16x128xf32>
    %c3_54 = arith.constant 3 : index
    %c1_55 = arith.constant 1 : index
    %c8_56 = arith.constant 8 : index
    %c0_57 = arith.constant 0 : index
    %57 = vector.load %arg8[%c3_54, %c1_55, %c8_56, %c0_57] : memref<4x17x24x128xf32, #tpu.memory_space<vmem>>, vector<1x16x16x128xf32>
    %58 = vector.shape_cast %57 : vector<1x16x16x128xf32> to vector<16x16x128xf32>
    %59 = vector.shape_cast %56 : vector<16x16x128xf32> to vector<1x16x16x128xf32>
    tpu.vector_store %arg8[%c3_54, %c1_55, %c8_56, %c0_57], %59 {strides = array<i32>} : memref<4x17x24x128xf32, #tpu.memory_space<vmem>>, vector<1x16x16x128xf32>,
    %c0_58 = arith.constant 0 : index
    %c0_59 = arith.constant 0 : index
    %60 = vector.load %arg4[%c0_58, %c0_59] : memref<9x128xf32, #tpu.memory_space<vmem>>, vector<1x128xf32>
    %c1_60 = arith.constant 1 : index
    %c0_61 = arith.constant 0 : index
    %61 = vector.load %arg4[%c1_60, %c0_61] : memref<9x128xf32, #tpu.memory_space<vmem>>, vector<1x128xf32>
    %c2_62 = arith.constant 2 : index
    %c0_63 = arith.constant 0 : index
    %62 = vector.load %arg4[%c2_62, %c0_63] : memref<9x128xf32, #tpu.memory_space<vmem>>, vector<1x128xf32>
    %c3_64 = arith.constant 3 : index
    %c0_65 = arith.constant 0 : index
    %63 = vector.load %arg4[%c3_64, %c0_65] : memref<9x128xf32, #tpu.memory_space<vmem>>, vector<1x128xf32>
    %c4 = arith.constant 4 : index
    %c0_66 = arith.constant 0 : index
    %64 = vector.load %arg4[%c4, %c0_66] : memref<9x128xf32, #tpu.memory_space<vmem>>, vector<1x128xf32>
    %c5 = arith.constant 5 : index
    %c0_67 = arith.constant 0 : index
    %65 = vector.load %arg4[%c5, %c0_67] : memref<9x128xf32, #tpu.memory_space<vmem>>, vector<1x128xf32>
    %c6 = arith.constant 6 : index
    %c0_68 = arith.constant 0 : index
    %66 = vector.load %arg4[%c6, %c0_68] : memref<9x128xf32, #tpu.memory_space<vmem>>, vector<1x128xf32>
    %c7_69 = arith.constant 7 : index
    %c0_70 = arith.constant 0 : index
    %67 = vector.load %arg4[%c7_69, %c0_70] : memref<9x128xf32, #tpu.memory_space<vmem>>, vector<1x128xf32>
    %c8_71 = arith.constant 8 : index
    %c0_72 = arith.constant 0 : index
    %68 = vector.load %arg4[%c8_71, %c0_72] : memref<9x128xf32, #tpu.memory_space<vmem>>, vector<1x128xf32>
    %c0_73 = arith.constant 0 : index
    %c0_74 = arith.constant 0 : index
    %69 = vector.load %arg5[%c0_73, %c0_74] : memref<1x64xf32, #tpu.memory_space<vmem>>, vector<1x64xf32>
    %cst_75 = arith.constant 0.000000e+00 : f32
    %70 = vector.broadcast %cst_75 : f32 to vector<1x64xf32>
    %c0_i32 = arith.constant 0 : i32
    %c4_i32 = arith.constant 4 : i32
    %71 = arith.muli %c0_i32, %c4_i32 : i32
    %72 = tpu.assume_multiple %71, 4 : i32
    %c0_i32_76 = arith.constant 0 : i32
    %73 = arith.addi %72, %c0_i32_76 : i32
    %c0_77 = arith.constant 0 : index
    %74 = arith.index_cast %73 : i32 to index
    %c7_78 = arith.constant 7 : index
    %c0_79 = arith.constant 0 : index
    %75 = vector.load %arg8[%c0_77, %74, %c7_78, %c0_79] : memref<4x17x24x128xf32, #tpu.memory_space<vmem>>, vector<1x4x16x128xf32>
    %76 = vector.shape_cast %75 : vector<1x4x16x128xf32> to vector<4x16x128xf32>
    %77 = vector.shape_cast %60 : vector<1x128xf32> to vector<1x1x128xf32>
    %78 = vector.broadcast %77 : vector<1x1x128xf32> to vector<4x16x128xf32>
    %79 = arith.mulf %76, %78 : vector<4x16x128xf32>
    %c0_i32_80 = arith.constant 0 : i32
    %80 = arith.addi %72, %c0_i32_80 : i32
    %c1_81 = arith.constant 1 : index
    %81 = arith.index_cast %80 : i32 to index
    %c8_82 = arith.constant 8 : index
    %c0_83 = arith.constant 0 : index
    %82 = vector.load %arg8[%c1_81, %81, %c8_82, %c0_83] : memref<4x17x24x128xf32, #tpu.memory_space<vmem>>, vector<1x4x16x128xf32>
    %83 = vector.shape_cast %82 : vector<1x4x16x128xf32> to vector<4x16x128xf32>
    %84 = vector.shape_cast %61 : vector<1x128xf32> to vector<1x1x128xf32>
    %85 = vector.broadcast %84 : vector<1x1x128xf32> to vector<4x16x128xf32>
    %86 = arith.mulf %83, %85 : vector<4x16x128xf32>
    %87 = arith.addf %79, %86 : vector<4x16x128xf32>
    %c0_i32_84 = arith.constant 0 : i32
    %88 = arith.addi %72, %c0_i32_84 : i32
    %c0_85 = arith.constant 0 : index
    %89 = arith.index_cast %88 : i32 to index
    %c8_86 = arith.constant 8 : index
    %c0_87 = arith.constant 0 : index
    %90 = vector.load %arg8[%c0_85, %89, %c8_86, %c0_87] : memref<4x17x24x128xf32, #tpu.memory_space<vmem>>, vector<1x4x16x128xf32>
    %91 = vector.shape_cast %90 : vector<1x4x16x128xf32> to vector<4x16x128xf32>
    %92 = vector.shape_cast %62 : vector<1x128xf32> to vector<1x1x128xf32>
    %93 = vector.broadcast %92 : vector<1x1x128xf32> to vector<4x16x128xf32>
    %94 = arith.mulf %91, %93 : vector<4x16x128xf32>
    %95 = arith.addf %87, %94 : vector<4x16x128xf32>
    %c1_i32 = arith.constant 1 : i32
    %96 = arith.addi %72, %c1_i32 : i32
    %c2_88 = arith.constant 2 : index
    %97 = arith.index_cast %96 : i32 to index
    %c7_89 = arith.constant 7 : index
    %c0_90 = arith.constant 0 : index
    %98 = vector.load %arg8[%c2_88, %97, %c7_89, %c0_90] : memref<4x17x24x128xf32, #tpu.memory_space<vmem>>, vector<1x4x16x128xf32>
    %99 = vector.shape_cast %98 : vector<1x4x16x128xf32> to vector<4x16x128xf32>
    %100 = vector.shape_cast %63 : vector<1x128xf32> to vector<1x1x128xf32>
    %101 = vector.broadcast %100 : vector<1x1x128xf32> to vector<4x16x128xf32>
    %102 = arith.mulf %99, %101 : vector<4x16x128xf32>
    %103 = arith.addf %95, %102 : vector<4x16x128xf32>
    %c1_i32_91 = arith.constant 1 : i32
    %104 = arith.addi %72, %c1_i32_91 : i32
    %c3_92 = arith.constant 3 : index
    %105 = arith.index_cast %104 : i32 to index
    %c8_93 = arith.constant 8 : index
    %c0_94 = arith.constant 0 : index
    %106 = vector.load %arg8[%c3_92, %105, %c8_93, %c0_94] : memref<4x17x24x128xf32, #tpu.memory_space<vmem>>, vector<1x4x16x128xf32>
    %107 = vector.shape_cast %106 : vector<1x4x16x128xf32> to vector<4x16x128xf32>
    %108 = vector.shape_cast %64 : vector<1x128xf32> to vector<1x1x128xf32>
    %109 = vector.broadcast %108 : vector<1x1x128xf32> to vector<4x16x128xf32>
    %110 = arith.mulf %107, %109 : vector<4x16x128xf32>
    %111 = arith.addf %103, %110 : vector<4x16x128xf32>
    %c1_i32_95 = arith.constant 1 : i32
    %112 = arith.addi %72, %c1_i32_95 : i32
    %c2_96 = arith.constant 2 : index
    %113 = arith.index_cast %112 : i32 to index
    %c8_97 = arith.constant 8 : index
    %c0_98 = arith.constant 0 : index
    %114 = vector.load %arg8[%c2_96, %113, %c8_97, %c0_98] : memref<4x17x24x128xf32, #tpu.memory_space<vmem>>, vector<1x4x16x128xf32>
    %115 = vector.shape_cast %114 : vector<1x4x16x128xf32> to vector<4x16x128xf32>
    %116 = vector.shape_cast %65 : vector<1x128xf32> to vector<1x1x128xf32>
    %117 = vector.broadcast %116 : vector<1x1x128xf32> to vector<4x16x128xf32>
    %118 = arith.mulf %115, %117 : vector<4x16x128xf32>
    %119 = arith.addf %111, %118 : vector<4x16x128xf32>
    %c1_i32_99 = arith.constant 1 : i32
    %120 = arith.addi %72, %c1_i32_99 : i32
    %c0_100 = arith.constant 0 : index
    %121 = arith.index_cast %120 : i32 to index
    %c7_101 = arith.constant 7 : index
    %c0_102 = arith.constant 0 : index
    %122 = vector.load %arg8[%c0_100, %121, %c7_101, %c0_102] : memref<4x17x24x128xf32, #tpu.memory_space<vmem>>, vector<1x4x16x128xf32>
    %123 = vector.shape_cast %122 : vector<1x4x16x128xf32> to vector<4x16x128xf32>
    %124 = vector.shape_cast %66 : vector<1x128xf32> to vector<1x1x128xf32>
    %125 = vector.broadcast %124 : vector<1x1x128xf32> to vector<4x16x128xf32>
    %126 = arith.mulf %123, %125 : vector<4x16x128xf32>
    %127 = arith.addf %119, %126 : vector<4x16x128xf32>
    %c1_i32_103 = arith.constant 1 : i32
    %128 = arith.addi %72, %c1_i32_103 : i32
    %c1_104 = arith.constant 1 : index
    %129 = arith.index_cast %128 : i32 to index
    %c8_105 = arith.constant 8 : index
    %c0_106 = arith.constant 0 : index
    %130 = vector.load %arg8[%c1_104, %129, %c8_105, %c0_106] : memref<4x17x24x128xf32, #tpu.memory_space<vmem>>, vector<1x4x16x128xf32>
    %131 = vector.shape_cast %130 : vector<1x4x16x128xf32> to vector<4x16x128xf32>
    %132 = vector.shape_cast %67 : vector<1x128xf32> to vector<1x1x128xf32>
    %133 = vector.broadcast %132 : vector<1x1x128xf32> to vector<4x16x128xf32>
    %134 = arith.mulf %131, %133 : vector<4x16x128xf32>
    %135 = arith.addf %127, %134 : vector<4x16x128xf32>
    %c1_i32_107 = arith.constant 1 : i32
    %136 = arith.addi %72, %c1_i32_107 : i32
    %c0_108 = arith.constant 0 : index
    %137 = arith.index_cast %136 : i32 to index
    %c8_109 = arith.constant 8 : index
    %c0_110 = arith.constant 0 : index
    %138 = vector.load %arg8[%c0_108, %137, %c8_109, %c0_110] : memref<4x17x24x128xf32, #tpu.memory_space<vmem>>, vector<1x4x16x128xf32>
    %139 = vector.shape_cast %138 : vector<1x4x16x128xf32> to vector<4x16x128xf32>
    %140 = vector.shape_cast %68 : vector<1x128xf32> to vector<1x1x128xf32>
    %141 = vector.broadcast %140 : vector<1x1x128xf32> to vector<4x16x128xf32>
    %142 = arith.mulf %139, %141 : vector<4x16x128xf32>
    %143 = arith.addf %135, %142 : vector<4x16x128xf32>
    %144 = vector.extract_strided_slice %143 {offsets = [0, 0, 0], sizes = [4, 16, 64], strides = [1, 1, 1]} : vector<4x16x128xf32> to vector<4x16x64xf32>
    %145 = vector.shape_cast %69 : vector<1x64xf32> to vector<1x1x64xf32>
    %146 = vector.broadcast %145 : vector<1x1x64xf32> to vector<4x16x64xf32>
    %147 = arith.addf %146, %144 : vector<4x16x64xf32>
    %148 = vector.extract_strided_slice %143 {offsets = [0, 0, 64], sizes = [4, 16, 64], strides = [1, 1, 1]} : vector<4x16x128xf32> to vector<4x16x64xf32>
    %149 = arith.addf %147, %148 : vector<4x16x64xf32>
    %c0_111 = arith.constant 0 : index
    %150 = arith.index_cast %72 : i32 to index
    %c0_112 = arith.constant 0 : index
    %c0_113 = arith.constant 0 : index
    %151 = vector.load %arg6[%c0_111, %150, %c0_112, %c0_113] : memref<1x16x16x64xf32, #tpu.memory_space<vmem>>, vector<1x4x16x64xf32>
    %152 = vector.shape_cast %151 : vector<1x4x16x64xf32> to vector<4x16x64xf32>
    %153 = vector.shape_cast %149 : vector<4x16x64xf32> to vector<1x4x16x64xf32>
    tpu.vector_store %arg6[%c0_111, %150, %c0_112, %c0_113], %153 {strides = array<i32>} : memref<1x16x16x64xf32, #tpu.memory_space<vmem>>, vector<1x4x16x64xf32>,
    %cst_114 = arith.constant dense<0.000000e+00> : vector<64xf32>
    %154 = vector.multi_reduction <add>, %149, %cst_114 [0, 1] : vector<4x16x64xf32> to vector<64xf32>
    %155 = vector.shape_cast %154 : vector<64xf32> to vector<1x64xf32>
    %156 = arith.addf %70, %155 : vector<1x64xf32>
    %157 = arith.mulf %149, %149 : vector<4x16x64xf32>
    %cst_115 = arith.constant dense<0.000000e+00> : vector<64xf32>
    %158 = vector.multi_reduction <add>, %157, %cst_115 [0, 1] : vector<4x16x64xf32> to vector<64xf32>
    %159 = vector.shape_cast %158 : vector<64xf32> to vector<1x64xf32>
    %160 = arith.addf %70, %159 : vector<1x64xf32>
    %c1_i32_116 = arith.constant 1 : i32
    %c4_i32_117 = arith.constant 4 : i32
    %161 = arith.muli %c1_i32_116, %c4_i32_117 : i32
    %162 = tpu.assume_multiple %161, 4 : i32
    %c0_i32_118 = arith.constant 0 : i32
    %163 = arith.addi %162, %c0_i32_118 : i32
    %c0_119 = arith.constant 0 : index
    %164 = arith.index_cast %163 : i32 to index
    %c7_120 = arith.constant 7 : index
    %c0_121 = arith.constant 0 : index
    %165 = vector.load %arg8[%c0_119, %164, %c7_120, %c0_121] : memref<4x17x24x128xf32, #tpu.memory_space<vmem>>, vector<1x4x16x128xf32>
    %166 = vector.shape_cast %165 : vector<1x4x16x128xf32> to vector<4x16x128xf32>
    %167 = vector.shape_cast %60 : vector<1x128xf32> to vector<1x1x128xf32>
    %168 = vector.broadcast %167 : vector<1x1x128xf32> to vector<4x16x128xf32>
    %169 = arith.mulf %166, %168 : vector<4x16x128xf32>
    %c0_i32_122 = arith.constant 0 : i32
    %170 = arith.addi %162, %c0_i32_122 : i32
    %c1_123 = arith.constant 1 : index
    %171 = arith.index_cast %170 : i32 to index
    %c8_124 = arith.constant 8 : index
    %c0_125 = arith.constant 0 : index
    %172 = vector.load %arg8[%c1_123, %171, %c8_124, %c0_125] : memref<4x17x24x128xf32, #tpu.memory_space<vmem>>, vector<1x4x16x128xf32>
    %173 = vector.shape_cast %172 : vector<1x4x16x128xf32> to vector<4x16x128xf32>
    %174 = vector.shape_cast %61 : vector<1x128xf32> to vector<1x1x128xf32>
    %175 = vector.broadcast %174 : vector<1x1x128xf32> to vector<4x16x128xf32>
    %176 = arith.mulf %173, %175 : vector<4x16x128xf32>
    %177 = arith.addf %169, %176 : vector<4x16x128xf32>
    %c0_i32_126 = arith.constant 0 : i32
    %178 = arith.addi %162, %c0_i32_126 : i32
    %c0_127 = arith.constant 0 : index
    %179 = arith.index_cast %178 : i32 to index
    %c8_128 = arith.constant 8 : index
    %c0_129 = arith.constant 0 : index
    %180 = vector.load %arg8[%c0_127, %179, %c8_128, %c0_129] : memref<4x17x24x128xf32, #tpu.memory_space<vmem>>, vector<1x4x16x128xf32>
    %181 = vector.shape_cast %180 : vector<1x4x16x128xf32> to vector<4x16x128xf32>
    %182 = vector.shape_cast %62 : vector<1x128xf32> to vector<1x1x128xf32>
    %183 = vector.broadcast %182 : vector<1x1x128xf32> to vector<4x16x128xf32>
    %184 = arith.mulf %181, %183 : vector<4x16x128xf32>
    %185 = arith.addf %177, %184 : vector<4x16x128xf32>
    %c1_i32_130 = arith.constant 1 : i32
    %186 = arith.addi %162, %c1_i32_130 : i32
    %c2_131 = arith.constant 2 : index
    %187 = arith.index_cast %186 : i32 to index
    %c7_132 = arith.constant 7 : index
    %c0_133 = arith.constant 0 : index
    %188 = vector.load %arg8[%c2_131, %187, %c7_132, %c0_133] : memref<4x17x24x128xf32, #tpu.memory_space<vmem>>, vector<1x4x16x128xf32>
    %189 = vector.shape_cast %188 : vector<1x4x16x128xf32> to vector<4x16x128xf32>
    %190 = vector.shape_cast %63 : vector<1x128xf32> to vector<1x1x128xf32>
    %191 = vector.broadcast %190 : vector<1x1x128xf32> to vector<4x16x128xf32>
    %192 = arith.mulf %189, %191 : vector<4x16x128xf32>
    %193 = arith.addf %185, %192 : vector<4x16x128xf32>
    %c1_i32_134 = arith.constant 1 : i32
    %194 = arith.addi %162, %c1_i32_134 : i32
    %c3_135 = arith.constant 3 : index
    %195 = arith.index_cast %194 : i32 to index
    %c8_136 = arith.constant 8 : index
    %c0_137 = arith.constant 0 : index
    %196 = vector.load %arg8[%c3_135, %195, %c8_136, %c0_137] : memref<4x17x24x128xf32, #tpu.memory_space<vmem>>, vector<1x4x16x128xf32>
    %197 = vector.shape_cast %196 : vector<1x4x16x128xf32> to vector<4x16x128xf32>
    %198 = vector.shape_cast %64 : vector<1x128xf32> to vector<1x1x128xf32>
    %199 = vector.broadcast %198 : vector<1x1x128xf32> to vector<4x16x128xf32>
    %200 = arith.mulf %197, %199 : vector<4x16x128xf32>
    %201 = arith.addf %193, %200 : vector<4x16x128xf32>
    %c1_i32_138 = arith.constant 1 : i32
    %202 = arith.addi %162, %c1_i32_138 : i32
    %c2_139 = arith.constant 2 : index
    %203 = arith.index_cast %202 : i32 to index
    %c8_140 = arith.constant 8 : index
    %c0_141 = arith.constant 0 : index
    %204 = vector.load %arg8[%c2_139, %203, %c8_140, %c0_141] : memref<4x17x24x128xf32, #tpu.memory_space<vmem>>, vector<1x4x16x128xf32>
    %205 = vector.shape_cast %204 : vector<1x4x16x128xf32> to vector<4x16x128xf32>
    %206 = vector.shape_cast %65 : vector<1x128xf32> to vector<1x1x128xf32>
    %207 = vector.broadcast %206 : vector<1x1x128xf32> to vector<4x16x128xf32>
    %208 = arith.mulf %205, %207 : vector<4x16x128xf32>
    %209 = arith.addf %201, %208 : vector<4x16x128xf32>
    %c1_i32_142 = arith.constant 1 : i32
    %210 = arith.addi %162, %c1_i32_142 : i32
    %c0_143 = arith.constant 0 : index
    %211 = arith.index_cast %210 : i32 to index
    %c7_144 = arith.constant 7 : index
    %c0_145 = arith.constant 0 : index
    %212 = vector.load %arg8[%c0_143, %211, %c7_144, %c0_145] : memref<4x17x24x128xf32, #tpu.memory_space<vmem>>, vector<1x4x16x128xf32>
    %213 = vector.shape_cast %212 : vector<1x4x16x128xf32> to vector<4x16x128xf32>
    %214 = vector.shape_cast %66 : vector<1x128xf32> to vector<1x1x128xf32>
    %215 = vector.broadcast %214 : vector<1x1x128xf32> to vector<4x16x128xf32>
    %216 = arith.mulf %213, %215 : vector<4x16x128xf32>
    %217 = arith.addf %209, %216 : vector<4x16x128xf32>
    %c1_i32_146 = arith.constant 1 : i32
    %218 = arith.addi %162, %c1_i32_146 : i32
    %c1_147 = arith.constant 1 : index
    %219 = arith.index_cast %218 : i32 to index
    %c8_148 = arith.constant 8 : index
    %c0_149 = arith.constant 0 : index
    %220 = vector.load %arg8[%c1_147, %219, %c8_148, %c0_149] : memref<4x17x24x128xf32, #tpu.memory_space<vmem>>, vector<1x4x16x128xf32>
    %221 = vector.shape_cast %220 : vector<1x4x16x128xf32> to vector<4x16x128xf32>
    %222 = vector.shape_cast %67 : vector<1x128xf32> to vector<1x1x128xf32>
    %223 = vector.broadcast %222 : vector<1x1x128xf32> to vector<4x16x128xf32>
    %224 = arith.mulf %221, %223 : vector<4x16x128xf32>
    %225 = arith.addf %217, %224 : vector<4x16x128xf32>
    %c1_i32_150 = arith.constant 1 : i32
    %226 = arith.addi %162, %c1_i32_150 : i32
    %c0_151 = arith.constant 0 : index
    %227 = arith.index_cast %226 : i32 to index
    %c8_152 = arith.constant 8 : index
    %c0_153 = arith.constant 0 : index
    %228 = vector.load %arg8[%c0_151, %227, %c8_152, %c0_153] : memref<4x17x24x128xf32, #tpu.memory_space<vmem>>, vector<1x4x16x128xf32>
    %229 = vector.shape_cast %228 : vector<1x4x16x128xf32> to vector<4x16x128xf32>
    %230 = vector.shape_cast %68 : vector<1x128xf32> to vector<1x1x128xf32>
    %231 = vector.broadcast %230 : vector<1x1x128xf32> to vector<4x16x128xf32>
    %232 = arith.mulf %229, %231 : vector<4x16x128xf32>
    %233 = arith.addf %225, %232 : vector<4x16x128xf32>
    %234 = vector.extract_strided_slice %233 {offsets = [0, 0, 0], sizes = [4, 16, 64], strides = [1, 1, 1]} : vector<4x16x128xf32> to vector<4x16x64xf32>
    %235 = vector.shape_cast %69 : vector<1x64xf32> to vector<1x1x64xf32>
    %236 = vector.broadcast %235 : vector<1x1x64xf32> to vector<4x16x64xf32>
    %237 = arith.addf %236, %234 : vector<4x16x64xf32>
    %238 = vector.extract_strided_slice %233 {offsets = [0, 0, 64], sizes = [4, 16, 64], strides = [1, 1, 1]} : vector<4x16x128xf32> to vector<4x16x64xf32>
    %239 = arith.addf %237, %238 : vector<4x16x64xf32>
    %c0_154 = arith.constant 0 : index
    %240 = arith.index_cast %162 : i32 to index
    %c0_155 = arith.constant 0 : index
    %c0_156 = arith.constant 0 : index
    %241 = vector.load %arg6[%c0_154, %240, %c0_155, %c0_156] : memref<1x16x16x64xf32, #tpu.memory_space<vmem>>, vector<1x4x16x64xf32>
    %242 = vector.shape_cast %241 : vector<1x4x16x64xf32> to vector<4x16x64xf32>
    %243 = vector.shape_cast %239 : vector<4x16x64xf32> to vector<1x4x16x64xf32>
    tpu.vector_store %arg6[%c0_154, %240, %c0_155, %c0_156], %243 {strides = array<i32>} : memref<1x16x16x64xf32, #tpu.memory_space<vmem>>, vector<1x4x16x64xf32>,
    %cst_157 = arith.constant dense<0.000000e+00> : vector<64xf32>
    %244 = vector.multi_reduction <add>, %239, %cst_157 [0, 1] : vector<4x16x64xf32> to vector<64xf32>
    %245 = vector.shape_cast %244 : vector<64xf32> to vector<1x64xf32>
    %246 = arith.addf %156, %245 : vector<1x64xf32>
    %247 = arith.mulf %239, %239 : vector<4x16x64xf32>
    %cst_158 = arith.constant dense<0.000000e+00> : vector<64xf32>
    %248 = vector.multi_reduction <add>, %247, %cst_158 [0, 1] : vector<4x16x64xf32> to vector<64xf32>
    %249 = vector.shape_cast %248 : vector<64xf32> to vector<1x64xf32>
    %250 = arith.addf %160, %249 : vector<1x64xf32>
    %c2_i32 = arith.constant 2 : i32
    %c4_i32_159 = arith.constant 4 : i32
    %251 = arith.muli %c2_i32, %c4_i32_159 : i32
    %252 = tpu.assume_multiple %251, 4 : i32
    %c0_i32_160 = arith.constant 0 : i32
    %253 = arith.addi %252, %c0_i32_160 : i32
    %c0_161 = arith.constant 0 : index
    %254 = arith.index_cast %253 : i32 to index
    %c7_162 = arith.constant 7 : index
    %c0_163 = arith.constant 0 : index
    %255 = vector.load %arg8[%c0_161, %254, %c7_162, %c0_163] : memref<4x17x24x128xf32, #tpu.memory_space<vmem>>, vector<1x4x16x128xf32>
    %256 = vector.shape_cast %255 : vector<1x4x16x128xf32> to vector<4x16x128xf32>
    %257 = vector.shape_cast %60 : vector<1x128xf32> to vector<1x1x128xf32>
    %258 = vector.broadcast %257 : vector<1x1x128xf32> to vector<4x16x128xf32>
    %259 = arith.mulf %256, %258 : vector<4x16x128xf32>
    %c0_i32_164 = arith.constant 0 : i32
    %260 = arith.addi %252, %c0_i32_164 : i32
    %c1_165 = arith.constant 1 : index
    %261 = arith.index_cast %260 : i32 to index
    %c8_166 = arith.constant 8 : index
    %c0_167 = arith.constant 0 : index
    %262 = vector.load %arg8[%c1_165, %261, %c8_166, %c0_167] : memref<4x17x24x128xf32, #tpu.memory_space<vmem>>, vector<1x4x16x128xf32>
    %263 = vector.shape_cast %262 : vector<1x4x16x128xf32> to vector<4x16x128xf32>
    %264 = vector.shape_cast %61 : vector<1x128xf32> to vector<1x1x128xf32>
    %265 = vector.broadcast %264 : vector<1x1x128xf32> to vector<4x16x128xf32>
    %266 = arith.mulf %263, %265 : vector<4x16x128xf32>
    %267 = arith.addf %259, %266 : vector<4x16x128xf32>
    %c0_i32_168 = arith.constant 0 : i32
    %268 = arith.addi %252, %c0_i32_168 : i32
    %c0_169 = arith.constant 0 : index
    %269 = arith.index_cast %268 : i32 to index
    %c8_170 = arith.constant 8 : index
    %c0_171 = arith.constant 0 : index
    %270 = vector.load %arg8[%c0_169, %269, %c8_170, %c0_171] : memref<4x17x24x128xf32, #tpu.memory_space<vmem>>, vector<1x4x16x128xf32>
    %271 = vector.shape_cast %270 : vector<1x4x16x128xf32> to vector<4x16x128xf32>
    %272 = vector.shape_cast %62 : vector<1x128xf32> to vector<1x1x128xf32>
    %273 = vector.broadcast %272 : vector<1x1x128xf32> to vector<4x16x128xf32>
    %274 = arith.mulf %271, %273 : vector<4x16x128xf32>
    %275 = arith.addf %267, %274 : vector<4x16x128xf32>
    %c1_i32_172 = arith.constant 1 : i32
    %276 = arith.addi %252, %c1_i32_172 : i32
    %c2_173 = arith.constant 2 : index
    %277 = arith.index_cast %276 : i32 to index
    %c7_174 = arith.constant 7 : index
    %c0_175 = arith.constant 0 : index
    %278 = vector.load %arg8[%c2_173, %277, %c7_174, %c0_175] : memref<4x17x24x128xf32, #tpu.memory_space<vmem>>, vector<1x4x16x128xf32>
    %279 = vector.shape_cast %278 : vector<1x4x16x128xf32> to vector<4x16x128xf32>
    %280 = vector.shape_cast %63 : vector<1x128xf32> to vector<1x1x128xf32>
    %281 = vector.broadcast %280 : vector<1x1x128xf32> to vector<4x16x128xf32>
    %282 = arith.mulf %279, %281 : vector<4x16x128xf32>
    %283 = arith.addf %275, %282 : vector<4x16x128xf32>
    %c1_i32_176 = arith.constant 1 : i32
    %284 = arith.addi %252, %c1_i32_176 : i32
    %c3_177 = arith.constant 3 : index
    %285 = arith.index_cast %284 : i32 to index
    %c8_178 = arith.constant 8 : index
    %c0_179 = arith.constant 0 : index
    %286 = vector.load %arg8[%c3_177, %285, %c8_178, %c0_179] : memref<4x17x24x128xf32, #tpu.memory_space<vmem>>, vector<1x4x16x128xf32>
    %287 = vector.shape_cast %286 : vector<1x4x16x128xf32> to vector<4x16x128xf32>
    %288 = vector.shape_cast %64 : vector<1x128xf32> to vector<1x1x128xf32>
    %289 = vector.broadcast %288 : vector<1x1x128xf32> to vector<4x16x128xf32>
    %290 = arith.mulf %287, %289 : vector<4x16x128xf32>
    %291 = arith.addf %283, %290 : vector<4x16x128xf32>
    %c1_i32_180 = arith.constant 1 : i32
    %292 = arith.addi %252, %c1_i32_180 : i32
    %c2_181 = arith.constant 2 : index
    %293 = arith.index_cast %292 : i32 to index
    %c8_182 = arith.constant 8 : index
    %c0_183 = arith.constant 0 : index
    %294 = vector.load %arg8[%c2_181, %293, %c8_182, %c0_183] : memref<4x17x24x128xf32, #tpu.memory_space<vmem>>, vector<1x4x16x128xf32>
    %295 = vector.shape_cast %294 : vector<1x4x16x128xf32> to vector<4x16x128xf32>
    %296 = vector.shape_cast %65 : vector<1x128xf32> to vector<1x1x128xf32>
    %297 = vector.broadcast %296 : vector<1x1x128xf32> to vector<4x16x128xf32>
    %298 = arith.mulf %295, %297 : vector<4x16x128xf32>
    %299 = arith.addf %291, %298 : vector<4x16x128xf32>
    %c1_i32_184 = arith.constant 1 : i32
    %300 = arith.addi %252, %c1_i32_184 : i32
    %c0_185 = arith.constant 0 : index
    %301 = arith.index_cast %300 : i32 to index
    %c7_186 = arith.constant 7 : index
    %c0_187 = arith.constant 0 : index
    %302 = vector.load %arg8[%c0_185, %301, %c7_186, %c0_187] : memref<4x17x24x128xf32, #tpu.memory_space<vmem>>, vector<1x4x16x128xf32>
    %303 = vector.shape_cast %302 : vector<1x4x16x128xf32> to vector<4x16x128xf32>
    %304 = vector.shape_cast %66 : vector<1x128xf32> to vector<1x1x128xf32>
    %305 = vector.broadcast %304 : vector<1x1x128xf32> to vector<4x16x128xf32>
    %306 = arith.mulf %303, %305 : vector<4x16x128xf32>
    %307 = arith.addf %299, %306 : vector<4x16x128xf32>
    %c1_i32_188 = arith.constant 1 : i32
    %308 = arith.addi %252, %c1_i32_188 : i32
    %c1_189 = arith.constant 1 : index
    %309 = arith.index_cast %308 : i32 to index
    %c8_190 = arith.constant 8 : index
    %c0_191 = arith.constant 0 : index
    %310 = vector.load %arg8[%c1_189, %309, %c8_190, %c0_191] : memref<4x17x24x128xf32, #tpu.memory_space<vmem>>, vector<1x4x16x128xf32>
    %311 = vector.shape_cast %310 : vector<1x4x16x128xf32> to vector<4x16x128xf32>
    %312 = vector.shape_cast %67 : vector<1x128xf32> to vector<1x1x128xf32>
    %313 = vector.broadcast %312 : vector<1x1x128xf32> to vector<4x16x128xf32>
    %314 = arith.mulf %311, %313 : vector<4x16x128xf32>
    %315 = arith.addf %307, %314 : vector<4x16x128xf32>
    %c1_i32_192 = arith.constant 1 : i32
    %316 = arith.addi %252, %c1_i32_192 : i32
    %c0_193 = arith.constant 0 : index
    %317 = arith.index_cast %316 : i32 to index
    %c8_194 = arith.constant 8 : index
    %c0_195 = arith.constant 0 : index
    %318 = vector.load %arg8[%c0_193, %317, %c8_194, %c0_195] : memref<4x17x24x128xf32, #tpu.memory_space<vmem>>, vector<1x4x16x128xf32>
    %319 = vector.shape_cast %318 : vector<1x4x16x128xf32> to vector<4x16x128xf32>
    %320 = vector.shape_cast %68 : vector<1x128xf32> to vector<1x1x128xf32>
    %321 = vector.broadcast %320 : vector<1x1x128xf32> to vector<4x16x128xf32>
    %322 = arith.mulf %319, %321 : vector<4x16x128xf32>
    %323 = arith.addf %315, %322 : vector<4x16x128xf32>
    %324 = vector.extract_strided_slice %323 {offsets = [0, 0, 0], sizes = [4, 16, 64], strides = [1, 1, 1]} : vector<4x16x128xf32> to vector<4x16x64xf32>
    %325 = vector.shape_cast %69 : vector<1x64xf32> to vector<1x1x64xf32>
    %326 = vector.broadcast %325 : vector<1x1x64xf32> to vector<4x16x64xf32>
    %327 = arith.addf %326, %324 : vector<4x16x64xf32>
    %328 = vector.extract_strided_slice %323 {offsets = [0, 0, 64], sizes = [4, 16, 64], strides = [1, 1, 1]} : vector<4x16x128xf32> to vector<4x16x64xf32>
    %329 = arith.addf %327, %328 : vector<4x16x64xf32>
    %c0_196 = arith.constant 0 : index
    %330 = arith.index_cast %252 : i32 to index
    %c0_197 = arith.constant 0 : index
    %c0_198 = arith.constant 0 : index
    %331 = vector.load %arg6[%c0_196, %330, %c0_197, %c0_198] : memref<1x16x16x64xf32, #tpu.memory_space<vmem>>, vector<1x4x16x64xf32>
    %332 = vector.shape_cast %331 : vector<1x4x16x64xf32> to vector<4x16x64xf32>
    %333 = vector.shape_cast %329 : vector<4x16x64xf32> to vector<1x4x16x64xf32>
    tpu.vector_store %arg6[%c0_196, %330, %c0_197, %c0_198], %333 {strides = array<i32>} : memref<1x16x16x64xf32, #tpu.memory_space<vmem>>, vector<1x4x16x64xf32>,
    %cst_199 = arith.constant dense<0.000000e+00> : vector<64xf32>
    %334 = vector.multi_reduction <add>, %329, %cst_199 [0, 1] : vector<4x16x64xf32> to vector<64xf32>
    %335 = vector.shape_cast %334 : vector<64xf32> to vector<1x64xf32>
    %336 = arith.addf %246, %335 : vector<1x64xf32>
    %337 = arith.mulf %329, %329 : vector<4x16x64xf32>
    %cst_200 = arith.constant dense<0.000000e+00> : vector<64xf32>
    %338 = vector.multi_reduction <add>, %337, %cst_200 [0, 1] : vector<4x16x64xf32> to vector<64xf32>
    %339 = vector.shape_cast %338 : vector<64xf32> to vector<1x64xf32>
    %340 = arith.addf %250, %339 : vector<1x64xf32>
    %c3_i32 = arith.constant 3 : i32
    %c4_i32_201 = arith.constant 4 : i32
    %341 = arith.muli %c3_i32, %c4_i32_201 : i32
    %342 = tpu.assume_multiple %341, 4 : i32
    %c0_i32_202 = arith.constant 0 : i32
    %343 = arith.addi %342, %c0_i32_202 : i32
    %c0_203 = arith.constant 0 : index
    %344 = arith.index_cast %343 : i32 to index
    %c7_204 = arith.constant 7 : index
    %c0_205 = arith.constant 0 : index
    %345 = vector.load %arg8[%c0_203, %344, %c7_204, %c0_205] : memref<4x17x24x128xf32, #tpu.memory_space<vmem>>, vector<1x4x16x128xf32>
    %346 = vector.shape_cast %345 : vector<1x4x16x128xf32> to vector<4x16x128xf32>
    %347 = vector.shape_cast %60 : vector<1x128xf32> to vector<1x1x128xf32>
    %348 = vector.broadcast %347 : vector<1x1x128xf32> to vector<4x16x128xf32>
    %349 = arith.mulf %346, %348 : vector<4x16x128xf32>
    %c0_i32_206 = arith.constant 0 : i32
    %350 = arith.addi %342, %c0_i32_206 : i32
    %c1_207 = arith.constant 1 : index
    %351 = arith.index_cast %350 : i32 to index
    %c8_208 = arith.constant 8 : index
    %c0_209 = arith.constant 0 : index
    %352 = vector.load %arg8[%c1_207, %351, %c8_208, %c0_209] : memref<4x17x24x128xf32, #tpu.memory_space<vmem>>, vector<1x4x16x128xf32>
    %353 = vector.shape_cast %352 : vector<1x4x16x128xf32> to vector<4x16x128xf32>
    %354 = vector.shape_cast %61 : vector<1x128xf32> to vector<1x1x128xf32>
    %355 = vector.broadcast %354 : vector<1x1x128xf32> to vector<4x16x128xf32>
    %356 = arith.mulf %353, %355 : vector<4x16x128xf32>
    %357 = arith.addf %349, %356 : vector<4x16x128xf32>
    %c0_i32_210 = arith.constant 0 : i32
    %358 = arith.addi %342, %c0_i32_210 : i32
    %c0_211 = arith.constant 0 : index
    %359 = arith.index_cast %358 : i32 to index
    %c8_212 = arith.constant 8 : index
    %c0_213 = arith.constant 0 : index
    %360 = vector.load %arg8[%c0_211, %359, %c8_212, %c0_213] : memref<4x17x24x128xf32, #tpu.memory_space<vmem>>, vector<1x4x16x128xf32>
    %361 = vector.shape_cast %360 : vector<1x4x16x128xf32> to vector<4x16x128xf32>
    %362 = vector.shape_cast %62 : vector<1x128xf32> to vector<1x1x128xf32>
    %363 = vector.broadcast %362 : vector<1x1x128xf32> to vector<4x16x128xf32>
    %364 = arith.mulf %361, %363 : vector<4x16x128xf32>
    %365 = arith.addf %357, %364 : vector<4x16x128xf32>
    %c1_i32_214 = arith.constant 1 : i32
    %366 = arith.addi %342, %c1_i32_214 : i32
    %c2_215 = arith.constant 2 : index
    %367 = arith.index_cast %366 : i32 to index
    %c7_216 = arith.constant 7 : index
    %c0_217 = arith.constant 0 : index
    %368 = vector.load %arg8[%c2_215, %367, %c7_216, %c0_217] : memref<4x17x24x128xf32, #tpu.memory_space<vmem>>, vector<1x4x16x128xf32>
    %369 = vector.shape_cast %368 : vector<1x4x16x128xf32> to vector<4x16x128xf32>
    %370 = vector.shape_cast %63 : vector<1x128xf32> to vector<1x1x128xf32>
    %371 = vector.broadcast %370 : vector<1x1x128xf32> to vector<4x16x128xf32>
    %372 = arith.mulf %369, %371 : vector<4x16x128xf32>
    %373 = arith.addf %365, %372 : vector<4x16x128xf32>
    %c1_i32_218 = arith.constant 1 : i32
    %374 = arith.addi %342, %c1_i32_218 : i32
    %c3_219 = arith.constant 3 : index
    %375 = arith.index_cast %374 : i32 to index
    %c8_220 = arith.constant 8 : index
    %c0_221 = arith.constant 0 : index
    %376 = vector.load %arg8[%c3_219, %375, %c8_220, %c0_221] : memref<4x17x24x128xf32, #tpu.memory_space<vmem>>, vector<1x4x16x128xf32>
    %377 = vector.shape_cast %376 : vector<1x4x16x128xf32> to vector<4x16x128xf32>
    %378 = vector.shape_cast %64 : vector<1x128xf32> to vector<1x1x128xf32>
    %379 = vector.broadcast %378 : vector<1x1x128xf32> to vector<4x16x128xf32>
    %380 = arith.mulf %377, %379 : vector<4x16x128xf32>
    %381 = arith.addf %373, %380 : vector<4x16x128xf32>
    %c1_i32_222 = arith.constant 1 : i32
    %382 = arith.addi %342, %c1_i32_222 : i32
    %c2_223 = arith.constant 2 : index
    %383 = arith.index_cast %382 : i32 to index
    %c8_224 = arith.constant 8 : index
    %c0_225 = arith.constant 0 : index
    %384 = vector.load %arg8[%c2_223, %383, %c8_224, %c0_225] : memref<4x17x24x128xf32, #tpu.memory_space<vmem>>, vector<1x4x16x128xf32>
    %385 = vector.shape_cast %384 : vector<1x4x16x128xf32> to vector<4x16x128xf32>
    %386 = vector.shape_cast %65 : vector<1x128xf32> to vector<1x1x128xf32>
    %387 = vector.broadcast %386 : vector<1x1x128xf32> to vector<4x16x128xf32>
    %388 = arith.mulf %385, %387 : vector<4x16x128xf32>
    %389 = arith.addf %381, %388 : vector<4x16x128xf32>
    %c1_i32_226 = arith.constant 1 : i32
    %390 = arith.addi %342, %c1_i32_226 : i32
    %c0_227 = arith.constant 0 : index
    %391 = arith.index_cast %390 : i32 to index
    %c7_228 = arith.constant 7 : index
    %c0_229 = arith.constant 0 : index
    %392 = vector.load %arg8[%c0_227, %391, %c7_228, %c0_229] : memref<4x17x24x128xf32, #tpu.memory_space<vmem>>, vector<1x4x16x128xf32>
    %393 = vector.shape_cast %392 : vector<1x4x16x128xf32> to vector<4x16x128xf32>
    %394 = vector.shape_cast %66 : vector<1x128xf32> to vector<1x1x128xf32>
    %395 = vector.broadcast %394 : vector<1x1x128xf32> to vector<4x16x128xf32>
    %396 = arith.mulf %393, %395 : vector<4x16x128xf32>
    %397 = arith.addf %389, %396 : vector<4x16x128xf32>
    %c1_i32_230 = arith.constant 1 : i32
    %398 = arith.addi %342, %c1_i32_230 : i32
    %c1_231 = arith.constant 1 : index
    %399 = arith.index_cast %398 : i32 to index
    %c8_232 = arith.constant 8 : index
    %c0_233 = arith.constant 0 : index
    %400 = vector.load %arg8[%c1_231, %399, %c8_232, %c0_233] : memref<4x17x24x128xf32, #tpu.memory_space<vmem>>, vector<1x4x16x128xf32>
    %401 = vector.shape_cast %400 : vector<1x4x16x128xf32> to vector<4x16x128xf32>
    %402 = vector.shape_cast %67 : vector<1x128xf32> to vector<1x1x128xf32>
    %403 = vector.broadcast %402 : vector<1x1x128xf32> to vector<4x16x128xf32>
    %404 = arith.mulf %401, %403 : vector<4x16x128xf32>
    %405 = arith.addf %397, %404 : vector<4x16x128xf32>
    %c1_i32_234 = arith.constant 1 : i32
    %406 = arith.addi %342, %c1_i32_234 : i32
    %c0_235 = arith.constant 0 : index
    %407 = arith.index_cast %406 : i32 to index
    %c8_236 = arith.constant 8 : index
    %c0_237 = arith.constant 0 : index
    %408 = vector.load %arg8[%c0_235, %407, %c8_236, %c0_237] : memref<4x17x24x128xf32, #tpu.memory_space<vmem>>, vector<1x4x16x128xf32>
    %409 = vector.shape_cast %408 : vector<1x4x16x128xf32> to vector<4x16x128xf32>
    %410 = vector.shape_cast %68 : vector<1x128xf32> to vector<1x1x128xf32>
    %411 = vector.broadcast %410 : vector<1x1x128xf32> to vector<4x16x128xf32>
    %412 = arith.mulf %409, %411 : vector<4x16x128xf32>
    %413 = arith.addf %405, %412 : vector<4x16x128xf32>
    %414 = vector.extract_strided_slice %413 {offsets = [0, 0, 0], sizes = [4, 16, 64], strides = [1, 1, 1]} : vector<4x16x128xf32> to vector<4x16x64xf32>
    %415 = vector.shape_cast %69 : vector<1x64xf32> to vector<1x1x64xf32>
    %416 = vector.broadcast %415 : vector<1x1x64xf32> to vector<4x16x64xf32>
    %417 = arith.addf %416, %414 : vector<4x16x64xf32>
    %418 = vector.extract_strided_slice %413 {offsets = [0, 0, 64], sizes = [4, 16, 64], strides = [1, 1, 1]} : vector<4x16x128xf32> to vector<4x16x64xf32>
    %419 = arith.addf %417, %418 : vector<4x16x64xf32>
    %c0_238 = arith.constant 0 : index
    %420 = arith.index_cast %342 : i32 to index
    %c0_239 = arith.constant 0 : index
    %c0_240 = arith.constant 0 : index
    %421 = vector.load %arg6[%c0_238, %420, %c0_239, %c0_240] : memref<1x16x16x64xf32, #tpu.memory_space<vmem>>, vector<1x4x16x64xf32>
    %422 = vector.shape_cast %421 : vector<1x4x16x64xf32> to vector<4x16x64xf32>
    %423 = vector.shape_cast %419 : vector<4x16x64xf32> to vector<1x4x16x64xf32>
    tpu.vector_store %arg6[%c0_238, %420, %c0_239, %c0_240], %423 {strides = array<i32>} : memref<1x16x16x64xf32, #tpu.memory_space<vmem>>, vector<1x4x16x64xf32>,
    %cst_241 = arith.constant dense<0.000000e+00> : vector<64xf32>
    %424 = vector.multi_reduction <add>, %419, %cst_241 [0, 1] : vector<4x16x64xf32> to vector<64xf32>
    %425 = vector.shape_cast %424 : vector<64xf32> to vector<1x64xf32>
    %426 = arith.addf %336, %425 : vector<1x64xf32>
    %427 = arith.mulf %419, %419 : vector<4x16x64xf32>
    %cst_242 = arith.constant dense<0.000000e+00> : vector<64xf32>
    %428 = vector.multi_reduction <add>, %427, %cst_242 [0, 1] : vector<4x16x64xf32> to vector<64xf32>
    %429 = vector.shape_cast %428 : vector<64xf32> to vector<1x64xf32>
    %430 = arith.addf %340, %429 : vector<1x64xf32>
    %c4_i32_243 = arith.constant 4 : i32
    %c0_244 = arith.constant 0 : index
    %c0_245 = arith.constant 0 : index
    %c0_246 = arith.constant 0 : index
    %431 = vector.load %arg7[%c0_244, %c0_245, %c0_246] : memref<1x2x64xf32, #tpu.memory_space<vmem>>, vector<1x1x64xf32>
    %432 = vector.shape_cast %431 : vector<1x1x64xf32> to vector<1x64xf32>
    %433 = vector.shape_cast %426 : vector<1x64xf32> to vector<1x1x64xf32>
    tpu.vector_store %arg7[%c0_244, %c0_245, %c0_246], %433 {strides = array<i32>} : memref<1x2x64xf32, #tpu.memory_space<vmem>>, vector<1x1x64xf32>,
    %c0_247 = arith.constant 0 : index
    %c1_248 = arith.constant 1 : index
    %c0_249 = arith.constant 0 : index
    %434 = vector.load %arg7[%c0_247, %c1_248, %c0_249] : memref<1x2x64xf32, #tpu.memory_space<vmem>>, vector<1x1x64xf32>
    %435 = vector.shape_cast %434 : vector<1x1x64xf32> to vector<1x64xf32>
    %436 = vector.shape_cast %430 : vector<1x64xf32> to vector<1x1x64xf32>
    tpu.vector_store %arg7[%c0_247, %c1_248, %c0_249], %436 {strides = array<i32>} : memref<1x2x64xf32, #tpu.memory_space<vmem>>, vector<1x1x64xf32>,
    return
  }
  func.func @transform_0(%arg0: i32) -> (i32, i32, i32, i32) {
    %c0_i32 = arith.constant 0 : i32
    %c0_i32_0 = arith.constant 0 : i32
    %c0_i32_1 = arith.constant 0 : i32
    %c0_i32_2 = arith.constant 0 : i32
    return %arg0, %c0_i32, %c0_i32_0, %c0_i32_1 : i32, i32, i32, i32
  }
  func.func @transform_1(%arg0: i32) -> (i32, i32) {
    %c0_i32 = arith.constant 0 : i32
    %c0_i32_0 = arith.constant 0 : i32
    %c0_i32_1 = arith.constant 0 : i32
    return %c0_i32, %c0_i32_0 : i32, i32
  }
  func.func @transform_2(%arg0: i32) -> (i32, i32) {
    %c0_i32 = arith.constant 0 : i32
    %c0_i32_0 = arith.constant 0 : i32
    %c0_i32_1 = arith.constant 0 : i32
    return %c0_i32, %c0_i32_0 : i32, i32
  }
  func.func @transform_3(%arg0: i32) -> (i32, i32) {
    %c0_i32 = arith.constant 0 : i32
    %c0_i32_0 = arith.constant 0 : i32
    %c0_i32_1 = arith.constant 0 : i32
    return %c0_i32, %c0_i32_0 : i32, i32
  }
  func.func @transform_4(%arg0: i32) -> (i32, i32) {
    %c0_i32 = arith.constant 0 : i32
    %c0_i32_0 = arith.constant 0 : i32
    %c0_i32_1 = arith.constant 0 : i32
    return %c0_i32, %c0_i32_0 : i32, i32
  }
  func.func @transform_5(%arg0: i32) -> (i32, i32, i32, i32) {
    %c0_i32 = arith.constant 0 : i32
    %c0_i32_0 = arith.constant 0 : i32
    %c0_i32_1 = arith.constant 0 : i32
    %c0_i32_2 = arith.constant 0 : i32
    return %arg0, %c0_i32, %c0_i32_0, %c0_i32_1 : i32, i32, i32, i32
  }
  func.func @transform_6(%arg0: i32) -> (i32, i32, i32) {
    %c0_i32 = arith.constant 0 : i32
    %c0_i32_0 = arith.constant 0 : i32
    %c0_i32_1 = arith.constant 0 : i32
    return %arg0, %c0_i32, %c0_i32_0 : i32, i32, i32
  }
}

module attributes {stable_mosaic.version = 11 : i64} {
  func.func @_falcon_conv_kernel(%arg0: i32, %arg1: memref<1x4x64x64xf32, #tpu.memory_space<vmem>>, %arg2: memref<1x64xf32, #tpu.memory_space<vmem>>, %arg3: memref<1x64xf32, #tpu.memory_space<vmem>>, %arg4: memref<64x128xbf16, #tpu.memory_space<vmem>>, %arg5: memref<1x128xf32, #tpu.memory_space<vmem>>, %arg6: memref<9x128xf32, #tpu.memory_space<vmem>>, %arg7: memref<1x64xf32, #tpu.memory_space<vmem>>, %arg8: memref<1x8x8x64xf32, #tpu.memory_space<vmem>>, %arg9: memref<1x2x64xf32, #tpu.memory_space<vmem>>, %arg10: memref<4x9x16x128xf32, #tpu.memory_space<vmem>>) attributes {dimension_semantics = [#tpu.dimension_semantics<parallel>], iteration_bounds = array<i64: 2>, scalar_prefetch = 0 : i64, scratch_operands = 1 : i64, tpu.core_type = #tpu.core_type<tc>, window_params = [{transform_indices = @transform_0, window_bounds = array<i64: 1, 4, 64, 64>}, {pipeline_mode = #tpu.pipeline_mode<synchronous>, transform_indices = @transform_1, window_bounds = array<i64: 1, 64>}, {pipeline_mode = #tpu.pipeline_mode<synchronous>, transform_indices = @transform_2, window_bounds = array<i64: 1, 64>}, {pipeline_mode = #tpu.pipeline_mode<synchronous>, transform_indices = @transform_3, window_bounds = array<i64: 64, 128>}, {pipeline_mode = #tpu.pipeline_mode<synchronous>, transform_indices = @transform_4, window_bounds = array<i64: 1, 128>}, {pipeline_mode = #tpu.pipeline_mode<synchronous>, transform_indices = @transform_5, window_bounds = array<i64: 9, 128>}, {pipeline_mode = #tpu.pipeline_mode<synchronous>, transform_indices = @transform_6, window_bounds = array<i64: 1, 64>}, {transform_indices = @transform_7, window_bounds = array<i64: 1, 8, 8, 64>}, {transform_indices = @transform_8, window_bounds = array<i64: 1, 2, 64>}]} {
    %cst = arith.constant 0.000000e+00 : f32
    %0 = vector.broadcast %cst : f32 to vector<1x16x128xf32>
    %c0 = arith.constant 0 : index
    %c0_0 = arith.constant 0 : index
    %c0_1 = arith.constant 0 : index
    %c0_2 = arith.constant 0 : index
    %1 = vector.load %arg10[%c0, %c0_0, %c0_1, %c0_2] : memref<4x9x16x128xf32, #tpu.memory_space<vmem>>, vector<1x1x16x128xf32>
    %2 = vector.shape_cast %1 : vector<1x1x16x128xf32> to vector<1x16x128xf32>
    %3 = vector.shape_cast %0 : vector<1x16x128xf32> to vector<1x1x16x128xf32>
    tpu.vector_store %arg10[%c0, %c0_0, %c0_1, %c0_2], %3 {strides = array<i32>} : memref<4x9x16x128xf32, #tpu.memory_space<vmem>>, vector<1x1x16x128xf32>,
    %cst_3 = arith.constant 0.000000e+00 : f32
    %4 = vector.broadcast %cst_3 : f32 to vector<9x1x128xf32>
    %c0_4 = arith.constant 0 : index
    %c0_5 = arith.constant 0 : index
    %c7 = arith.constant 7 : index
    %c0_6 = arith.constant 0 : index
    %5 = vector.load %arg10[%c0_4, %c0_5, %c7, %c0_6] : memref<4x9x16x128xf32, #tpu.memory_space<vmem>>, vector<1x9x1x128xf32>
    %6 = vector.shape_cast %5 : vector<1x9x1x128xf32> to vector<9x1x128xf32>
    %7 = vector.shape_cast %4 : vector<9x1x128xf32> to vector<1x9x1x128xf32>
    tpu.vector_store %arg10[%c0_4, %c0_5, %c7, %c0_6], %7 {strides = array<i32>} : memref<4x9x16x128xf32, #tpu.memory_space<vmem>>, vector<1x9x1x128xf32>,
    %cst_7 = arith.constant 0.000000e+00 : f32
    %8 = vector.broadcast %cst_7 : f32 to vector<1x16x128xf32>
    %c1 = arith.constant 1 : index
    %c0_8 = arith.constant 0 : index
    %c0_9 = arith.constant 0 : index
    %c0_10 = arith.constant 0 : index
    %9 = vector.load %arg10[%c1, %c0_8, %c0_9, %c0_10] : memref<4x9x16x128xf32, #tpu.memory_space<vmem>>, vector<1x1x16x128xf32>
    %10 = vector.shape_cast %9 : vector<1x1x16x128xf32> to vector<1x16x128xf32>
    %11 = vector.shape_cast %8 : vector<1x16x128xf32> to vector<1x1x16x128xf32>
    tpu.vector_store %arg10[%c1, %c0_8, %c0_9, %c0_10], %11 {strides = array<i32>} : memref<4x9x16x128xf32, #tpu.memory_space<vmem>>, vector<1x1x16x128xf32>,
    %cst_11 = arith.constant 0.000000e+00 : f32
    %12 = vector.broadcast %cst_11 : f32 to vector<9x1x128xf32>
    %c1_12 = arith.constant 1 : index
    %c0_13 = arith.constant 0 : index
    %c7_14 = arith.constant 7 : index
    %c0_15 = arith.constant 0 : index
    %13 = vector.load %arg10[%c1_12, %c0_13, %c7_14, %c0_15] : memref<4x9x16x128xf32, #tpu.memory_space<vmem>>, vector<1x9x1x128xf32>
    %14 = vector.shape_cast %13 : vector<1x9x1x128xf32> to vector<9x1x128xf32>
    %15 = vector.shape_cast %12 : vector<9x1x128xf32> to vector<1x9x1x128xf32>
    tpu.vector_store %arg10[%c1_12, %c0_13, %c7_14, %c0_15], %15 {strides = array<i32>} : memref<4x9x16x128xf32, #tpu.memory_space<vmem>>, vector<1x9x1x128xf32>,
    %cst_16 = arith.constant 0.000000e+00 : f32
    %16 = vector.broadcast %cst_16 : f32 to vector<1x16x128xf32>
    %c2 = arith.constant 2 : index
    %c0_17 = arith.constant 0 : index
    %c0_18 = arith.constant 0 : index
    %c0_19 = arith.constant 0 : index
    %17 = vector.load %arg10[%c2, %c0_17, %c0_18, %c0_19] : memref<4x9x16x128xf32, #tpu.memory_space<vmem>>, vector<1x1x16x128xf32>
    %18 = vector.shape_cast %17 : vector<1x1x16x128xf32> to vector<1x16x128xf32>
    %19 = vector.shape_cast %16 : vector<1x16x128xf32> to vector<1x1x16x128xf32>
    tpu.vector_store %arg10[%c2, %c0_17, %c0_18, %c0_19], %19 {strides = array<i32>} : memref<4x9x16x128xf32, #tpu.memory_space<vmem>>, vector<1x1x16x128xf32>,
    %cst_20 = arith.constant 0.000000e+00 : f32
    %20 = vector.broadcast %cst_20 : f32 to vector<9x1x128xf32>
    %c2_21 = arith.constant 2 : index
    %c0_22 = arith.constant 0 : index
    %c7_23 = arith.constant 7 : index
    %c0_24 = arith.constant 0 : index
    %21 = vector.load %arg10[%c2_21, %c0_22, %c7_23, %c0_24] : memref<4x9x16x128xf32, #tpu.memory_space<vmem>>, vector<1x9x1x128xf32>
    %22 = vector.shape_cast %21 : vector<1x9x1x128xf32> to vector<9x1x128xf32>
    %23 = vector.shape_cast %20 : vector<9x1x128xf32> to vector<1x9x1x128xf32>
    tpu.vector_store %arg10[%c2_21, %c0_22, %c7_23, %c0_24], %23 {strides = array<i32>} : memref<4x9x16x128xf32, #tpu.memory_space<vmem>>, vector<1x9x1x128xf32>,
    %cst_25 = arith.constant 0.000000e+00 : f32
    %24 = vector.broadcast %cst_25 : f32 to vector<1x16x128xf32>
    %c3 = arith.constant 3 : index
    %c0_26 = arith.constant 0 : index
    %c0_27 = arith.constant 0 : index
    %c0_28 = arith.constant 0 : index
    %25 = vector.load %arg10[%c3, %c0_26, %c0_27, %c0_28] : memref<4x9x16x128xf32, #tpu.memory_space<vmem>>, vector<1x1x16x128xf32>
    %26 = vector.shape_cast %25 : vector<1x1x16x128xf32> to vector<1x16x128xf32>
    %27 = vector.shape_cast %24 : vector<1x16x128xf32> to vector<1x1x16x128xf32>
    tpu.vector_store %arg10[%c3, %c0_26, %c0_27, %c0_28], %27 {strides = array<i32>} : memref<4x9x16x128xf32, #tpu.memory_space<vmem>>, vector<1x1x16x128xf32>,
    %cst_29 = arith.constant 0.000000e+00 : f32
    %28 = vector.broadcast %cst_29 : f32 to vector<9x1x128xf32>
    %c3_30 = arith.constant 3 : index
    %c0_31 = arith.constant 0 : index
    %c7_32 = arith.constant 7 : index
    %c0_33 = arith.constant 0 : index
    %29 = vector.load %arg10[%c3_30, %c0_31, %c7_32, %c0_33] : memref<4x9x16x128xf32, #tpu.memory_space<vmem>>, vector<1x9x1x128xf32>
    %30 = vector.shape_cast %29 : vector<1x9x1x128xf32> to vector<9x1x128xf32>
    %31 = vector.shape_cast %28 : vector<9x1x128xf32> to vector<1x9x1x128xf32>
    tpu.vector_store %arg10[%c3_30, %c0_31, %c7_32, %c0_33], %31 {strides = array<i32>} : memref<4x9x16x128xf32, #tpu.memory_space<vmem>>, vector<1x9x1x128xf32>,
    %c0_34 = arith.constant 0 : index
    %c0_35 = arith.constant 0 : index
    %c0_36 = arith.constant 0 : index
    %c0_37 = arith.constant 0 : index
    %32 = vector.load %arg1[%c0_34, %c0_35, %c0_36, %c0_37] : memref<1x4x64x64xf32, #tpu.memory_space<vmem>>, vector<1x4x64x64xf32>
    %33 = vector.shape_cast %32 : vector<1x4x64x64xf32> to vector<256x64xf32>
    %c0_38 = arith.constant 0 : index
    %c0_39 = arith.constant 0 : index
    %34 = vector.load %arg2[%c0_38, %c0_39] : memref<1x64xf32, #tpu.memory_space<vmem>>, vector<1x64xf32>
    %35 = vector.broadcast %34 : vector<1x64xf32> to vector<256x64xf32>
    %36 = arith.mulf %33, %35 : vector<256x64xf32>
    %c0_40 = arith.constant 0 : index
    %c0_41 = arith.constant 0 : index
    %37 = vector.load %arg3[%c0_40, %c0_41] : memref<1x64xf32, #tpu.memory_space<vmem>>, vector<1x64xf32>
    %38 = vector.broadcast %37 : vector<1x64xf32> to vector<256x64xf32>
    %39 = arith.addf %36, %38 : vector<256x64xf32>
    %cst_42 = arith.constant 0.000000e+00 : f32
    %40 = vector.broadcast %cst_42 : f32 to vector<256x64xf32>
    %41 = arith.maximumf %39, %40 : vector<256x64xf32>
    %42 = arith.truncf %41 : vector<256x64xf32> to vector<256x64xbf16>
    %c0_43 = arith.constant 0 : index
    %c0_44 = arith.constant 0 : index
    %43 = vector.load %arg4[%c0_43, %c0_44] : memref<64x128xbf16, #tpu.memory_space<vmem>>, vector<64x128xbf16>
    %cst_45 = arith.constant dense<0.000000e+00> : vector<256x128xf32>
    %44 = tpu.matmul %42, %43, %cst_45 {dimension_numbers = #tpu.dot_dimension_numbers<[1], [0], [0], [1], [0, 0, 1, 1], [], []>} : vector<256x64xbf16>, vector<64x128xbf16>, vector<256x128xf32> -> vector<256x128xf32>
    %c0_46 = arith.constant 0 : index
    %c0_47 = arith.constant 0 : index
    %45 = vector.load %arg5[%c0_46, %c0_47] : memref<1x128xf32, #tpu.memory_space<vmem>>, vector<1x128xf32>
    %46 = vector.broadcast %45 : vector<1x128xf32> to vector<256x128xf32>
    %47 = arith.addf %44, %46 : vector<256x128xf32>
    %48 = vector.shape_cast %47 : vector<256x128xf32> to vector<4x8x8x128xf32>
    %49 = vector.extract_strided_slice %48 {offsets = [0, 0, 0, 0], sizes = [1, 8, 8, 128], strides = [1, 1, 1, 1]} : vector<4x8x8x128xf32> to vector<1x8x8x128xf32>
    %50 = vector.shape_cast %49 : vector<1x8x8x128xf32> to vector<8x8x128xf32>
    %c0_48 = arith.constant 0 : index
    %c1_49 = arith.constant 1 : index
    %c8 = arith.constant 8 : index
    %c0_50 = arith.constant 0 : index
    %51 = vector.load %arg10[%c0_48, %c1_49, %c8, %c0_50] : memref<4x9x16x128xf32, #tpu.memory_space<vmem>>, vector<1x8x8x128xf32>
    %52 = vector.shape_cast %51 : vector<1x8x8x128xf32> to vector<8x8x128xf32>
    %53 = vector.shape_cast %50 : vector<8x8x128xf32> to vector<1x8x8x128xf32>
    tpu.vector_store %arg10[%c0_48, %c1_49, %c8, %c0_50], %53 {strides = array<i32>} : memref<4x9x16x128xf32, #tpu.memory_space<vmem>>, vector<1x8x8x128xf32>,
    %54 = vector.extract_strided_slice %48 {offsets = [1, 0, 0, 0], sizes = [1, 8, 8, 128], strides = [1, 1, 1, 1]} : vector<4x8x8x128xf32> to vector<1x8x8x128xf32>
    %55 = vector.shape_cast %54 : vector<1x8x8x128xf32> to vector<8x8x128xf32>
    %c1_51 = arith.constant 1 : index
    %c1_52 = arith.constant 1 : index
    %c8_53 = arith.constant 8 : index
    %c0_54 = arith.constant 0 : index
    %56 = vector.load %arg10[%c1_51, %c1_52, %c8_53, %c0_54] : memref<4x9x16x128xf32, #tpu.memory_space<vmem>>, vector<1x8x8x128xf32>
    %57 = vector.shape_cast %56 : vector<1x8x8x128xf32> to vector<8x8x128xf32>
    %58 = vector.shape_cast %55 : vector<8x8x128xf32> to vector<1x8x8x128xf32>
    tpu.vector_store %arg10[%c1_51, %c1_52, %c8_53, %c0_54], %58 {strides = array<i32>} : memref<4x9x16x128xf32, #tpu.memory_space<vmem>>, vector<1x8x8x128xf32>,
    %59 = vector.extract_strided_slice %48 {offsets = [2, 0, 0, 0], sizes = [1, 8, 8, 128], strides = [1, 1, 1, 1]} : vector<4x8x8x128xf32> to vector<1x8x8x128xf32>
    %60 = vector.shape_cast %59 : vector<1x8x8x128xf32> to vector<8x8x128xf32>
    %c2_55 = arith.constant 2 : index
    %c1_56 = arith.constant 1 : index
    %c8_57 = arith.constant 8 : index
    %c0_58 = arith.constant 0 : index
    %61 = vector.load %arg10[%c2_55, %c1_56, %c8_57, %c0_58] : memref<4x9x16x128xf32, #tpu.memory_space<vmem>>, vector<1x8x8x128xf32>
    %62 = vector.shape_cast %61 : vector<1x8x8x128xf32> to vector<8x8x128xf32>
    %63 = vector.shape_cast %60 : vector<8x8x128xf32> to vector<1x8x8x128xf32>
    tpu.vector_store %arg10[%c2_55, %c1_56, %c8_57, %c0_58], %63 {strides = array<i32>} : memref<4x9x16x128xf32, #tpu.memory_space<vmem>>, vector<1x8x8x128xf32>,
    %64 = vector.extract_strided_slice %48 {offsets = [3, 0, 0, 0], sizes = [1, 8, 8, 128], strides = [1, 1, 1, 1]} : vector<4x8x8x128xf32> to vector<1x8x8x128xf32>
    %65 = vector.shape_cast %64 : vector<1x8x8x128xf32> to vector<8x8x128xf32>
    %c3_59 = arith.constant 3 : index
    %c1_60 = arith.constant 1 : index
    %c8_61 = arith.constant 8 : index
    %c0_62 = arith.constant 0 : index
    %66 = vector.load %arg10[%c3_59, %c1_60, %c8_61, %c0_62] : memref<4x9x16x128xf32, #tpu.memory_space<vmem>>, vector<1x8x8x128xf32>
    %67 = vector.shape_cast %66 : vector<1x8x8x128xf32> to vector<8x8x128xf32>
    %68 = vector.shape_cast %65 : vector<8x8x128xf32> to vector<1x8x8x128xf32>
    tpu.vector_store %arg10[%c3_59, %c1_60, %c8_61, %c0_62], %68 {strides = array<i32>} : memref<4x9x16x128xf32, #tpu.memory_space<vmem>>, vector<1x8x8x128xf32>,
    %c0_63 = arith.constant 0 : index
    %c0_64 = arith.constant 0 : index
    %69 = vector.load %arg6[%c0_63, %c0_64] : memref<9x128xf32, #tpu.memory_space<vmem>>, vector<1x128xf32>
    %c1_65 = arith.constant 1 : index
    %c0_66 = arith.constant 0 : index
    %70 = vector.load %arg6[%c1_65, %c0_66] : memref<9x128xf32, #tpu.memory_space<vmem>>, vector<1x128xf32>
    %c2_67 = arith.constant 2 : index
    %c0_68 = arith.constant 0 : index
    %71 = vector.load %arg6[%c2_67, %c0_68] : memref<9x128xf32, #tpu.memory_space<vmem>>, vector<1x128xf32>
    %c3_69 = arith.constant 3 : index
    %c0_70 = arith.constant 0 : index
    %72 = vector.load %arg6[%c3_69, %c0_70] : memref<9x128xf32, #tpu.memory_space<vmem>>, vector<1x128xf32>
    %c4 = arith.constant 4 : index
    %c0_71 = arith.constant 0 : index
    %73 = vector.load %arg6[%c4, %c0_71] : memref<9x128xf32, #tpu.memory_space<vmem>>, vector<1x128xf32>
    %c5 = arith.constant 5 : index
    %c0_72 = arith.constant 0 : index
    %74 = vector.load %arg6[%c5, %c0_72] : memref<9x128xf32, #tpu.memory_space<vmem>>, vector<1x128xf32>
    %c6 = arith.constant 6 : index
    %c0_73 = arith.constant 0 : index
    %75 = vector.load %arg6[%c6, %c0_73] : memref<9x128xf32, #tpu.memory_space<vmem>>, vector<1x128xf32>
    %c7_74 = arith.constant 7 : index
    %c0_75 = arith.constant 0 : index
    %76 = vector.load %arg6[%c7_74, %c0_75] : memref<9x128xf32, #tpu.memory_space<vmem>>, vector<1x128xf32>
    %c8_76 = arith.constant 8 : index
    %c0_77 = arith.constant 0 : index
    %77 = vector.load %arg6[%c8_76, %c0_77] : memref<9x128xf32, #tpu.memory_space<vmem>>, vector<1x128xf32>
    %c0_78 = arith.constant 0 : index
    %c0_79 = arith.constant 0 : index
    %78 = vector.load %arg7[%c0_78, %c0_79] : memref<1x64xf32, #tpu.memory_space<vmem>>, vector<1x64xf32>
    %cst_80 = arith.constant 0.000000e+00 : f32
    %79 = vector.broadcast %cst_80 : f32 to vector<1x64xf32>
    %c0_i32 = arith.constant 0 : i32
    %c4_i32 = arith.constant 4 : i32
    %80 = arith.muli %c0_i32, %c4_i32 : i32
    %81 = tpu.assume_multiple %80, 4 : i32
    %c0_i32_81 = arith.constant 0 : i32
    %82 = arith.addi %81, %c0_i32_81 : i32
    %c0_82 = arith.constant 0 : index
    %83 = arith.index_cast %82 : i32 to index
    %c7_83 = arith.constant 7 : index
    %c0_84 = arith.constant 0 : index
    %84 = vector.load %arg10[%c0_82, %83, %c7_83, %c0_84] : memref<4x9x16x128xf32, #tpu.memory_space<vmem>>, vector<1x4x8x128xf32>
    %85 = vector.shape_cast %84 : vector<1x4x8x128xf32> to vector<4x8x128xf32>
    %86 = vector.shape_cast %69 : vector<1x128xf32> to vector<1x1x128xf32>
    %87 = vector.broadcast %86 : vector<1x1x128xf32> to vector<4x8x128xf32>
    %88 = arith.mulf %85, %87 : vector<4x8x128xf32>
    %c0_i32_85 = arith.constant 0 : i32
    %89 = arith.addi %81, %c0_i32_85 : i32
    %c1_86 = arith.constant 1 : index
    %90 = arith.index_cast %89 : i32 to index
    %c8_87 = arith.constant 8 : index
    %c0_88 = arith.constant 0 : index
    %91 = vector.load %arg10[%c1_86, %90, %c8_87, %c0_88] : memref<4x9x16x128xf32, #tpu.memory_space<vmem>>, vector<1x4x8x128xf32>
    %92 = vector.shape_cast %91 : vector<1x4x8x128xf32> to vector<4x8x128xf32>
    %93 = vector.shape_cast %70 : vector<1x128xf32> to vector<1x1x128xf32>
    %94 = vector.broadcast %93 : vector<1x1x128xf32> to vector<4x8x128xf32>
    %95 = arith.mulf %92, %94 : vector<4x8x128xf32>
    %96 = arith.addf %88, %95 : vector<4x8x128xf32>
    %c0_i32_89 = arith.constant 0 : i32
    %97 = arith.addi %81, %c0_i32_89 : i32
    %c0_90 = arith.constant 0 : index
    %98 = arith.index_cast %97 : i32 to index
    %c8_91 = arith.constant 8 : index
    %c0_92 = arith.constant 0 : index
    %99 = vector.load %arg10[%c0_90, %98, %c8_91, %c0_92] : memref<4x9x16x128xf32, #tpu.memory_space<vmem>>, vector<1x4x8x128xf32>
    %100 = vector.shape_cast %99 : vector<1x4x8x128xf32> to vector<4x8x128xf32>
    %101 = vector.shape_cast %71 : vector<1x128xf32> to vector<1x1x128xf32>
    %102 = vector.broadcast %101 : vector<1x1x128xf32> to vector<4x8x128xf32>
    %103 = arith.mulf %100, %102 : vector<4x8x128xf32>
    %104 = arith.addf %96, %103 : vector<4x8x128xf32>
    %c1_i32 = arith.constant 1 : i32
    %105 = arith.addi %81, %c1_i32 : i32
    %c2_93 = arith.constant 2 : index
    %106 = arith.index_cast %105 : i32 to index
    %c7_94 = arith.constant 7 : index
    %c0_95 = arith.constant 0 : index
    %107 = vector.load %arg10[%c2_93, %106, %c7_94, %c0_95] : memref<4x9x16x128xf32, #tpu.memory_space<vmem>>, vector<1x4x8x128xf32>
    %108 = vector.shape_cast %107 : vector<1x4x8x128xf32> to vector<4x8x128xf32>
    %109 = vector.shape_cast %72 : vector<1x128xf32> to vector<1x1x128xf32>
    %110 = vector.broadcast %109 : vector<1x1x128xf32> to vector<4x8x128xf32>
    %111 = arith.mulf %108, %110 : vector<4x8x128xf32>
    %112 = arith.addf %104, %111 : vector<4x8x128xf32>
    %c1_i32_96 = arith.constant 1 : i32
    %113 = arith.addi %81, %c1_i32_96 : i32
    %c3_97 = arith.constant 3 : index
    %114 = arith.index_cast %113 : i32 to index
    %c8_98 = arith.constant 8 : index
    %c0_99 = arith.constant 0 : index
    %115 = vector.load %arg10[%c3_97, %114, %c8_98, %c0_99] : memref<4x9x16x128xf32, #tpu.memory_space<vmem>>, vector<1x4x8x128xf32>
    %116 = vector.shape_cast %115 : vector<1x4x8x128xf32> to vector<4x8x128xf32>
    %117 = vector.shape_cast %73 : vector<1x128xf32> to vector<1x1x128xf32>
    %118 = vector.broadcast %117 : vector<1x1x128xf32> to vector<4x8x128xf32>
    %119 = arith.mulf %116, %118 : vector<4x8x128xf32>
    %120 = arith.addf %112, %119 : vector<4x8x128xf32>
    %c1_i32_100 = arith.constant 1 : i32
    %121 = arith.addi %81, %c1_i32_100 : i32
    %c2_101 = arith.constant 2 : index
    %122 = arith.index_cast %121 : i32 to index
    %c8_102 = arith.constant 8 : index
    %c0_103 = arith.constant 0 : index
    %123 = vector.load %arg10[%c2_101, %122, %c8_102, %c0_103] : memref<4x9x16x128xf32, #tpu.memory_space<vmem>>, vector<1x4x8x128xf32>
    %124 = vector.shape_cast %123 : vector<1x4x8x128xf32> to vector<4x8x128xf32>
    %125 = vector.shape_cast %74 : vector<1x128xf32> to vector<1x1x128xf32>
    %126 = vector.broadcast %125 : vector<1x1x128xf32> to vector<4x8x128xf32>
    %127 = arith.mulf %124, %126 : vector<4x8x128xf32>
    %128 = arith.addf %120, %127 : vector<4x8x128xf32>
    %c1_i32_104 = arith.constant 1 : i32
    %129 = arith.addi %81, %c1_i32_104 : i32
    %c0_105 = arith.constant 0 : index
    %130 = arith.index_cast %129 : i32 to index
    %c7_106 = arith.constant 7 : index
    %c0_107 = arith.constant 0 : index
    %131 = vector.load %arg10[%c0_105, %130, %c7_106, %c0_107] : memref<4x9x16x128xf32, #tpu.memory_space<vmem>>, vector<1x4x8x128xf32>
    %132 = vector.shape_cast %131 : vector<1x4x8x128xf32> to vector<4x8x128xf32>
    %133 = vector.shape_cast %75 : vector<1x128xf32> to vector<1x1x128xf32>
    %134 = vector.broadcast %133 : vector<1x1x128xf32> to vector<4x8x128xf32>
    %135 = arith.mulf %132, %134 : vector<4x8x128xf32>
    %136 = arith.addf %128, %135 : vector<4x8x128xf32>
    %c1_i32_108 = arith.constant 1 : i32
    %137 = arith.addi %81, %c1_i32_108 : i32
    %c1_109 = arith.constant 1 : index
    %138 = arith.index_cast %137 : i32 to index
    %c8_110 = arith.constant 8 : index
    %c0_111 = arith.constant 0 : index
    %139 = vector.load %arg10[%c1_109, %138, %c8_110, %c0_111] : memref<4x9x16x128xf32, #tpu.memory_space<vmem>>, vector<1x4x8x128xf32>
    %140 = vector.shape_cast %139 : vector<1x4x8x128xf32> to vector<4x8x128xf32>
    %141 = vector.shape_cast %76 : vector<1x128xf32> to vector<1x1x128xf32>
    %142 = vector.broadcast %141 : vector<1x1x128xf32> to vector<4x8x128xf32>
    %143 = arith.mulf %140, %142 : vector<4x8x128xf32>
    %144 = arith.addf %136, %143 : vector<4x8x128xf32>
    %c1_i32_112 = arith.constant 1 : i32
    %145 = arith.addi %81, %c1_i32_112 : i32
    %c0_113 = arith.constant 0 : index
    %146 = arith.index_cast %145 : i32 to index
    %c8_114 = arith.constant 8 : index
    %c0_115 = arith.constant 0 : index
    %147 = vector.load %arg10[%c0_113, %146, %c8_114, %c0_115] : memref<4x9x16x128xf32, #tpu.memory_space<vmem>>, vector<1x4x8x128xf32>
    %148 = vector.shape_cast %147 : vector<1x4x8x128xf32> to vector<4x8x128xf32>
    %149 = vector.shape_cast %77 : vector<1x128xf32> to vector<1x1x128xf32>
    %150 = vector.broadcast %149 : vector<1x1x128xf32> to vector<4x8x128xf32>
    %151 = arith.mulf %148, %150 : vector<4x8x128xf32>
    %152 = arith.addf %144, %151 : vector<4x8x128xf32>
    %153 = vector.extract_strided_slice %152 {offsets = [0, 0, 0], sizes = [4, 8, 64], strides = [1, 1, 1]} : vector<4x8x128xf32> to vector<4x8x64xf32>
    %154 = vector.shape_cast %78 : vector<1x64xf32> to vector<1x1x64xf32>
    %155 = vector.broadcast %154 : vector<1x1x64xf32> to vector<4x8x64xf32>
    %156 = arith.addf %155, %153 : vector<4x8x64xf32>
    %157 = vector.extract_strided_slice %152 {offsets = [0, 0, 64], sizes = [4, 8, 64], strides = [1, 1, 1]} : vector<4x8x128xf32> to vector<4x8x64xf32>
    %158 = arith.addf %156, %157 : vector<4x8x64xf32>
    %c0_116 = arith.constant 0 : index
    %159 = arith.index_cast %81 : i32 to index
    %c0_117 = arith.constant 0 : index
    %c0_118 = arith.constant 0 : index
    %160 = vector.load %arg8[%c0_116, %159, %c0_117, %c0_118] : memref<1x8x8x64xf32, #tpu.memory_space<vmem>>, vector<1x4x8x64xf32>
    %161 = vector.shape_cast %160 : vector<1x4x8x64xf32> to vector<4x8x64xf32>
    %162 = vector.shape_cast %158 : vector<4x8x64xf32> to vector<1x4x8x64xf32>
    tpu.vector_store %arg8[%c0_116, %159, %c0_117, %c0_118], %162 {strides = array<i32>} : memref<1x8x8x64xf32, #tpu.memory_space<vmem>>, vector<1x4x8x64xf32>,
    %cst_119 = arith.constant dense<0.000000e+00> : vector<64xf32>
    %163 = vector.multi_reduction <add>, %158, %cst_119 [0, 1] : vector<4x8x64xf32> to vector<64xf32>
    %164 = vector.shape_cast %163 : vector<64xf32> to vector<1x64xf32>
    %165 = arith.addf %79, %164 : vector<1x64xf32>
    %166 = arith.mulf %158, %158 : vector<4x8x64xf32>
    %cst_120 = arith.constant dense<0.000000e+00> : vector<64xf32>
    %167 = vector.multi_reduction <add>, %166, %cst_120 [0, 1] : vector<4x8x64xf32> to vector<64xf32>
    %168 = vector.shape_cast %167 : vector<64xf32> to vector<1x64xf32>
    %169 = arith.addf %79, %168 : vector<1x64xf32>
    %c1_i32_121 = arith.constant 1 : i32
    %c4_i32_122 = arith.constant 4 : i32
    %170 = arith.muli %c1_i32_121, %c4_i32_122 : i32
    %171 = tpu.assume_multiple %170, 4 : i32
    %c0_i32_123 = arith.constant 0 : i32
    %172 = arith.addi %171, %c0_i32_123 : i32
    %c0_124 = arith.constant 0 : index
    %173 = arith.index_cast %172 : i32 to index
    %c7_125 = arith.constant 7 : index
    %c0_126 = arith.constant 0 : index
    %174 = vector.load %arg10[%c0_124, %173, %c7_125, %c0_126] : memref<4x9x16x128xf32, #tpu.memory_space<vmem>>, vector<1x4x8x128xf32>
    %175 = vector.shape_cast %174 : vector<1x4x8x128xf32> to vector<4x8x128xf32>
    %176 = vector.shape_cast %69 : vector<1x128xf32> to vector<1x1x128xf32>
    %177 = vector.broadcast %176 : vector<1x1x128xf32> to vector<4x8x128xf32>
    %178 = arith.mulf %175, %177 : vector<4x8x128xf32>
    %c0_i32_127 = arith.constant 0 : i32
    %179 = arith.addi %171, %c0_i32_127 : i32
    %c1_128 = arith.constant 1 : index
    %180 = arith.index_cast %179 : i32 to index
    %c8_129 = arith.constant 8 : index
    %c0_130 = arith.constant 0 : index
    %181 = vector.load %arg10[%c1_128, %180, %c8_129, %c0_130] : memref<4x9x16x128xf32, #tpu.memory_space<vmem>>, vector<1x4x8x128xf32>
    %182 = vector.shape_cast %181 : vector<1x4x8x128xf32> to vector<4x8x128xf32>
    %183 = vector.shape_cast %70 : vector<1x128xf32> to vector<1x1x128xf32>
    %184 = vector.broadcast %183 : vector<1x1x128xf32> to vector<4x8x128xf32>
    %185 = arith.mulf %182, %184 : vector<4x8x128xf32>
    %186 = arith.addf %178, %185 : vector<4x8x128xf32>
    %c0_i32_131 = arith.constant 0 : i32
    %187 = arith.addi %171, %c0_i32_131 : i32
    %c0_132 = arith.constant 0 : index
    %188 = arith.index_cast %187 : i32 to index
    %c8_133 = arith.constant 8 : index
    %c0_134 = arith.constant 0 : index
    %189 = vector.load %arg10[%c0_132, %188, %c8_133, %c0_134] : memref<4x9x16x128xf32, #tpu.memory_space<vmem>>, vector<1x4x8x128xf32>
    %190 = vector.shape_cast %189 : vector<1x4x8x128xf32> to vector<4x8x128xf32>
    %191 = vector.shape_cast %71 : vector<1x128xf32> to vector<1x1x128xf32>
    %192 = vector.broadcast %191 : vector<1x1x128xf32> to vector<4x8x128xf32>
    %193 = arith.mulf %190, %192 : vector<4x8x128xf32>
    %194 = arith.addf %186, %193 : vector<4x8x128xf32>
    %c1_i32_135 = arith.constant 1 : i32
    %195 = arith.addi %171, %c1_i32_135 : i32
    %c2_136 = arith.constant 2 : index
    %196 = arith.index_cast %195 : i32 to index
    %c7_137 = arith.constant 7 : index
    %c0_138 = arith.constant 0 : index
    %197 = vector.load %arg10[%c2_136, %196, %c7_137, %c0_138] : memref<4x9x16x128xf32, #tpu.memory_space<vmem>>, vector<1x4x8x128xf32>
    %198 = vector.shape_cast %197 : vector<1x4x8x128xf32> to vector<4x8x128xf32>
    %199 = vector.shape_cast %72 : vector<1x128xf32> to vector<1x1x128xf32>
    %200 = vector.broadcast %199 : vector<1x1x128xf32> to vector<4x8x128xf32>
    %201 = arith.mulf %198, %200 : vector<4x8x128xf32>
    %202 = arith.addf %194, %201 : vector<4x8x128xf32>
    %c1_i32_139 = arith.constant 1 : i32
    %203 = arith.addi %171, %c1_i32_139 : i32
    %c3_140 = arith.constant 3 : index
    %204 = arith.index_cast %203 : i32 to index
    %c8_141 = arith.constant 8 : index
    %c0_142 = arith.constant 0 : index
    %205 = vector.load %arg10[%c3_140, %204, %c8_141, %c0_142] : memref<4x9x16x128xf32, #tpu.memory_space<vmem>>, vector<1x4x8x128xf32>
    %206 = vector.shape_cast %205 : vector<1x4x8x128xf32> to vector<4x8x128xf32>
    %207 = vector.shape_cast %73 : vector<1x128xf32> to vector<1x1x128xf32>
    %208 = vector.broadcast %207 : vector<1x1x128xf32> to vector<4x8x128xf32>
    %209 = arith.mulf %206, %208 : vector<4x8x128xf32>
    %210 = arith.addf %202, %209 : vector<4x8x128xf32>
    %c1_i32_143 = arith.constant 1 : i32
    %211 = arith.addi %171, %c1_i32_143 : i32
    %c2_144 = arith.constant 2 : index
    %212 = arith.index_cast %211 : i32 to index
    %c8_145 = arith.constant 8 : index
    %c0_146 = arith.constant 0 : index
    %213 = vector.load %arg10[%c2_144, %212, %c8_145, %c0_146] : memref<4x9x16x128xf32, #tpu.memory_space<vmem>>, vector<1x4x8x128xf32>
    %214 = vector.shape_cast %213 : vector<1x4x8x128xf32> to vector<4x8x128xf32>
    %215 = vector.shape_cast %74 : vector<1x128xf32> to vector<1x1x128xf32>
    %216 = vector.broadcast %215 : vector<1x1x128xf32> to vector<4x8x128xf32>
    %217 = arith.mulf %214, %216 : vector<4x8x128xf32>
    %218 = arith.addf %210, %217 : vector<4x8x128xf32>
    %c1_i32_147 = arith.constant 1 : i32
    %219 = arith.addi %171, %c1_i32_147 : i32
    %c0_148 = arith.constant 0 : index
    %220 = arith.index_cast %219 : i32 to index
    %c7_149 = arith.constant 7 : index
    %c0_150 = arith.constant 0 : index
    %221 = vector.load %arg10[%c0_148, %220, %c7_149, %c0_150] : memref<4x9x16x128xf32, #tpu.memory_space<vmem>>, vector<1x4x8x128xf32>
    %222 = vector.shape_cast %221 : vector<1x4x8x128xf32> to vector<4x8x128xf32>
    %223 = vector.shape_cast %75 : vector<1x128xf32> to vector<1x1x128xf32>
    %224 = vector.broadcast %223 : vector<1x1x128xf32> to vector<4x8x128xf32>
    %225 = arith.mulf %222, %224 : vector<4x8x128xf32>
    %226 = arith.addf %218, %225 : vector<4x8x128xf32>
    %c1_i32_151 = arith.constant 1 : i32
    %227 = arith.addi %171, %c1_i32_151 : i32
    %c1_152 = arith.constant 1 : index
    %228 = arith.index_cast %227 : i32 to index
    %c8_153 = arith.constant 8 : index
    %c0_154 = arith.constant 0 : index
    %229 = vector.load %arg10[%c1_152, %228, %c8_153, %c0_154] : memref<4x9x16x128xf32, #tpu.memory_space<vmem>>, vector<1x4x8x128xf32>
    %230 = vector.shape_cast %229 : vector<1x4x8x128xf32> to vector<4x8x128xf32>
    %231 = vector.shape_cast %76 : vector<1x128xf32> to vector<1x1x128xf32>
    %232 = vector.broadcast %231 : vector<1x1x128xf32> to vector<4x8x128xf32>
    %233 = arith.mulf %230, %232 : vector<4x8x128xf32>
    %234 = arith.addf %226, %233 : vector<4x8x128xf32>
    %c1_i32_155 = arith.constant 1 : i32
    %235 = arith.addi %171, %c1_i32_155 : i32
    %c0_156 = arith.constant 0 : index
    %236 = arith.index_cast %235 : i32 to index
    %c8_157 = arith.constant 8 : index
    %c0_158 = arith.constant 0 : index
    %237 = vector.load %arg10[%c0_156, %236, %c8_157, %c0_158] : memref<4x9x16x128xf32, #tpu.memory_space<vmem>>, vector<1x4x8x128xf32>
    %238 = vector.shape_cast %237 : vector<1x4x8x128xf32> to vector<4x8x128xf32>
    %239 = vector.shape_cast %77 : vector<1x128xf32> to vector<1x1x128xf32>
    %240 = vector.broadcast %239 : vector<1x1x128xf32> to vector<4x8x128xf32>
    %241 = arith.mulf %238, %240 : vector<4x8x128xf32>
    %242 = arith.addf %234, %241 : vector<4x8x128xf32>
    %243 = vector.extract_strided_slice %242 {offsets = [0, 0, 0], sizes = [4, 8, 64], strides = [1, 1, 1]} : vector<4x8x128xf32> to vector<4x8x64xf32>
    %244 = vector.shape_cast %78 : vector<1x64xf32> to vector<1x1x64xf32>
    %245 = vector.broadcast %244 : vector<1x1x64xf32> to vector<4x8x64xf32>
    %246 = arith.addf %245, %243 : vector<4x8x64xf32>
    %247 = vector.extract_strided_slice %242 {offsets = [0, 0, 64], sizes = [4, 8, 64], strides = [1, 1, 1]} : vector<4x8x128xf32> to vector<4x8x64xf32>
    %248 = arith.addf %246, %247 : vector<4x8x64xf32>
    %c0_159 = arith.constant 0 : index
    %249 = arith.index_cast %171 : i32 to index
    %c0_160 = arith.constant 0 : index
    %c0_161 = arith.constant 0 : index
    %250 = vector.load %arg8[%c0_159, %249, %c0_160, %c0_161] : memref<1x8x8x64xf32, #tpu.memory_space<vmem>>, vector<1x4x8x64xf32>
    %251 = vector.shape_cast %250 : vector<1x4x8x64xf32> to vector<4x8x64xf32>
    %252 = vector.shape_cast %248 : vector<4x8x64xf32> to vector<1x4x8x64xf32>
    tpu.vector_store %arg8[%c0_159, %249, %c0_160, %c0_161], %252 {strides = array<i32>} : memref<1x8x8x64xf32, #tpu.memory_space<vmem>>, vector<1x4x8x64xf32>,
    %cst_162 = arith.constant dense<0.000000e+00> : vector<64xf32>
    %253 = vector.multi_reduction <add>, %248, %cst_162 [0, 1] : vector<4x8x64xf32> to vector<64xf32>
    %254 = vector.shape_cast %253 : vector<64xf32> to vector<1x64xf32>
    %255 = arith.addf %165, %254 : vector<1x64xf32>
    %256 = arith.mulf %248, %248 : vector<4x8x64xf32>
    %cst_163 = arith.constant dense<0.000000e+00> : vector<64xf32>
    %257 = vector.multi_reduction <add>, %256, %cst_163 [0, 1] : vector<4x8x64xf32> to vector<64xf32>
    %258 = vector.shape_cast %257 : vector<64xf32> to vector<1x64xf32>
    %259 = arith.addf %169, %258 : vector<1x64xf32>
    %c2_i32 = arith.constant 2 : i32
    %c0_164 = arith.constant 0 : index
    %c0_165 = arith.constant 0 : index
    %c0_166 = arith.constant 0 : index
    %260 = vector.load %arg9[%c0_164, %c0_165, %c0_166] : memref<1x2x64xf32, #tpu.memory_space<vmem>>, vector<1x1x64xf32>
    %261 = vector.shape_cast %260 : vector<1x1x64xf32> to vector<1x64xf32>
    %262 = vector.shape_cast %255 : vector<1x64xf32> to vector<1x1x64xf32>
    tpu.vector_store %arg9[%c0_164, %c0_165, %c0_166], %262 {strides = array<i32>} : memref<1x2x64xf32, #tpu.memory_space<vmem>>, vector<1x1x64xf32>,
    %c0_167 = arith.constant 0 : index
    %c1_168 = arith.constant 1 : index
    %c0_169 = arith.constant 0 : index
    %263 = vector.load %arg9[%c0_167, %c1_168, %c0_169] : memref<1x2x64xf32, #tpu.memory_space<vmem>>, vector<1x1x64xf32>
    %264 = vector.shape_cast %263 : vector<1x1x64xf32> to vector<1x64xf32>
    %265 = vector.shape_cast %259 : vector<1x64xf32> to vector<1x1x64xf32>
    tpu.vector_store %arg9[%c0_167, %c1_168, %c0_169], %265 {strides = array<i32>} : memref<1x2x64xf32, #tpu.memory_space<vmem>>, vector<1x1x64xf32>,
    return
  }
  func.func @transform_0(%arg0: i32) -> (i32, i32, i32, i32) {
    %c0_i32 = arith.constant 0 : i32
    %c0_i32_0 = arith.constant 0 : i32
    %c0_i32_1 = arith.constant 0 : i32
    %c0_i32_2 = arith.constant 0 : i32
    return %arg0, %c0_i32, %c0_i32_0, %c0_i32_1 : i32, i32, i32, i32
  }
  func.func @transform_1(%arg0: i32) -> (i32, i32) {
    %c0_i32 = arith.constant 0 : i32
    %c0_i32_0 = arith.constant 0 : i32
    %c0_i32_1 = arith.constant 0 : i32
    return %c0_i32, %c0_i32_0 : i32, i32
  }
  func.func @transform_2(%arg0: i32) -> (i32, i32) {
    %c0_i32 = arith.constant 0 : i32
    %c0_i32_0 = arith.constant 0 : i32
    %c0_i32_1 = arith.constant 0 : i32
    return %c0_i32, %c0_i32_0 : i32, i32
  }
  func.func @transform_3(%arg0: i32) -> (i32, i32) {
    %c0_i32 = arith.constant 0 : i32
    %c0_i32_0 = arith.constant 0 : i32
    %c0_i32_1 = arith.constant 0 : i32
    return %c0_i32, %c0_i32_0 : i32, i32
  }
  func.func @transform_4(%arg0: i32) -> (i32, i32) {
    %c0_i32 = arith.constant 0 : i32
    %c0_i32_0 = arith.constant 0 : i32
    %c0_i32_1 = arith.constant 0 : i32
    return %c0_i32, %c0_i32_0 : i32, i32
  }
  func.func @transform_5(%arg0: i32) -> (i32, i32) {
    %c0_i32 = arith.constant 0 : i32
    %c0_i32_0 = arith.constant 0 : i32
    %c0_i32_1 = arith.constant 0 : i32
    return %c0_i32, %c0_i32_0 : i32, i32
  }
  func.func @transform_6(%arg0: i32) -> (i32, i32) {
    %c0_i32 = arith.constant 0 : i32
    %c0_i32_0 = arith.constant 0 : i32
    %c0_i32_1 = arith.constant 0 : i32
    return %c0_i32, %c0_i32_0 : i32, i32
  }
  func.func @transform_7(%arg0: i32) -> (i32, i32, i32, i32) {
    %c0_i32 = arith.constant 0 : i32
    %c0_i32_0 = arith.constant 0 : i32
    %c0_i32_1 = arith.constant 0 : i32
    %c0_i32_2 = arith.constant 0 : i32
    return %arg0, %c0_i32, %c0_i32_0, %c0_i32_1 : i32, i32, i32, i32
  }
  func.func @transform_8(%arg0: i32) -> (i32, i32, i32) {
    %c0_i32 = arith.constant 0 : i32
    %c0_i32_0 = arith.constant 0 : i32
    %c0_i32_1 = arith.constant 0 : i32
    return %arg0, %c0_i32, %c0_i32_0 : i32, i32, i32
  }
}

module attributes {stable_mosaic.version = 11 : i64} {
  func.func @_fc_fused_kernel(%arg0: i32, %arg1: memref<2x4096xf32, #tpu.memory_space<vmem>>, %arg2: memref<1x4096xf32, #tpu.memory_space<vmem>>, %arg3: memref<1x4096xf32, #tpu.memory_space<vmem>>, %arg4: memref<4096x384xbf16, #tpu.memory_space<vmem>>, %arg5: memref<1x384xf32, #tpu.memory_space<vmem>>, %arg6: memref<384x192xbf16, #tpu.memory_space<vmem>>, %arg7: memref<1x192xf32, #tpu.memory_space<vmem>>, %arg8: memref<192x10xbf16, #tpu.memory_space<vmem>>, %arg9: memref<1x10xf32, #tpu.memory_space<vmem>>, %arg10: memref<2x10xf32, #tpu.memory_space<vmem>>) attributes {dimension_semantics = [#tpu.dimension_semantics<arbitrary>], iteration_bounds = array<i64: 1>, scalar_prefetch = 0 : i64, scratch_operands = 0 : i64, tpu.core_type = #tpu.core_type<tc>, window_params = [{pipeline_mode = #tpu.pipeline_mode<synchronous>, transform_indices = @transform_0, window_bounds = array<i64: 2, 4096>}, {pipeline_mode = #tpu.pipeline_mode<synchronous>, transform_indices = @transform_1, window_bounds = array<i64: 1, 4096>}, {pipeline_mode = #tpu.pipeline_mode<synchronous>, transform_indices = @transform_2, window_bounds = array<i64: 1, 4096>}, {pipeline_mode = #tpu.pipeline_mode<synchronous>, transform_indices = @transform_3, window_bounds = array<i64: 4096, 384>}, {pipeline_mode = #tpu.pipeline_mode<synchronous>, transform_indices = @transform_4, window_bounds = array<i64: 1, 384>}, {pipeline_mode = #tpu.pipeline_mode<synchronous>, transform_indices = @transform_5, window_bounds = array<i64: 384, 192>}, {pipeline_mode = #tpu.pipeline_mode<synchronous>, transform_indices = @transform_6, window_bounds = array<i64: 1, 192>}, {pipeline_mode = #tpu.pipeline_mode<synchronous>, transform_indices = @transform_7, window_bounds = array<i64: 192, 10>}, {pipeline_mode = #tpu.pipeline_mode<synchronous>, transform_indices = @transform_8, window_bounds = array<i64: 1, 10>}, {pipeline_mode = #tpu.pipeline_mode<synchronous>, transform_indices = @transform_9, window_bounds = array<i64: 2, 10>}]} {
    %c0 = arith.constant 0 : index
    %c0_0 = arith.constant 0 : index
    %0 = vector.load %arg1[%c0, %c0_0] : memref<2x4096xf32, #tpu.memory_space<vmem>>, vector<2x4096xf32>
    %c0_1 = arith.constant 0 : index
    %c0_2 = arith.constant 0 : index
    %1 = vector.load %arg2[%c0_1, %c0_2] : memref<1x4096xf32, #tpu.memory_space<vmem>>, vector<1x4096xf32>
    %2 = vector.broadcast %1 : vector<1x4096xf32> to vector<2x4096xf32>
    %3 = arith.mulf %0, %2 : vector<2x4096xf32>
    %c0_3 = arith.constant 0 : index
    %c0_4 = arith.constant 0 : index
    %4 = vector.load %arg3[%c0_3, %c0_4] : memref<1x4096xf32, #tpu.memory_space<vmem>>, vector<1x4096xf32>
    %5 = vector.broadcast %4 : vector<1x4096xf32> to vector<2x4096xf32>
    %6 = arith.addf %3, %5 : vector<2x4096xf32>
    %cst = arith.constant 0.000000e+00 : f32
    %7 = vector.broadcast %cst : f32 to vector<2x4096xf32>
    %8 = arith.maximumf %6, %7 : vector<2x4096xf32>
    %9 = arith.truncf %8 : vector<2x4096xf32> to vector<2x4096xbf16>
    %c0_5 = arith.constant 0 : index
    %c0_6 = arith.constant 0 : index
    %10 = vector.load %arg4[%c0_5, %c0_6] : memref<4096x384xbf16, #tpu.memory_space<vmem>>, vector<4096x384xbf16>
    %cst_7 = arith.constant dense<0.000000e+00> : vector<2x384xf32>
    %11 = tpu.matmul %9, %10, %cst_7 {dimension_numbers = #tpu.dot_dimension_numbers<[1], [0], [0], [1], [0, 0, 1, 1], [], []>} : vector<2x4096xbf16>, vector<4096x384xbf16>, vector<2x384xf32> -> vector<2x384xf32>
    %c0_8 = arith.constant 0 : index
    %c0_9 = arith.constant 0 : index
    %12 = vector.load %arg5[%c0_8, %c0_9] : memref<1x384xf32, #tpu.memory_space<vmem>>, vector<1x384xf32>
    %13 = vector.broadcast %12 : vector<1x384xf32> to vector<2x384xf32>
    %14 = arith.addf %11, %13 : vector<2x384xf32>
    %cst_10 = arith.constant 0.000000e+00 : f32
    %15 = vector.broadcast %cst_10 : f32 to vector<2x384xf32>
    %16 = arith.maximumf %14, %15 : vector<2x384xf32>
    %17 = arith.truncf %16 : vector<2x384xf32> to vector<2x384xbf16>
    %c0_11 = arith.constant 0 : index
    %c0_12 = arith.constant 0 : index
    %18 = vector.load %arg6[%c0_11, %c0_12] : memref<384x192xbf16, #tpu.memory_space<vmem>>, vector<384x192xbf16>
    %cst_13 = arith.constant dense<0.000000e+00> : vector<2x192xf32>
    %19 = tpu.matmul %17, %18, %cst_13 {dimension_numbers = #tpu.dot_dimension_numbers<[1], [0], [0], [1], [0, 0, 1, 1], [], []>} : vector<2x384xbf16>, vector<384x192xbf16>, vector<2x192xf32> -> vector<2x192xf32>
    %c0_14 = arith.constant 0 : index
    %c0_15 = arith.constant 0 : index
    %20 = vector.load %arg7[%c0_14, %c0_15] : memref<1x192xf32, #tpu.memory_space<vmem>>, vector<1x192xf32>
    %21 = vector.broadcast %20 : vector<1x192xf32> to vector<2x192xf32>
    %22 = arith.addf %19, %21 : vector<2x192xf32>
    %cst_16 = arith.constant 0.000000e+00 : f32
    %23 = vector.broadcast %cst_16 : f32 to vector<2x192xf32>
    %24 = arith.maximumf %22, %23 : vector<2x192xf32>
    %25 = arith.truncf %24 : vector<2x192xf32> to vector<2x192xbf16>
    %c0_17 = arith.constant 0 : index
    %c0_18 = arith.constant 0 : index
    %26 = vector.load %arg8[%c0_17, %c0_18] : memref<192x10xbf16, #tpu.memory_space<vmem>>, vector<192x10xbf16>
    %cst_19 = arith.constant dense<0.000000e+00> : vector<2x10xf32>
    %27 = tpu.matmul %25, %26, %cst_19 {dimension_numbers = #tpu.dot_dimension_numbers<[1], [0], [0], [1], [0, 0, 1, 1], [], []>} : vector<2x192xbf16>, vector<192x10xbf16>, vector<2x10xf32> -> vector<2x10xf32>
    %c0_20 = arith.constant 0 : index
    %c0_21 = arith.constant 0 : index
    %28 = vector.load %arg9[%c0_20, %c0_21] : memref<1x10xf32, #tpu.memory_space<vmem>>, vector<1x10xf32>
    %29 = vector.broadcast %28 : vector<1x10xf32> to vector<2x10xf32>
    %30 = arith.addf %27, %29 : vector<2x10xf32>
    %cst_22 = arith.constant dense<0xFF800000> : vector<2xf32>
    %31 = vector.multi_reduction <maximumf>, %30, %cst_22 [1] : vector<2x10xf32> to vector<2xf32>
    %32 = vector.shape_cast %31 : vector<2xf32> to vector<2x1xf32>
    %33 = vector.broadcast %32 : vector<2x1xf32> to vector<2x10xf32>
    %34 = arith.subf %30, %33 : vector<2x10xf32>
    %35 = math.exp %34 : vector<2x10xf32>
    %cst_23 = arith.constant dense<0.000000e+00> : vector<2xf32>
    %36 = vector.multi_reduction <add>, %35, %cst_23 [1] : vector<2x10xf32> to vector<2xf32>
    %37 = vector.shape_cast %36 : vector<2xf32> to vector<2x1xf32>
    %38 = tpu.reciprocal %37 {approx = true} : vector<2x1xf32> -> vector<2x1xf32>
    %39 = vector.broadcast %38 : vector<2x1xf32> to vector<2x10xf32>
    %40 = arith.mulf %35, %39 : vector<2x10xf32>
    %c0_24 = arith.constant 0 : index
    %c0_25 = arith.constant 0 : index
    %41 = vector.load %arg10[%c0_24, %c0_25] : memref<2x10xf32, #tpu.memory_space<vmem>>, vector<2x10xf32>
    tpu.vector_store %arg10[%c0_24, %c0_25], %40 {strides = array<i32>} : memref<2x10xf32, #tpu.memory_space<vmem>>, vector<2x10xf32>,
    return
  }
  func.func @transform_0(%arg0: i32) -> (i32, i32) {
    %c0_i32 = arith.constant 0 : i32
    %c0_i32_0 = arith.constant 0 : i32
    %c0_i32_1 = arith.constant 0 : i32
    return %c0_i32, %c0_i32_0 : i32, i32
  }
  func.func @transform_1(%arg0: i32) -> (i32, i32) {
    %c0_i32 = arith.constant 0 : i32
    %c0_i32_0 = arith.constant 0 : i32
    %c0_i32_1 = arith.constant 0 : i32
    return %c0_i32, %c0_i32_0 : i32, i32
  }
  func.func @transform_2(%arg0: i32) -> (i32, i32) {
    %c0_i32 = arith.constant 0 : i32
    %c0_i32_0 = arith.constant 0 : i32
    %c0_i32_1 = arith.constant 0 : i32
    return %c0_i32, %c0_i32_0 : i32, i32
  }
  func.func @transform_3(%arg0: i32) -> (i32, i32) {
    %c0_i32 = arith.constant 0 : i32
    %c0_i32_0 = arith.constant 0 : i32
    %c0_i32_1 = arith.constant 0 : i32
    return %c0_i32, %c0_i32_0 : i32, i32
  }
  func.func @transform_4(%arg0: i32) -> (i32, i32) {
    %c0_i32 = arith.constant 0 : i32
    %c0_i32_0 = arith.constant 0 : i32
    %c0_i32_1 = arith.constant 0 : i32
    return %c0_i32, %c0_i32_0 : i32, i32
  }
  func.func @transform_5(%arg0: i32) -> (i32, i32) {
    %c0_i32 = arith.constant 0 : i32
    %c0_i32_0 = arith.constant 0 : i32
    %c0_i32_1 = arith.constant 0 : i32
    return %c0_i32, %c0_i32_0 : i32, i32
  }
  func.func @transform_6(%arg0: i32) -> (i32, i32) {
    %c0_i32 = arith.constant 0 : i32
    %c0_i32_0 = arith.constant 0 : i32
    %c0_i32_1 = arith.constant 0 : i32
    return %c0_i32, %c0_i32_0 : i32, i32
  }
  func.func @transform_7(%arg0: i32) -> (i32, i32) {
    %c0_i32 = arith.constant 0 : i32
    %c0_i32_0 = arith.constant 0 : i32
    %c0_i32_1 = arith.constant 0 : i32
    return %c0_i32, %c0_i32_0 : i32, i32
  }
  func.func @transform_8(%arg0: i32) -> (i32, i32) {
    %c0_i32 = arith.constant 0 : i32
    %c0_i32_0 = arith.constant 0 : i32
    %c0_i32_1 = arith.constant 0 : i32
    return %c0_i32, %c0_i32_0 : i32, i32
  }
  func.func @transform_9(%arg0: i32) -> (i32, i32) {
    %c0_i32 = arith.constant 0 : i32
    %c0_i32_0 = arith.constant 0 : i32
    %c0_i32_1 = arith.constant 0 : i32
    return %c0_i32, %c0_i32_0 : i32, i32
  }
}

</mosaic_0001>

<bundles_post_ra>
// kernel: tile.13
= control target key start
LH: loop header
LB: loop body
LE: loop exit
PB: predicated region body
PF: predicated region fallthrough
CT: control target
= control target key end

     0   :  { %s64_s0 = inlined_call_operand.vmem [shape: f32[64], index: 0, kind: input, shape index: {}]   ;;  %s65_s1 = inlined_call_operand.vmem [shape: f32[64,64], index: 1, kind: output, shape index: {}]  }
   0x1   :  { %v4_v0 = vld [vmem:[%s64_s0] ss:$0 sm:$0xff] }
   0x2   :  { %5 = vst [vmem:[%s65_s1] sm:$0xff] %v4_v0  ;;  %20 = vst [vmem:[%s65_s1 + $0x8] sm:$0xff] %v4_v0 }
   0x3   :  { %21 = vst [vmem:[%s65_s1 + $0x10] sm:$0xff] %v4_v0  ;;  %22 = vst [vmem:[%s65_s1 + $0x18] sm:$0xff] %v4_v0 }
   0x4   :  { %23 = vst [vmem:[%s65_s1 + $0x20] sm:$0xff] %v4_v0  ;;  %24 = vst [vmem:[%s65_s1 + $0x28] sm:$0xff] %v4_v0 }
   0x5   :  { %25 = vst [vmem:[%s65_s1 + $0x30] sm:$0xff] %v4_v0  ;;  %26 = vst [vmem:[%s65_s1 + $0x38] sm:$0xff] %v4_v0 }

// kernel: tile.14
= control target key start
LH: loop header
LB: loop body
LE: loop exit
PB: predicated region body
PF: predicated region fallthrough
CT: control target
= control target key end

     0   :  { %s321_s10 = smov 64   ;;  %vm3_vm0 = vcmask 523264   ;;  %vm31_vm1 = vcmask 1048064   ;;  %s452_s0 = inlined_call_operand.vmem [shape: f32[64,64], index: 0, kind: input, shape index: {}]   ;;  %s453_s1 = inlined_call_operand.vmem [shape: f32[1,4096], index: 1, kind: output, shape index: {}]  }
   0x1   :  { %v287_v0 = vld [vmem:[%s452_s0 + $0x21] ss:$2 sm:$0xff]   ;;  %v288_v2 = vld [vmem:[%s452_s0 + $0x31] ss:$2 sm:$0xff]   ;;  %v283_v4 = vld [vmem:[%s452_s0 + $0x20] ss:$2 sm:$0xff]  }
   0x2   :  { %v285_v1 = vld [vmem:[%s452_s0 + $0x1] ss:$2 sm:$0xff]   ;;  %45 = vrot.lane.b32.xlu1 %v287_v0, %s321_s10  ;;  %v286_v3 = vld [vmem:[%s452_s0 + $0x11] ss:$2 sm:$0xff]   ;;  %v2_v5 = vld [vmem:[%s452_s0] ss:$2 sm:$0xff]  }
   0x3   :  { %29 = vrot.lane.b32.xlu0 %v285_v1, %s321_s10  ;;  %v284_v6 = vld [vmem:[%s452_s0 + $0x30] ss:$2 sm:$0xff]   ;;  %17 = vst.msk [vmem:[#allocation0 + $0x80] ss:$8 sm:$0xf] %vm3_vm0, %v283_v4  }
   0x4   :  { %19 = vst.msk [vmem:[#allocation0 + $0x80] ss:$8 sm:$0xf0] %vm3_vm0, %v283_v4   ;;  %4 = vst.msk [vmem:[#allocation0] ss:$8 sm:$0xf] %vm3_vm0, %v2_v5  }
   0x5   :  { %5 = vst.msk [vmem:[#allocation0] ss:$8 sm:$0xf0] %vm3_vm0, %v2_v5   ;;  %24 = vst.msk [vmem:[#allocation0 + $0xc0] ss:$8 sm:$0xf] %vm3_vm0, %v284_v6  }
   0x6   :  { %26 = vst.msk [vmem:[#allocation0 + $0xc0] ss:$8 sm:$0xf0] %vm3_vm0, %v284_v6   ;;  %v282_v7 = vld [vmem:[%s452_s0 + $0x10] ss:$2 sm:$0xff]   ;;  %54 = vrot.lane.b32.xlu1 %v288_v2, %s321_s10 }
   0x7   :  { %10 = vst.msk [vmem:[#allocation0 + $0x40] ss:$8 sm:$0xf] %vm3_vm0, %v282_v7   ;;  %12 = vst.msk [vmem:[#allocation0 + $0x40] ss:$8 sm:$0xf0] %vm3_vm0, %v282_v7   ;;  %36 = vrot.lane.b32.xlu0 %v286_v3, %s321_s10 }
  0x74   :  { %v46_v8 = vpop.permute.xlu1 %45  }
  0x75   :  { %v30_v9 = vpop.permute.xlu0 %29   ;;  %49 = vst.msk [vmem:[#allocation0 + $0x80] ss:$8 sm:$0xf] %vm31_vm1, %v46_v8   ;;  %51 = vst.msk [vmem:[#allocation0 + $0x80] ss:$8 sm:$0xf0] %vm31_vm1, %v46_v8  }
  0x76   :  { %32 = vst.msk [vmem:[#allocation0] ss:$8 sm:$0xf] %vm31_vm1, %v30_v9   ;;  %33 = vst.msk [vmem:[#allocation0] ss:$8 sm:$0xf0] %vm31_vm1, %v30_v9  }
  0x78   :  { %v55_v10 = vpop.permute.xlu1 %54  }
  0x79   :  { %v37_v11 = vpop.permute.xlu0 %36   ;;  %58 = vst.msk [vmem:[#allocation0 + $0xc0] ss:$8 sm:$0xf] %vm31_vm1, %v55_v10   ;;  %60 = vst.msk [vmem:[#allocation0 + $0xc0] ss:$8 sm:$0xf0] %vm31_vm1, %v55_v10  }
  0x7a   :  { %40 = vst.msk [vmem:[#allocation0 + $0x40] ss:$8 sm:$0xf] %vm31_vm1, %v37_v11   ;;  %42 = vst.msk [vmem:[#allocation0 + $0x40] ss:$8 sm:$0xf0] %vm31_vm1, %v37_v11  }
  0x7c   :  { %v157_v12 = vld [vmem:[#allocation0 + $0x80] sm:$0x1]  ;;  %v163_v13 = vld [vmem:[#allocation0 + $0x88] sm:$0x1]  ;;  %v169_v14 = vld [vmem:[#allocation0 + $0x90] sm:$0x1] }
  0x7d   :  { %304 = vst [vmem:[%s453_s1 + $0x10] sm:$0x1] %v157_v12  ;;  %305 = vst [vmem:[%s453_s1 + $0x11] sm:$0x1] %v163_v13  ;;  %v175_v15 = vld [vmem:[#allocation0 + $0x98] sm:$0x1] }
  0x7e   :  { %306 = vst [vmem:[%s453_s1 + $0x12] sm:$0x1] %v169_v14  ;;  %v181_v16 = vld [vmem:[#allocation0 + $0xa0] sm:$0x1]  ;;  %v187_v17 = vld [vmem:[#allocation0 + $0xa8] sm:$0x1] }
  0x7f   :  { %307 = vst [vmem:[%s453_s1 + $0x13] sm:$0x1] %v175_v15  ;;  %308 = vst [vmem:[%s453_s1 + $0x14] sm:$0x1] %v181_v16  ;;  %v193_v18 = vld [vmem:[#allocation0 + $0xb0] sm:$0x1] }
  0x80   :  { %309 = vst [vmem:[%s453_s1 + $0x15] sm:$0x1] %v187_v17  ;;  %v199_v19 = vld [vmem:[#allocation0 + $0xb8] sm:$0x1]  ;;  %v64_v20 = vld [vmem:[#allocation0] sm:$0x1] }
  0x81   :  { %310 = vst [vmem:[%s453_s1 + $0x16] sm:$0x1] %v193_v18  ;;  %311 = vst [vmem:[%s453_s1 + $0x17] sm:$0x1] %v199_v19  ;;  %v68_v21 = vld [vmem:[#allocation0 + $0x8] sm:$0x1] }
  0x82   :  { %66 = vst [vmem:[%s453_s1] sm:$0x1] %v64_v20  ;;  %v73_v22 = vld [vmem:[#allocation0 + $0x10] sm:$0x1]  ;;  %v79_v23 = vld [vmem:[#allocation0 + $0x18] sm:$0x1] }
  0x83   :  { %289 = vst [vmem:[%s453_s1 + $0x1] sm:$0x1] %v68_v21  ;;  %290 = vst [vmem:[%s453_s1 + $0x2] sm:$0x1] %v73_v22  ;;  %v85_v24 = vld [vmem:[#allocation0 + $0x20] sm:$0x1] }
  0x84   :  { %291 = vst [vmem:[%s453_s1 + $0x3] sm:$0x1] %v79_v23  ;;  %v91_v25 = vld [vmem:[#allocation0 + $0x28] sm:$0x1]  ;;  %v97_v26 = vld [vmem:[#allocation0 + $0x30] sm:$0x1] }
  0x85   :  { %292 = vst [vmem:[%s453_s1 + $0x4] sm:$0x1] %v85_v24  ;;  %293 = vst [vmem:[%s453_s1 + $0x5] sm:$0x1] %v91_v25  ;;  %v103_v27 = vld [vmem:[#allocation0 + $0x38] sm:$0x1] }
  0x86   :  { %294 = vst [vmem:[%s453_s1 + $0x6] sm:$0x1] %v97_v26  ;;  %v205_v28 = vld [vmem:[#allocation0 + $0xc0] sm:$0x1]  ;;  %v211_v29 = vld [vmem:[#allocation0 + $0xc8] sm:$0x1] }
  0x87   :  { %295 = vst [vmem:[%s453_s1 + $0x7] sm:$0x1] %v103_v27  ;;  %312 = vst [vmem:[%s453_s1 + $0x18] sm:$0x1] %v205_v28  ;;  %v217_v30 = vld [vmem:[#allocation0 + $0xd0] sm:$0x1] }
  0x88   :  { %313 = vst [vmem:[%s453_s1 + $0x19] sm:$0x1] %v211_v29  ;;  %v223_v31 = vld [vmem:[#allocation0 + $0xd8] sm:$0x1]  ;;  %v229_v32 = vld [vmem:[#allocation0 + $0xe0] sm:$0x1] }
  0x89   :  { %314 = vst [vmem:[%s453_s1 + $0x1a] sm:$0x1] %v217_v30  ;;  %315 = vst [vmem:[%s453_s1 + $0x1b] sm:$0x1] %v223_v31  ;;  %v235_v33 = vld [vmem:[#allocation0 + $0xe8] sm:$0x1] }
  0x8a   :  { %316 = vst [vmem:[%s453_s1 + $0x1c] sm:$0x1] %v229_v32  ;;  %v241_v34 = vld [vmem:[#allocation0 + $0xf0] sm:$0x1]  ;;  %v247_v35 = vld [vmem:[#allocation0 + $0xf8] sm:$0x1] }
  0x8b   :  { %317 = vst [vmem:[%s453_s1 + $0x1d] sm:$0x1] %v235_v33  ;;  %318 = vst [vmem:[%s453_s1 + $0x1e] sm:$0x1] %v241_v34  ;;  %v109_v36 = vld [vmem:[#allocation0 + $0x40] sm:$0x1] }
  0x8c   :  { %319 = vst [vmem:[%s453_s1 + $0x1f] sm:$0x1] %v247_v35  ;;  %v115_v37 = vld [vmem:[#allocation0 + $0x48] sm:$0x1]  ;;  %v121_v38 = vld [vmem:[#allocation0 + $0x50] sm:$0x1] }
  0x8d   :  { %296 = vst [vmem:[%s453_s1 + $0x8] sm:$0x1] %v109_v36  ;;  %297 = vst [vmem:[%s453_s1 + $0x9] sm:$0x1] %v115_v37  ;;  %v127_v39 = vld [vmem:[#allocation0 + $0x58] sm:$0x1] }
  0x8e   :  { %298 = vst [vmem:[%s453_s1 + $0xa] sm:$0x1] %v121_v38  ;;  %v133_v40 = vld [vmem:[#allocation0 + $0x60] sm:$0x1]  ;;  %v139_v41 = vld [vmem:[#allocation0 + $0x68] sm:$0x1] }
  0x8f   :  { %299 = vst [vmem:[%s453_s1 + $0xb] sm:$0x1] %v127_v39  ;;  %300 = vst [vmem:[%s453_s1 + $0xc] sm:$0x1] %v133_v40  ;;  %v145_v42 = vld [vmem:[#allocation0 + $0x70] sm:$0x1] }
  0x90   :  { %301 = vst [vmem:[%s453_s1 + $0xd] sm:$0x1] %v139_v41  ;;  %v151_v43 = vld [vmem:[#allocation0 + $0x78] sm:$0x1]  ;;  %302 = vst [vmem:[%s453_s1 + $0xe] sm:$0x1] %v145_v42 }
  0x91   :  { %303 = vst [vmem:[%s453_s1 + $0xf] sm:$0x1] %v151_v43 }

// kernel: rank_falcon_simplenet_forward.4
= control target key start
LH: loop header
LB: loop body
LE: loop exit
PB: predicated region body
PF: predicated region fallthrough
CT: control target
= control target key end

     0   :  { %s1507_s27 = smov 0   ;;  %s2006_s0 = inlined_call_operand.vmem [shape: f32[2,4,64,64], index: 0, kind: input, shape index: {}]   ;;  %s2007_s1 = inlined_call_operand.vmem [shape: f32[1,64], index: 1, kind: input, shape index: {}]   ;;  %s2008_s2 = inlined_call_operand.vmem [shape: f32[1,64], index: 2, kind: input, shape index: {}]   ;;  %s2009_s3 = inlined_call_operand.vmem [shape: bf16[64,128], index: 3, kind: input, shape index: {}]   ;;  %s2010_s4 = inlined_call_operand.vmem [shape: f32[1,128], index: 4, kind: input, shape index: {}]   ;;  %s2011_s5 = inlined_call_operand.vmem [shape: f32[9,128], index: 5, kind: input, shape index: {}]   ;;  %s2012_s6 = inlined_call_operand.vmem [shape: f32[1,64], index: 6, kind: input, shape index: {}]   ;;  %s2013_s7 = inlined_call_operand.vmem [shape: f32[2,8,8,64], index: 7, kind: output, shape index: {0}]   ;;  %s2014_s8 = inlined_call_operand.vmem [shape: f32[2,2,64], index: 8, kind: output, shape index: {1}]  }
   0x1 LB: > { %s1319_s28 = sadd.s32 4294967295, %s1458_s27   ;;  %p1323_p0 = scmp.ge.s32.totalorder %s1458_s27, 1  ;;  %s1458_s27 = sphi %s1507_s27, %s19_s27  }
   0x2   : > { %p265_p1 = scmp.lt.s32.totalorder %s1458_s27, 3 }
   0x4   : > { %p266_p2 = pnand %p1323_p0, %p265_p1 }
   0x6   : > { %269 = sbr.rel (%p266_p2) target bundleno = 434 (0x1b2), region = 48 }
   0xd   : > { %v1448_v0 = vld [vmem:[%s2009_s3] sm:$0xff]   ;;  %p303_p3 = scmp.lt.s32.totalorder %s1319_s28, 1  ;;  %v1449_v1 = vld [vmem:[%s2009_s3 + $0x8] sm:$0xff]   ;;  %v1450_v2 = vld [vmem:[%s2009_s3 + $0x10] sm:$0xff]   ;;  %vm562_vm0 = vcmask 523264   ;;  %s1461_s23 = smov 64  }
   0xe   : > { %1390 = vmatprep.subr.bf16.mxu0 %v1448_v0  ;;  %1430 = vmatprep.subr.bf16.mxu1 %v1448_v0  ;;  %v1530_v3 = vld [vmem:[%s2007_s1] ss:$0 sm:$0xff]  ;;  %v1451_v14 = vld [vmem:[%s2009_s3 + $0x18] sm:$0xff]   ;;  %vm1218_vm1 = vcmask 516096  }
   0xf   : > { %s2027_s28 = smov (!%p303_p3, %s1319_s28), 1  ;;  %1391 = vmatpush3.bf16.msra.mxu0 %v1448_v0  ;;  %1434 = vmatpush3.bf16.msra.mxu1 %v1448_v0  ;;  %v1540_v4 = vld [vmem:[%s2008_s2] ss:$0 sm:$0xff] }
  0x10   : > { %1392 = vmatprep.subr.bf16.mxu0 %v1449_v1  ;;  %1431 = vmatprep.subr.bf16.mxu1 %v1449_v1  ;;  %s1368_s13 = sshll.u32 %s2027_s28, 8  ;;  %s1369_s26 = sshll.u32 %s2027_s28, 6 }
  0x11   : > { %s1535_s18 = scalar_lea.vmem %s2006_s0, %s1368_s13  ;;  %s1962_s9 = scalar_lea.vmem %s2013_s7, %s1369_s26 }
  0x12   : > { %v365_v5 = vld [vmem:[%s1535_s18] sm:$0xff]  ;;  %v366_v6 = vld [vmem:[%s1535_s18 + $0x8] sm:$0xff]  ;;  %v367_v12 = vld [vmem:[%s1535_s18 + $0x10] sm:$0xff]  ;;  %s1328_s10 = sshll.u32 %s2027_s28, 1 }
  0x13   : > { %v381_v7 = vld [vmem:[%s1535_s18 + $0x80] sm:$0xff]  ;;  %1393 = vmatpush3.bf16.msra.mxu0 %v1449_v1  ;;  %1435 = vmatpush3.bf16.msra.mxu1 %v1449_v1  ;;  %v404_v8 = vmul.f32 %v1530_v3, %v365_v5  ;;  %v405_v9 = vmul.f32 %v1530_v3, %v366_v6  ;;  %v382_v10 = vld [vmem:[%s1535_s18 + $0x88] sm:$0xff]  ;;  %v368_v13 = vld [vmem:[%s1535_s18 + $0x18] sm:$0xff]  ;;  %v406_v16 = vmul.f32 %v1530_v3, %v367_v12  ;;  %s316_s13 = scalar_lea.vmem %s2014_s8, %s1328_s10 }
  0x14   : > { %v420_v11 = vmul.f32 %v1530_v3, %v381_v7  ;;  %1394 = vmatprep.subr.bf16.mxu0 %v1450_v2  ;;  %1432 = vmatprep.subr.bf16.mxu1 %v1450_v2  ;;  %v421_v15 = vmul.f32 %v1530_v3, %v382_v10  ;;  %v407_v17 = vmul.f32 %v1530_v3, %v368_v13  ;;  %v383_v18 = vld [vmem:[%s1535_s18 + $0x90] sm:$0xff]  ;;  %v384_v19 = vld [vmem:[%s1535_s18 + $0x98] sm:$0xff]  ;;  %v369_v28 = vld [vmem:[%s1535_s18 + $0x20] sm:$0xff] }
  0x15   : > { %v443_v20 = vadd.f32 %v1540_v4, %v404_v8  ;;  %v444_v21 = vadd.f32 %v1540_v4, %v405_v9  ;;  %v422_v23 = vmul.f32 %v1530_v3, %v383_v18  ;;  %v445_v25 = vadd.f32 %v1540_v4, %v406_v16  ;;  %v370_v29 = vld [vmem:[%s1535_s18 + $0x28] sm:$0xff]  ;;  %v385_v34 = vld [vmem:[%s1535_s18 + $0xa0] sm:$0xff]  ;;  %v371_v44 = vld [vmem:[%s1535_s18 + $0x30] sm:$0xff] }
  0x16   : > { %v459_v22 = vadd.f32 %v1540_v4, %v420_v11  ;;  %v460_v24 = vadd.f32 %v1540_v4, %v421_v15  ;;  %v446_v26 = vadd.f32 %v1540_v4, %v407_v17  ;;  %v423_v27 = vmul.f32 %v1530_v3, %v384_v19  ;;  %v386_v39 = vld [vmem:[%s1535_s18 + $0xa8] sm:$0xff]  ;;  %v372_v49 = vld [vmem:[%s1535_s18 + $0x38] sm:$0xff]  ;;  %v387_v53 = vld [vmem:[%s1535_s18 + $0xb0] sm:$0xff] }
  0x17   : > { %1395 = vmatpush3.bf16.msra.mxu0 %v1450_v2  ;;  %1436 = vmatpush3.bf16.msra.mxu1 %v1450_v2  ;;  %v475_v30 = vmax.f32 %v443_v20, 0.0  ;;  %v476_v31 = vmax.f32 %v444_v21, 0.0  ;;  %v461_v33 = vadd.f32 %v1540_v4, %v422_v23  ;;  %v477_v36 = vmax.f32 %v445_v25, 0.0  ;;  %v388_v54 = vld [vmem:[%s1535_s18 + $0xb8] sm:$0xff]  ;;  %v373_v58 = vld [vmem:[%s1535_s18 + $0x40] sm:$0xff]  ;;  %v374_v63 = vld [vmem:[%s1535_s18 + $0x48] sm:$0xff] }
  0x18   : > { %v491_v32 = vmax.f32 %v459_v22, 0.0  ;;  %1396 = vmatprep.subr.bf16.mxu0 %v1451_v14  ;;  %1433 = vmatprep.subr.bf16.mxu1 %v1451_v14  ;;  %v492_v35 = vmax.f32 %v460_v24, 0.0  ;;  %v478_v37 = vmax.f32 %v446_v26, 0.0  ;;  %v462_v38 = vadd.f32 %v1540_v4, %v423_v27  ;;  %v389_v6 = vld [vmem:[%s1535_s18 + $0xc0] sm:$0xff]  ;;  %v390_v11 = vld [vmem:[%s1535_s18 + $0xc8] sm:$0xff]  ;;  %v375_v16 = vld [vmem:[%s1535_s18 + $0x50] sm:$0xff] }
  0x19   : > { %v507_v40 = vpack.c.bf16 %v476_v31, %v475_v30  ;;  %v493_v41 = vmax.f32 %v461_v33, 0.0  ;;  %v408_v42 = vmul.f32 %v1530_v3, %v369_v28  ;;  %v409_v43 = vmul.f32 %v1530_v3, %v370_v29  ;;  %v376_v21 = vld [vmem:[%s1535_s18 + $0x58] sm:$0xff]  ;;  %v391_v26 = vld [vmem:[%s1535_s18 + $0xd0] sm:$0xff] }
  0x1a   : > { %v515_v45 = vpack.c.bf16 %v492_v35, %v491_v32  ;;  %v508_v46 = vpack.c.bf16 %v478_v37, %v477_v36  ;;  %v494_v47 = vmax.f32 %v462_v38, 0.0  ;;  %v424_v48 = vmul.f32 %v1530_v3, %v385_v34  ;;  %v392_v27 = vld [vmem:[%s1535_s18 + $0xd8] sm:$0xff]  ;;  %v377_v32 = vld [vmem:[%s1535_s18 + $0x60] sm:$0xff]  ;;  %v378_v37 = vld [vmem:[%s1535_s18 + $0x68] sm:$0xff] }
  0x1b   : > { %1397 = vmatpush3.bf16.msra.mxu0 %v1451_v14  ;;  %1437 = vmatpush3.bf16.msra.mxu1 %v1451_v14  ;;  %v447_v50 = vadd.f32 %v1540_v4, %v408_v42  ;;  %v448_v51 = vadd.f32 %v1540_v4, %v409_v43  ;;  %v425_v52 = vmul.f32 %v1530_v3, %v386_v39  ;;  %v393_v42 = vld [vmem:[%s1535_s18 + $0xe0] sm:$0xff] }
  0x1c   : > { %1398 = vmatprep.mubr.msk.bf16.mxu0 %vm562_vm0, %v507_v40  ;;  %1414 = vmatprep.mubr.msk.bf16.mxu1 %vm562_vm0, %v515_v45  ;;  %v516_v55 = vpack.c.bf16 %v494_v47, %v493_v41  ;;  %v463_v56 = vadd.f32 %v1540_v4, %v424_v48  ;;  %v410_v57 = vmul.f32 %v1530_v3, %v371_v44  ;;  %v394_v47 = vld [vmem:[%s1535_s18 + $0xe8] sm:$0xff] }
  0x1d   : > { %v479_v59 = vmax.f32 %v447_v50, 0.0  ;;  %v480_v60 = vmax.f32 %v448_v51, 0.0  ;;  %v464_v61 = vadd.f32 %v1540_v4, %v425_v52  ;;  %v411_v62 = vmul.f32 %v1530_v3, %v372_v49  ;;  %v379_v52 = vld [vmem:[%s1535_s18 + $0x70] sm:$0xff] }
  0x1e   : > { %1399 = vmatmul.mubr.msk.bf16.vlgmr.msra.gmra.mrb[0].mxu0 %vm562_vm0, %v508_v46  ;;  %1415 = vmatmul.mubr.msk.bf16.vlgmr.msra.gmra.mrb[0].mxu1 %vm562_vm0, %v516_v55  ;;  %v495_v0 = vmax.f32 %v463_v56, 0.0  ;;  %v449_v1 = vadd.f32 %v1540_v4, %v410_v57  ;;  %v426_v2 = vmul.f32 %v1530_v3, %v387_v53  ;;  %v427_v5 = vmul.f32 %v1530_v3, %v388_v54  ;;  %v380_v57 = vld [vmem:[%s1535_s18 + $0x78] sm:$0xff] }
  0x1f   : > { %v509_v7 = vpack.c.bf16 %v480_v60, %v479_v59  ;;  %v496_v8 = vmax.f32 %v464_v61, 0.0  ;;  %v450_v9 = vadd.f32 %v1540_v4, %v411_v62  ;;  %v412_v10 = vmul.f32 %v1530_v3, %v373_v58  ;;  %v395_v62 = vld [vmem:[%s1535_s18 + $0xf0] sm:$0xff] }
  0x20   : > { %v481_v12 = vmax.f32 %v449_v1, 0.0  ;;  %v465_v13 = vadd.f32 %v1540_v4, %v426_v2  ;;  %v466_v14 = vadd.f32 %v1540_v4, %v427_v5  ;;  %v413_v15 = vmul.f32 %v1530_v3, %v374_v63  ;;  %v396_v63 = vld [vmem:[%s1535_s18 + $0xf8] sm:$0xff] }
  0x21   : > { %1402 = vmatprep.mubr.msk.bf16.mxu0 %vm562_vm0, %v509_v7  ;;  %v517_v17 = vpack.c.bf16 %v496_v8, %v495_v0  ;;  %v482_v18 = vmax.f32 %v450_v9, 0.0  ;;  %v451_v19 = vadd.f32 %v1540_v4, %v412_v10  ;;  %v428_v20 = vmul.f32 %v1530_v3, %v389_v6 }
  0x22   : > { %v497_v22 = vmax.f32 %v465_v13, 0.0  ;;  %v498_v23 = vmax.f32 %v466_v14, 0.0  ;;  %v452_v24 = vadd.f32 %v1540_v4, %v413_v15  ;;  %v429_v25 = vmul.f32 %v1530_v3, %v390_v11 }
  0x23   : > { %1418 = vmatprep.mubr.msk.bf16.mxu1 %vm562_vm0, %v517_v17  ;;  %v510_v28 = vpack.c.bf16 %v482_v18, %v481_v12  ;;  %v483_v29 = vmax.f32 %v451_v19, 0.0  ;;  %v467_v30 = vadd.f32 %v1540_v4, %v428_v20  ;;  %v414_v31 = vmul.f32 %v1530_v3, %v375_v16 }
  0x24   : > { %v518_v33 = vpack.c.bf16 %v498_v23, %v497_v22  ;;  %v484_v34 = vmax.f32 %v452_v24, 0.0  ;;  %v468_v35 = vadd.f32 %v1540_v4, %v429_v25  ;;  %v415_v36 = vmul.f32 %v1530_v3, %v376_v21 }
  0x25   : > { %v499_v38 = vmax.f32 %v467_v30, 0.0  ;;  %v453_v39 = vadd.f32 %v1540_v4, %v414_v31  ;;  %v430_v40 = vmul.f32 %v1530_v3, %v391_v26  ;;  %v431_v41 = vmul.f32 %v1530_v3, %v392_v27  ;;  %v1665_v26 = vld [vmem:[%s2011_s5] ss:$0 sm:$0xff] }
  0x26   : > { %1403 = vmatmul.mubr.msk.bf16.gmra.mrb[4].mxu0 %vm562_vm0, %v510_v28  ;;  %1419 = vmatmul.mubr.msk.bf16.gmra.mrb[4].mxu1 %vm562_vm0, %v518_v33  ;;  %v511_v43 = vpack.c.bf16 %v484_v34, %v483_v29  ;;  %v500_v44 = vmax.f32 %v468_v35, 0.0  ;;  %v454_v45 = vadd.f32 %v1540_v4, %v415_v36  ;;  %v416_v46 = vmul.f32 %v1530_v3, %v377_v32  ;;  %v1670_v29 = vld [vmem:[%s2011_s5 + $0x1] ss:$0 sm:$0xff] }
  0x27   : > { %v485_v48 = vmax.f32 %v453_v39, 0.0  ;;  %v469_v49 = vadd.f32 %v1540_v4, %v430_v40  ;;  %v470_v50 = vadd.f32 %v1540_v4, %v431_v41  ;;  %v417_v51 = vmul.f32 %v1530_v3, %v378_v37 }
  0x28   : > { %1406 = vmatprep.mubr.msk.bf16.mxu0 %vm562_vm0, %v511_v43  ;;  %v519_v53 = vpack.c.bf16 %v500_v44, %v499_v38  ;;  %v486_v54 = vmax.f32 %v454_v45, 0.0  ;;  %v455_v55 = vadd.f32 %v1540_v4, %v416_v46  ;;  %v432_v56 = vmul.f32 %v1530_v3, %v393_v42 }
  0x29   : > { %v501_v58 = vmax.f32 %v469_v49, 0.0  ;;  %v502_v59 = vmax.f32 %v470_v50, 0.0  ;;  %v456_v60 = vadd.f32 %v1540_v4, %v417_v51  ;;  %v433_v61 = vmul.f32 %v1530_v3, %v394_v47  ;;  %v1691_v47 = vld [vmem:[%s2011_s5 + $0x2] ss:$0 sm:$0xff] }
  0x2a   : > { %1422 = vmatprep.mubr.msk.bf16.mxu1 %vm562_vm0, %v519_v53  ;;  %v512_v0 = vpack.c.bf16 %v486_v54, %v485_v48  ;;  %v487_v1 = vmax.f32 %v455_v55, 0.0  ;;  %v471_v2 = vadd.f32 %v1540_v4, %v432_v56  ;;  %v418_v5 = vmul.f32 %v1530_v3, %v379_v52  ;;  %v1697_v52 = vld [vmem:[%s2011_s5 + $0x5] ss:$0 sm:$0xff] }
  0x2b   : > { %v520_v6 = vpack.c.bf16 %v502_v59, %v501_v58  ;;  %v488_v7 = vmax.f32 %v456_v60, 0.0  ;;  %v472_v8 = vadd.f32 %v1540_v4, %v433_v61  ;;  %v419_v9 = vmul.f32 %v1530_v3, %v380_v57  ;;  %v1708_v57 = vld [vmem:[%s2011_s5 + $0x8] ss:$0 sm:$0xff] }
  0x2c   : > { %v503_v10 = vmax.f32 %v471_v2, 0.0  ;;  %v457_v11 = vadd.f32 %v1540_v4, %v418_v5  ;;  %v434_v12 = vmul.f32 %v1530_v3, %v395_v62  ;;  %v435_v13 = vmul.f32 %v1530_v3, %v396_v63  ;;  %v1717_v62 = vld [vmem:[%s2011_s5 + $0x3] ss:$0 sm:$0xff]  ;;  %v1730_v5 = vld [vmem:[%s2011_s5 + $0x6] ss:$0 sm:$0xff] }
  0x2d   : > { %v513_v14 = vpack.c.bf16 %v488_v7, %v487_v1  ;;  %v504_v15 = vmax.f32 %v472_v8, 0.0  ;;  %v458_v16 = vadd.f32 %v1540_v4, %v419_v9  ;;  %v1460_v25 = vmov 0.0  }
  0x2e   : > { %1407 = vmatmul.mubr.msk.bf16.gmra.mrb[8].mxu0 %vm562_vm0, %v512_v0  ;;  %1423 = vmatmul.mubr.msk.bf16.gmra.mrb[8].mxu1 %vm562_vm0, %v520_v6  ;;  %v489_v17 = vmax.f32 %v457_v11, 0.0  ;;  %v473_v18 = vadd.f32 %v1540_v4, %v434_v12  ;;  %v474_v19 = vadd.f32 %v1540_v4, %v435_v13  ;;  %318 = vst [vmem:[#allocation2] sm:$0xff] %v1460_v25  ;;  %319 = vst [vmem:[#allocation2 + $0x8] sm:$0xff] %v1460_v25  ;;  %v1660_v4 = vld [vmem:[%s2010_s4] ss:$0 sm:$0xff] }
  0x2f   : > { %1410 = vmatprep.mubr.msk.bf16.mxu0 %vm562_vm0, %v513_v14  ;;  %v521_v20 = vpack.c.bf16 %v504_v15, %v503_v10  ;;  %v490_v21 = vmax.f32 %v458_v16, 0.0  ;;  %321 = vst [vmem:[#allocation2 + $0x17] sm:$0x1] %v1460_v25  ;;  %345 = vst [vmem:[#allocation2 + $0x137] sm:$0x1] %v1460_v25  ;;  %v842_v44 = vmul.f32 0.0, %v1670_v29 }
  0x30   : > { %v505_v22 = vmax.f32 %v473_v18, 0.0  ;;  %v506_v23 = vmax.f32 %v474_v19, 0.0  ;;  %322 = vst [vmem:[#allocation2 + $0x27] sm:$0x1] %v1460_v25  ;;  %323 = vst [vmem:[#allocation2 + $0x37] sm:$0x1] %v1460_v25 }
  0x31   : > { %1426 = vmatprep.mubr.msk.bf16.mxu1 %vm562_vm0, %v521_v20  ;;  %v514_v3 = vpack.c.bf16 %v490_v21, %v489_v17  ;;  %324 = vst [vmem:[#allocation2 + $0x47] sm:$0x1] %v1460_v25  ;;  %325 = vst [vmem:[#allocation2 + $0x57] sm:$0x1] %v1460_v25  ;;  %v858_v49 = vmul.f32 0.0, %v1691_v47 }
  0x32   : > { %v522_v24 = vpack.c.bf16 %v506_v23, %v505_v22  ;;  %326 = vst [vmem:[#allocation2 + $0x67] sm:$0x1] %v1460_v25  ;;  %327 = vst [vmem:[#allocation2 + $0x77] sm:$0x1] %v1460_v25 }
  0x33   : > { %328 = vst [vmem:[#allocation2 + $0x87] sm:$0x1] %v1460_v25  ;;  %346 = vst [vmem:[#allocation2 + $0x147] sm:$0x1] %v1460_v25 }
  0x34   : > { %347 = vst [vmem:[#allocation2 + $0x157] sm:$0x1] %v1460_v25  ;;  %348 = vst [vmem:[#allocation2 + $0x167] sm:$0x1] %v1460_v25 }
  0x35   : > { %349 = vst [vmem:[#allocation2 + $0x177] sm:$0x1] %v1460_v25  ;;  %350 = vst [vmem:[#allocation2 + $0x187] sm:$0x1] %v1460_v25 }
  0x36   : > { %1411 = vmatmul.mubr.msk.bf16.gmra.mrb[12].mxu0 %vm562_vm0, %v514_v3  ;;  %1427 = vmatmul.mubr.msk.bf16.gmra.mrb[12].mxu1 %vm562_vm0, %v522_v24  ;;  %351 = vst [vmem:[#allocation2 + $0x197] sm:$0x1] %v1460_v25  ;;  %352 = vst [vmem:[#allocation2 + $0x1a7] sm:$0x1] %v1460_v25 }
  0x37   : > { %320 = vst [vmem:[#allocation2 + $0x7] sm:$0x1] %v1460_v25 }
  0x3e   : > { %v820_v30 = vld [vmem:[#allocation2 + $0x7] sm:$0xff] }
  0x3f   : > { %v828_v43 = vmul.f32 %v1665_v26, %v820_v30 }
  0x41   : > { %v846_v48 = vadd.f32 %v842_v44, %v828_v43  ;;  %v1800_v43 = vld [vmem:[%s2011_s5 + $0x4] ss:$0 sm:$0xff] }
  0x43   : > { %v862_v6 = vadd.f32 %v858_v49, %v846_v48 }
  0xf1   : > { %v1400_v27 = vpop.f32.mrb[0].mxu0  ;;  %v1416_v28 = vpop.f32.mrb[0].mxu1 }
  0xf2   : > { %v1673_v31 = vadd.f32 %v1400_v27, %v1660_v4  ;;  %v718_v32 = vadd.f32 %v1416_v28, %v1660_v4  ;;  %v645_v33 = vpop.f32.mrb[1].mxu0  ;;  %v709_v34 = vpop.f32.mrb[1].mxu1 }
  0xf3   : > { %v646_v35 = vadd.f32 %v1660_v4, %v645_v33  ;;  %v710_v36 = vadd.f32 %v1660_v4, %v709_v34  ;;  %v1401_v37 = vpop.f32.mrb[2].mxu0  ;;  %v1417_v38 = vpop.f32.mrb[2].mxu1 }
  0xf4   : > { %775 = vst [vmem:[#allocation2 + $0x38] sm:$0xff] %v1673_v31  ;;  %793 = vst [vmem:[#allocation2 + $0x158] sm:$0xff] %v718_v32  ;;  %v1680_v39 = vadd.f32 %v1401_v37, %v1660_v4  ;;  %v721_v40 = vadd.f32 %v1417_v38, %v1660_v4  ;;  %v648_v41 = vpop.f32.mrb[3].mxu0  ;;  %v712_v42 = vpop.f32.mrb[3].mxu1  ;;  %v1733_v8 = vmul.f32 %v1697_v52, %v718_v32 }
  0xf5   : > { %773 = vst [vmem:[#allocation2 + $0x18] sm:$0xff] %v646_v35  ;;  %791 = vst [vmem:[#allocation2 + $0x138] sm:$0xff] %v710_v36  ;;  %v649_v45 = vadd.f32 %v1660_v4, %v648_v41  ;;  %v713_v46 = vadd.f32 %v1660_v4, %v712_v42  ;;  %v1741_v11 = vmul.f32 %v1697_v52, %v710_v36 }
  0xf6   : > { %2018 = vst [vmem:[#allocation3_spill] sm:$0xff] %v1680_v39  ;;  %776 = vst [vmem:[#allocation2 + $0x48] sm:$0xff] %v1680_v39  ;;  %v1745_v15 = vmul.f32 %v1708_v57, %v1673_v31  ;;  %v1751_v17 = vmul.f32 %v1708_v57, %v646_v35  ;;  %v1754_v18 = vmul.f32 %v1691_v47, %v646_v35 }
  0xf7   : > { %794 = vst [vmem:[#allocation2 + $0x168] sm:$0xff] %v721_v40  ;;  %774 = vst [vmem:[#allocation2 + $0x28] sm:$0xff] %v649_v45  ;;  %v1758_v20 = vmul.f32 %v1691_v47, %v1680_v39  ;;  %v1762_v22 = vmul.f32 %v1697_v52, %v713_v46  ;;  %v1765_v23 = vmul.f32 %v1708_v57, %v649_v45 }
  0xf8   : > { %792 = vst [vmem:[#allocation2 + $0x148] sm:$0xff] %v713_v46  ;;  %v1769_v3 = vmul.f32 %v1691_v47, %v1673_v31  ;;  %v1772_v24 = vmul.f32 %v1697_v52, %v721_v40  ;;  %v1778_v28 = vmul.f32 %v1691_v47, %v649_v45 }
  0xf9   : > { %v1404_v50 = vpop.f32.mrb[4].mxu0  ;;  %v1420_v51 = vpop.f32.mrb[4].mxu1 }
  0xfa   : > { %v1700_v53 = vadd.f32 %v1404_v50, %v1660_v4  ;;  %v1703_v54 = vadd.f32 %v1420_v51, %v1660_v4  ;;  %v661_v55 = vpop.f32.mrb[5].mxu0  ;;  %v725_v56 = vpop.f32.mrb[5].mxu1 }
  0xfb   : > { %v1711_v58 = vadd.f32 %v1660_v4, %v661_v55  ;;  %v726_v59 = vadd.f32 %v1660_v4, %v725_v56  ;;  %v1405_v60 = vpop.f32.mrb[6].mxu0  ;;  %v1421_v61 = vpop.f32.mrb[6].mxu1  ;;  %v872_v13 = vld [vmem:[#allocation2 + $0x157] sm:$0xff] }
  0xfc   : > { %779 = vst [vmem:[#allocation2 + $0x78] sm:$0xff] %v1700_v53  ;;  %797 = vst [vmem:[#allocation2 + $0x198] sm:$0xff] %v1703_v54  ;;  %v1722_v63 = vadd.f32 %v1405_v60, %v1660_v4  ;;  %v1725_v0 = vadd.f32 %v1421_v61, %v1660_v4  ;;  %v664_v1 = vpop.f32.mrb[7].mxu0  ;;  %v728_v2 = vpop.f32.mrb[7].mxu1  ;;  %v870_v7 = vld [vmem:[#allocation2 + $0x137] sm:$0xff]  ;;  %v1781_v30 = vmul.f32 %v1717_v62, %v872_v13 }
  0xfd   : > { %777 = vst [vmem:[#allocation2 + $0x58] sm:$0xff] %v1711_v58  ;;  %795 = vst [vmem:[#allocation2 + $0x178] sm:$0xff] %v726_v59  ;;  %v1737_v9 = vadd.f32 %v1660_v4, %v664_v1  ;;  %v729_v10 = vadd.f32 %v1660_v4, %v728_v2  ;;  %v921_v12 = vld [vmem:[#allocation2 + $0x17] sm:$0xff]  ;;  %v878_v16 = vmul.f32 %v1717_v62, %v870_v7  ;;  %v1041_v19 = vld [vmem:[#allocation2 + $0x47] sm:$0xff] }
  0xfe   : > { %2019 = vst [vmem:[#allocation4_spill] sm:$0xff] %v1722_v63  ;;  %2020 = vst [vmem:[#allocation5_spill] sm:$0xff] %v1725_v0  ;;  %v923_v14 = vld [vmem:[#allocation2 + $0x37] sm:$0xff]  ;;  %v1775_v25 = vmul.f32 %v1730_v5, %v921_v12  ;;  %v922_v27 = vld [vmem:[#allocation2 + $0x27] sm:$0xff]  ;;  %v829_v31 = vmul.f32 %v1665_v26, %v921_v12  ;;  %v1045_v35 = vmul.f32 %v1665_v26, %v1041_v19 }
  0xff   : > { %780 = vst [vmem:[#allocation2 + $0x88] sm:$0xff] %v1722_v63  ;;  %798 = vst [vmem:[#allocation2 + $0x1a8] sm:$0xff] %v1725_v0  ;;  %v871_v21 = vld [vmem:[#allocation2 + $0x147] sm:$0xff]  ;;  %v1784_v32 = vmul.f32 %v1730_v5, %v923_v14  ;;  %v1789_v36 = vmul.f32 %v1697_v52, %v726_v59  ;;  %v1793_v37 = vmul.f32 %v1708_v57, %v1711_v58 }
 0x100   : > { %778 = vst [vmem:[#allocation2 + $0x68] sm:$0xff] %v1737_v9  ;;  %796 = vst [vmem:[#allocation2 + $0x188] sm:$0xff] %v729_v10  ;;  %v882_v44 = vadd.f32 %v878_v16, %v862_v6  ;;  %v879_v45 = vmul.f32 %v1717_v62, %v871_v21  ;;  %v1806_v51 = vmul.f32 %v1730_v5, %v922_v27  ;;  %v873_v56 = vld [vmem:[#allocation2 + $0x167] sm:$0xff] }
 0x101   : > { %v1408_v33 = vpop.f32.mrb[8].mxu0  ;;  %v1424_v34 = vpop.f32.mrb[8].mxu1  ;;  %v830_v55 = vmul.f32 %v1665_v26, %v922_v27  ;;  %v1818_v2 = vld [vmem:[%s2011_s5 + $0x7] ss:$0 sm:$0xff]  ;;  %v1822_v6 = vmul.f32 %v1691_v47, %v1711_v58  ;;  %v1825_v7 = vmul.f32 %v1697_v52, %v729_v10  ;;  %v831_v27 = vmul.f32 %v1665_v26, %v923_v14 }
 0x102   : > { %v686_v38 = vadd.f32 %v1408_v33, %v1660_v4  ;;  %v750_v40 = vadd.f32 %v1424_v34, %v1660_v4  ;;  %v677_v41 = vpop.f32.mrb[9].mxu0  ;;  %v741_v42 = vpop.f32.mrb[9].mxu1  ;;  %v1835_v58 = vmul.f32 %v1717_v62, %v873_v56  ;;  %v1838_v10 = vmul.f32 %v1730_v5, %v1041_v19 }
 0x103   : > { %v678_v46 = vadd.f32 %v1660_v4, %v677_v41  ;;  %v742_v48 = vadd.f32 %v1660_v4, %v741_v42  ;;  %v1409_v49 = vpop.f32.mrb[10].mxu0  ;;  %v1425_v50 = vpop.f32.mrb[10].mxu1 }
 0x104   : > { %v1810_v59 = vadd.f32 %v1409_v49, %v1660_v4  ;;  %v1813_v60 = vadd.f32 %v1425_v50, %v1660_v4  ;;  %v680_v61 = vpop.f32.mrb[11].mxu0  ;;  %v744_v1 = vpop.f32.mrb[11].mxu1  ;;  %v1079_v21 = vld [vmem:[#allocation2 + $0x177] sm:$0xff]  ;;  %v898_v49 = vmul.f32 %v1800_v43, %v750_v40 }
 0x105   : > { %v681_v12 = vadd.f32 %v1660_v4, %v680_v61  ;;  %v745_v13 = vadd.f32 %v1660_v4, %v744_v1  ;;  %v896_v16 = vmul.f32 %v1800_v43, %v742_v48  ;;  %v843_v33 = vmul.f32 %v1670_v29, %v678_v46 }
 0x106   : > { %v1055_v34 = vmul.f32 %v1670_v29, %v1810_v59  ;;  %v1843_v48 = vmul.f32 %v1818_v2, %v686_v38  ;;  %v947_v14 = vmul.f32 %v1818_v2, %v678_v46  ;;  %v1083_v1 = vmul.f32 %v1717_v62, %v1079_v21 }
 0x107   : > { %v900_v41 = vadd.f32 %v896_v16, %v882_v44  ;;  %v844_v42 = vmul.f32 %v1670_v29, %v681_v12  ;;  %v847_v50 = vadd.f32 %v843_v33, %v829_v31  ;;  %v897_v19 = vmul.f32 %v1800_v43, %v745_v13 }
 0x108   : > { %v1059_v61 = vadd.f32 %v1055_v34, %v1045_v35  ;;  %v845_v16 = vmul.f32 %v1670_v29, %v686_v38  ;;  %v1118_v34 = vld [vmem:[#allocation2 + $0x57] sm:$0xff] }
 0x109   : > { %v1412_v63 = vpop.f32.mrb[12].mxu0  ;;  %v1428_v56 = vpop.f32.mrb[12].mxu1  ;;  %v916_v0 = vadd.f32 %v1741_v11, %v900_v41  ;;  %v848_v44 = vadd.f32 %v844_v42, %v830_v55  ;;  %v863_v35 = vadd.f32 %v1754_v18, %v847_v50 }
 0x10a   : > { %v1851_v40 = vadd.f32 %v1412_v63, %v1660_v4  ;;  %v1854_v39 = vadd.f32 %v1428_v56, %v1660_v4  ;;  %v693_v46 = vpop.f32.mrb[13].mxu0  ;;  %v757_v31 = vpop.f32.mrb[13].mxu1  ;;  %v1071_v21 = vadd.f32 %v1758_v20, %v1059_v61 }
 0x10b   : > { %v694_v33 = vadd.f32 %v1660_v4, %v693_v46  ;;  %v758_v11 = vadd.f32 %v1660_v4, %v757_v31  ;;  %v1413_v13 = vpop.f32.mrb[14].mxu0  ;;  %v1429_v55 = vpop.f32.mrb[14].mxu1  ;;  %v933_v38 = vadd.f32 %v1775_v25, %v916_v0  ;;  %v864_v63 = vadd.f32 %v1778_v28, %v848_v44 }
 0x10c   : > { %v1863_v41 = vadd.f32 %v1413_v13, %v1660_v4  ;;  %v1866_v42 = vadd.f32 %v1429_v55, %v1660_v4  ;;  %v696_v18 = vpop.f32.mrb[15].mxu0  ;;  %v760_v50 = vpop.f32.mrb[15].mxu1  ;;  %v883_v20 = vadd.f32 %v879_v45, %v863_v35  ;;  %v1087_v61 = vadd.f32 %v1083_v1, %v1071_v21  ;;  %v1080_v55 = vld [vmem:[#allocation2 + $0x187] sm:$0xff] }
 0x10d   : > { %v697_v56 = vadd.f32 %v1660_v4, %v696_v18  ;;  %v761_v46 = vadd.f32 %v1660_v4, %v760_v50  ;;  %v951_v31 = vadd.f32 %v947_v14, %v933_v38  ;;  %v1097_v0 = vmul.f32 %v1800_v43, %v758_v11 }
 0x10e   : > { %2021 = vst [vmem:[#allocation6_spill] sm:$0xff] %v1863_v41  ;;  %v901_v25 = vadd.f32 %v897_v19, %v883_v20  ;;  %v884_v28 = vadd.f32 %v1781_v30, %v864_v63  ;;  %v1046_v44 = vmul.f32 %v1665_v26, %v1118_v34  ;;  %v1056_v13 = vmul.f32 %v1670_v29, %v694_v33  ;;  %v1119_v19 = vld [vmem:[#allocation2 + $0x67] sm:$0xff] }
 0x10f   : > { %v1875_v41 = vadd.f32 %v1751_v17, %v951_v31  ;;  %v948_v45 = vmul.f32 %v1818_v2, %v681_v12  ;;  %v1101_v1 = vadd.f32 %v1097_v0, %v1087_v61  ;;  %v1122_v35 = vmul.f32 %v1730_v5, %v1118_v34 }
 0x110   : > { %v917_v4 = vadd.f32 %v1762_v22, %v901_v25  ;;  %v902_v14 = vadd.f32 %v898_v49, %v884_v28  ;;  %v1060_v21 = vadd.f32 %v1056_v13, %v1046_v44  ;;  %v849_v11 = vadd.f32 %v845_v16, %v831_v27  ;;  %v1081_v16 = vld [vmem:[#allocation2 + $0x197] sm:$0xff] }
 0x111   : > { %985 = vrot.lane.b32.xlu0 %v1875_v41, %s1461_s23  ;;  %v1113_v30 = vadd.f32 %v1789_v36, %v1101_v1  ;;  %v1136_v17 = vmul.f32 %v1818_v2, %v694_v33  ;;  %v1084_v38 = vmul.f32 %v1717_v62, %v1080_v55  ;;  %v1098_v12 = vmul.f32 %v1800_v43, %v761_v46  ;;  %v1082_v1 = vld [vmem:[#allocation2 + $0x1a7] sm:$0xff] }
 0x112   : > { %v934_v34 = vadd.f32 %v1806_v51, %v917_v4  ;;  %v918_v22 = vadd.f32 %v1733_v8, %v902_v14  ;;  %v1072_v49 = vadd.f32 %v1822_v6, %v1060_v21  ;;  %v865_v27 = vadd.f32 %v1769_v3, %v849_v11  ;;  %v1120_v8 = vld [vmem:[#allocation2 + $0x77] sm:$0xff] }
 0x113   : > { %v1126_v63 = vadd.f32 %v1122_v35, %v1113_v30  ;;  %v899_v18 = vmul.f32 %v1800_v43, %v1813_v60  ;;  %v1047_v36 = vmul.f32 %v1665_v26, %v1119_v19  ;;  %v1057_v33 = vmul.f32 %v1670_v29, %v697_v56  ;;  %v2022_v30 = vld [vmem:[#allocation3_spill] sm:$0xff] }
 0x114   : > { %v952_v50 = vadd.f32 %v948_v45, %v934_v34  ;;  %v935_v20 = vadd.f32 %v1784_v32, %v918_v22  ;;  %v1088_v61 = vadd.f32 %v1084_v38, %v1072_v49  ;;  %v885_v51 = vadd.f32 %v1835_v58, %v865_v27  ;;  %v1121_v34 = vld [vmem:[#allocation2 + $0x87] sm:$0xff] }
 0x115   : > { %v1140_v46 = vadd.f32 %v1136_v17, %v1126_v63  ;;  %v1061_v6 = vadd.f32 %v1057_v33, %v1047_v36  ;;  %v1069_v3 = vmul.f32 %v1691_v47, %v1737_v9  ;;  %v1085_v31 = vmul.f32 %v1717_v62, %v1081_v16 }
 0x116   : > { %v1900_v60 = vadd.f32 %v1765_v23, %v952_v50  ;;  %v953_v0 = vadd.f32 %v1843_v48, %v935_v20  ;;  %v1102_v25 = vadd.f32 %v1098_v12, %v1088_v61  ;;  %v903_v28 = vadd.f32 %v899_v18, %v885_v51  ;;  %v2024_v50 = vld [vmem:[#allocation6_spill] sm:$0xff]  ;;  %v2025_v20 = vld [vmem:[#allocation4_spill] sm:$0xff] }
 0x117   : > { %v1152_v32 = vadd.f32 %v1793_v37, %v1140_v46  ;;  %v1073_v44 = vadd.f32 %v1069_v3, %v1061_v6  ;;  %v1048_v58 = vmul.f32 %v1665_v26, %v1120_v8  ;;  %v1058_v13 = vmul.f32 %v1670_v29, %v1851_v40 }
 0x118   : > { %987 = vrot.lane.b32.xlu0 %v1900_v60, %s1461_s23  ;;  %v1910_v55 = vadd.f32 %v1745_v15, %v953_v0  ;;  %v1114_v23 = vadd.f32 %v1825_v7, %v1102_v25  ;;  %v1123_v48 = vmul.f32 %v1730_v5, %v1119_v19  ;;  %v919_v45 = vadd.f32 %v1772_v24, %v903_v28 }
 0x119   : > { %1164 = vrot.lane.b32.xlu1 %v1152_v32, %s1461_s23  ;;  %v1089_v37 = vadd.f32 %v1085_v31, %v1073_v44  ;;  %v1099_v26 = vmul.f32 %v1800_v43, %v1854_v39  ;;  %v1062_v29 = vadd.f32 %v1058_v13, %v1048_v58  ;;  %v1070_v35 = vmul.f32 %v1691_v47, %v1700_v53 }
 0x11a   : > { %v1127_v4 = vadd.f32 %v1123_v48, %v1114_v23  ;;  %v1137_v15 = vmul.f32 %v1818_v2, %v697_v56  ;;  %v936_v7 = vadd.f32 %v1838_v10, %v919_v45  ;;  %v950_v14 = vmul.f32 %v1818_v2, %v1810_v59 }
 0x11b   : > { %v1103_v24 = vadd.f32 %v1099_v26, %v1089_v37  ;;  %v1111_v21 = vmul.f32 %v1697_v52, %v1703_v54  ;;  %v1074_v19 = vadd.f32 %v1070_v35, %v1062_v29  ;;  %v1086_v11 = vmul.f32 %v1717_v62, %v1082_v1 }
 0x11c   : > { %989 = vrot.lane.b32.xlu0 %v1910_v55, %s1461_s23  ;;  %v1141_v39 = vadd.f32 %v1137_v15, %v1127_v4  ;;  %v1149_v47 = vmul.f32 %v1708_v57, %v1737_v9  ;;  %v954_v56 = vadd.f32 %v950_v14, %v936_v7  ;;  %v966_v10 = vmul.f32 %v1708_v57, %v2022_v30  ;;  %v2023_v9 = vld [vmem:[#allocation5_spill] sm:$0xff] }
 0x11d   : > { %v1115_v17 = vadd.f32 %v1111_v21, %v1103_v24  ;;  %v1124_v59 = vmul.f32 %v1730_v5, %v1120_v8  ;;  %v1090_v38 = vadd.f32 %v1086_v11, %v1074_v19  ;;  %v1100_v54 = vmul.f32 %v1800_v43, %v1866_v42 }
 0x11e   : > { %v1153_v12 = vadd.f32 %v1149_v47, %v1141_v39  ;;  %v970_v62 = vadd.f32 %v966_v10, %v954_v56  ;;  %v1138_v49 = vmul.f32 %v1818_v2, %v1851_v40  ;;  %v1112_v16 = vmul.f32 %v1697_v52, %v2023_v9 }
 0x11f   : > { %v1128_v22 = vadd.f32 %v1124_v59, %v1115_v17  ;;  %v1104_v27 = vadd.f32 %v1100_v54, %v1090_v38  ;;  %v1150_v43 = vmul.f32 %v1708_v57, %v1700_v53  ;;  %v1125_v18 = vmul.f32 %v1730_v5, %v1121_v34  ;;  %v1361_v53 = vld [vmem:[%s2012_s6] ss:$0 sm:$0xff] }
 0x120   : > { %1166 = vrot.lane.b32.xlu1 %v1153_v12, %s1461_s23  ;;  %991 = vrot.lane.b32.xlu0 %v970_v62, %s1461_s23  ;;  %v1139_v40 = vmul.f32 %v1818_v2, %v2024_v50  ;;  %v1151_v61 = vmul.f32 %v1708_v57, %v2025_v20  ;;  %v977_v5 = vadd.f32 %v1361_v53, %v1875_v41 }
 0x121   : > { %v1142_v63 = vadd.f32 %v1138_v49, %v1128_v22  ;;  %v1116_v42 = vadd.f32 %v1112_v16, %v1104_v27  ;;  %v978_v8 = vadd.f32 %v1361_v53, %v1900_v60  ;;  %v1156_v6 = vadd.f32 %v1361_v53, %v1152_v32 }
 0x122   : > { %v979_v58 = vadd.f32 %v1361_v53, %v1910_v55  ;;  %v1157_v26 = vadd.f32 %v1361_v53, %v1153_v12  ;;  %v980_v29 = vadd.f32 %v1361_v53, %v970_v62 }
 0x123   : > { %v1154_v36 = vadd.f32 %v1150_v43, %v1142_v63  ;;  %v1129_v33 = vadd.f32 %v1125_v18, %v1116_v42 }
 0x125   : > { %1168 = vrot.lane.b32.xlu1 %v1154_v36, %s1461_s23  ;;  %v1143_v52 = vadd.f32 %v1139_v40, %v1129_v33  ;;  %v1158_v17 = vadd.f32 %v1361_v53, %v1154_v36 }
 0x127   : > { %v1950_v51 = vadd.f32 %v1151_v61, %v1143_v52 }
 0x129   : > { %1170 = vrot.lane.b32.xlu1 %v1950_v51, %s1461_s23  ;;  %v1159_v63 = vadd.f32 %v1361_v53, %v1950_v51 }
 0x183   : > { %v986_v57 = vpop.permute.xlu0 %985 }
 0x184   : > { %v997_v2 = vadd.f32 %v986_v57, %v977_v5 }
 0x186   : > { %1003 = vst.msk [vmem:[%s1962_s9] sm:$0xff] %vm562_vm0, %v997_v2  ;;  %v1021_v3 = vmul.f32 %v997_v2, %v997_v2  ;;  %v1007_v25 = vsel %vm562_vm0, %v997_v2, 0.0 }
 0x188   : > { %v1025_v32 = vsel %vm562_vm0, %v1021_v3, 0.0 }
 0x18a   : > { %v988_v46 = vpop.permute.xlu0 %987 }
 0x18b   : > { %v998_v31 = vadd.f32 %v988_v46, %v978_v8  ;;  %v1165_v41 = vpop.permute.xlu1 %1164 }
 0x18c   : > { %v1176_v0 = vadd.f32 %v1165_v41, %v1156_v6 }
 0x18d   : > { %1004 = vst.msk [vmem:[%s1962_s9 + $0x8] sm:$0xff] %vm562_vm0, %v998_v31  ;;  %v1008_v28 = vsel %vm562_vm0, %v998_v31, 0.0  ;;  %v1022_v44 = vmul.f32 %v998_v31, %v998_v31 }
 0x18e   : > { %v1009_v13 = vadd.f32 %v1008_v28, %v1007_v25  ;;  %1362 = vst.msk [vmem:[%s1962_s9 + $0x20] sm:$0xff] %vm562_vm0, %v1176_v0  ;;  %v990_v60 = vpop.permute.xlu0 %989  ;;  %v1200_v15 = vmul.f32 %v1176_v0, %v1176_v0  ;;  %v1186_v21 = vsel %vm562_vm0, %v1176_v0, 0.0 }
 0x18f   : > { %v1026_v23 = vsel %vm562_vm0, %v1022_v44, 0.0  ;;  %v999_v48 = vadd.f32 %v990_v60, %v979_v58 }
 0x190   : > { %v1027_v45 = vadd.f32 %v1026_v23, %v1025_v32  ;;  %v1204_v59 = vsel %vm562_vm0, %v1200_v15, 0.0 }
 0x191   : > { %1005 = vst.msk [vmem:[%s1962_s9 + $0x10] sm:$0xff] %vm562_vm0, %v999_v48  ;;  %v1010_v1 = vsel %vm562_vm0, %v999_v48, 0.0  ;;  %v1023_v37 = vmul.f32 %v999_v48, %v999_v48 }
 0x192   : > { %v1011_v55 = vadd.f32 %v1010_v1, %v1009_v13  ;;  %v1167_v35 = vpop.permute.xlu1 %1166  ;;  %v992_v4 = vpop.permute.xlu0 %991 }
 0x193   : > { %v1028_v7 = vsel %vm562_vm0, %v1023_v37, 0.0  ;;  %v1177_v14 = vadd.f32 %v1167_v35, %v1157_v26  ;;  %v1000_v24 = vadd.f32 %v992_v4, %v980_v29 }
 0x194   : > { %v1029_v19 = vadd.f32 %v1028_v7, %v1027_v45 }
 0x195   : > { %1363 = vst.msk [vmem:[%s1962_s9 + $0x28] sm:$0xff] %vm562_vm0, %v1177_v14  ;;  %v1187_v11 = vsel %vm562_vm0, %v1177_v14, 0.0  ;;  %v1201_v39 = vmul.f32 %v1177_v14, %v1177_v14  ;;  %1006 = vst.msk [vmem:[%s1962_s9 + $0x18] sm:$0xff] %vm562_vm0, %v1000_v24  ;;  %v1012_v47 = vsel %vm562_vm0, %v1000_v24, 0.0  ;;  %v1024_v56 = vmul.f32 %v1000_v24, %v1000_v24 }
 0x196   : > { %v1188_v30 = vadd.f32 %v1187_v11, %v1186_v21  ;;  %v1013_v10 = vadd.f32 %v1012_v47, %v1011_v55 }
 0x197   : > { %v1205_v38 = vsel %vm562_vm0, %v1201_v39, 0.0  ;;  %v1030_v54 = vsel %vm562_vm0, %v1024_v56, 0.0  ;;  %v1169_v12 = vpop.permute.xlu1 %1168 }
 0x198   : > { %v1206_v62 = vadd.f32 %v1205_v38, %v1204_v59  ;;  %v1014_v34 = vrot.slane %v1013_v10, 4  ;;  %v1031_v22 = vadd.f32 %v1030_v54, %v1029_v19  ;;  %v1178_v49 = vadd.f32 %v1169_v12, %v1158_v17 }
 0x19a   : > { %v1032_v27 = vrot.slane %v1031_v22, 4  ;;  %1364 = vst.msk [vmem:[%s1962_s9 + $0x30] sm:$0xff] %vm562_vm0, %v1178_v49  ;;  %v1189_v9 = vsel %vm562_vm0, %v1178_v49, 0.0  ;;  %v1202_v16 = vmul.f32 %v1178_v49, %v1178_v49  ;;  %v1015_v43 = vadd.f32 %v1014_v34, %v1013_v10 }
 0x19b   : > { %v1190_v42 = vadd.f32 %v1189_v9, %v1188_v30  ;;  %v1171_v18 = vpop.permute.xlu1 %1170 }
 0x19c   : > { %v1207_v36 = vsel %vm562_vm0, %v1202_v16, 0.0  ;;  %v1179_v33 = vadd.f32 %v1171_v18, %v1159_v63  ;;  %v1033_v50 = vadd.f32 %v1032_v27, %v1031_v22  ;;  %v1016_v61 = vrot.slane %v1015_v43, 2 }
 0x19d   : > { %v1208_v40 = vadd.f32 %v1207_v36, %v1206_v62 }
 0x19e   : > { %1365 = vst.msk [vmem:[%s1962_s9 + $0x38] sm:$0xff] %vm562_vm0, %v1179_v33  ;;  %v1191_v52 = vsel %vm562_vm0, %v1179_v33, 0.0  ;;  %v1203_v20 = vmul.f32 %v1179_v33, %v1179_v33  ;;  %v1034_v2 = vrot.slane %v1033_v50, 2  ;;  %v1017_v8 = vadd.f32 %v1016_v61, %v1015_v43 }
 0x19f   : > { %v1192_v5 = vadd.f32 %v1191_v52, %v1190_v42 }
 0x1a0   : > { %v1209_v57 = vsel %vm562_vm0, %v1203_v20, 0.0  ;;  %v1035_v3 = vadd.f32 %v1034_v2, %v1033_v50  ;;  %v1018_v0 = vrot.slane %v1017_v8, 1 }
 0x1a1   : > { %v1193_v51 = vrot.slane %v1192_v5, 4  ;;  %v1210_v53 = vadd.f32 %v1209_v57, %v1208_v40 }
 0x1a2   : > { %v1036_v44 = vrot.slane %v1035_v3, 1  ;;  %v1019_v60 = vadd.f32 %v1018_v0, %v1017_v8 }
 0x1a3   : > { %v1194_v46 = vadd.f32 %v1193_v51, %v1192_v5  ;;  %v1211_v6 = vrot.slane %v1210_v53, 4 }
 0x1a4   : > { %v1037_v48 = vadd.f32 %v1036_v44, %v1035_v3 }
 0x1a5   : > { %v1195_v31 = vrot.slane %v1194_v46, 2  ;;  %v1212_v41 = vadd.f32 %v1211_v6, %v1210_v53 }
 0x1a7   : > { %v1196_v25 = vadd.f32 %v1195_v31, %v1194_v46  ;;  %v1213_v28 = vrot.slane %v1212_v41, 2 }
 0x1a9   : > { %v1197_v58 = vrot.slane %v1196_v25, 1  ;;  %v1214_v13 = vadd.f32 %v1213_v28, %v1212_v41 }
 0x1ab   : > { %v1198_v32 = vadd.f32 %v1197_v58, %v1196_v25  ;;  %v1215_v23 = vrot.slane %v1214_v13, 1 }
 0x1ad   : > { %v1199_v45 = vadd.f32 %v1198_v32, %v1019_v60  ;;  %v1216_v1 = vadd.f32 %v1215_v23, %v1214_v13 }
 0x1af   : > { %v1217_v37 = vadd.f32 %v1216_v1, %v1037_v48  ;;  %1219 = vst.msk [vmem:[%s316_s13] sm:$0x1] %vm1218_vm1, %v1199_v45 }
 0x1b1   : > { %1220 = vst.msk [vmem:[%s316_s13 + $0x1] sm:$0x1] %vm1218_vm1, %v1217_v37 }
 0x1b2 PF: > { %s19_s27 = sadd.s32 1, %s1458_s27  }
 0x1b3   : > { %p16_p4 = scmp.ge.s32.totalorder %s19_s27, 4  }
 0x1b5   :  { %18 = sbr.rel (!%p16_p4) target bundleno = 1 (0x1), region = 111 }

// kernel: rank_falcon_simplenet_forward.3
= control target key start
LH: loop header
LB: loop body
LE: loop exit
PB: predicated region body
PF: predicated region fallthrough
CT: control target
= control target key end

     0   :  { %12 = vsyncpa [#allocation4], 0  ;;  %s5797_s0 = inlined_call_operand.vmem [shape: bf16[2,4,256,8], index: 0, kind: input, shape index: {}]   ;;  %s5798_s1 = inlined_call_operand.hbm [shape: bf16[8,128], index: 1, kind: input, shape index: {}]   ;;  %s5799_s2 = inlined_call_operand.hbm [shape: f32[1,128], index: 2, kind: input, shape index: {}]   ;;  %s5800_s3 = inlined_call_operand.hbm [shape: f32[9,128], index: 3, kind: input, shape index: {}]   ;;  %s5801_s4 = inlined_call_operand.hbm [shape: f32[1,64], index: 4, kind: input, shape index: {}]   ;;  %s5802_s5 = inlined_call_operand.vmem [shape: f32[2,16,16,64], index: 5, kind: output, shape index: {0}]   ;;  %s5803_s6 = inlined_call_operand.vmem [shape: f32[2,2,64], index: 6, kind: output, shape index: {1}]  }
   0x1   :  { %13 = vsyncpa [#allocation6], 0 }
   0x2   :  { %14 = vsyncpa [#allocation9], 0  ;;  %s3951_s21 = smov 0  }
   0x3 LB: > { %s3908_s22 = smov [#allocation5]   ;;  %s3957_s24 = sadd.s32 4294967295, %s3906_s21   ;;  %s3906_s21 = sphi %s3951_s21, %s20_s21  }
   0x4   : > { %s211_s23 = sshll.u32 %s3908_s22, 4  ;;  %p3265_p0 = scmp.ge.s32.totalorder %s3906_s21, 1  ;;  %s3962_s23 = int_to_ptr.vmem [resolvable:$true] %s211_s23 }
   0x5   : > { %p187_p1 = scmp.lt.s32.totalorder %s3906_s21, 3  ;;  %p5804_p2 = scmp.eq.s32.totalorder %s3957_s24, 0 }
   0x6   : > { %s3909_s26 = smov [#allocation3]   ;;  %s3910_s28 = smov [#allocation7]  }
   0x7   : > { %p3964_p3 = pnand %p3265_p0, %p187_p1  ;;  %s200_s27 = sshll.u32 %s3909_s26, 4  ;;  %s3970_s27 = int_to_ptr.vmem [resolvable:$true] %s200_s27 }
   0x8   : > { %s221_s29 = sshll.u32 %s3910_s28, 4  ;;  %s3911_s7 = smov [#allocation8]   ;;  %s3978_s29 = int_to_ptr.vmem [resolvable:$true] %s221_s29 }
   0x9   : > { %s5821_s25 = scalar_select %p3964_p3, 1, 0 }
   0xa   : > { %p3663_p4 = pneg %p3964_p3  ;;  %s3980_s8 = sshll.u32 %s3911_s7, 4  ;;  %s236_s8 = int_to_ptr.vmem [resolvable:$true] %s3980_s8 }
   0xb   : > { %s3776_s11 = scalar_lea.hbm %s5799_s2, 16 }
   0xc   : > { %p3974_p5 = pnand %p5804_p2, %p3663_p4  ;;  %p3777_p6 = scmp.ne.s32.totalorder %s5799_s2, %s3776_s11 }
   0xd   : > { %p3783_p10 = scmp.lt.u32.totalorder %s3776_s11, %s5799_s2 }
   0xe   : > { %p3990_p7 = pneg %p3974_p5 }
  0x10   : > { %p3779_p8 = pnand %p3990_p7, %p3777_p6 }
  0x12   : > { %p3780_p9 = pneg %p3779_p8 }
  0x14   : > { %p3785_p11 = pnand %p3783_p10, %p3780_p9 }
  0x16   : > { %3788 = shalt.err (!%p3785_p11)
}
  0x17   : > { %s3789_s17 = scalar_lea.vmem %s3962_s23, 16  ;;  %s3796_s18 = scalar_lea.vmem %s3962_s23, 32 }
  0x18   : > { %p3790_p12 = scmp.ne.s32.totalorder %s3962_s23, %s3789_s17  ;;  %p3797_p1 = scmp.lt.s32.totalorder %s3962_s23, %s3962_s23 }
  0x19   : > { %p3798_p4 = scmp.lt.s32.totalorder %s3796_s18, %s3789_s17 }
  0x1a   : > { %p3792_p13 = pnand %p3790_p12, %p3990_p7 }
  0x1b   : > { %p3799_p6 = por %p3798_p4, %p3797_p1 }
  0x1c   : > { %p3793_p0 = pneg %p3792_p13 }
  0x1e   : > { %p3800_p8 = pnand %p3799_p6, %p3793_p0 }
  0x20   : > { %3803 = shalt.err (!%p3800_p8)
}
  0x21   : > { %3669 = dma.hbm_to_vmem [thread:$0]  (!%p3974_p5), %s5799_s2, 16, %s3962_s23, [#allocation6]  }
  0x22   : > { %s3804_s28 = scalar_lea.hbm %s5798_s1, 64 }
  0x23   : > { %p3805_p9 = scmp.ne.s32.totalorder %s5798_s1, %s3804_s28  ;;  %p3811_p12 = scmp.lt.u32.totalorder %s3804_s28, %s5798_s1 }
  0x25   : > { %p3807_p10 = pnand %p3805_p9, %p3990_p7 }
  0x27   : > { %p3808_p11 = pneg %p3807_p10 }
  0x29   : > { %p3813_p13 = pnand %p3811_p12, %p3808_p11 }
  0x2b   : > { %3816 = shalt.err (!%p3813_p13)
}
  0x2c   : > { %s3817_s23 = scalar_lea.vmem %s3970_s27, 64  ;;  %p3825_p6 = scmp.lt.s32.totalorder %s3970_s27, %s3970_s27 }
  0x2d   : > { %p3818_p0 = scmp.ne.s32.totalorder %s3970_s27, %s3817_s23  ;;  %p3826_p8 = scmp.lt.s32.totalorder %s3817_s23, %s3817_s23 }
  0x2f   : > { %p3820_p1 = pnand %p3818_p0, %p3990_p7  ;;  %p3827_p9 = por %p3826_p8, %p3825_p6 }
  0x31   : > { %p3821_p4 = pneg %p3820_p1 }
  0x33   : > { %p3828_p10 = pnand %p3827_p9, %p3821_p4 }
  0x35   : > { %3831 = shalt.err (!%p3828_p10)
}
  0x36   : > { %3666 = dma.hbm_to_vmem [thread:$0]  (!%p3974_p5), %s5798_s1, 64, %s3970_s27, [#allocation4]  }
  0x37   : > { %s3832_s17 = scalar_lea.hbm %s5800_s3, 256 }
  0x38   : > { %p3833_p11 = scmp.ne.s32.totalorder %s5800_s3, %s3832_s17  ;;  %p3839_p0 = scmp.lt.u32.totalorder %s3832_s17, %s5800_s3 }
  0x3a   : > { %p3835_p12 = pnand %p3833_p11, %p3990_p7 }
  0x3c   : > { %p3836_p13 = pneg %p3835_p12 }
  0x3e   : > { %p3841_p1 = pnand %p3839_p0, %p3836_p13 }
  0x40   : > { %3844 = shalt.err (!%p3841_p1)
}
  0x41   : > { %s3845_s27 = scalar_lea.vmem %s3978_s29, 256  ;;  %p3853_p9 = scmp.lt.s32.totalorder %s3978_s29, %s3978_s29 }
  0x42   : > { %p3846_p4 = scmp.ne.s32.totalorder %s3978_s29, %s3845_s27  ;;  %p3854_p10 = scmp.lt.s32.totalorder %s3845_s27, %s3845_s27 }
  0x44   : > { %p3848_p6 = pnand %p3846_p4, %p3990_p7  ;;  %p3855_p11 = por %p3854_p10, %p3853_p9 }
  0x46   : > { %p3849_p8 = pneg %p3848_p6 }
  0x48   : > { %p3856_p12 = pnand %p3855_p11, %p3849_p8 }
  0x4a   : > { %3859 = shalt.err (!%p3856_p12)
}
  0x4b   : > { %s3912_s26 = smov 128   ;;  %s3913_s28 = smov 8  }
  0x4c   : > { %3672 = dma.hbm_to_vmem [thread:$0]  (!%p3974_p5), %s5800_s3, 256, %s3978_s29, [#allocation6], %s3912_s26, %s3912_s26, %s3913_s28  }
  0x4d   : > { %s3860_s23 = scalar_lea.hbm %s5801_s4, 16 }
  0x4e   : > { %p3861_p13 = scmp.ne.s32.totalorder %s5801_s4, %s3860_s23  ;;  %p3867_p4 = scmp.lt.u32.totalorder %s3860_s23, %s5801_s4 }
  0x50   : > { %p3863_p0 = pnand %p3861_p13, %p3990_p7 }
  0x52   : > { %p3864_p1 = pneg %p3863_p0 }
  0x54   : > { %p3869_p6 = pnand %p3867_p4, %p3864_p1 }
  0x56   : > { %3872 = shalt.err (!%p3869_p6)
}
  0x57   : > { %s3873_s17 = scalar_lea.vmem %s236_s8, 16  ;;  %s3880_s29 = scalar_lea.vmem %s236_s8, 32 }
  0x58   : > { %p3874_p8 = scmp.ne.s32.totalorder %s236_s8, %s3873_s17  ;;  %p3881_p11 = scmp.lt.s32.totalorder %s236_s8, %s236_s8 }
  0x59   : > { %p3882_p12 = scmp.lt.s32.totalorder %s3880_s29, %s3873_s17 }
  0x5a   : > { %p3876_p9 = pnand %p3874_p8, %p3990_p7 }
  0x5b   : > { %p3883_p2 = por %p3882_p12, %p3881_p11 }
  0x5c   : > { %p3877_p10 = pneg %p3876_p9 }
  0x5e   : > { %p3884_p3 = pnand %p3883_p2, %p3877_p10 }
  0x60   : > { %3887 = shalt.err (!%p3884_p3)
}
  0x61   : > { %3675 = dma.hbm_to_vmem [thread:$0]  (!%p3974_p5), %s5801_s4, 16, %s236_s8, [#allocation9]  }
  0x62   : > { %p5824_p13 = scmp.ne.s32.totalorder %s5821_s25, 0 }
  0x64   : > { %256 = sbr.rel (%p5824_p13) target bundleno = 695 (0x2b7), region = 40 }
  0x6b   : > { %p5825_p0 = scmp.eq.s32.totalorder %s3957_s24, 0 }
  0x6d   : > { %3893 = dma.done.wait (%p5825_p0), [#allocation4], 64   ;;  %p5826_p7 = pmov %p5825_p0 }
  0x6e   : > { %p5827_p1 = pmov %p5825_p0 }
  0x6f   : > { %3895 = vsyncadd (%p5826_p7), [#allocation4], 4294967232 }
  0x70   : > { %3897 = dma.done.wait (%p5827_p1), [#allocation6], 272   ;;  %p5828_p2 = pmov %p5825_p0 }
  0x71   : > { %p5829_p3 = pmov %p5825_p0 }
  0x72   : > { %3899 = vsyncadd (%p5828_p2), [#allocation6], 4294967024 }
  0x73   : > { %3901 = dma.done.wait (%p5829_p3), [#allocation9], 16   ;;  %p5830_p5 = pmov %p5825_p0 }
  0x74   : > { %p302_p4 = scmp.lt.s32.totalorder %s3957_s24, 1  ;;  %v3914_v0 = vmov 0.0   ;;  %vm1049_vm0 = vcmask 1043456   ;;  %vm856_vm1 = vcmask 64512   ;;  %v528_v1 = vld [vmem:[#allocation3] sm:$0xf] }
  0x75   : > { %3903 = vsyncadd (%p5830_p5), [#allocation9], 4294967280  ;;  %317 = vst [vmem:[#allocation2] sm:$0xff] %v3914_v0  ;;  %3645 = vmatprep.subr.msk.bf16.mxu0 %vm1049_vm0, %v528_v1  ;;  %3646 = vmatprep.subr.msk.bf16.mxu1 %vm1049_vm0, %v528_v1  ;;  %v1051_v2 = vsel %vm1049_vm0, %v528_v1, 0  ;;  %s3915_s20 = smov 64   ;;  %vm2053_vm2 = vcmask 523264  }
  0x76   : > { %318 = vst [vmem:[#allocation2 + $0x8] sm:$0xff] %v3914_v0  ;;  %319 = vst [vmem:[#allocation2 + $0x10] sm:$0xff] %v3914_v0  ;;  %s6110_s24 = smov (!%p302_p4, %s3957_s24), 1  ;;  %3514 = vmatpush3.bf16.msra.mxu0 %v1051_v2  ;;  %3644 = vmatpush3.bf16.msra.mxu1 %v1051_v2  ;;  %vm3107_vm3 = vcmask 516096  }
  0x77   : > { %321 = vst [vmem:[#allocation2 + $0x1f] sm:$0x1] %v3914_v0  ;;  %322 = vst [vmem:[#allocation2 + $0x37] sm:$0x1] %v3914_v0  ;;  %s3446_s25 = sshll.u32 %s6110_s24, 9  ;;  %s3447_s22 = sshll.u32 %s6110_s24, 8 }
  0x78   : > { %323 = vst [vmem:[#allocation2 + $0x4f] sm:$0x1] %v3914_v0  ;;  %324 = vst [vmem:[#allocation2 + $0x67] sm:$0x1] %v3914_v0  ;;  %s4101_s14 = scalar_lea.vmem %s5797_s0, %s3446_s25  ;;  %s5601_s28 = scalar_lea.vmem %s5802_s5, %s3447_s22 }
  0x79   : > { %325 = vst [vmem:[#allocation2 + $0x7f] sm:$0x1] %v3914_v0  ;;  %326 = vst [vmem:[#allocation2 + $0x97] sm:$0x1] %v3914_v0  ;;  %v3700_v3 = vld [vmem:[%s4101_s14] sm:$0xff]   ;;  %v3702_v5 = vld [vmem:[%s4101_s14 + $0x8] sm:$0xff]  }
  0x7a   : > { %327 = vst [vmem:[#allocation2 + $0xaf] sm:$0x1] %v3914_v0  ;;  %328 = vst [vmem:[#allocation2 + $0xc7] sm:$0x1] %v3914_v0  ;;  %v3701_v4 = vld [vmem:[%s4101_s14 + $0x100] sm:$0xff]   ;;  %3515 = vmatprep.mubr.msk.bf16.mxu0 %vm856_vm1, %v3700_v3  ;;  %v3703_v6 = vld [vmem:[%s4101_s14 + $0x108] sm:$0xff]  }
  0x7b   : > { %329 = vst [vmem:[#allocation2 + $0xdf] sm:$0x1] %v3914_v0  ;;  %330 = vst [vmem:[#allocation2 + $0xf7] sm:$0x1] %v3914_v0  ;;  %3579 = vmatprep.mubr.msk.bf16.mxu1 %vm856_vm1, %v3701_v4  ;;  %3516 = vmatmul.mubr.msk.bf16.vlgmr.msra.gmra.mrb[0].mxu0 %vm856_vm1, %v3702_v5  ;;  %v3704_v7 = vld [vmem:[%s4101_s14 + $0x10] sm:$0xff]   ;;  %v3706_v9 = vld [vmem:[%s4101_s14 + $0x18] sm:$0xff]  }
  0x7c   : > { %331 = vst [vmem:[#allocation2 + $0x10f] sm:$0x1] %v3914_v0  ;;  %332 = vst [vmem:[#allocation2 + $0x127] sm:$0x1] %v3914_v0  ;;  %3580 = vmatmul.mubr.msk.bf16.vlgmr.msra.gmra.mrb[0].mxu1 %vm856_vm1, %v3703_v6  ;;  %v3705_v8 = vld [vmem:[%s4101_s14 + $0x110] sm:$0xff]   ;;  %3519 = vmatprep.mubr.msk.bf16.mxu0 %vm856_vm1, %v3704_v7  ;;  %v3707_v10 = vld [vmem:[%s4101_s14 + $0x118] sm:$0xff]  }
  0x7d   : > { %333 = vst [vmem:[#allocation2 + $0x13f] sm:$0x1] %v3914_v0  ;;  %334 = vst [vmem:[#allocation2 + $0x157] sm:$0x1] %v3914_v0  ;;  %3583 = vmatprep.mubr.msk.bf16.mxu1 %vm856_vm1, %v3705_v8  ;;  %v3708_v11 = vld [vmem:[%s4101_s14 + $0x20] sm:$0xff]   ;;  %v3710_v13 = vld [vmem:[%s4101_s14 + $0x28] sm:$0xff]  }
  0x7e   : > { %335 = vst [vmem:[#allocation2 + $0x16f] sm:$0x1] %v3914_v0  ;;  %336 = vst [vmem:[#allocation2 + $0x187] sm:$0x1] %v3914_v0  ;;  %v3709_v12 = vld [vmem:[%s4101_s14 + $0x120] sm:$0xff]   ;;  %v3711_v14 = vld [vmem:[%s4101_s14 + $0x128] sm:$0xff]  }
  0x7f   : > { %363 = vst [vmem:[#allocation2 + $0x34f] sm:$0x1] %v3914_v0  ;;  %364 = vst [vmem:[#allocation2 + $0x367] sm:$0x1] %v3914_v0  ;;  %v3712_v15 = vld [vmem:[%s4101_s14 + $0x30] sm:$0xff]   ;;  %v3714_v17 = vld [vmem:[%s4101_s14 + $0x38] sm:$0xff]  }
  0x80   : > { %365 = vst [vmem:[#allocation2 + $0x37f] sm:$0x1] %v3914_v0  ;;  %366 = vst [vmem:[#allocation2 + $0x397] sm:$0x1] %v3914_v0  ;;  %v3713_v16 = vld [vmem:[%s4101_s14 + $0x130] sm:$0xff]   ;;  %v3715_v18 = vld [vmem:[%s4101_s14 + $0x138] sm:$0xff]  }
  0x81   : > { %367 = vst [vmem:[#allocation2 + $0x3af] sm:$0x1] %v3914_v0  ;;  %368 = vst [vmem:[#allocation2 + $0x3c7] sm:$0x1] %v3914_v0  ;;  %v3716_v19 = vld [vmem:[%s4101_s14 + $0x40] sm:$0xff]   ;;  %v3718_v21 = vld [vmem:[%s4101_s14 + $0x48] sm:$0xff]  }
  0x82   : > { %369 = vst [vmem:[#allocation2 + $0x3df] sm:$0x1] %v3914_v0  ;;  %370 = vst [vmem:[#allocation2 + $0x3f7] sm:$0x1] %v3914_v0  ;;  %v3717_v20 = vld [vmem:[%s4101_s14 + $0x140] sm:$0xff]   ;;  %v3719_v22 = vld [vmem:[%s4101_s14 + $0x148] sm:$0xff]  }
  0x83   : > { %371 = vst [vmem:[#allocation2 + $0x40f] sm:$0x1] %v3914_v0  ;;  %372 = vst [vmem:[#allocation2 + $0x427] sm:$0x1] %v3914_v0  ;;  %3520 = vmatmul.mubr.msk.bf16.gmra.mrb[4].mxu0 %vm856_vm1, %v3706_v9  ;;  %v3720_v23 = vld [vmem:[%s4101_s14 + $0x50] sm:$0xff]   ;;  %v3722_v25 = vld [vmem:[%s4101_s14 + $0x58] sm:$0xff]  }
  0x84   : > { %373 = vst [vmem:[#allocation2 + $0x43f] sm:$0x1] %v3914_v0  ;;  %374 = vst [vmem:[#allocation2 + $0x457] sm:$0x1] %v3914_v0  ;;  %3584 = vmatmul.mubr.msk.bf16.gmra.mrb[4].mxu1 %vm856_vm1, %v3707_v10  ;;  %3523 = vmatprep.mubr.msk.bf16.mxu0 %vm856_vm1, %v3708_v11  ;;  %v3721_v24 = vld [vmem:[%s4101_s14 + $0x150] sm:$0xff]   ;;  %v3723_v26 = vld [vmem:[%s4101_s14 + $0x158] sm:$0xff]  }
  0x85   : > { %375 = vst [vmem:[#allocation2 + $0x46f] sm:$0x1] %v3914_v0  ;;  %376 = vst [vmem:[#allocation2 + $0x487] sm:$0x1] %v3914_v0  ;;  %3587 = vmatprep.mubr.msk.bf16.mxu1 %vm856_vm1, %v3709_v12  ;;  %v3724_v27 = vld [vmem:[%s4101_s14 + $0x60] sm:$0xff]   ;;  %v3726_v29 = vld [vmem:[%s4101_s14 + $0x68] sm:$0xff]  }
  0x86   : > { %377 = vst [vmem:[#allocation2 + $0x49f] sm:$0x1] %v3914_v0  ;;  %378 = vst [vmem:[#allocation2 + $0x4b7] sm:$0x1] %v3914_v0  ;;  %v3725_v28 = vld [vmem:[%s4101_s14 + $0x160] sm:$0xff]   ;;  %v3727_v30 = vld [vmem:[%s4101_s14 + $0x168] sm:$0xff]  }
  0x87   : > { %320 = vst [vmem:[#allocation2 + $0x7] sm:$0x1] %v3914_v0  ;;  %v3728_v31 = vld [vmem:[%s4101_s14 + $0x70] sm:$0xff]   ;;  %v3730_v33 = vld [vmem:[%s4101_s14 + $0x78] sm:$0xff]   ;;  %v3732_v35 = vld [vmem:[%s4101_s14 + $0x80] sm:$0xff]   ;;  %s3280_s7 = sshll.u32 %s6110_s24, 1 }
  0x88   : > { %v3729_v32 = vld [vmem:[%s4101_s14 + $0x170] sm:$0xff]   ;;  %v3731_v34 = vld [vmem:[%s4101_s14 + $0x178] sm:$0xff]   ;;  %v3733_v36 = vld [vmem:[%s4101_s14 + $0x180] sm:$0xff]   ;;  %s315_s11 = scalar_lea.vmem %s5803_s6, %s3280_s7 }
  0x89   : > { %v3734_v37 = vld [vmem:[%s4101_s14 + $0x88] sm:$0xff]   ;;  %v3736_v39 = vld [vmem:[%s4101_s14 + $0x90] sm:$0xff]   ;;  %v3738_v41 = vld [vmem:[%s4101_s14 + $0x98] sm:$0xff]  }
  0x8a   : > { %v3735_v38 = vld [vmem:[%s4101_s14 + $0x188] sm:$0xff]   ;;  %v3737_v40 = vld [vmem:[%s4101_s14 + $0x190] sm:$0xff]   ;;  %v3739_v42 = vld [vmem:[%s4101_s14 + $0x198] sm:$0xff]  }
  0x8b   : > { %3524 = vmatmul.mubr.msk.bf16.gmra.mrb[8].mxu0 %vm856_vm1, %v3710_v13  ;;  %v3740_v43 = vld [vmem:[%s4101_s14 + $0xa0] sm:$0xff]   ;;  %v3742_v45 = vld [vmem:[%s4101_s14 + $0xa8] sm:$0xff]   ;;  %v3744_v47 = vld [vmem:[%s4101_s14 + $0xb0] sm:$0xff]  }
  0x8c   : > { %3588 = vmatmul.mubr.msk.bf16.gmra.mrb[8].mxu1 %vm856_vm1, %v3711_v14  ;;  %3527 = vmatprep.mubr.msk.bf16.mxu0 %vm856_vm1, %v3712_v15  ;;  %v3741_v44 = vld [vmem:[%s4101_s14 + $0x1a0] sm:$0xff]   ;;  %v3743_v46 = vld [vmem:[%s4101_s14 + $0x1a8] sm:$0xff]   ;;  %v3745_v48 = vld [vmem:[%s4101_s14 + $0x1b0] sm:$0xff]  }
  0x8d   : > { %3591 = vmatprep.mubr.msk.bf16.mxu1 %vm856_vm1, %v3713_v16  ;;  %v3746_v49 = vld [vmem:[%s4101_s14 + $0xb8] sm:$0xff]   ;;  %v3748_v51 = vld [vmem:[%s4101_s14 + $0xc0] sm:$0xff]   ;;  %v3750_v53 = vld [vmem:[%s4101_s14 + $0xc8] sm:$0xff]  }
  0x8e   : > { %v3747_v50 = vld [vmem:[%s4101_s14 + $0x1b8] sm:$0xff]   ;;  %v3749_v52 = vld [vmem:[%s4101_s14 + $0x1c0] sm:$0xff]   ;;  %v3751_v54 = vld [vmem:[%s4101_s14 + $0x1c8] sm:$0xff]  }
  0x8f   : > { %v3752_v55 = vld [vmem:[%s4101_s14 + $0xd0] sm:$0xff]   ;;  %v3754_v57 = vld [vmem:[%s4101_s14 + $0xd8] sm:$0xff]   ;;  %v3756_v59 = vld [vmem:[%s4101_s14 + $0xe0] sm:$0xff]  }
  0x90   : > { %v3753_v56 = vld [vmem:[%s4101_s14 + $0x1d0] sm:$0xff]   ;;  %v3755_v58 = vld [vmem:[%s4101_s14 + $0x1d8] sm:$0xff]   ;;  %v3757_v60 = vld [vmem:[%s4101_s14 + $0x1e0] sm:$0xff]  }
  0x91   : > { %v3758_v61 = vld [vmem:[%s4101_s14 + $0xe8] sm:$0xff]   ;;  %v3760_v63 = vld [vmem:[%s4101_s14 + $0xf0] sm:$0xff]   ;;  %v3762_v1 = vld [vmem:[%s4101_s14 + $0xf8] sm:$0xff]  }
  0x92   : > { %v3759_v62 = vld [vmem:[%s4101_s14 + $0x1e8] sm:$0xff]   ;;  %v3761_v0 = vld [vmem:[%s4101_s14 + $0x1f0] sm:$0xff]   ;;  %v3763_v2 = vld [vmem:[%s4101_s14 + $0x1f8] sm:$0xff]  }
  0x93   : > { %3528 = vmatmul.mubr.msk.bf16.gmra.mrb[12].mxu0 %vm856_vm1, %v3714_v17  ;;  %v4231_v3 = vld [vmem:[#allocation5] ss:$0 sm:$0xff]  ;;  %v4236_v8 = vld [vmem:[#allocation7] ss:$0 sm:$0xff]  ;;  %v4244_v13 = vld [vmem:[#allocation7 + $0x1] ss:$0 sm:$0xff] }
  0x94   : > { %3592 = vmatmul.mubr.msk.bf16.gmra.mrb[12].mxu1 %vm856_vm1, %v3715_v18  ;;  %3531 = vmatprep.mubr.msk.bf16.mxu0 %vm856_vm1, %v3716_v19  ;;  %v1742_v14 = vld [vmem:[#allocation2 + $0x7] sm:$0xff]  ;;  %v1743_v15 = vld [vmem:[#allocation2 + $0xf] sm:$0xff] }
  0x95   : > { %3595 = vmatprep.mubr.msk.bf16.mxu1 %vm856_vm1, %v3717_v20 }
  0x9b   : > { %3532 = vmatmul.mubr.msk.bf16.gmra.mrb[16].mxu0 %vm856_vm1, %v3718_v21 }
  0x9c   : > { %3596 = vmatmul.mubr.msk.bf16.gmra.mrb[16].mxu1 %vm856_vm1, %v3719_v22  ;;  %3535 = vmatprep.mubr.msk.bf16.mxu0 %vm856_vm1, %v3720_v23 }
  0x9d   : > { %3599 = vmatprep.mubr.msk.bf16.mxu1 %vm856_vm1, %v3721_v24  ;;  %v1754_v24 = vmul.f32 %v4236_v8, %v1742_v14 }
  0xa3   : > { %3536 = vmatmul.mubr.msk.bf16.gmra.mrb[20].mxu0 %vm856_vm1, %v3722_v25  ;;  %v1776_v25 = vmul.f32 0.0, %v4244_v13 }
  0xa4   : > { %3600 = vmatmul.mubr.msk.bf16.gmra.mrb[20].mxu1 %vm856_vm1, %v3723_v26  ;;  %3539 = vmatprep.mubr.msk.bf16.mxu0 %vm856_vm1, %v3724_v27  ;;  %v1755_v26 = vmul.f32 %v4236_v8, %v1743_v15 }
  0xa5   : > { %3603 = vmatprep.mubr.msk.bf16.mxu1 %vm856_vm1, %v3725_v28  ;;  %v4260_v28 = vld [vmem:[#allocation7 + $0x2] ss:$0 sm:$0xff] }
  0xab   : > { %3540 = vmatmul.mubr.msk.bf16.gmra.mrb[24].mxu0 %vm856_vm1, %v3726_v29 }
  0xac   : > { %3604 = vmatmul.mubr.msk.bf16.gmra.mrb[24].mxu1 %vm856_vm1, %v3727_v30  ;;  %3543 = vmatprep.mubr.msk.bf16.mxu0 %vm856_vm1, %v3728_v31 }
  0xad   : > { %3607 = vmatprep.mubr.msk.bf16.mxu1 %vm856_vm1, %v3729_v32  ;;  %v1784_v32 = vadd.f32 %v1776_v25, %v1754_v24 }
  0xb3   : > { %3544 = vmatmul.mubr.msk.bf16.gmra.mrb[28].mxu0 %vm856_vm1, %v3730_v33  ;;  %v1804_v33 = vmul.f32 0.0, %v4260_v28 }
  0xb4   : > { %3608 = vmatmul.mubr.msk.bf16.gmra.mrb[28].mxu1 %vm856_vm1, %v3731_v34  ;;  %3547 = vmatprep.mubr.msk.bf16.mxu0 %vm856_vm1, %v3732_v35  ;;  %v1785_v34 = vadd.f32 %v1776_v25, %v1755_v26 }
  0xb5   : > { %3611 = vmatprep.mubr.msk.bf16.mxu1 %vm856_vm1, %v3733_v36 }
  0xbb   : > { %3548 = vmatmul.mubr.msk.bf16.gmra.mrb[32].mxu0 %vm856_vm1, %v3734_v37 }
  0xbc   : > { %3612 = vmatmul.mubr.msk.bf16.gmra.mrb[32].mxu1 %vm856_vm1, %v3735_v38  ;;  %3551 = vmatprep.mubr.msk.bf16.mxu0 %vm856_vm1, %v3736_v39 }
  0xbd   : > { %3615 = vmatprep.mubr.msk.bf16.mxu1 %vm856_vm1, %v3737_v40 }
  0xc3   : > { %3552 = vmatmul.mubr.msk.bf16.gmra.mrb[36].mxu0 %vm856_vm1, %v3738_v41 }
  0xc4   : > { %3616 = vmatmul.mubr.msk.bf16.gmra.mrb[36].mxu1 %vm856_vm1, %v3739_v42  ;;  %3555 = vmatprep.mubr.msk.bf16.mxu0 %vm856_vm1, %v3740_v43  ;;  %v4275_v43 = vld [vmem:[#allocation7 + $0x5] ss:$0 sm:$0xff] }
  0xc5   : > { %3619 = vmatprep.mubr.msk.bf16.mxu1 %vm856_vm1, %v3741_v44  ;;  %v4277_v44 = vld [vmem:[#allocation7 + $0x8] ss:$0 sm:$0xff] }
  0xcb   : > { %3556 = vmatmul.mubr.msk.bf16.gmra.mrb[40].mxu0 %vm856_vm1, %v3742_v45 }
  0xcc   : > { %3620 = vmatmul.mubr.msk.bf16.gmra.mrb[40].mxu1 %vm856_vm1, %v3743_v46  ;;  %3559 = vmatprep.mubr.msk.bf16.mxu0 %vm856_vm1, %v3744_v47 }
  0xcd   : > { %3623 = vmatprep.mubr.msk.bf16.mxu1 %vm856_vm1, %v3745_v48 }
  0xd3   : > { %3560 = vmatmul.mubr.msk.bf16.gmra.mrb[44].mxu0 %vm856_vm1, %v3746_v49  ;;  %v4288_v49 = vld [vmem:[#allocation7 + $0x3] ss:$0 sm:$0xff] }
  0xd4   : > { %3624 = vmatmul.mubr.msk.bf16.gmra.mrb[44].mxu1 %vm856_vm1, %v3747_v50  ;;  %3563 = vmatprep.mubr.msk.bf16.mxu0 %vm856_vm1, %v3748_v51  ;;  %v1812_v50 = vadd.f32 %v1804_v33, %v1784_v32  ;;  %v4290_v51 = vadd.f32 %v1804_v33, %v1785_v34 }
  0xd5   : > { %3627 = vmatprep.mubr.msk.bf16.mxu1 %vm856_vm1, %v3749_v52 }
  0xdb   : > { %3564 = vmatmul.mubr.msk.bf16.gmra.mrb[48].mxu0 %vm856_vm1, %v3750_v53 }
  0xdc   : > { %3628 = vmatmul.mubr.msk.bf16.gmra.mrb[48].mxu1 %vm856_vm1, %v3751_v54  ;;  %3567 = vmatprep.mubr.msk.bf16.mxu0 %vm856_vm1, %v3752_v55  ;;  %v4297_v54 = vld [vmem:[#allocation7 + $0x6] ss:$0 sm:$0xff] }
  0xdd   : > { %3631 = vmatprep.mubr.msk.bf16.mxu1 %vm856_vm1, %v3753_v56 }
  0xe3   : > { %3568 = vmatmul.mubr.msk.bf16.gmra.mrb[52].mxu0 %vm856_vm1, %v3754_v57 }
  0xe4   : > { %3632 = vmatmul.mubr.msk.bf16.gmra.mrb[52].mxu1 %vm856_vm1, %v3755_v58  ;;  %3571 = vmatprep.mubr.msk.bf16.mxu0 %vm856_vm1, %v3756_v59 }
  0xe5   : > { %3635 = vmatprep.mubr.msk.bf16.mxu1 %vm856_vm1, %v3757_v60 }
  0xeb   : > { %3572 = vmatmul.mubr.msk.bf16.gmra.mrb[56].mxu0 %vm856_vm1, %v3758_v61 }
  0xec   : > { %3636 = vmatmul.mubr.msk.bf16.gmra.mrb[56].mxu1 %vm856_vm1, %v3759_v62  ;;  %3575 = vmatprep.mubr.msk.bf16.mxu0 %vm856_vm1, %v3760_v63 }
  0xed   : > { %3639 = vmatprep.mubr.msk.bf16.mxu1 %vm856_vm1, %v3761_v0 }
  0xf3   : > { %3576 = vmatmul.mubr.msk.bf16.gmra.mrb[60].mxu0 %vm856_vm1, %v3762_v1 }
  0xf4   : > { %3640 = vmatmul.mubr.msk.bf16.gmra.mrb[60].mxu1 %vm856_vm1, %v3763_v2 }
 0x14e   : > { %v3517_v4 = vpop.f32.mrb[0].mxu0 }
 0x14f   : > { %v4234_v5 = vadd.f32 %v3517_v4, %v4231_v3  ;;  %v3581_v6 = vpop.f32.mrb[0].mxu1  ;;  %v1087_v7 = vpop.f32.mrb[1].mxu0 }
 0x150   : > { %v4239_v9 = vadd.f32 %v3581_v6, %v4231_v3  ;;  %v4242_v10 = vadd.f32 %v4231_v3, %v1087_v7  ;;  %v1343_v11 = vpop.f32.mrb[1].mxu1  ;;  %v3518_v12 = vpop.f32.mrb[2].mxu0 }
 0x151   : > { %1601 = vst [vmem:[#allocation2 + $0x38] sm:$0xff] %v4234_v5  ;;  %v1344_v16 = vadd.f32 %v4231_v3, %v1343_v11  ;;  %v4249_v17 = vadd.f32 %v3518_v12, %v4231_v3  ;;  %v3582_v18 = vpop.f32.mrb[2].mxu1  ;;  %v1090_v19 = vpop.f32.mrb[3].mxu0  ;;  %v4294_v53 = vmul.f32 %v4260_v28, %v4234_v5  ;;  %v4312_v60 = vmul.f32 %v4277_v44, %v4234_v5 }
 0x152   : > { %1667 = vst [vmem:[#allocation2 + $0x368] sm:$0xff] %v4239_v9  ;;  %1599 = vst [vmem:[#allocation2 + $0x20] sm:$0xff] %v4242_v10  ;;  %v1355_v20 = vadd.f32 %v3582_v18, %v4231_v3  ;;  %v1091_v21 = vadd.f32 %v4231_v3, %v1090_v19  ;;  %v1346_v22 = vpop.f32.mrb[3].mxu1  ;;  %v4304_v58 = vmul.f32 %v4277_v44, %v4242_v10 }
 0x153   : > { %1665 = vst [vmem:[#allocation2 + $0x350] sm:$0xff] %v1344_v16  ;;  %1602 = vst [vmem:[#allocation2 + $0x40] sm:$0xff] %v4249_v17  ;;  %v1347_v23 = vadd.f32 %v4231_v3, %v1346_v22  ;;  %v4300_v56 = vmul.f32 %v4275_v43, %v1344_v16  ;;  %v4308_v59 = vmul.f32 %v4260_v28, %v4242_v10 }
 0x154   : > { %1668 = vst [vmem:[#allocation2 + $0x370] sm:$0xff] %v1355_v20  ;;  %1600 = vst [vmem:[#allocation2 + $0x28] sm:$0xff] %v1091_v21  ;;  %v4316_v61 = vmul.f32 %v4277_v44, %v1091_v21  ;;  %v4320_v62 = vmul.f32 %v4275_v43, %v4239_v9  ;;  %v4324_v63 = vmul.f32 %v4260_v28, %v4249_v17 }
 0x155   : > { %1666 = vst [vmem:[#allocation2 + $0x358] sm:$0xff] %v1347_v23  ;;  %v4327_v0 = vmul.f32 %v4260_v28, %v1091_v21  ;;  %v4330_v4 = vmul.f32 %v4275_v43, %v1347_v23  ;;  %v4336_v6 = vmul.f32 %v4275_v43, %v1355_v20  ;;  %v4340_v7 = vmul.f32 %v4277_v44, %v4249_v17 }
 0x156   : > { %v3521_v27 = vpop.f32.mrb[4].mxu0 }
 0x157   : > { %v4263_v29 = vadd.f32 %v3521_v27, %v4231_v3  ;;  %v3585_v30 = vpop.f32.mrb[4].mxu1  ;;  %v1103_v31 = vpop.f32.mrb[5].mxu0  ;;  %5831 = vst [vmem:[#allocation13_spill] sm:$0xff] %v4340_v7 }
 0x158   : > { %v4267_v35 = vadd.f32 %v3585_v30, %v4231_v3  ;;  %v4270_v36 = vadd.f32 %v4231_v3, %v1103_v31  ;;  %v1359_v37 = vpop.f32.mrb[5].mxu1  ;;  %v3522_v38 = vpop.f32.mrb[6].mxu0  ;;  %v1746_v52 = vld [vmem:[#allocation2 + $0x37] sm:$0xff] }
 0x159   : > { %1605 = vst [vmem:[#allocation2 + $0x68] sm:$0xff] %v4263_v29  ;;  %v1360_v39 = vadd.f32 %v4231_v3, %v1359_v37  ;;  %v1115_v40 = vadd.f32 %v3522_v38, %v4231_v3  ;;  %v3586_v41 = vpop.f32.mrb[6].mxu1  ;;  %v1106_v42 = vpop.f32.mrb[7].mxu0  ;;  %v1911_v57 = vld [vmem:[#allocation2 + $0x1f] sm:$0xff]  ;;  %v4333_v5 = vmul.f32 %v4236_v8, %v1746_v52  ;;  %v1826_v16 = vld [vmem:[#allocation2 + $0x367] sm:$0xff]  ;;  %v4348_v18 = vmul.f32 %v4297_v54, %v1746_v52 }
 0x15a   : > { %1671 = vst [vmem:[#allocation2 + $0x398] sm:$0xff] %v4267_v35  ;;  %1603 = vst [vmem:[#allocation2 + $0x50] sm:$0xff] %v4270_v36  ;;  %v1371_v45 = vadd.f32 %v3586_v41, %v4231_v3  ;;  %v4283_v46 = vadd.f32 %v4231_v3, %v1106_v42  ;;  %v1362_v47 = vpop.f32.mrb[7].mxu1  ;;  %v1824_v55 = vld [vmem:[#allocation2 + $0x34f] sm:$0xff]  ;;  %v4345_v14 = vmul.f32 %v4297_v54, %v1911_v57  ;;  %v1747_v24 = vld [vmem:[#allocation2 + $0x3f] sm:$0xff] }
 0x15b   : > { %1669 = vst [vmem:[#allocation2 + $0x380] sm:$0xff] %v1360_v39  ;;  %1606 = vst [vmem:[#allocation2 + $0x70] sm:$0xff] %v1115_v40  ;;  %v4286_v48 = vadd.f32 %v4231_v3, %v1362_v47  ;;  %v1836_v12 = vmul.f32 %v4288_v49, %v1824_v55  ;;  %v1912_v15 = vld [vmem:[#allocation2 + $0x27] sm:$0xff]  ;;  %v4355_v22 = vmul.f32 %v4275_v43, %v1360_v39  ;;  %v1827_v33 = vld [vmem:[#allocation2 + $0x36f] sm:$0xff] }
 0x15c   : > { %1672 = vst [vmem:[#allocation2 + $0x3a0] sm:$0xff] %v1371_v45  ;;  %1604 = vst [vmem:[#allocation2 + $0x58] sm:$0xff] %v4283_v46  ;;  %v1825_v2 = vld [vmem:[#allocation2 + $0x357] sm:$0xff]  ;;  %v4359_v23 = vmul.f32 %v4277_v44, %v4270_v36  ;;  %v4365_v32 = vmul.f32 %v4236_v8, %v1911_v57  ;;  %v4371_v39 = vmul.f32 %v4297_v54, %v1912_v15 }
 0x15d   : > { %1670 = vst [vmem:[#allocation2 + $0x388] sm:$0xff] %v4286_v48  ;;  %v1837_v31 = vmul.f32 %v4288_v49, %v1825_v2  ;;  %v4374_v40 = vmul.f32 %v4288_v49, %v1826_v16  ;;  %v4377_v42 = vadd.f32 %v1836_v12, %v1812_v50  ;;  %v4380_v47 = vmul.f32 %v4236_v8, %v1747_v24 }
 0x15e   : > { %v3525_v1 = vpop.f32.mrb[8].mxu0  ;;  %5832 = vst [vmem:[#allocation14_spill] sm:$0xff] %v4359_v23  ;;  %v4384_v52 = vmul.f32 %v4277_v44, %v4283_v46  ;;  %v4391_v2 = vmul.f32 %v4236_v8, %v1912_v15  ;;  %v4394_v50 = vmul.f32 %v4288_v49, %v1827_v33  ;;  %v4408_v15 = vmul.f32 %v4275_v43, %v4267_v35 }
 0x15f   : > { %v1128_v9 = vadd.f32 %v3525_v1, %v4231_v3  ;;  %v3589_v10 = vpop.f32.mrb[8].mxu1  ;;  %v1119_v11 = vpop.f32.mrb[9].mxu0  ;;  %v4388_v1 = vmul.f32 %v4275_v43, %v4286_v48  ;;  %v4404_v48 = vmul.f32 %v4260_v28, %v4270_v36  ;;  %v4412_v16 = vmul.f32 %v4277_v44, %v4263_v29 }
 0x160   : > { %v1384_v19 = vadd.f32 %v3589_v10, %v4231_v3  ;;  %v4352_v20 = vadd.f32 %v4231_v3, %v1119_v11  ;;  %v1375_v17 = vpop.f32.mrb[9].mxu1  ;;  %v3526_v21 = vpop.f32.mrb[10].mxu0  ;;  %5833 = vst [vmem:[#allocation15_spill] sm:$0xff] %v4384_v52  ;;  %v1917_v55 = vld [vmem:[#allocation2 + $0x67] sm:$0xff]  ;;  %v4400_v11 = vadd.f32 %v1837_v31, %v4290_v51  ;;  %5835 = vst [vmem:[#allocation17_spill] sm:$0xff] %v4408_v15 }
 0x161   : > { %1609 = vst [vmem:[#allocation2 + $0x98] sm:$0xff] %v1128_v9  ;;  %v1376_v25 = vadd.f32 %v4231_v3, %v1375_v17  ;;  %v1131_v26 = vadd.f32 %v3526_v21, %v4231_v3  ;;  %v3590_v27 = vpop.f32.mrb[10].mxu1  ;;  %v1122_v30 = vpop.f32.mrb[11].mxu0  ;;  %v1915_v45 = vld [vmem:[#allocation2 + $0x4f] sm:$0xff]  ;;  %v4397_v9 = vmul.f32 %v4297_v54, %v1747_v24  ;;  %v1830_v10 = vld [vmem:[#allocation2 + $0x397] sm:$0xff]  ;;  %5834 = vst [vmem:[#allocation16_spill] sm:$0xff] %v4404_v48 }
 0x162   : > { %1675 = vst [vmem:[#allocation2 + $0x3c8] sm:$0xff] %v1384_v19  ;;  %1607 = vst [vmem:[#allocation2 + $0x80] sm:$0xff] %v4352_v20  ;;  %v1387_v34 = vadd.f32 %v3590_v27, %v4231_v3  ;;  %v1123_v37 = vadd.f32 %v4231_v3, %v1122_v30  ;;  %v1378_v38 = vpop.f32.mrb[11].mxu1  ;;  %v1828_v57 = vld [vmem:[#allocation2 + $0x37f] sm:$0xff]  ;;  %v2158_v46 = vld [vmem:[#allocation2 + $0x68] sm:$0xff]  ;;  %v4415_v17 = vmul.f32 %v4297_v54, %v1915_v45 }
 0x163   : > { %1673 = vst [vmem:[#allocation2 + $0x3b0] sm:$0xff] %v1376_v25  ;;  %1610 = vst [vmem:[#allocation2 + $0xa0] sm:$0xff] %v1131_v26  ;;  %v1379_v41 = vadd.f32 %v4231_v3, %v1378_v38  ;;  %v1916_v12 = vld [vmem:[#allocation2 + $0x57] sm:$0xff]  ;;  %v4418_v51 = vmul.f32 %v4236_v8, %v1915_v45  ;;  %v4421_v21 = vmul.f32 %v4297_v54, %v1917_v55 }
 0x164   : > { %1676 = vst [vmem:[#allocation2 + $0x3d0] sm:$0xff] %v1387_v34  ;;  %1608 = vst [vmem:[#allocation2 + $0x88] sm:$0xff] %v1123_v37  ;;  %v4424_v36 = vmul.f32 %v4236_v8, %v1917_v55  ;;  %v4428_v29 = vmul.f32 %v4288_v49, %v1828_v57  ;;  %v1829_v27 = vld [vmem:[#allocation2 + $0x387] sm:$0xff]  ;;  %v4431_v30 = vmul.f32 %v4288_v49, %v1830_v10  ;;  %v1799_v33 = vld [vmem:[#allocation2 + $0x58] sm:$0xff] }
 0x165   : > { %1674 = vst [vmem:[#allocation2 + $0x3b8] sm:$0xff] %v1379_v41  ;;  %5836 = vst [vmem:[#allocation18_spill] sm:$0xff] %v4412_v16  ;;  %v4434_v31 = vmul.f32 %v4260_v28, %v2158_v46  ;;  %v4439_v45 = vmul.f32 %v4297_v54, %v1916_v12  ;;  %v4442_v55 = vmul.f32 %v4275_v43, %v1376_v25  ;;  %v1831_v57 = vld [vmem:[#allocation2 + $0x39f] sm:$0xff]  ;;  %v1918_v10 = vld [vmem:[#allocation2 + $0x6f] sm:$0xff] }
 0x166   : > { %v3529_v19 = vpop.f32.mrb[12].mxu0  ;;  %5837 = vst [vmem:[#allocation19_spill] sm:$0xff] %v4421_v21  ;;  %5838 = vst [vmem:[#allocation20_spill] sm:$0xff] %v4424_v36  ;;  %v4451_v15 = vmul.f32 %v4236_v8, %v1916_v12 }
 0x167   : > { %v1144_v35 = vadd.f32 %v3529_v19, %v4231_v3  ;;  %v3593_v24 = vpop.f32.mrb[12].mxu1  ;;  %v1135_v26 = vpop.f32.mrb[13].mxu0  ;;  %5839 = vst [vmem:[#allocation21_spill] sm:$0xff] %v4431_v30  ;;  %5840 = vst [vmem:[#allocation22_spill] sm:$0xff] %v4434_v31  ;;  %v1889_v19 = vld [vmem:[#allocation2 + $0x3a0] sm:$0xff]  ;;  %v1976_v31 = vld [vmem:[#allocation2 + $0x70] sm:$0xff] }
 0x168   : > { %v1400_v34 = vadd.f32 %v3593_v24, %v4231_v3  ;;  %v1136_v37 = vadd.f32 %v4231_v3, %v1135_v26  ;;  %v1391_v38 = vpop.f32.mrb[13].mxu1  ;;  %v3530_v41 = vpop.f32.mrb[14].mxu0  ;;  %5841 = vst [vmem:[#allocation23_spill] sm:$0xff] %v4442_v55  ;;  %v4448_v26 = vmul.f32 %v4277_v44, %v4352_v20  ;;  %5843 = vst [vmem:[#allocation25_spill] sm:$0xff] %v4451_v15  ;;  %v2120_v25 = vld [vmem:[#allocation2 + $0x97] sm:$0xff] }
 0x169   : > { %1613 = vst [vmem:[#allocation2 + $0xc8] sm:$0xff] %v1144_v35  ;;  %v1392_v46 = vadd.f32 %v4231_v3, %v1391_v38  ;;  %v1147_v16 = vadd.f32 %v3530_v41, %v4231_v3  ;;  %v3594_v21 = vpop.f32.mrb[14].mxu1  ;;  %v1138_v24 = vpop.f32.mrb[15].mxu0  ;;  %v2162_v55 = vld [vmem:[#allocation2 + $0x98] sm:$0xff]  ;;  %v4456_v41 = vmul.f32 %v4288_v49, %v1829_v27  ;;  %v4459_v20 = vmul.f32 %v4260_v28, %v1799_v33 }
 0x16a   : > { %5842 = vst [vmem:[#allocation24_spill] sm:$0xff] %v4448_v26  ;;  %1679 = vst [vmem:[#allocation2 + $0x3f8] sm:$0xff] %v1400_v34  ;;  %v1403_v35 = vadd.f32 %v3594_v21, %v4231_v3  ;;  %v1139_v38 = vadd.f32 %v4231_v3, %v1138_v24  ;;  %v1394_v7 = vpop.f32.mrb[15].mxu1  ;;  %v2186_v30 = vld [vmem:[#allocation2 + $0x3af] sm:$0xff]  ;;  %v2261_v52 = vld [vmem:[#allocation2 + $0x7f] sm:$0xff]  ;;  %v4468_v21 = vmul.f32 %v4275_v43, %v1889_v19 }
 0x16b   : > { %1611 = vst [vmem:[#allocation2 + $0xb0] sm:$0xff] %v1136_v37  ;;  %5844 = vst [vmem:[#allocation26_spill] sm:$0xff] %v4459_v20  ;;  %v4461_v12 = vld [vmem:[#allocation2 + $0x9f] sm:$0xff]  ;;  %v1395_v34 = vadd.f32 %v4231_v3, %v1394_v7  ;;  %v4465_v37 = vmul.f32 %v4288_v49, %v1831_v57  ;;  %v4471_v27 = vmul.f32 %v4297_v54, %v1918_v10  ;;  %v2262_v24 = vld [vmem:[#allocation2 + $0x87] sm:$0xff] }
 0x16c   : > { %1677 = vst [vmem:[#allocation2 + $0x3e0] sm:$0xff] %v1392_v46  ;;  %1614 = vst [vmem:[#allocation2 + $0xd0] sm:$0xff] %v1147_v16  ;;  %v2312_v26 = vld [vmem:[#allocation2 + $0x88] sm:$0xff]  ;;  %v4473_v15 = vld [vmem:[#allocation2 + $0xa0] sm:$0xff]  ;;  %v4476_v33 = vmul.f32 %v4277_v44, %v1976_v31  ;;  %v4479_v7 = vmul.f32 %v4236_v8, %v2120_v25  ;;  %v4482_v16 = vmul.f32 %v4236_v8, %v1918_v10 }
 0x16d   : > { %5845 = vst [vmem:[#allocation27_spill] sm:$0xff] %v4465_v37  ;;  %5846 = vst [vmem:[#allocation28_spill] sm:$0xff] %v4468_v21  ;;  %v4485_v57 = vmul.f32 %v4260_v28, %v1976_v31  ;;  %v2187_v19 = vld [vmem:[#allocation2 + $0x3b7] sm:$0xff]  ;;  %v2160_v46 = vld [vmem:[#allocation2 + $0x80] sm:$0xff]  ;;  %v4488_v21 = vmul.f32 %v4288_v49, %v2186_v30  ;;  %v4497_v10 = vmul.f32 %v4236_v8, %v2261_v52 }
 0x16e   : > { %5847 = vst [vmem:[#allocation29_spill] sm:$0xff] %v4471_v27  ;;  %1680 = vst [vmem:[#allocation2 + $0x400] sm:$0xff] %v1403_v35  ;;  %v2188_v27 = vld [vmem:[#allocation2 + $0x3c7] sm:$0xff]  ;;  %v4491_v35 = vmul.f32 %v4297_v54, %v2261_v52  ;;  %v3533_v31 = vpop.f32.mrb[16].mxu0  ;;  %v4507_v30 = vmul.f32 %v4236_v8, %v4461_v12  ;;  %v4537_v36 = vmul.f32 %v4277_v44, %v2162_v55 }
 0x16f   : > { %1612 = vst [vmem:[#allocation2 + $0xb8] sm:$0xff] %v1139_v38  ;;  %5848 = vst [vmem:[#allocation30_spill] sm:$0xff] %v4476_v33  ;;  %v4494_v38 = vmul.f32 %v4260_v28, %v2162_v55  ;;  %v2237_v33 = vld [vmem:[#allocation2 + $0x3b8] sm:$0xff]  ;;  %v3597_v52 = vpop.f32.mrb[16].mxu1  ;;  %v4542_v23 = vmul.f32 %v4236_v8, %v2262_v24 }
 0x170   : > { %5849 = vst [vmem:[#allocation31_spill] sm:$0xff] %v4479_v7  ;;  %5850 = vst [vmem:[#allocation32_spill] sm:$0xff] %v4482_v16  ;;  %v2238_v16 = vld [vmem:[#allocation2 + $0x3c8] sm:$0xff]  ;;  %v4515_v7 = vmul.f32 %v4288_v49, %v2187_v19  ;;  %v1416_v37 = vadd.f32 %v3597_v52, %v4231_v3  ;;  %v1407_v20 = vpop.f32.mrb[17].mxu1 }
 0x171   : > { %5851 = vst [vmem:[#allocation33_spill] sm:$0xff] %v4485_v57  ;;  %1678 = vst [vmem:[#allocation2 + $0x3e8] sm:$0xff] %v1395_v34  ;;  %v4500_v57 = vmul.f32 %v4297_v54, %v2262_v24  ;;  %v4503_v34 = vmul.f32 %v4277_v44, %v2312_v26  ;;  %v2189_v19 = vld [vmem:[#allocation2 + $0x3cf] sm:$0xff]  ;;  %v4556_v24 = vmul.f32 %v4297_v54, %v4461_v12 }
 0x172   : > { %5852 = vst [vmem:[#allocation34_spill] sm:$0xff] %v4488_v21  ;;  %5853 = vst [vmem:[#allocation35_spill] sm:$0xff] %v4491_v35  ;;  %v4511_v35 = vmul.f32 %v4260_v28, %v4473_v15  ;;  %v2265_v52 = vld [vmem:[#allocation2 + $0xaf] sm:$0xff] }
 0x173   : > { %5854 = vst [vmem:[#allocation36_spill] sm:$0xff] %v4494_v38  ;;  %5855 = vst [vmem:[#allocation37_spill] sm:$0xff] %v4497_v10  ;;  %v1160_v38 = vadd.f32 %v3533_v31, %v4231_v3  ;;  %v1151_v10 = vpop.f32.mrb[17].mxu0  ;;  %v4529_v31 = vmul.f32 %v4275_v43, %v2238_v16  ;;  %v2315_v48 = vld [vmem:[#allocation2 + $0xb0] sm:$0xff] }
 0x174   : > { %5856 = vst [vmem:[#allocation38_spill] sm:$0xff] %v4500_v57  ;;  %5857 = vst [vmem:[#allocation39_spill] sm:$0xff] %v4503_v34  ;;  %v4518_v57 = vmul.f32 %v4260_v28, %v2160_v46  ;;  %v4521_v34 = vmul.f32 %v4288_v49, %v2188_v27  ;;  %v3534_v21 = vpop.f32.mrb[18].mxu0  ;;  %v1408_v46 = vadd.f32 %v4231_v3, %v1407_v20 }
 0x175   : > { %5858 = vst [vmem:[#allocation40_spill] sm:$0xff] %v4507_v30  ;;  %5859 = vst [vmem:[#allocation41_spill] sm:$0xff] %v4511_v35  ;;  %v1152_v30 = vadd.f32 %v4231_v3, %v1151_v10  ;;  %v4526_v35 = vmul.f32 %v4275_v43, %v2237_v33  ;;  %v1163_v27 = vadd.f32 %v3534_v21, %v4231_v3  ;;  %v2267_v33 = vld [vmem:[#allocation2 + $0xc7] sm:$0xff] }
 0x176   : > { %5860 = vst [vmem:[#allocation42_spill] sm:$0xff] %v4515_v7  ;;  %5861 = vst [vmem:[#allocation43_spill] sm:$0xff] %v4518_v57  ;;  %v2239_v7 = vld [vmem:[#allocation2 + $0x3d0] sm:$0xff]  ;;  %v1154_v57 = vpop.f32.mrb[19].mxu0  ;;  %v4534_v10 = vmul.f32 %v4297_v54, %v2120_v25  ;;  %v2240_v21 = vld [vmem:[#allocation2 + $0x3e0] sm:$0xff]  ;;  %v4545_v25 = vmul.f32 %v4260_v28, %v2312_v26  ;;  %v4559_v26 = vmul.f32 %v4297_v54, %v2265_v52 }
 0x177   : > { %5862 = vst [vmem:[#allocation44_spill] sm:$0xff] %v4521_v34  ;;  %5863 = vst [vmem:[#allocation45_spill] sm:$0xff] %v4526_v35  ;;  %v3598_v34 = vpop.f32.mrb[18].mxu1  ;;  %v2317_v35 = vld [vmem:[#allocation2 + $0xc8] sm:$0xff] }
 0x178   : > { %5864 = vst [vmem:[#allocation46_spill] sm:$0xff] %v4529_v31  ;;  %1617 = vst [vmem:[#allocation2 + $0xf8] sm:$0xff] %v1160_v38  ;;  %v1419_v16 = vadd.f32 %v3598_v34, %v4231_v3  ;;  %v1155_v38 = vadd.f32 %v4231_v3, %v1154_v57  ;;  %v1410_v20 = vpop.f32.mrb[19].mxu1  ;;  %v2190_v31 = vld [vmem:[#allocation2 + $0x3df] sm:$0xff]  ;;  %v4549_v34 = vmul.f32 %v4288_v49, %v2189_v19 }
 0x179   : > { %5865 = vst [vmem:[#allocation47_spill] sm:$0xff] %v4534_v10  ;;  %5866 = vst [vmem:[#allocation48_spill] sm:$0xff] %v4537_v36  ;;  %v1411_v55 = vadd.f32 %v4231_v3, %v1410_v20  ;;  %v2192_v36 = vld [vmem:[#allocation2 + $0x3f7] sm:$0xff]  ;;  %v4552_v57 = vmul.f32 %v4275_v43, %v2239_v7  ;;  %v4565_v19 = vmul.f32 %v4277_v44, %v2317_v35 }
 0x17a   : > { %1683 = vst [vmem:[#allocation2 + $0x428] sm:$0xff] %v1416_v37  ;;  %1615 = vst [vmem:[#allocation2 + $0xe0] sm:$0xff] %v1152_v30  ;;  %v2266_v37 = vld [vmem:[#allocation2 + $0xb7] sm:$0xff]  ;;  %v4569_v7 = vmul.f32 %v4277_v44, %v4473_v15  ;;  %v4572_v12 = vmul.f32 %v4288_v49, %v2190_v31  ;;  %v4593_v31 = vmul.f32 %v4288_v49, %v2192_v36 }
 0x17b   : > { %5867 = vst [vmem:[#allocation49_spill] sm:$0xff] %v4542_v23  ;;  %5868 = vst [vmem:[#allocation50_spill] sm:$0xff] %v4545_v25  ;;  %v2316_v30 = vld [vmem:[#allocation2 + $0xb8] sm:$0xff]  ;;  %v4562_v25 = vmul.f32 %v4297_v54, %v2267_v33 }
 0x17c   : > { %1681 = vst [vmem:[#allocation2 + $0x410] sm:$0xff] %v1408_v46  ;;  %1618 = vst [vmem:[#allocation2 + $0x100] sm:$0xff] %v1163_v27  ;;  %v2191_v46 = vld [vmem:[#allocation2 + $0x3e7] sm:$0xff]  ;;  %v2242_v20 = vld [vmem:[#allocation2 + $0x3f8] sm:$0xff]  ;;  %v4587_v15 = vmul.f32 %v4277_v44, %v2316_v30 }
 0x17d   : > { %5869 = vst [vmem:[#allocation51_spill] sm:$0xff] %v4549_v34  ;;  %5870 = vst [vmem:[#allocation52_spill] sm:$0xff] %v4552_v57  ;;  %v2241_v27 = vld [vmem:[#allocation2 + $0x3e8] sm:$0xff]  ;;  %v3537_v57 = vpop.f32.mrb[20].mxu0  ;;  %v3601_v34 = vpop.f32.mrb[20].mxu1  ;;  %v4597_v10 = vmul.f32 %v4288_v49, %v2191_v46  ;;  %v2193_v46 = vld [vmem:[#allocation2 + $0x3ff] sm:$0xff] }
 0x17e   : > { %5871 = vst [vmem:[#allocation53_spill] sm:$0xff] %v4556_v24  ;;  %1684 = vst [vmem:[#allocation2 + $0x430] sm:$0xff] %v1419_v16  ;;  %v4575_v16 = vmul.f32 %v4275_v43, %v2240_v21  ;;  %v4581_v24 = vmul.f32 %v4236_v8, %v2265_v52  ;;  %v2448_v21 = vld [vmem:[#allocation2 + $0xcf] sm:$0xff]  ;;  %v1167_v52 = vpop.f32.mrb[21].mxu0  ;;  %v4600_v23 = vmul.f32 %v4275_v43, %v2241_v27 }
 0x17f   : > { %1616 = vst [vmem:[#allocation2 + $0xe8] sm:$0xff] %v1155_v38  ;;  %5872 = vst [vmem:[#allocation54_spill] sm:$0xff] %v4559_v26  ;;  %v4578_v38 = vmul.f32 %v4277_v44, %v2315_v48  ;;  %v1168_v36 = vadd.f32 %v4231_v3, %v1167_v52 }
 0x180   : > { %5873 = vst [vmem:[#allocation55_spill] sm:$0xff] %v4562_v25  ;;  %5874 = vst [vmem:[#allocation56_spill] sm:$0xff] %v4565_v19  ;;  %v4584_v19 = vmul.f32 %v4297_v54, %v2266_v37  ;;  %v1176_v25 = vadd.f32 %v3537_v57, %v4231_v3  ;;  %v4611_v57 = vmul.f32 %v4260_v28, %v2317_v35 }
 0x181   : > { %5875 = vst [vmem:[#allocation57_spill] sm:$0xff] %v4569_v7  ;;  %1682 = vst [vmem:[#allocation2 + $0x418] sm:$0xff] %v1411_v55  ;;  %v4590_v55 = vmul.f32 %v4260_v28, %v2315_v48  ;;  %v2490_v7 = vld [vmem:[#allocation2 + $0xd0] sm:$0xff]  ;;  %v1432_v48 = vadd.f32 %v3601_v34, %v4231_v3  ;;  %v4617_v52 = vld [vmem:[#allocation2 + $0xdf] sm:$0xff] }
 0x182   : > { %5876 = vst [vmem:[#allocation58_spill] sm:$0xff] %v4572_v12  ;;  %5877 = vst [vmem:[#allocation59_spill] sm:$0xff] %v4575_v16  ;;  %v4625_v35 = vmul.f32 %v4260_v28, %v2490_v7  ;;  %v4635_v16 = vmul.f32 %v4260_v28, %v2316_v30  ;;  %v4651_v30 = vmul.f32 %v4297_v54, %v4617_v52 }
 0x183   : > { %5878 = vst [vmem:[#allocation60_spill] sm:$0xff] %v4578_v38  ;;  %5879 = vst [vmem:[#allocation61_spill] sm:$0xff] %v4581_v24  ;;  %v2243_v38 = vld [vmem:[#allocation2 + $0x400] sm:$0xff]  ;;  %v4613_v24 = vld [vmem:[#allocation2 + $0xf7] sm:$0xff] }
 0x184   : > { %5880 = vst [vmem:[#allocation62_spill] sm:$0xff] %v4584_v19  ;;  %5881 = vst [vmem:[#allocation63_spill] sm:$0xff] %v4587_v15  ;;  %v4603_v15 = vmul.f32 %v4275_v43, %v2242_v20  ;;  %v4608_v19 = vmul.f32 %v4236_v8, %v2267_v33  ;;  %v4622_v33 = vmul.f32 %v4236_v8, %v2448_v21  ;;  %v2567_v26 = vld [vmem:[#allocation2 + $0x410] sm:$0xff] }
 0x185   : > { %5882 = vst [vmem:[#allocation64_spill] sm:$0xff] %v4590_v55  ;;  %5883 = vst [vmem:[#allocation65_spill] sm:$0xff] %v4593_v31  ;;  %v1423_v31 = vpop.f32.mrb[21].mxu1  ;;  %v3538_v55 = vpop.f32.mrb[22].mxu0 }
 0x186   : > { %5884 = vst [vmem:[#allocation66_spill] sm:$0xff] %v4597_v10  ;;  %5885 = vst [vmem:[#allocation67_spill] sm:$0xff] %v4600_v23  ;;  %v1424_v27 = vadd.f32 %v4231_v3, %v1423_v31  ;;  %v1179_v20 = vadd.f32 %v3538_v55, %v4231_v3  ;;  %v3602_v34 = vpop.f32.mrb[22].mxu1  ;;  %v4619_v23 = vld [vmem:[#allocation2 + $0xe0] sm:$0xff]  ;;  %v4632_v10 = vmul.f32 %v4236_v8, %v2266_v37 }
 0x187   : > { %5886 = vst [vmem:[#allocation68_spill] sm:$0xff] %v4603_v15  ;;  %5887 = vst [vmem:[#allocation69_spill] sm:$0xff] %v4608_v19  ;;  %v1170_v15 = vpop.f32.mrb[23].mxu0  ;;  %v1426_v31 = vpop.f32.mrb[23].mxu1  ;;  %v2517_v19 = vld [vmem:[#allocation2 + $0x40f] sm:$0xff]  ;;  %v4647_v37 = vmul.f32 %v4297_v54, %v2448_v21 }
 0x188   : > { %5888 = vst [vmem:[#allocation70_spill] sm:$0xff] %v4611_v57  ;;  %1621 = vst [vmem:[#allocation2 + $0x128] sm:$0xff] %v1176_v25  ;;  %v4627_v57 = vld [vmem:[#allocation2 + $0xf8] sm:$0xff]  ;;  %v1435_v25 = vadd.f32 %v3602_v34, %v4231_v3  ;;  %v1171_v55 = vadd.f32 %v4231_v3, %v1170_v15  ;;  %v4641_v34 = vmul.f32 %v4288_v49, %v2193_v46 }
 0x189   : > { %5889 = vst [vmem:[#allocation71_spill] sm:$0xff] %v4622_v33  ;;  %5890 = vst [vmem:[#allocation72_spill] sm:$0xff] %v4625_v35  ;;  %v4637_v33 = vld [vmem:[#allocation2 + $0xff] sm:$0xff]  ;;  %v2643_v35 = vld [vmem:[#allocation2 + $0xe8] sm:$0xff]  ;;  %v4644_v15 = vmul.f32 %v4275_v43, %v2243_v38  ;;  %v4658_v46 = vmul.f32 %v4297_v54, %v4613_v24  ;;  %v4662_v38 = vmul.f32 %v4277_v44, %v4627_v57 }
 0x18a   : > { %1687 = vst [vmem:[#allocation2 + $0x458] sm:$0xff] %v1432_v48  ;;  %1619 = vst [vmem:[#allocation2 + $0x110] sm:$0xff] %v1168_v36  ;;  %v1427_v48 = vadd.f32 %v4231_v3, %v1426_v31  ;;  %v2593_v36 = vld [vmem:[#allocation2 + $0xe7] sm:$0xff]  ;;  %v4654_v31 = vmul.f32 %v4277_v44, %v2490_v7  ;;  %v4665_v21 = vmul.f32 %v4288_v49, %v2517_v19 }
 0x18b   : > { %5891 = vst [vmem:[#allocation73_spill] sm:$0xff] %v4632_v10  ;;  %5892 = vst [vmem:[#allocation74_spill] sm:$0xff] %v4635_v16  ;;  %v2520_v16 = vld [vmem:[#allocation2 + $0x42f] sm:$0xff]  ;;  %v4672_v7 = vmul.f32 %v4277_v44, %v4619_v23  ;;  %v4682_v19 = vmul.f32 %v4277_v44, %v2643_v35 }
 0x18c   : > { %1685 = vst [vmem:[#allocation2 + $0x440] sm:$0xff] %v1424_v27  ;;  %1622 = vst [vmem:[#allocation2 + $0x130] sm:$0xff] %v1179_v20  ;;  %v2518_v27 = vld [vmem:[#allocation2 + $0x417] sm:$0xff]  ;;  %v2569_v10 = vld [vmem:[#allocation2 + $0x428] sm:$0xff] }
 0x18d   : > { %5893 = vst [vmem:[#allocation75_spill] sm:$0xff] %v4641_v34  ;;  %5894 = vst [vmem:[#allocation76_spill] sm:$0xff] %v4644_v15  ;;  %v2568_v20 = vld [vmem:[#allocation2 + $0x418] sm:$0xff] }
 0x18e   : > { %5895 = vst [vmem:[#allocation77_spill] sm:$0xff] %v4647_v37  ;;  %1688 = vst [vmem:[#allocation2 + $0x460] sm:$0xff] %v1435_v25  ;;  %v4668_v25 = vmul.f32 %v4275_v43, %v2567_v26  ;;  %v3541_v37 = vpop.f32.mrb[24].mxu0  ;;  %v4685_v26 = vmul.f32 %v4236_v8, %v2593_v36 }
 0x18f   : > { %1620 = vst [vmem:[#allocation2 + $0x118] sm:$0xff] %v1171_v55  ;;  %5896 = vst [vmem:[#allocation78_spill] sm:$0xff] %v4651_v30  ;;  %v2570_v55 = vld [vmem:[#allocation2 + $0x430] sm:$0xff]  ;;  %v1192_v15 = vadd.f32 %v3541_v37, %v4231_v3  ;;  %v1183_v34 = vpop.f32.mrb[25].mxu0  ;;  %v4695_v30 = vmul.f32 %v4275_v43, %v2568_v20 }
 0x190   : > { %5897 = vst [vmem:[#allocation79_spill] sm:$0xff] %v4654_v31  ;;  %5898 = vst [vmem:[#allocation80_spill] sm:$0xff] %v4658_v46  ;;  %v4676_v31 = vmul.f32 %v4297_v54, %v4637_v33  ;;  %v2645_v46 = vld [vmem:[#allocation2 + $0x100] sm:$0xff]  ;;  %v4703_v37 = vmul.f32 %v4275_v43, %v2570_v55 }
 0x191   : > { %5899 = vst [vmem:[#allocation81_spill] sm:$0xff] %v4662_v38  ;;  %1686 = vst [vmem:[#allocation2 + $0x448] sm:$0xff] %v1427_v48  ;;  %v4679_v38 = vmul.f32 %v4297_v54, %v2593_v36  ;;  %v4688_v48 = vmul.f32 %v4260_v28, %v2643_v35  ;;  %v1184_v35 = vadd.f32 %v4231_v3, %v1183_v34  ;;  %v2596_v55 = vld [vmem:[#allocation2 + $0x10f] sm:$0xff] }
 0x192   : > { %5900 = vst [vmem:[#allocation82_spill] sm:$0xff] %v4665_v21  ;;  %5901 = vst [vmem:[#allocation83_spill] sm:$0xff] %v4668_v25  ;;  %v4708_v25 = vld [vmem:[#allocation2 + $0x127] sm:$0xff]  ;;  %v4714_v34 = vmul.f32 %v4236_v8, %v4617_v52  ;;  %v4728_v52 = vmul.f32 %v4275_v43, %v2569_v10  ;;  %v4743_v10 = vmul.f32 %v4236_v8, %v4637_v33 }
 0x193   : > { %5902 = vst [vmem:[#allocation84_spill] sm:$0xff] %v4672_v7  ;;  %5903 = vst [vmem:[#allocation85_spill] sm:$0xff] %v4676_v31  ;;  %v3605_v7 = vpop.f32.mrb[24].mxu1  ;;  %v4692_v31 = vmul.f32 %v4288_v49, %v2518_v27  ;;  %v4706_v27 = vmul.f32 %v4277_v44, %v2645_v46  ;;  %v4808_v21 = vmul.f32 %v4297_v54, %v4708_v25 }
 0x194   : > { %5904 = vst [vmem:[#allocation86_spill] sm:$0xff] %v4679_v38  ;;  %5905 = vst [vmem:[#allocation87_spill] sm:$0xff] %v4682_v19  ;;  %v4698_v38 = vmul.f32 %v4288_v49, %v2520_v16  ;;  %v2519_v19 = vld [vmem:[#allocation2 + $0x427] sm:$0xff]  ;;  %v1448_v36 = vadd.f32 %v3605_v7, %v4231_v3  ;;  %v4718_v7 = vmul.f32 %v4260_v28, %v4619_v23 }
 0x195   : > { %5906 = vst [vmem:[#allocation88_spill] sm:$0xff] %v4685_v26  ;;  %5907 = vst [vmem:[#allocation89_spill] sm:$0xff] %v4688_v48  ;;  %v1439_v48 = vpop.f32.mrb[25].mxu1  ;;  %v3542_v26 = vpop.f32.mrb[26].mxu0  ;;  %v2571_v23 = vld [vmem:[#allocation2 + $0x440] sm:$0xff] }
 0x196   : > { %5908 = vst [vmem:[#allocation90_spill] sm:$0xff] %v4692_v31  ;;  %5909 = vst [vmem:[#allocation91_spill] sm:$0xff] %v4695_v30  ;;  %v1440_v16 = vadd.f32 %v4231_v3, %v1439_v48  ;;  %v1195_v20 = vadd.f32 %v3542_v26, %v4231_v3  ;;  %v1186_v30 = vpop.f32.mrb[27].mxu0  ;;  %v4725_v31 = vmul.f32 %v4288_v49, %v2519_v19  ;;  %v2821_v19 = vld [vmem:[#allocation2 + $0x130] sm:$0xff] }
 0x197   : > { %5910 = vst [vmem:[#allocation92_spill] sm:$0xff] %v4698_v38  ;;  %5911 = vst [vmem:[#allocation93_spill] sm:$0xff] %v4703_v37  ;;  %v3606_v38 = vpop.f32.mrb[26].mxu1  ;;  %v2646_v37 = vld [vmem:[#allocation2 + $0x110] sm:$0xff]  ;;  %v1187_v26 = vadd.f32 %v4231_v3, %v1186_v30  ;;  %v4739_v30 = vmul.f32 %v4260_v28, %v4627_v57  ;;  %v4753_v57 = vmul.f32 %v4236_v8, %v4708_v25 }
 0x198   : > { %5912 = vst [vmem:[#allocation94_spill] sm:$0xff] %v4706_v27  ;;  %1625 = vst [vmem:[#allocation2 + $0x158] sm:$0xff] %v1192_v15  ;;  %v4720_v27 = vld [vmem:[#allocation2 + $0x128] sm:$0xff]  ;;  %v1451_v15 = vadd.f32 %v3606_v38, %v4231_v3  ;;  %v1442_v48 = vpop.f32.mrb[27].mxu1  ;;  %v4735_v38 = vmul.f32 %v4236_v8, %v4613_v24 }
 0x199   : > { %5913 = vst [vmem:[#allocation95_spill] sm:$0xff] %v4714_v34  ;;  %5914 = vst [vmem:[#allocation96_spill] sm:$0xff] %v4718_v7  ;;  %v2521_v34 = vld [vmem:[#allocation2 + $0x43f] sm:$0xff]  ;;  %v4730_v7 = vld [vmem:[#allocation2 + $0x12f] sm:$0xff]  ;;  %v4757_v33 = vmul.f32 %v4260_v28, %v4720_v27 }
 0x19a   : > { %1691 = vst [vmem:[#allocation2 + $0x488] sm:$0xff] %v1448_v36  ;;  %1623 = vst [vmem:[#allocation2 + $0x140] sm:$0xff] %v1184_v35  ;;  %v1443_v36 = vadd.f32 %v4231_v3, %v1442_v48  ;;  %v2597_v35 = vld [vmem:[#allocation2 + $0x117] sm:$0xff]  ;;  %v2522_v24 = vld [vmem:[#allocation2 + $0x447] sm:$0xff] }
 0x19b   : > { %5915 = vst [vmem:[#allocation97_spill] sm:$0xff] %v4725_v31  ;;  %5916 = vst [vmem:[#allocation98_spill] sm:$0xff] %v4728_v52  ;;  %v2647_v52 = vld [vmem:[#allocation2 + $0x118] sm:$0xff]  ;;  %v2572_v48 = vld [vmem:[#allocation2 + $0x448] sm:$0xff]  ;;  %v4817_v12 = vmul.f32 %v4236_v8, %v2597_v35 }
 0x19c   : > { %1689 = vst [vmem:[#allocation2 + $0x470] sm:$0xff] %v1440_v16  ;;  %1626 = vst [vmem:[#allocation2 + $0x160] sm:$0xff] %v1195_v20  ;;  %v4746_v16 = vmul.f32 %v4297_v54, %v2596_v55  ;;  %v4749_v20 = vmul.f32 %v4260_v28, %v2645_v46  ;;  %v4766_v46 = vmul.f32 %v4277_v44, %v2646_v37 }
 0x19d   : > { %5917 = vst [vmem:[#allocation99_spill] sm:$0xff] %v4735_v38  ;;  %5918 = vst [vmem:[#allocation100_spill] sm:$0xff] %v4739_v30  ;;  %v4773_v30 = vmul.f32 %v4260_v28, %v2821_v19  ;;  %v4792_v19 = vmul.f32 %v4260_v28, %v2646_v37  ;;  %v4820_v25 = vmul.f32 %v4260_v28, %v2647_v52 }
 0x19e   : > { %5919 = vst [vmem:[#allocation101_spill] sm:$0xff] %v4743_v10  ;;  %1692 = vst [vmem:[#allocation2 + $0x490] sm:$0xff] %v1451_v15  ;;  %v4760_v15 = vmul.f32 %v4288_v49, %v2521_v34  ;;  %v3545_v10 = vpop.f32.mrb[28].mxu0  ;;  %v4779_v34 = vmul.f32 %v4277_v44, %v2647_v52 }
 0x19f   : > { %1624 = vst [vmem:[#allocation2 + $0x148] sm:$0xff] %v1187_v26  ;;  %5920 = vst [vmem:[#allocation102_spill] sm:$0xff] %v4746_v16  ;;  %v4763_v26 = vmul.f32 %v4275_v43, %v2571_v23  ;;  %v4770_v16 = vmul.f32 %v4236_v8, %v4730_v7  ;;  %v4782_v23 = vmul.f32 %v4236_v8, %v2596_v55  ;;  %v2975_v38 = vld [vmem:[#allocation2 + $0x158] sm:$0xff] }
 0x1a0   : > { %5921 = vst [vmem:[#allocation103_spill] sm:$0xff] %v4749_v20  ;;  %5922 = vst [vmem:[#allocation104_spill] sm:$0xff] %v4753_v57  ;;  %v2523_v20 = vld [vmem:[#allocation2 + $0x457] sm:$0xff] }
 0x1a1   : > { %5923 = vst [vmem:[#allocation105_spill] sm:$0xff] %v4757_v33  ;;  %1690 = vst [vmem:[#allocation2 + $0x478] sm:$0xff] %v1443_v36  ;;  %v2573_v57 = vld [vmem:[#allocation2 + $0x458] sm:$0xff]  ;;  %v4776_v36 = vmul.f32 %v4297_v54, %v2597_v35  ;;  %v3609_v33 = vpop.f32.mrb[28].mxu1  ;;  %v2822_v31 = vld [vmem:[#allocation2 + $0x140] sm:$0xff]  ;;  %v4831_v35 = vmul.f32 %v4297_v54, %v4730_v7 }
 0x1a2   : > { %5924 = vst [vmem:[#allocation106_spill] sm:$0xff] %v4760_v15  ;;  %5925 = vst [vmem:[#allocation107_spill] sm:$0xff] %v4763_v26  ;;  %v1199_v26 = vpop.f32.mrb[29].mxu0  ;;  %v4786_v15 = vmul.f32 %v4288_v49, %v2522_v24  ;;  %v4802_v24 = vmul.f32 %v4275_v43, %v2573_v57 }
 0x1a3   : > { %5926 = vst [vmem:[#allocation108_spill] sm:$0xff] %v4766_v46  ;;  %5927 = vst [vmem:[#allocation109_spill] sm:$0xff] %v4770_v16  ;;  %v1208_v46 = vadd.f32 %v3545_v10, %v4231_v3  ;;  %v4789_v16 = vmul.f32 %v4275_v43, %v2572_v48  ;;  %v3546_v55 = vpop.f32.mrb[30].mxu0  ;;  %v4799_v10 = vmul.f32 %v4288_v49, %v2523_v20  ;;  %v2574_v48 = vld [vmem:[#allocation2 + $0x460] sm:$0xff] }
 0x1a4   : > { %5928 = vst [vmem:[#allocation110_spill] sm:$0xff] %v4773_v30  ;;  %5929 = vst [vmem:[#allocation111_spill] sm:$0xff] %v4776_v36  ;;  %v1464_v36 = vadd.f32 %v3609_v33, %v4231_v3  ;;  %v1455_v30 = vpop.f32.mrb[29].mxu1  ;;  %v4812_v20 = vmul.f32 %v4277_v44, %v4720_v27 }
 0x1a5   : > { %5930 = vst [vmem:[#allocation112_spill] sm:$0xff] %v4779_v34  ;;  %5931 = vst [vmem:[#allocation113_spill] sm:$0xff] %v4782_v23  ;;  %v1200_v34 = vadd.f32 %v4231_v3, %v1199_v26  ;;  %v4796_v23 = vld [vmem:[#allocation2 + $0x157] sm:$0xff]  ;;  %v1456_v37 = vadd.f32 %v4231_v3, %v1455_v30  ;;  %v3610_v33 = vpop.f32.mrb[30].mxu1  ;;  %v2780_v26 = vld [vmem:[#allocation2 + $0x13f] sm:$0xff] }
 0x1a6   : > { %5932 = vst [vmem:[#allocation114_spill] sm:$0xff] %v4786_v15  ;;  %5933 = vst [vmem:[#allocation115_spill] sm:$0xff] %v4789_v16  ;;  %v2524_v15 = vld [vmem:[#allocation2 + $0x45f] sm:$0xff]  ;;  %v1202_v16 = vpop.f32.mrb[31].mxu0  ;;  %v1467_v57 = vadd.f32 %v3610_v33, %v4231_v3 }
 0x1a7   : > { %5934 = vst [vmem:[#allocation116_spill] sm:$0xff] %v4792_v19  ;;  %5935 = vst [vmem:[#allocation117_spill] sm:$0xff] %v4799_v10  ;;  %v1211_v19 = vadd.f32 %v3546_v55, %v4231_v3  ;;  %v1203_v30 = vadd.f32 %v4231_v3, %v1202_v16  ;;  %v2850_v55 = vld [vmem:[#allocation2 + $0x487] sm:$0xff]  ;;  %v2848_v10 = vld [vmem:[#allocation2 + $0x46f] sm:$0xff]  ;;  %v4824_v33 = vmul.f32 %v4288_v49, %v2524_v15 }
 0x1a8   : > { %5936 = vst [vmem:[#allocation118_spill] sm:$0xff] %v4802_v24  ;;  %1629 = vst [vmem:[#allocation2 + $0x188] sm:$0xff] %v1208_v46  ;;  %v1458_v46 = vpop.f32.mrb[31].mxu1  ;;  %v2900_v24 = vld [vmem:[#allocation2 + $0x488] sm:$0xff]  ;;  %v4827_v16 = vmul.f32 %v4275_v43, %v2574_v48  ;;  %v2849_v52 = vld [vmem:[#allocation2 + $0x477] sm:$0xff]  ;;  %v4841_v15 = vmul.f32 %v4297_v54, %v4796_v23  ;;  %v4844_v48 = vmul.f32 %v4277_v44, %v2975_v38 }
 0x1a9   : > { %5937 = vst [vmem:[#allocation119_spill] sm:$0xff] %v4808_v21  ;;  %5938 = vst [vmem:[#allocation120_spill] sm:$0xff] %v4812_v20  ;;  %v1459_v27 = vadd.f32 %v4231_v3, %v1458_v46  ;;  %v2898_v20 = vld [vmem:[#allocation2 + $0x470] sm:$0xff]  ;;  %v4837_v46 = vmul.f32 %v4260_v28, %v2822_v31  ;;  %v4859_v21 = vmul.f32 %v4288_v49, %v2849_v52 }
 0x1aa   : > { %1695 = vst [vmem:[#allocation2 + $0x4b8] sm:$0xff] %v1464_v36  ;;  %1627 = vst [vmem:[#allocation2 + $0x170] sm:$0xff] %v1200_v34  ;;  %v2924_v36 = vld [vmem:[#allocation2 + $0x147] sm:$0xff]  ;;  %v4875_v52 = vmul.f32 %v4277_v44, %v2822_v31 }
 0x1ab   : > { %5939 = vst [vmem:[#allocation121_spill] sm:$0xff] %v4817_v12  ;;  %5940 = vst [vmem:[#allocation122_spill] sm:$0xff] %v4820_v25  ;;  %v2974_v34 = vld [vmem:[#allocation2 + $0x148] sm:$0xff]  ;;  %v4847_v7 = vmul.f32 %v4297_v54, %v2924_v36  ;;  %v2901_v25 = vld [vmem:[#allocation2 + $0x490] sm:$0xff]  ;;  %v3613_v12 = vpop.f32.mrb[32].mxu1 }
 0x1ac   : > { %1693 = vst [vmem:[#allocation2 + $0x4a0] sm:$0xff] %v1456_v37  ;;  %1630 = vst [vmem:[#allocation2 + $0x190] sm:$0xff] %v1211_v19  ;;  %v2899_v37 = vld [vmem:[#allocation2 + $0x478] sm:$0xff]  ;;  %v4834_v19 = vmul.f32 %v4236_v8, %v2780_v26  ;;  %v4862_v38 = vmul.f32 %v4277_v44, %v2974_v34 }
 0x1ad   : > { %5941 = vst [vmem:[#allocation123_spill] sm:$0xff] %v4824_v33  ;;  %5942 = vst [vmem:[#allocation124_spill] sm:$0xff] %v4827_v16  ;;  %v2851_v16 = vld [vmem:[#allocation2 + $0x48f] sm:$0xff]  ;;  %v3549_v33 = vpop.f32.mrb[32].mxu0 }
 0x1ae   : > { %5943 = vst [vmem:[#allocation125_spill] sm:$0xff] %v4831_v35  ;;  %1696 = vst [vmem:[#allocation2 + $0x4c0] sm:$0xff] %v1467_v57  ;;  %v4850_v57 = vmul.f32 %v4288_v49, %v2850_v55  ;;  %v4856_v35 = vmul.f32 %v4288_v49, %v2848_v10  ;;  %v4868_v55 = vmul.f32 %v4297_v54, %v2780_v26  ;;  %v1215_v10 = vpop.f32.mrb[33].mxu0 }
 0x1af   : > { %1628 = vst [vmem:[#allocation2 + $0x178] sm:$0xff] %v1203_v30  ;;  %5944 = vst [vmem:[#allocation126_spill] sm:$0xff] %v4841_v15  ;;  %v4853_v30 = vmul.f32 %v4275_v43, %v2900_v24  ;;  %v1224_v24 = vadd.f32 %v3549_v33, %v4231_v3  ;;  %v4878_v15 = vmul.f32 %v4236_v8, %v2924_v36  ;;  %v4884_v33 = vld [vmem:[#allocation7 + $0x4] ss:$0 sm:$0xff] }
 0x1b0   : > { %5945 = vst [vmem:[#allocation127_spill] sm:$0xff] %v4844_v48  ;;  %1694 = vst [vmem:[#allocation2 + $0x4a8] sm:$0xff] %v1459_v27  ;;  %v4865_v27 = vmul.f32 %v4275_v43, %v2898_v20  ;;  %v4872_v48 = vmul.f32 %v4275_v43, %v2899_v37  ;;  %v1480_v20 = vadd.f32 %v3613_v12, %v4231_v3 }
 0x1b1   : > { %5946 = vst [vmem:[#allocation128_spill] sm:$0xff] %v4853_v30  ;;  %5947 = vst [vmem:[#allocation129_spill] sm:$0xff] %v4856_v35  ;;  %v1216_v26 = vadd.f32 %v4231_v3, %v1215_v10  ;;  %v4886_v35 = vld [vmem:[#allocation7 + $0x7] ss:$0 sm:$0xff]  ;;  %v4889_v37 = vmul.f32 %v4260_v28, %v2974_v34  ;;  %v4892_v44 = vmul.f32 %v4288_v49, %v2851_v16 }
 0x1b2   : > { %5948 = vst [vmem:[#allocation130_spill] sm:$0xff] %v4862_v38  ;;  %5949 = vst [vmem:[#allocation131_spill] sm:$0xff] %v4865_v27  ;;  %v4880_v38 = vld [vmem:[#allocation2 + $0x15f] sm:$0xff]  ;;  %v3550_v27 = vpop.f32.mrb[34].mxu0  ;;  %v1780_v10 = vmul.f32 %v4244_v13, %v1224_v24 }
 0x1b3   : > { %5950 = vst [vmem:[#allocation132_spill] sm:$0xff] %v4868_v55  ;;  %5951 = vst [vmem:[#allocation133_spill] sm:$0xff] %v4875_v52  ;;  %v1471_v55 = vpop.f32.mrb[33].mxu1  ;;  %v4896_v31 = vadd.f32 %v3550_v27, %v4231_v3  ;;  %v1218_v36 = vpop.f32.mrb[35].mxu0  ;;  %v4900_v52 = vmul.f32 %v4275_v43, %v2901_v25  ;;  %v1778_v49 = vmul.f32 %v4244_v13, %v1216_v26 }
 0x1b4   : > { %5952 = vst [vmem:[#allocation134_spill] sm:$0xff] %v4892_v44  ;;  %v1472_v8 = vadd.f32 %v4231_v3, %v1471_v55  ;;  %v3614_v12 = vpop.f32.mrb[34].mxu1  ;;  %v1219_v28 = vadd.f32 %v4231_v3, %v1218_v36  ;;  %v4907_v16 = vmul.f32 %v4297_v54, %v4880_v38  ;;  %v1788_v44 = vadd.f32 %v1780_v10, %v4333_v5  ;;  %v3553_v10 = vpop.f32.mrb[36].mxu0 }
 0x1b5   : > { %5953 = vst [vmem:[#allocation135_spill] sm:$0xff] %v4900_v52  ;;  %v1483_v30 = vadd.f32 %v3614_v12, %v4231_v3  ;;  %v1474_v34 = vpop.f32.mrb[35].mxu1  ;;  %v4913_v43 = vmul.f32 %v4886_v35, %v1224_v24  ;;  %v1953_v25 = vmul.f32 %v4886_v35, %v1216_v26  ;;  %v1786_v12 = vadd.f32 %v1778_v49, %v4365_v32  ;;  %v4928_v49 = vld [vmem:[#allocation5] ss:$0 sm:$0xff] }
 0x1b6   : > { %v1475_v27 = vadd.f32 %v4231_v3, %v1474_v34  ;;  %v1866_v55 = vmul.f32 %v4884_v33, %v1472_v8  ;;  %v1781_v36 = vmul.f32 %v4244_v13, %v4896_v31  ;;  %v1779_v52 = vmul.f32 %v4244_v13, %v1219_v28 }
 0x1b7   : > { %v1816_v8 = vadd.f32 %v4294_v53, %v1788_v44  ;;  %v1868_v5 = vmul.f32 %v4884_v33, %v1480_v20  ;;  %v1954_v24 = vmul.f32 %v4886_v35, %v1219_v28  ;;  %v1814_v26 = vadd.f32 %v4308_v59, %v1786_v12 }
 0x1b8   : > { %v1874_v54 = vadd.f32 %v1866_v55, %v4377_v42  ;;  %v1867_v3 = vmul.f32 %v4884_v33, %v1475_v27  ;;  %v1789_v32 = vadd.f32 %v1781_v36, %v4380_v47  ;;  %v1869_v34 = vmul.f32 %v4884_v33, %v1483_v30  ;;  %v3617_v42 = vpop.f32.mrb[36].mxu1  ;;  %v1231_v27 = vpop.f32.mrb[37].mxu0 }
 0x1b9   : > { %v4931_v13 = vadd.f32 %v4928_v49, %v3553_v10  ;;  %v1787_v44 = vadd.f32 %v1779_v52, %v4391_v2  ;;  %v4937_v28 = vadd.f32 %v4928_v49, %v3617_v42  ;;  %v1232_v59 = vadd.f32 %v4928_v49, %v1231_v27  ;;  %v1487_v47 = vpop.f32.mrb[37].mxu1  ;;  %v3554_v30 = vpop.f32.mrb[38].mxu0 }
 0x1ba   : > { %v1902_v53 = vadd.f32 %v4300_v56, %v1874_v54  ;;  %v1875_v20 = vadd.f32 %v1867_v3, %v4400_v11  ;;  %v1846_v55 = vadd.f32 %v4374_v40, %v1814_v26  ;;  %v1817_v12 = vadd.f32 %v4324_v63, %v1789_v32  ;;  %v3618_v56 = vpop.f32.mrb[38].mxu1  ;;  %v1234_v11 = vpop.f32.mrb[39].mxu0 }
 0x1bb   : > { %v1488_v36 = vadd.f32 %v4928_v49, %v1487_v47  ;;  %v4944_v10 = vadd.f32 %v4928_v49, %v3554_v30  ;;  %v4949_v54 = vadd.f32 %v4928_v49, %v3618_v56  ;;  %v4952_v3 = vadd.f32 %v4928_v49, %v1234_v11  ;;  %v1490_v40 = vpop.f32.mrb[39].mxu1 }
 0x1bc   : > { %v1931_v2 = vadd.f32 %v4345_v14, %v1902_v53  ;;  %v1903_v52 = vadd.f32 %v4330_v4, %v1875_v20  ;;  %v1848_v63 = vadd.f32 %v4428_v29, %v1816_v8  ;;  %v1876_v26 = vadd.f32 %v1868_v5, %v1846_v55 }
 0x1bd   : > { %v1491_v32 = vadd.f32 %v4928_v49, %v1490_v40  ;;  %v1870_v47 = vmul.f32 %v4884_v33, %v1488_v36  ;;  %v1957_v14 = vmul.f32 %v4886_v35, %v1232_v59  ;;  %v1849_v53 = vadd.f32 %v4456_v41, %v1817_v12 }
 0x1be   : > { %v1961_v42 = vadd.f32 %v1953_v25, %v1931_v2  ;;  %v1932_v27 = vadd.f32 %v4371_v39, %v1903_v52  ;;  %v1904_v4 = vadd.f32 %v4320_v62, %v1876_v26  ;;  %v1815_v20 = vadd.f32 %v4327_v0, %v1787_v44  ;;  %v3557_v25 = vpop.f32.mrb[40].mxu0  ;;  %v4970_v62 = vld [vmem:[#allocation7 + $0x1] ss:$0 sm:$0xff] }
 0x1bf   : > { %v1878_v8 = vadd.f32 %v1870_v47, %v1848_v63  ;;  %v1871_v5 = vmul.f32 %v4884_v33, %v1491_v32  ;;  %v1958_v55 = vmul.f32 %v4886_v35, %v4952_v3  ;;  %v1782_v41 = vmul.f32 %v4970_v62, %v1232_v59 }
 0x1c0   : > { %v4963_v30 = vadd.f32 %v4304_v58, %v1961_v42  ;;  %v1962_v29 = vadd.f32 %v1954_v24, %v1932_v27  ;;  %v1933_v39 = vadd.f32 %v4348_v18, %v1904_v4  ;;  %v1847_v36 = vadd.f32 %v4394_v50, %v1815_v20  ;;  %v3621_v58 = vpop.f32.mrb[40].mxu1  ;;  %v1247_v24 = vpop.f32.mrb[41].mxu0 }
 0x1c1   : > { %v4974_v0 = vadd.f32 %v4928_v49, %v3557_v25  ;;  %v1906_v44 = vadd.f32 %v4355_v22, %v1878_v8  ;;  %v1879_v12 = vadd.f32 %v1871_v5, %v1849_v53  ;;  %v4983_v50 = vadd.f32 %v4928_v49, %v3621_v58  ;;  %v1503_v56 = vpop.f32.mrb[41].mxu1  ;;  %v3558_v11 = vpop.f32.mrb[42].mxu0  ;;  %v5957_v8 = vld [vmem:[#allocation14_spill] sm:$0xff]  ;;  %v5959_v5 = vld [vmem:[#allocation16_spill] sm:$0xff] }
 0x1c2   : > { %5954 = vst [vmem:[#allocation136_spill] sm:$0xff] %v4963_v30  ;;  %2019 = vrot.lane.b32.xlu0 %v4963_v30, %s3915_s20  ;;  %v4979_v18 = vadd.f32 %v4316_v61, %v1962_v29  ;;  %v4986_v59 = vadd.f32 %v4928_v49, %v1247_v24  ;;  %v1963_v2 = vadd.f32 %v4913_v43, %v1933_v39  ;;  %v3622_v61 = vpop.f32.mrb[42].mxu1  ;;  %v1250_v26 = vpop.f32.mrb[43].mxu0 }
 0x1c3   : > { %v1877_v52 = vadd.f32 %v1869_v34, %v1847_v36  ;;  %v1504_v40 = vadd.f32 %v4928_v49, %v1503_v56  ;;  %v4991_v63 = vadd.f32 %v4928_v49, %v3558_v11  ;;  %v1935_v22 = vadd.f32 %v4415_v17, %v1906_v44  ;;  %v1506_v47 = vpop.f32.mrb[43].mxu1  ;;  %v3561_v39 = vpop.f32.mrb[44].mxu0  ;;  %v5960_v36 = vld [vmem:[#allocation20_spill] sm:$0xff] }
 0x1c4   : > { %5955 = vst [vmem:[#allocation137_spill] sm:$0xff] %v4979_v18  ;;  %v1907_v32 = vadd.f32 %v4388_v1, %v1879_v12  ;;  %v1515_v42 = vadd.f32 %v4928_v49, %v3622_v61  ;;  %v4997_v27 = vadd.f32 %v4928_v49, %v1250_v26  ;;  %v5000_v43 = vadd.f32 %v4312_v60, %v1963_v2  ;;  %v3625_v24 = vpop.f32.mrb[44].mxu1  ;;  %v1263_v44 = vpop.f32.mrb[45].mxu0  ;;  %v5963_v12 = vld [vmem:[#allocation21_spill] sm:$0xff]  ;;  %v5966_v26 = vld [vmem:[#allocation22_spill] sm:$0xff] }
 0x1c5   : > { %v1905_v34 = vadd.f32 %v4336_v6, %v1877_v52  ;;  %1643 = vst [vmem:[#allocation2 + $0x238] sm:$0xff] %v4991_v63  ;;  %v5005_v4 = vadd.f32 %v4928_v49, %v1506_v47  ;;  %v1965_v1 = vadd.f32 %v1957_v14, %v1935_v22  ;;  %v1790_v53 = vadd.f32 %v1782_v41, %v4418_v51  ;;  %v1519_v2 = vpop.f32.mrb[45].mxu1  ;;  %v3562_v52 = vpop.f32.mrb[46].mxu0 }
 0x1c6   : > { %5956 = vst [vmem:[#allocation138_spill] sm:$0xff] %v5000_v43  ;;  %2021 = vrot.lane.b32.xlu0 %v4979_v18, %s3915_s20  ;;  %v1936_v17 = vadd.f32 %v4439_v45, %v1907_v32  ;;  %1709 = vst [vmem:[#allocation2 + $0x568] sm:$0xff] %v1515_v42  ;;  %v1956_v6 = vmul.f32 %v4886_v35, %v4896_v31  ;;  %v1872_v20 = vmul.f32 %v4884_v33, %v4937_v28  ;;  %v3626_v47 = vpop.f32.mrb[46].mxu1 }
 0x1c7   : > { %1641 = vst [vmem:[#allocation2 + $0x220] sm:$0xff] %v4997_v27  ;;  %v1934_v60 = vadd.f32 %v4397_v9, %v1905_v34  ;;  %v2142_v29 = vmul.f32 %v4970_v62, %v4931_v13  ;;  %v5020_v14 = vadd.f32 %v5957_v8, %v1965_v1  ;;  %v1818_v51 = vadd.f32 %v5959_v5, %v1790_v53  ;;  %v1266_v34 = vpop.f32.mrb[47].mxu0  ;;  %v5968_v8 = vld [vmem:[#allocation34_spill] sm:$0xff] }
 0x1c8   : > { %v1966_v45 = vadd.f32 %v1958_v55, %v1936_v17  ;;  %v1959_v25 = vmul.f32 %v4886_v35, %v4931_v13  ;;  %v2220_v31 = vmul.f32 %v4884_v33, %v1504_v40  ;;  %v1783_v28 = vmul.f32 %v4970_v62, %v4952_v3  ;;  %v5961_v13 = vld [vmem:[#allocation15_spill] sm:$0xff]  ;;  %v5964_v40 = vld [vmem:[#allocation13_spill] sm:$0xff] }
 0x1c9   : > { %5958 = vst [vmem:[#allocation14_spill] sm:$0xff] %v5020_v14  ;;  %v1964_v9 = vadd.f32 %v1956_v6, %v1934_v60  ;;  %v2150_v41 = vadd.f32 %v2142_v29, %v5960_v36  ;;  %v5030_v58 = vadd.f32 %v4928_v49, %v3561_v39  ;;  %2027 = vrot.lane.b32.xlu1 %v5020_v14, %s3915_s20  ;;  %v5967_v17 = vld [vmem:[#allocation25_spill] sm:$0xff]  ;;  %v1522_v29 = vpop.f32.mrb[47].mxu1  ;;  %v6022_v14 = vld [vmem:[#allocation82_spill] sm:$0xff] }
 0x1ca   : > { %2023 = vrot.lane.b32.xlu0 %v5000_v43, %s3915_s20  ;;  %v5037_v55 = vadd.f32 %v5961_v13, %v1966_v45  ;;  %v1850_v56 = vadd.f32 %v5963_v12, %v1818_v51  ;;  %v5041_v11 = vadd.f32 %v4928_v49, %v3625_v24  ;;  %v5044_v3 = vadd.f32 %v4928_v49, %v1263_v44  ;;  %v5971_v13 = vld [vmem:[#allocation19_spill] sm:$0xff]  ;;  %v6018_v43 = vld [vmem:[#allocation70_spill] sm:$0xff] }
 0x1cb   : > { %v5047_v61 = vadd.f32 %v5964_v40, %v1964_v9  ;;  %v2174_v22 = vadd.f32 %v5966_v26, %v2150_v41  ;;  %1646 = vst [vmem:[#allocation2 + $0x260] sm:$0xff] %v5030_v58  ;;  %v1520_v32 = vadd.f32 %v4928_v49, %v1519_v2  ;;  %v1275_v42 = vadd.f32 %v4928_v49, %v3562_v52  ;;  %v5970_v9 = vld [vmem:[#allocation26_spill] sm:$0xff]  ;;  %v3565_v26 = vpop.f32.mrb[48].mxu0 }
 0x1cc   : > { %5962 = vst [vmem:[#allocation16_spill] sm:$0xff] %v5037_v55  ;;  %v1880_v1 = vadd.f32 %v1872_v20, %v1850_v56  ;;  %v1791_v53 = vadd.f32 %v1783_v28, %v5967_v17  ;;  %v1531_v60 = vadd.f32 %v4928_v49, %v3626_v47  ;;  %v5056_v6 = vadd.f32 %v4928_v49, %v1266_v34  ;;  %v5969_v20 = vld [vmem:[#allocation17_spill] sm:$0xff]  ;;  %v5972_v56 = vld [vmem:[#allocation27_spill] sm:$0xff]  ;;  %v3629_v17 = vpop.f32.mrb[48].mxu1 }
 0x1cd   : > { %5965 = vst [vmem:[#allocation20_spill] sm:$0xff] %v5047_v61  ;;  %v2202_v45 = vadd.f32 %v5968_v8, %v2174_v22  ;;  %v2295_v5 = vmul.f32 %v4886_v35, %v4986_v59  ;;  %1647 = vst [vmem:[#allocation2 + $0x268] sm:$0xff] %v1275_v42  ;;  %v1523_v51 = vadd.f32 %v4928_v49, %v1522_v29  ;;  %2029 = vrot.lane.b32.xlu1 %v5037_v55, %s3915_s20  ;;  %v5974_v42 = vld [vmem:[#allocation31_spill] sm:$0xff]  ;;  %v5975_v29 = vld [vmem:[#allocation32_spill] sm:$0xff] }
 0x1ce   : > { %2025 = vrot.lane.b32.xlu0 %v5047_v61, %s3915_s20  ;;  %v1908_v39 = vadd.f32 %v5969_v20, %v1880_v1  ;;  %v1819_v36 = vadd.f32 %v5970_v9, %v1791_v53  ;;  %1713 = vst [vmem:[#allocation2 + $0x598] sm:$0xff] %v1531_v60  ;;  %1645 = vst [vmem:[#allocation2 + $0x250] sm:$0xff] %v5056_v6  ;;  %v1873_v28 = vmul.f32 %v4884_v33, %v4949_v54  ;;  %v1279_v53 = vpop.f32.mrb[49].mxu0  ;;  %v1535_v20 = vpop.f32.mrb[49].mxu1  ;;  %v5976_v9 = vld [vmem:[#allocation35_spill] sm:$0xff] }
 0x1cf   : > { %v2228_v41 = vadd.f32 %v2220_v31, %v2202_v45  ;;  %v1960_v24 = vmul.f32 %v4886_v35, %v4944_v10  ;;  %v2146_v44 = vmul.f32 %v4970_v62, %v4974_v0  ;;  %v2224_v52 = vmul.f32 %v4884_v33, %v1520_v32  ;;  %v5973_v31 = vld [vmem:[#allocation23_spill] sm:$0xff] }
 0x1d0   : > { %v1937_v12 = vadd.f32 %v5971_v13, %v1908_v39  ;;  %v1851_v2 = vadd.f32 %v5972_v56, %v1819_v36  ;;  %v2143_v40 = vmul.f32 %v4970_v62, %v4944_v10  ;;  %v2221_v47 = vmul.f32 %v4884_v33, %v5005_v4  ;;  %v3566_v39 = vpop.f32.mrb[50].mxu0  ;;  %v5977_v36 = vld [vmem:[#allocation36_spill] sm:$0xff]  ;;  %v5978_v13 = vld [vmem:[#allocation18_spill] sm:$0xff]  ;;  %v6017_v61 = vld [vmem:[#allocation55_spill] sm:$0xff] }
 0x1d1   : > { %v2252_v22 = vadd.f32 %v5973_v31, %v2228_v41  ;;  %v2154_v54 = vadd.f32 %v2146_v44, %v5974_v42  ;;  %v2147_v34 = vmul.f32 %v4970_v62, %v4991_v63  ;;  %v1288_v1 = vadd.f32 %v4928_v49, %v3565_v26  ;;  %v1282_v44 = vpop.f32.mrb[51].mxu0  ;;  %v5980_v56 = vld [vmem:[#allocation28_spill] sm:$0xff] }
 0x1d2   : > { %v1967_v60 = vadd.f32 %v1959_v25, %v1937_v12  ;;  %v1881_v32 = vadd.f32 %v1873_v28, %v1851_v2  ;;  %v2151_v8 = vadd.f32 %v2143_v40, %v5975_v29  ;;  %v1544_v10 = vadd.f32 %v4928_v49, %v3629_v17  ;;  %v3630_v28 = vpop.f32.mrb[50].mxu1  ;;  %v5104_v40 = vld [vmem:[#allocation2 + $0x160] sm:$0xff] }
 0x1d3   : > { %v5090_v45 = vadd.f32 %v4928_v49, %v1279_v53  ;;  %v2277_v4 = vadd.f32 %v5976_v9, %v2252_v22  ;;  %v2178_v41 = vadd.f32 %v5977_v36, %v2154_v54  ;;  %1650 = vst [vmem:[#allocation2 + $0x290] sm:$0xff] %v1288_v1  ;;  %v5095_v63 = vadd.f32 %v4928_v49, %v1535_v20  ;;  %v1538_v22 = vpop.f32.mrb[51].mxu1  ;;  %v5981_v54 = vld [vmem:[#allocation58_spill] sm:$0xff]  ;;  %v5982_v53 = vld [vmem:[#allocation29_spill] sm:$0xff]  ;;  %v5126_v36 = vld [vmem:[#allocation7 + $0x8] ss:$0 sm:$0xff] }
 0x1d4   : > { %v5098_v25 = vadd.f32 %v4928_v49, %v3566_v39  ;;  %v5101_v12 = vadd.f32 %v5978_v13, %v1967_v60  ;;  %v1909_v2 = vadd.f32 %v5980_v56, %v1881_v32  ;;  %1716 = vst [vmem:[#allocation2 + $0x5c0] sm:$0xff] %v1544_v10  ;;  %v5107_v26 = vadd.f32 %v4928_v49, %v3630_v28  ;;  %v5983_v32 = vld [vmem:[#allocation33_spill] sm:$0xff]  ;;  %v5984_v10 = vld [vmem:[#allocation40_spill] sm:$0xff] }
 0x1d5   : > { %v5110_v31 = vadd.f32 %v4928_v49, %v1282_v44  ;;  %v2303_v42 = vadd.f32 %v2295_v5, %v2277_v4  ;;  %v2206_v1 = vadd.f32 %v5981_v54, %v2178_v41  ;;  %v5115_v17 = vadd.f32 %v4928_v49, %v1538_v22  ;;  %v5985_v39 = vld [vmem:[#allocation24_spill] sm:$0xff]  ;;  %v5987_v44 = vld [vmem:[#allocation42_spill] sm:$0xff]  ;;  %v5988_v56 = vld [vmem:[#allocation41_spill] sm:$0xff] }
 0x1d6   : > { %5979 = vst [vmem:[#allocation15_spill] sm:$0xff] %v5101_v12  ;;  %1651 = vst [vmem:[#allocation2 + $0x298] sm:$0xff] %v5098_v25  ;;  %2031 = vrot.lane.b32.xlu1 %v5101_v12, %s3915_s20  ;;  %v1938_v60 = vadd.f32 %v5982_v53, %v1909_v2  ;;  %v2175_v29 = vadd.f32 %v5983_v32, %v2151_v8  ;;  %v2155_v20 = vadd.f32 %v2147_v34, %v5984_v10  ;;  %v3569_v8 = vpop.f32.mrb[52].mxu0  ;;  %v5989_v22 = vld [vmem:[#allocation59_spill] sm:$0xff]  ;;  %v2290_v12 = vld [vmem:[#allocation2 + $0x238] sm:$0xff] }
 0x1d7   : > { %v5123_v9 = vadd.f32 %v5985_v39, %v2303_v42  ;;  %v2232_v5 = vadd.f32 %v2224_v52, %v2206_v1  ;;  %v2225_v4 = vmul.f32 %v4884_v33, %v1523_v51  ;;  %v5130_v41 = vmul.f32 %v5126_v36, %v5104_v40  ;;  %v3633_v1 = vpop.f32.mrb[52].mxu1  ;;  %v1295_v53 = vpop.f32.mrb[53].mxu0 }
 0x1d8   : > { %v1968_v28 = vadd.f32 %v1960_v24, %v1938_v60  ;;  %v2203_v13 = vadd.f32 %v5987_v44, %v2175_v29  ;;  %v2179_v2 = vadd.f32 %v5988_v56, %v2155_v20  ;;  %v2144_v34 = vmul.f32 %v4970_v62, %v4986_v59  ;;  %v5990_v59 = vld [vmem:[#allocation30_spill] sm:$0xff]  ;;  %v1551_v39 = vpop.f32.mrb[53].mxu1  ;;  %v5994_v56 = vld [vmem:[#allocation37_spill] sm:$0xff] }
 0x1d9   : > { %5986 = vst [vmem:[#allocation21_spill] sm:$0xff] %v5123_v9  ;;  %v2256_v42 = vadd.f32 %v5989_v22, %v2232_v5  ;;  %v2299_v51 = vmul.f32 %v4886_v35, %v5044_v3  ;;  %v2296_v52 = vmul.f32 %v4886_v35, %v4997_v27  ;;  %v2148_v54 = vmul.f32 %v4970_v62, %v5044_v3  ;;  %v5992_v29 = vld [vmem:[#allocation66_spill] sm:$0xff]  ;;  %v3570_v3 = vpop.f32.mrb[54].mxu0 }
 0x1da   : > { %v1304_v24 = vadd.f32 %v4928_v49, %v3569_v8  ;;  %2351 = vrot.lane.b32.xlu1 %v5123_v9, %s3915_s20  ;;  %v5147_v60 = vadd.f32 %v5990_v59, %v1968_v28  ;;  %v2229_v32 = vadd.f32 %v2221_v47, %v2203_v13  ;;  %v2207_v10 = vadd.f32 %v5992_v29, %v2179_v2  ;;  %v5993_v5 = vld [vmem:[#allocation54_spill] sm:$0xff]  ;;  %v3634_v47 = vpop.f32.mrb[54].mxu1  ;;  %v1298_v13 = vpop.f32.mrb[55].mxu0  ;;  %v5995_v2 = vld [vmem:[#allocation45_spill] sm:$0xff]  ;;  %v5996_v29 = vld [vmem:[#allocation43_spill] sm:$0xff] }
 0x1db   : > { %v1560_v20 = vadd.f32 %v4928_v49, %v3633_v1  ;;  %v5152_v27 = vadd.f32 %v4928_v49, %v1295_v53  ;;  %v2281_v44 = vadd.f32 %v5993_v5, %v2256_v42  ;;  %v2152_v8 = vadd.f32 %v2144_v34, %v5994_v56  ;;  %v1554_v34 = vpop.f32.mrb[55].mxu1  ;;  %v2137_v5 = vld [vmem:[#allocation2 + $0x220] sm:$0xff]  ;;  %v5999_v56 = vld [vmem:[#allocation61_spill] sm:$0xff] }
 0x1dc   : > { %5991 = vst [vmem:[#allocation13_spill] sm:$0xff] %v5147_v60  ;;  %1654 = vst [vmem:[#allocation2 + $0x2c0] sm:$0xff] %v1304_v24  ;;  %v5157_v22 = vadd.f32 %v4928_v49, %v1551_v39  ;;  %v5160_v28 = vadd.f32 %v4928_v49, %v3570_v3  ;;  %v2253_v1 = vadd.f32 %v5995_v2, %v2229_v32  ;;  %v6002_v2 = vld [vmem:[#allocation44_spill] sm:$0xff]  ;;  %v2545_v30 = vld [vmem:[#allocation2 + $0x5c0] sm:$0xff] }
 0x1dd   : > { %v2233_v59 = vadd.f32 %v2225_v4, %v2207_v10  ;;  %1720 = vst [vmem:[#allocation2 + $0x5f0] sm:$0xff] %v1560_v20  ;;  %1652 = vst [vmem:[#allocation2 + $0x2a8] sm:$0xff] %v5152_v27  ;;  %v1563_v53 = vadd.f32 %v4928_v49, %v3634_v47  ;;  %v5166_v42 = vadd.f32 %v4928_v49, %v1298_v13  ;;  %v5997_v4 = vld [vmem:[#allocation38_spill] sm:$0xff]  ;;  %v5998_v10 = vld [vmem:[#allocation67_spill] sm:$0xff] }
 0x1de   : > { %v2307_v24 = vadd.f32 %v2299_v51, %v2281_v44  ;;  %v2176_v39 = vadd.f32 %v5996_v29, %v2152_v8  ;;  %1655 = vst [vmem:[#allocation2 + $0x2c8] sm:$0xff] %v5160_v28  ;;  %v5171_v3 = vadd.f32 %v4928_v49, %v1554_v34  ;;  %2033 = vrot.lane.b32.xlu1 %v5147_v60, %s3915_s20  ;;  %v2465_v13 = vld [vmem:[#allocation2 + $0x260] sm:$0xff]  ;;  %v6000_v51 = vld [vmem:[#allocation60_spill] sm:$0xff] }
 0x1df   : > { %v2278_v32 = vadd.f32 %v5997_v4, %v2253_v1  ;;  %v2257_v20 = vadd.f32 %v5998_v10, %v2233_v59  ;;  %v2156_v47 = vadd.f32 %v2148_v54, %v5999_v56  ;;  %1721 = vst [vmem:[#allocation2 + $0x5f8] sm:$0xff] %v1563_v53  ;;  %1653 = vst [vmem:[#allocation2 + $0x2b0] sm:$0xff] %v5166_v42  ;;  %v6003_v4 = vld [vmem:[#allocation62_spill] sm:$0xff]  ;;  %v6004_v10 = vld [vmem:[#allocation64_spill] sm:$0xff]  ;;  %v3573_v56 = vpop.f32.mrb[56].mxu0 }
 0x1e0   : > { %v5180_v44 = vadd.f32 %v6000_v51, %v2307_v24  ;;  %v2300_v8 = vmul.f32 %v4886_v35, %v5056_v6  ;;  %v2204_v34 = vadd.f32 %v6002_v2, %v2176_v39  ;;  %v2222_v29 = vmul.f32 %v4884_v33, %v4983_v50  ;;  %v6007_v2 = vld [vmem:[#allocation65_spill] sm:$0xff]  ;;  %v6013_v60 = vld [vmem:[#allocation50_spill] sm:$0xff] }
 0x1e1   : > { %v2304_v1 = vadd.f32 %v2296_v52, %v2278_v32  ;;  %v2282_v59 = vadd.f32 %v6003_v4, %v2257_v20  ;;  %v2180_v54 = vadd.f32 %v6004_v10, %v2156_v47  ;;  %v2145_v53 = vmul.f32 %v4970_v62, %v2137_v5  ;;  %v3637_v32 = vpop.f32.mrb[56].mxu1  ;;  %v1311_v20 = vpop.f32.mrb[57].mxu0  ;;  %v6005_v47 = vld [vmem:[#allocation39_spill] sm:$0xff] }
 0x1e2   : > { %6001 = vst [vmem:[#allocation22_spill] sm:$0xff] %v5180_v44  ;;  %2359 = vrot.lane.b32.xlu0 %v5180_v44, %s3915_s20  ;;  %v2230_v24 = vadd.f32 %v2222_v29, %v2204_v34  ;;  %v2297_v6 = vmul.f32 %v4886_v35, %v4974_v0  ;;  %v2226_v39 = vmul.f32 %v4884_v33, %v5041_v11  ;;  %v1567_v11 = vpop.f32.mrb[57].mxu1  ;;  %v3574_v29 = vpop.f32.mrb[58].mxu0 }
 0x1e3   : > { %v2473_v50 = vmul.f32 %v4970_v62, %v2465_v13  ;;  %v5198_v52 = vadd.f32 %v4928_v49, %v3573_v56  ;;  %v5201_v5 = vadd.f32 %v6005_v47, %v2304_v1  ;;  %v2308_v51 = vadd.f32 %v2300_v8, %v2282_v59  ;;  %v6008_v13 = vld [vmem:[#allocation46_spill] sm:$0xff]  ;;  %v6009_v56 = vld [vmem:[#allocation49_spill] sm:$0xff]  ;;  %v3638_v59 = vpop.f32.mrb[58].mxu1 }
 0x1e4   : > { %v2208_v4 = vadd.f32 %v6007_v2, %v2180_v54  ;;  %v5205_v34 = vadd.f32 %v4928_v49, %v3637_v32  ;;  %v5208_v0 = vadd.f32 %v4928_v49, %v1311_v20  ;;  %v2254_v10 = vadd.f32 %v6008_v13, %v2230_v24  ;;  %v1314_v54 = vpop.f32.mrb[59].mxu0  ;;  %v6010_v32 = vld [vmem:[#allocation63_spill] sm:$0xff] }
 0x1e5   : > { %6006 = vst [vmem:[#allocation25_spill] sm:$0xff] %v5201_v5  ;;  %v2153_v44 = vadd.f32 %v2145_v53, %v6009_v56  ;;  %1658 = vst [vmem:[#allocation2 + $0x2f0] sm:$0xff] %v5198_v52  ;;  %v5214_v1 = vadd.f32 %v4928_v49, %v1567_v11  ;;  %v5217_v8 = vadd.f32 %v4928_v49, %v3574_v29  ;;  %2353 = vrot.lane.b32.xlu1 %v5201_v5, %s3915_s20  ;;  %v2215_v24 = vld [vmem:[#allocation2 + $0x568] sm:$0xff]  ;;  %v1570_v29 = vpop.f32.mrb[59].mxu1 }
 0x1e6   : > { %v5222_v20 = vadd.f32 %v6010_v32, %v2308_v51  ;;  %v2234_v47 = vadd.f32 %v2226_v39, %v2208_v4  ;;  %v5224_v2 = vld [vmem:[#allocation2 + $0x268] sm:$0xff]  ;;  %v5227_v53 = vadd.f32 %v4928_v49, %v3638_v59  ;;  %v5230_v11 = vadd.f32 %v4928_v49, %v1314_v54  ;;  %v6014_v39 = vld [vmem:[#allocation68_spill] sm:$0xff]  ;;  %v6015_v54 = vld [vmem:[#allocation69_spill] sm:$0xff] }
 0x1e7   : > { %v6012_v13 = vld [vmem:[#allocation47_spill] sm:$0xff]  ;;  %v2177_v9 = vadd.f32 %v6013_v60, %v2153_v44  ;;  %1659 = vst [vmem:[#allocation2 + $0x2f8] sm:$0xff] %v5217_v8  ;;  %v5236_v51 = vadd.f32 %v4928_v49, %v1570_v29  ;;  %v2301_v59 = vmul.f32 %v4886_v35, %v5030_v58  ;;  %v2481_v32 = vadd.f32 %v2473_v50, %v6015_v54  ;;  %v2141_v29 = vld [vmem:[#allocation2 + $0x250] sm:$0xff] }
 0x1e8   : > { %6011 = vst [vmem:[#allocation34_spill] sm:$0xff] %v5222_v20  ;;  %v2279_v56 = vadd.f32 %v6012_v13, %v2254_v10  ;;  %2361 = vrot.lane.b32.xlu0 %v5222_v20, %s3915_s20  ;;  %v2258_v4 = vadd.f32 %v6014_v39, %v2234_v47  ;;  %v6016_v10 = vld [vmem:[#allocation51_spill] sm:$0xff]  ;;  %v2223_v60 = vmul.f32 %v4884_v33, %v2215_v24  ;;  %v3577_v39 = vpop.f32.mrb[60].mxu0  ;;  %v6019_v50 = vld [vmem:[#allocation48_spill] sm:$0xff] }
 0x1e9   : > { %v2205_v13 = vadd.f32 %v6016_v10, %v2177_v9  ;;  %v2474_v44 = vmul.f32 %v4970_v62, %v5224_v2  ;;  %v2298_v20 = vmul.f32 %v4886_v35, %v2290_v12  ;;  %v2505_v47 = vadd.f32 %v6018_v43, %v2481_v32  ;;  %v1327_v12 = vpop.f32.mrb[61].mxu0 }
 0x1ea   : > { %v2305_v5 = vadd.f32 %v2297_v6, %v2279_v56  ;;  %v2283_v55 = vadd.f32 %v6017_v61, %v2258_v4  ;;  %v2551_v58 = vmul.f32 %v4884_v33, %v5095_v63  ;;  %v6021_v56 = vld [vmem:[#allocation71_spill] sm:$0xff]  ;;  %v2552_v54 = vmul.f32 %v4884_v33, %v5115_v17  ;;  %v3641_v61 = vpop.f32.mrb[60].mxu1  ;;  %v6023_v17 = vld [vmem:[#allocation52_spill] sm:$0xff] }
 0x1eb   : > { %v2231_v9 = vadd.f32 %v2223_v60, %v2205_v13  ;;  %v2482_v24 = vadd.f32 %v2474_v44, %v6021_v56  ;;  %v1336_v10 = vadd.f32 %v4928_v49, %v3577_v39  ;;  %v2533_v43 = vadd.f32 %v6022_v14, %v2505_v47  ;;  %v1583_v13 = vpop.f32.mrb[61].mxu1  ;;  %v3578_v60 = vpop.f32.mrb[62].mxu0  ;;  %v6024_v39 = vld [vmem:[#allocation72_spill] sm:$0xff] }
 0x1ec   : > { %v5254_v6 = vadd.f32 %v6019_v50, %v2305_v5  ;;  %v2309_v4 = vadd.f32 %v2301_v59, %v2283_v55  ;;  %v2149_v32 = vmul.f32 %v4970_v62, %v2141_v29  ;;  %v1592_v63 = vadd.f32 %v4928_v49, %v3641_v61  ;;  %v6025_v55 = vld [vmem:[#allocation56_spill] sm:$0xff]  ;;  %v3642_v47 = vpop.f32.mrb[62].mxu1  ;;  %v1330_v56 = vpop.f32.mrb[63].mxu0 }
 0x1ed   : > { %v5266_v5 = vadd.f32 %v4928_v49, %v1327_v12  ;;  %v2255_v44 = vadd.f32 %v6023_v17, %v2231_v9  ;;  %v2506_v50 = vadd.f32 %v6024_v39, %v2482_v24  ;;  %1662 = vst [vmem:[#allocation2 + $0x320] sm:$0xff] %v1336_v10  ;;  %v5274_v14 = vadd.f32 %v4928_v49, %v1583_v13  ;;  %v1586_v24 = vpop.f32.mrb[63].mxu1  ;;  %v6028_v10 = vld [vmem:[#allocation53_spill] sm:$0xff]  ;;  %v6029_v17 = vld [vmem:[#allocation90_spill] sm:$0xff] }
 0x1ee   : > { %6020 = vst [vmem:[#allocation17_spill] sm:$0xff] %v5254_v6  ;;  %2355 = vrot.lane.b32.xlu1 %v5254_v6, %s3915_s20  ;;  %v5271_v59 = vadd.f32 %v6025_v55, %v2309_v4  ;;  %v5277_v29 = vadd.f32 %v4928_v49, %v3578_v60  ;;  %v2559_v61 = vadd.f32 %v2551_v58, %v2533_v43  ;;  %1728 = vst [vmem:[#allocation2 + $0x650] sm:$0xff] %v1592_v63  ;;  %v6030_v60 = vld [vmem:[#allocation83_spill] sm:$0xff]  ;;  %v6031_v43 = vld [vmem:[#allocation73_spill] sm:$0xff] }
 0x1ef   : > { %v5280_v12 = vadd.f32 %v4928_v49, %v3642_v47  ;;  %v5283_v9 = vadd.f32 %v4928_v49, %v1330_v56  ;;  %v2280_v4 = vadd.f32 %v6028_v10, %v2255_v44  ;;  %v2534_v39 = vadd.f32 %v6029_v17, %v2506_v50  ;;  %v2219_v55 = vld [vmem:[#allocation2 + $0x598] sm:$0xff]  ;;  %v5294_v47 = vld [vmem:[#allocation7] ss:$0 sm:$0xff] }
 0x1f0   : > { %6026 = vst [vmem:[#allocation26_spill] sm:$0xff] %v5271_v59  ;;  %6027 = vst [vmem:[#allocation19_spill] sm:$0xff] %v5277_v29  ;;  %2363 = vrot.lane.b32.xlu0 %v5271_v59, %s3915_s20  ;;  %v5290_v13 = vadd.f32 %v4928_v49, %v1586_v24  ;;  %v2583_v58 = vadd.f32 %v6030_v60, %v2559_v61  ;;  %v2157_v63 = vadd.f32 %v2149_v32, %v6031_v43  ;;  %v6032_v24 = vld [vmem:[#allocation78_spill] sm:$0xff]  ;;  %v6034_v59 = vld [vmem:[#allocation57_spill] sm:$0xff] }
 0x1f1   : > { %v5298_v56 = vmul.f32 %v5294_v47, %v4796_v23  ;;  %v2306_v44 = vadd.f32 %v2298_v20, %v2280_v4  ;;  %v2626_v50 = vmul.f32 %v4886_v35, %v5090_v45  ;;  %v2560_v10 = vadd.f32 %v2552_v54, %v2534_v39  ;;  %v6033_v61 = vld [vmem:[#allocation74_spill] sm:$0xff]  ;;  %v2620_v23 = vld [vmem:[#allocation2 + $0x290] sm:$0xff]  ;;  %v6036_v4 = vld [vmem:[#allocation91_spill] sm:$0xff] }
 0x1f2   : > { %v2476_v49 = vmul.f32 %v4970_v62, %v5110_v31  ;;  %v2608_v17 = vadd.f32 %v6032_v24, %v2583_v58  ;;  %v2627_v32 = vmul.f32 %v4886_v35, %v5110_v31  ;;  %v2181_v60 = vadd.f32 %v6033_v61, %v2157_v63  ;;  %v6037_v39 = vld [vmem:[#allocation88_spill] sm:$0xff]  ;;  %v6038_v24 = vld [vmem:[#allocation75_spill] sm:$0xff] }
 0x1f3   : > { %v2475_v43 = vmul.f32 %v4970_v62, %v5090_v45  ;;  %v5311_v20 = vadd.f32 %v6034_v59, %v2306_v44  ;;  %v2584_v6 = vadd.f32 %v6036_v4, %v2560_v10  ;;  %v2227_v54 = vmul.f32 %v4884_v33, %v2219_v55  ;;  %v6039_v63 = vld [vmem:[#allocation95_spill] sm:$0xff]  ;;  %v6040_v45 = vld [vmem:[#allocation86_spill] sm:$0xff]  ;;  %v6041_v44 = vld [vmem:[#allocation89_spill] sm:$0xff] }
 0x1f4   : > { %v2484_v18 = vadd.f32 %v2476_v49, %v6037_v39  ;;  %v2634_v58 = vadd.f32 %v2626_v50, %v2608_v17  ;;  %v2209_v29 = vadd.f32 %v6038_v24, %v2181_v60  ;;  %v2302_v31 = vmul.f32 %v4886_v35, %v5224_v2  ;;  %v6042_v50 = vld [vmem:[#allocation84_spill] sm:$0xff] }
 0x1f5   : > { %6035 = vst [vmem:[#allocation27_spill] sm:$0xff] %v5311_v20  ;;  %v2483_v61 = vadd.f32 %v2475_v43, %v6039_v63  ;;  %2357 = vrot.lane.b32.xlu1 %v5311_v20, %s3915_s20  ;;  %v2609_v59 = vadd.f32 %v6040_v45, %v2584_v6  ;;  %v2554_v55 = vmul.f32 %v4884_v33, %v5107_v26  ;;  %v6043_v4 = vld [vmem:[#allocation96_spill] sm:$0xff]  ;;  %v6045_v20 = vld [vmem:[#allocation99_spill] sm:$0xff]  ;;  %v2470_v45 = vld [vmem:[#allocation2 + $0x298] sm:$0xff] }
 0x1f6   : > { %v2508_v10 = vadd.f32 %v6041_v44, %v2484_v18  ;;  %v2477_v49 = vmul.f32 %v4970_v62, %v2620_v23  ;;  %v5328_v17 = vadd.f32 %v6042_v50, %v2634_v58  ;;  %v2235_v60 = vadd.f32 %v2227_v54, %v2209_v29  ;;  %v6044_v24 = vld [vmem:[#allocation92_spill] sm:$0xff]  ;;  %v6047_v54 = vld [vmem:[#allocation97_spill] sm:$0xff] }
 0x1f7   : > { %v2507_v2 = vadd.f32 %v6043_v4, %v2483_v61  ;;  %v2553_v43 = vmul.f32 %v4884_v33, %v2545_v30  ;;  %v2635_v39 = vadd.f32 %v2627_v32, %v2609_v59  ;;  %v2805_v18 = vmul.f32 %v4970_v62, %v5160_v28  ;;  %v6046_v26 = vld [vmem:[#allocation76_spill] sm:$0xff]  ;;  %v6048_v32 = vld [vmem:[#allocation87_spill] sm:$0xff]  ;;  %v6050_v28 = vld [vmem:[#allocation109_spill] sm:$0xff] }
 0x1f8   : > { %v2536_v63 = vadd.f32 %v6044_v24, %v2508_v10  ;;  %v2485_v6 = vadd.f32 %v2477_v49, %v6045_v20  ;;  %2682 = vrot.lane.b32.xlu0 %v5328_v17, %s3915_s20  ;;  %v2259_v58 = vadd.f32 %v6046_v26, %v2235_v60  ;;  %v2629_v29 = vmul.f32 %v4886_v35, %v5098_v25  ;;  %v6049_v44 = vld [vmem:[#allocation100_spill] sm:$0xff]  ;;  %v6051_v50 = vld [vmem:[#allocation77_spill] sm:$0xff] }
 0x1f9   : > { %v2535_v61 = vadd.f32 %v6047_v54, %v2507_v2  ;;  %v2628_v30 = vmul.f32 %v4886_v35, %v2620_v23  ;;  %v5344_v59 = vadd.f32 %v6048_v32, %v2635_v39  ;;  %v2813_v49 = vadd.f32 %v2805_v18, %v6050_v28  ;;  %v6052_v23 = vld [vmem:[#allocation93_spill] sm:$0xff]  ;;  %v6053_v39 = vld [vmem:[#allocation106_spill] sm:$0xff] }
 0x1fa   : > { %v2562_v20 = vadd.f32 %v2554_v55, %v2536_v63  ;;  %v2509_v10 = vadd.f32 %v6049_v44, %v2485_v6  ;;  %v2284_v4 = vadd.f32 %v6051_v50, %v2259_v58  ;;  %v2555_v60 = vmul.f32 %v4884_v33, %v5157_v22  ;;  %v6054_v55 = vld [vmem:[#allocation110_spill] sm:$0xff]  ;;  %v6056_v54 = vld [vmem:[#allocation101_spill] sm:$0xff] }
 0x1fb   : > { %v2561_v24 = vadd.f32 %v2553_v43, %v2535_v61  ;;  %v2478_v25 = vmul.f32 %v4970_v62, %v2470_v45  ;;  %2684 = vrot.lane.b32.xlu1 %v5344_v59, %s3915_s20  ;;  %v2837_v63 = vadd.f32 %v6054_v55, %v2813_v49  ;;  %v2883_v6 = vmul.f32 %v4884_v33, %v5236_v51  ;;  %v6055_v58 = vld [vmem:[#allocation98_spill] sm:$0xff]  ;;  %v6057_v45 = vld [vmem:[#allocation85_spill] sm:$0xff]  ;;  %v6058_v49 = vld [vmem:[#allocation79_spill] sm:$0xff] }
 0x1fc   : > { %v2586_v2 = vadd.f32 %v6052_v23, %v2562_v20  ;;  %v2537_v26 = vadd.f32 %v6053_v39, %v2509_v10  ;;  %v2310_v18 = vadd.f32 %v2302_v31, %v2284_v4  ;;  %v2806_v22 = vmul.f32 %v4970_v62, %v5208_v0  ;;  %v5367_v28 = vld [vmem:[#allocation2 + $0x2c0] sm:$0xff]  ;;  %v6059_v31 = vld [vmem:[#allocation80_spill] sm:$0xff]  ;;  %v6060_v4 = vld [vmem:[#allocation103_spill] sm:$0xff] }
 0x1fd   : > { %v2585_v43 = vadd.f32 %v6055_v58, %v2561_v24  ;;  %v2486_v61 = vadd.f32 %v2478_v25, %v6056_v54  ;;  %v2630_v20 = vmul.f32 %v4886_v35, %v5152_v27  ;;  %v2865_v10 = vadd.f32 %v4859_v21, %v2837_v63  ;;  %v6061_v39 = vld [vmem:[#allocation107_spill] sm:$0xff]  ;;  %v6063_v58 = vld [vmem:[#allocation94_spill] sm:$0xff]  ;;  %v6065_v54 = vld [vmem:[#allocation81_spill] sm:$0xff] }
 0x1fe   : > { %v2611_v32 = vadd.f32 %v6057_v45, %v2586_v2  ;;  %v2563_v44 = vadd.f32 %v2555_v60, %v2537_v26  ;;  %v5370_v51 = vadd.f32 %v6058_v49, %v2310_v18  ;;  %v2814_v25 = vadd.f32 %v2806_v22, %v4834_v19  ;;  %v6062_v26 = vld [vmem:[#allocation114_spill] sm:$0xff]  ;;  %v6067_v49 = vld [vmem:[#allocation115_spill] sm:$0xff] }
 0x1ff   : > { %v2610_v50 = vadd.f32 %v6059_v31, %v2585_v43  ;;  %v2510_v24 = vadd.f32 %v6060_v4, %v2486_v61  ;;  %v2891_v60 = vadd.f32 %v2883_v6, %v2865_v10  ;;  %v2556_v27 = vmul.f32 %v4884_v33, %v5171_v3  ;;  %v2471_v10 = vld [vmem:[#allocation2 + $0x2a8] sm:$0xff]  ;;  %v6068_v4 = vld [vmem:[#allocation105_spill] sm:$0xff] }
 0x200   : > { %v2637_v23 = vadd.f32 %v2629_v29, %v2611_v32  ;;  %v2587_v2 = vadd.f32 %v6061_v39, %v2563_v44  ;;  %2365 = vrot.lane.b32.xlu0 %v5370_v51, %s3915_s20  ;;  %v2838_v63 = vadd.f32 %v4837_v46, %v2814_v25  ;;  %v2804_v18 = vmul.f32 %v4970_v62, %v5367_v28  ;;  %v6064_v29 = vld [vmem:[#allocation102_spill] sm:$0xff]  ;;  %v6066_v46 = vld [vmem:[#allocation104_spill] sm:$0xff]  ;;  %v6070_v39 = vld [vmem:[#allocation111_spill] sm:$0xff] }
 0x201   : > { %v2636_v21 = vadd.f32 %v2628_v30, %v2610_v50  ;;  %v2538_v55 = vadd.f32 %v6062_v26, %v2510_v24  ;;  %v2915_v6 = vadd.f32 %v4872_v48, %v2891_v60  ;;  %v2884_v3 = vmul.f32 %v4884_v33, %v5205_v34  ;;  %v6069_v24 = vld [vmem:[#allocation108_spill] sm:$0xff] }
 0x202   : > { %v5385_v19 = vadd.f32 %v6063_v58, %v2637_v23  ;;  %v2612_v43 = vadd.f32 %v6064_v29, %v2587_v2  ;;  %v2866_v22 = vadd.f32 %v4850_v57, %v2838_v63  ;;  %v2812_v45 = vadd.f32 %v2804_v18, %v6066_v46  ;;  %v6071_v60 = vld [vmem:[#allocation128_spill] sm:$0xff]  ;;  %v6073_v63 = vld [vmem:[#allocation130_spill] sm:$0xff]  ;;  %v5427_v58 = vld [vmem:[#allocation7 + $0x2] ss:$0 sm:$0xff] }
 0x203   : > { %v5392_v61 = vadd.f32 %v6065_v54, %v2636_v21  ;;  %v2564_v30 = vadd.f32 %v2556_v27, %v2538_v55  ;;  %v2940_v44 = vadd.f32 %v4847_v7, %v2915_v6  ;;  %v2958_v48 = vmul.f32 %v4886_v35, %v5230_v11  ;;  %v6072_v21 = vld [vmem:[#allocation129_spill] sm:$0xff]  ;;  %v2800_v55 = vld [vmem:[#allocation2 + $0x2f0] sm:$0xff] }
 0x204   : > { %2688 = vrot.lane.b32.xlu1 %v5385_v19, %s3915_s20  ;;  %v2638_v32 = vadd.f32 %v2630_v20, %v2612_v43  ;;  %v2807_v34 = vmul.f32 %v4970_v62, %v5230_v11  ;;  %v2631_v31 = vmul.f32 %v4886_v35, %v5166_v42  ;;  %v2892_v50 = vadd.f32 %v2884_v3, %v2866_v22  ;;  %v3769_v29 = vld [vmem:[#allocation2 + $0x158] sm:$0xff]  ;;  %v6074_v3 = vld [vmem:[#allocation126_spill] sm:$0xff] }
 0x205   : > { %2686 = vrot.lane.b32.xlu0 %v5392_v61, %s3915_s20  ;;  %v2588_v57 = vadd.f32 %v6067_v49, %v2564_v30  ;;  %v2836_v20 = vadd.f32 %v6068_v4, %v2812_v45  ;;  %v2966_v25 = vadd.f32 %v2958_v48, %v2940_v44  ;;  %v2882_v23 = vmul.f32 %v4884_v33, %v5214_v1  ;;  %v6075_v22 = vld [vmem:[#allocation113_spill] sm:$0xff]  ;;  %v2549_v45 = vld [vmem:[#allocation2 + $0x5f0] sm:$0xff] }
 0x206   : > { %v5410_v7 = vadd.f32 %v6069_v24, %v2638_v32  ;;  %v2815_v11 = vadd.f32 %v2807_v34, %v4878_v15  ;;  %v2916_v27 = vadd.f32 %v6071_v60, %v2892_v50  ;;  %v2479_v42 = vmul.f32 %v4970_v62, %v2471_v10  ;;  %v6076_v32 = vld [vmem:[#allocation134_spill] sm:$0xff]  ;;  %v6077_v10 = vld [vmem:[#allocation112_spill] sm:$0xff] }
 0x207   : > { %v2613_v2 = vadd.f32 %v6070_v39, %v2588_v57  ;;  %v2864_v26 = vadd.f32 %v6072_v21, %v2836_v20  ;;  %v5422_v18 = vadd.f32 %v6073_v63, %v2966_v25  ;;  %v2959_v1 = vmul.f32 %v4886_v35, %v5198_v52  ;;  %v2852_v48 = vld [vmem:[#allocation2 + $0x49f] sm:$0xff]  ;;  %v6079_v4 = vld [vmem:[#allocation116_spill] sm:$0xff]  ;;  %v5460_v63 = vld [vmem:[#allocation7 + $0x4] ss:$0 sm:$0xff] }
 0x208   : > { %2690 = vrot.lane.b32.xlu1 %v5410_v7, %s3915_s20  ;;  %v2839_v15 = vadd.f32 %v4889_v37, %v2815_v11  ;;  %v2832_v43 = vmul.f32 %v3769_v29, %v5427_v58  ;;  %v2941_v54 = vadd.f32 %v6074_v3, %v2916_v27  ;;  %v2487_v46 = vadd.f32 %v2479_v42, %v6075_v22  ;;  %v2472_v24 = vld [vmem:[#allocation2 + $0x2b0] sm:$0xff]  ;;  %v6082_v27 = vld [vmem:[#allocation117_spill] sm:$0xff] }
 0x209   : > { %v2639_v6 = vadd.f32 %v2631_v31, %v2613_v2  ;;  %v2890_v30 = vadd.f32 %v2882_v23, %v2864_v26  ;;  %3015 = vrot.lane.b32.xlu0 %v5422_v18, %s3915_s20  ;;  %v2885_v37 = vmul.f32 %v4884_v33, %v5227_v53  ;;  %v2808_v52 = vmul.f32 %v4970_v62, %v2800_v55  ;;  %v6078_v31 = vld [vmem:[#allocation131_spill] sm:$0xff]  ;;  %v6081_v2 = vld [vmem:[#allocation132_spill] sm:$0xff] }
 0x20a   : > { %v2867_v44 = vadd.f32 %v6076_v32, %v2839_v15  ;;  %v2791_v34 = vmul.f32 %v5294_v47, %v4880_v38  ;;  %v2967_v57 = vadd.f32 %v2959_v1, %v2941_v54  ;;  %v2511_v20 = vadd.f32 %v6079_v4, %v2487_v46  ;;  %v6080_v38 = vld [vmem:[#allocation127_spill] sm:$0xff]  ;;  %v2902_v1 = vld [vmem:[#allocation2 + $0x4a0] sm:$0xff]  ;;  %v6084_v46 = vld [vmem:[#allocation121_spill] sm:$0xff] }
 0x20b   : > { %v5441_v49 = vadd.f32 %v6077_v10, %v2639_v6  ;;  %v2914_v50 = vadd.f32 %v6078_v31, %v2890_v30  ;;  %v2957_v25 = vmul.f32 %v4886_v35, %v5208_v0  ;;  %v2557_v53 = vmul.f32 %v4884_v33, %v2549_v45  ;;  %v5456_v26 = vld [vmem:[#allocation7 + $0x3] ss:$0 sm:$0xff]  ;;  %v2801_v35 = vld [vmem:[#allocation2 + $0x2f8] sm:$0xff]  ;;  %v5467_v6 = vld [vmem:[#allocation7 + $0x7] ss:$0 sm:$0xff] }
 0x20c   : > { %v2893_v23 = vadd.f32 %v2885_v37, %v2867_v44  ;;  %v2816_v11 = vadd.f32 %v2808_v52, %v5298_v56  ;;  %v5452_v39 = vadd.f32 %v6080_v38, %v2967_v57  ;;  %v2539_v21 = vadd.f32 %v6082_v27, %v2511_v20  ;;  %v6083_v0 = vld [vmem:[#allocation135_spill] sm:$0xff]  ;;  %v2550_v32 = vld [vmem:[#allocation2 + $0x5f8] sm:$0xff]  ;;  %v6086_v10 = vld [vmem:[#allocation118_spill] sm:$0xff] }
 0x20d   : > { %2692 = vrot.lane.b32.xlu1 %v5441_v49, %s3915_s20  ;;  %v2939_v60 = vadd.f32 %v6081_v2, %v2914_v50  ;;  %v2860_v42 = vmul.f32 %v5456_v26, %v2852_v48  ;;  %v2886_v56 = vmul.f32 %v5460_v63, %v5274_v14  ;;  %v2480_v15 = vmul.f32 %v4970_v62, %v2472_v24  ;;  %v2927_v14 = vld [vmem:[#allocation2 + $0x16f] sm:$0xff]  ;;  %v2853_v37 = vld [vmem:[#allocation2 + $0x4a7] sm:$0xff]  ;;  %v6085_v52 = vld [vmem:[#allocation133_spill] sm:$0xff] }
 0x20e   : > { %v2917_v55 = vadd.f32 %v6083_v0, %v2893_v23  ;;  %v2840_v33 = vadd.f32 %v2832_v43, %v2816_v11  ;;  %3017 = vrot.lane.b32.xlu0 %v5452_v39, %s3915_s20  ;;  %v2960_v3 = vmul.f32 %v5467_v6, %v5217_v8  ;;  %v2565_v54 = vadd.f32 %v2557_v53, %v2539_v21  ;;  %v5482_v31 = vld [vmem:[#allocation7 + $0x5] ss:$0 sm:$0xff]  ;;  %v6087_v4 = vld [vmem:[#allocation122_spill] sm:$0xff]  ;;  %v5489_v11 = vld [vmem:[#allocation7 + $0x6] ss:$0 sm:$0xff] }
 0x20f   : > { %v2965_v29 = vadd.f32 %v2957_v25, %v2939_v60  ;;  %v2833_v43 = vmul.f32 %v5427_v58, %v5104_v40  ;;  %v2488_v45 = vadd.f32 %v2480_v15, %v6084_v46  ;;  %v2809_v44 = vmul.f32 %v4970_v62, %v2801_v35  ;;  %v2928_v25 = vld [vmem:[#allocation2 + $0x177] sm:$0xff]  ;;  %v6088_v23 = vld [vmem:[#allocation119_spill] sm:$0xff] }
 0x210   : > { %v2942_v30 = vadd.f32 %v4907_v16, %v2917_v55  ;;  %v2868_v22 = vadd.f32 %v2860_v42, %v2840_v33  ;;  %v2589_v57 = vadd.f32 %v6086_v10, %v2565_v54  ;;  %v2632_v8 = vmul.f32 %v5467_v6, %v5367_v28  ;;  %v2977_v21 = vld [vmem:[#allocation2 + $0x170] sm:$0xff]  ;;  %v2978_v0 = vld [vmem:[#allocation2 + $0x178] sm:$0xff] }
 0x211   : > { %v5477_v48 = vadd.f32 %v6085_v52, %v2965_v29  ;;  %v2910_v16 = vmul.f32 %v5482_v31, %v2902_v1  ;;  %v2512_v20 = vadd.f32 %v6087_v4, %v2488_v45  ;;  %v2817_v24 = vadd.f32 %v2809_v44, %v2791_v34  ;;  %v6089_v34 = vld [vmem:[#allocation123_spill] sm:$0xff]  ;;  %v6091_v52 = vld [vmem:[#allocation124_spill] sm:$0xff]  ;;  %v6092_v4 = vld [vmem:[#allocation125_spill] sm:$0xff] }
 0x212   : > { %v2968_v40 = vadd.f32 %v2960_v3, %v2942_v30  ;;  %v2894_v50 = vadd.f32 %v2886_v56, %v2868_v22  ;;  %v2614_v53 = vadd.f32 %v6088_v23, %v2589_v57  ;;  %v2935_v38 = vmul.f32 %v5489_v11, %v2927_v14  ;;  %v2903_v56 = vld [vmem:[#allocation2 + $0x4a8] sm:$0xff]  ;;  %v2855_v30 = vld [vmem:[#allocation2 + $0x4bf] sm:$0xff]  ;;  %v6090_v22 = vld [vmem:[#allocation120_spill] sm:$0xff] }
 0x213   : > { %3013 = vrot.lane.b32.xlu1 %v5477_v48, %s3915_s20  ;;  %v2558_v28 = vmul.f32 %v5460_v63, %v2550_v32  ;;  %v2861_v2 = vmul.f32 %v5456_v26, %v2853_v37  ;;  %v2540_v42 = vadd.f32 %v6089_v34, %v2512_v20  ;;  %v2841_v35 = vadd.f32 %v2833_v43, %v2817_v24  ;;  %v2625_v3 = vld [vmem:[#allocation2 + $0x2c8] sm:$0xff] }
 0x214   : > { %v5495_v60 = vadd.f32 %v5130_v41, %v2968_v40  ;;  %v2918_v27 = vadd.f32 %v2910_v16, %v2894_v50  ;;  %v2640_v55 = vadd.f32 %v2632_v8, %v2614_v53  ;;  %v2961_v33 = vmul.f32 %v5467_v6, %v5266_v5  ;;  %v2905_v53 = vld [vmem:[#allocation2 + $0x4c0] sm:$0xff] }
 0x215   : > { %v2793_v1 = vmul.f32 %v5294_v47, %v2928_v25  ;;  %v2811_v15 = vmul.f32 %v4970_v62, %v5283_v9  ;;  %v2566_v29 = vadd.f32 %v2558_v28, %v2540_v42  ;;  %v2869_v54 = vadd.f32 %v2861_v2, %v2841_v35  ;;  %v2930_v2 = vld [vmem:[#allocation2 + $0x18f] sm:$0xff] }
 0x216   : > { %3019 = vrot.lane.b32.xlu0 %v5495_v60, %s3915_s20  ;;  %v2943_v41 = vadd.f32 %v2935_v38, %v2918_v27  ;;  %v2887_v43 = vmul.f32 %v5460_v63, %v5290_v13  ;;  %v5508_v46 = vadd.f32 %v6090_v22, %v2640_v55  ;;  %v2985_v45 = vmul.f32 %v5126_v36, %v2977_v21  ;;  %v3775_v35 = vld [vmem:[#allocation2 + $0x130] sm:$0xff] }
 0x217   : > { %v2819_v32 = vadd.f32 %v2811_v15, %v2793_v1  ;;  %v2835_v44 = vmul.f32 %v5427_v58, %v2978_v0  ;;  %v2590_v10 = vadd.f32 %v6091_v52, %v2566_v29  ;;  %v2911_v8 = vmul.f32 %v5482_v31, %v2903_v56  ;;  %v2854_v56 = vld [vmem:[#allocation2 + $0x4b7] sm:$0xff] }
 0x218   : > { %v2969_v37 = vadd.f32 %v2961_v33, %v2943_v41  ;;  %v2895_v57 = vadd.f32 %v2887_v43, %v2869_v54  ;;  %2694 = vrot.lane.b32.xlu1 %v5508_v46, %s3915_s20  ;;  %v2633_v13 = vmul.f32 %v5467_v6, %v2625_v3  ;;  %v2863_v40 = vmul.f32 %v5456_v26, %v2855_v30  ;;  %v2880_v1 = vld [vmem:[#allocation2 + $0x650] sm:$0xff] }
 0x219   : > { %v2843_v16 = vadd.f32 %v2835_v44, %v2819_v32  ;;  %v2615_v20 = vadd.f32 %v6092_v4, %v2590_v10  ;;  %v2936_v23 = vmul.f32 %v5489_v11, %v2928_v25  ;;  %v2889_v28 = vmul.f32 %v5460_v63, %v5280_v12  ;;  %v2980_v22 = vld [vmem:[#allocation2 + $0x190] sm:$0xff]  ;;  %v6093_v44 = vld [vmem:[#allocation19_spill] sm:$0xff] }
 0x21a   : > { %v2993_v50 = vadd.f32 %v2985_v45, %v2969_v37  ;;  %v2919_v24 = vadd.f32 %v2911_v8, %v2895_v57  ;;  %v2792_v27 = vmul.f32 %v5294_v47, %v2927_v14  ;;  %v2810_v34 = vmul.f32 %v4970_v62, %v5266_v5  ;;  %v2904_v45 = vld [vmem:[#allocation2 + $0x4b8] sm:$0xff]  ;;  %v2929_v37 = vld [vmem:[#allocation2 + $0x187] sm:$0xff]  ;;  %v5542_v8 = vld [vmem:[#allocation8] ss:$0 sm:$0xff] }
 0x21b   : > { %v2871_v38 = vadd.f32 %v2863_v40, %v2843_v16  ;;  %v2641_v42 = vadd.f32 %v2633_v13, %v2615_v20  ;;  %v2657_v55 = vmul.f32 %v3775_v35, %v5126_v36  ;;  %v2962_v25 = vmul.f32 %v5467_v6, %v5283_v9  ;;  %v2979_v20 = vld [vmem:[#allocation2 + $0x188] sm:$0xff] }
 0x21c   : > { %3021 = vrot.lane.b32.xlu0 %v2993_v50, %s3915_s20  ;;  %v2944_v33 = vadd.f32 %v2936_v23, %v2919_v24  ;;  %v2913_v12 = vmul.f32 %v5482_v31, %v2905_v53  ;;  %v2818_v41 = vadd.f32 %v2810_v34, %v2792_v27  ;;  %v2834_v47 = vmul.f32 %v5427_v58, %v2977_v21  ;;  %v6095_v34 = vld [vmem:[#allocation137_spill] sm:$0xff] }
 0x21d   : > { %v2897_v15 = vadd.f32 %v2889_v28, %v2871_v38  ;;  %v2665_v14 = vadd.f32 %v2657_v55, %v2641_v42  ;;  %v2986_v5 = vmul.f32 %v5126_v36, %v2978_v0  ;;  %v2938_v29 = vmul.f32 %v5489_v11, %v2930_v2  ;;  %v2955_v0 = vld [vmem:[#allocation2 + $0x320] sm:$0xff] }
 0x21e   : > { %v2970_v62 = vadd.f32 %v2962_v25, %v2944_v33  ;;  %v2842_v54 = vadd.f32 %v2834_v47, %v2818_v41  ;;  %v2862_v43 = vmul.f32 %v5456_v26, %v2854_v56  ;;  %v2888_v9 = vmul.f32 %v5460_v63, %v2880_v1  ;;  %v6096_v25 = vld [vmem:[#allocation14_spill] sm:$0xff] }
 0x21f   : > { %v2921_v3 = vadd.f32 %v2913_v12, %v2897_v15  ;;  %2696 = vrot.lane.b32.xlu1 %v2665_v14, %s3915_s20  ;;  %v2964_v58 = vmul.f32 %v5467_v6, %v6093_v44  ;;  %v2988_v10 = vmul.f32 %v5126_v36, %v2980_v22  ;;  %v2912_v63 = vmul.f32 %v5482_v31, %v2904_v45  ;;  %v6097_v41 = vld [vmem:[#allocation138_spill] sm:$0xff]  ;;  %v6098_v45 = vld [vmem:[#allocation16_spill] sm:$0xff] }
 0x220   : > { %v2994_v30 = vadd.f32 %v2986_v5, %v2970_v62  ;;  %v2870_v21 = vadd.f32 %v2862_v43, %v2842_v54  ;;  %v2937_v57 = vmul.f32 %v5489_v11, %v2929_v37  ;;  %v2963_v40 = vmul.f32 %v5467_v6, %v2955_v0  ;;  %v6099_v44 = vld [vmem:[#allocation20_spill] sm:$0xff] }
 0x221   : > { %v2946_v32 = vadd.f32 %v2938_v29, %v2921_v3  ;;  %v5547_v4 = vadd.f32 %v5542_v8, %v5392_v61  ;;  %v5551_v24 = vadd.f32 %v5542_v8, %v5410_v7  ;;  %v5555_v31 = vadd.f32 %v5542_v8, %v5422_v18 }
 0x222   : > { %3023 = vrot.lane.b32.xlu0 %v2994_v30, %s3915_s20  ;;  %v2896_v26 = vadd.f32 %v2888_v9, %v2870_v21  ;;  %v5559_v11 = vadd.f32 %v5542_v8, %v5441_v49  ;;  %v5563_v6 = vadd.f32 %v5542_v8, %v5452_v39  ;;  %v5568_v7 = vadd.f32 %v5542_v8, %v5477_v48 }
 0x223   : > { %v2972_v52 = vadd.f32 %v2964_v58, %v2946_v32  ;;  %v5572_v18 = vadd.f32 %v5542_v8, %v5495_v60  ;;  %v5576_v49 = vadd.f32 %v5542_v8, %v5508_v46  ;;  %v5579_v23 = vadd.f32 %v5542_v8, %v2993_v50  ;;  %v6094_v50 = vld [vmem:[#allocation136_spill] sm:$0xff] }
 0x224   : > { %v2920_v16 = vadd.f32 %v2912_v63, %v2896_v26  ;;  %v5582_v39 = vadd.f32 %v5542_v8, %v2665_v14  ;;  %v5585_v53 = vadd.f32 %v5542_v8, %v2994_v30  ;;  %v2987_v60 = vmul.f32 %v5126_v36, %v2979_v20 }
 0x225   : > { %v2996_v13 = vadd.f32 %v2988_v10, %v2972_v52  ;;  %v2003_v2 = vadd.f32 %v5542_v8, %v6094_v50  ;;  %v2004_v42 = vadd.f32 %v5542_v8, %v6095_v34  ;;  %v2007_v56 = vadd.f32 %v5542_v8, %v6096_v25 }
 0x226   : > { %v2945_v61 = vadd.f32 %v2937_v57, %v2920_v16  ;;  %v2005_v47 = vadd.f32 %v5542_v8, %v6097_v41  ;;  %v2008_v32 = vadd.f32 %v5542_v8, %v6098_v45  ;;  %v2006_v58 = vadd.f32 %v5542_v8, %v6099_v44 }
 0x227   : > { %3027 = vrot.lane.b32.xlu1 %v2996_v13, %s3915_s20  ;;  %v5588_v48 = vadd.f32 %v5542_v8, %v2996_v13 }
 0x228   : > { %v2971_v38 = vadd.f32 %v2963_v40, %v2945_v61 }
 0x22a   : > { %v2995_v28 = vadd.f32 %v2987_v60, %v2971_v38 }
 0x22c   : > { %3025 = vrot.lane.b32.xlu0 %v2995_v28, %s3915_s20  ;;  %v5593_v46 = vadd.f32 %v5542_v8, %v2995_v28 }
 0x234   : > { %v2020_v27 = vpop.permute.xlu0 %2019 }
 0x235   : > { %v2043_v36 = vadd.f32 %v2020_v27, %v2003_v2  ;;  %v6100_v27 = vld [vmem:[#allocation15_spill] sm:$0xff] }
 0x237   : > { %2054 = vst.msk [vmem:[%s5601_s28] sm:$0xff] %vm2053_vm2, %v2043_v36  ;;  %v2084_v55 = vmul.f32 %v2043_v36, %v2043_v36  ;;  %v2062_v1 = vsel %vm2053_vm2, %v2043_v36, 0.0  ;;  %v2009_v36 = vadd.f32 %v5542_v8, %v6100_v27  ;;  %v6106_v27 = vld [vmem:[#allocation17_spill] sm:$0xff] }
 0x238   : > { %v2022_v35 = vpop.permute.xlu0 %2021 }
 0x239   : > { %v2044_v33 = vadd.f32 %v2022_v35, %v2004_v42  ;;  %v2092_v29 = vsel %vm2053_vm2, %v2084_v55, 0.0 }
 0x23b   : > { %2055 = vst.msk [vmem:[%s5601_s28 + $0x8] sm:$0xff] %vm2053_vm2, %v2044_v33  ;;  %v2063_v15 = vsel %vm2053_vm2, %v2044_v33, 0.0  ;;  %v2085_v12 = vmul.f32 %v2044_v33, %v2044_v33  ;;  %v2028_v62 = vpop.permute.xlu1 %2027 }
 0x23c   : > { %v2064_v14 = vadd.f32 %v2063_v15, %v2062_v1  ;;  %v2024_v5 = vpop.permute.xlu0 %2023  ;;  %v2047_v54 = vadd.f32 %v2028_v62, %v2007_v56  ;;  %v6101_v15 = vld [vmem:[#allocation21_spill] sm:$0xff] }
 0x23d   : > { %v2093_v3 = vsel %vm2053_vm2, %v2085_v12, 0.0  ;;  %v2045_v43 = vadd.f32 %v2024_v5, %v2005_v47  ;;  %v2335_v12 = vadd.f32 %v5542_v8, %v6101_v15 }
 0x23e   : > { %v2094_v9 = vadd.f32 %v2093_v3, %v2092_v29  ;;  %2058 = vst.msk [vmem:[%s5601_s28 + $0x20] sm:$0xff] %vm2053_vm2, %v2047_v54  ;;  %v2088_v57 = vmul.f32 %v2047_v54, %v2047_v54  ;;  %v2069_v20 = vsel %vm2053_vm2, %v2047_v54, 0.0  ;;  %v6102_v29 = vld [vmem:[#allocation13_spill] sm:$0xff] }
 0x23f   : > { %2056 = vst.msk [vmem:[%s5601_s28 + $0x10] sm:$0xff] %vm2053_vm2, %v2045_v43  ;;  %v2065_v30 = vsel %vm2053_vm2, %v2045_v43, 0.0  ;;  %v2086_v22 = vmul.f32 %v2045_v43, %v2045_v43  ;;  %v2030_v37 = vpop.permute.xlu1 %2029  ;;  %v2010_v3 = vadd.f32 %v5542_v8, %v6102_v29 }
 0x240   : > { %v2066_v21 = vadd.f32 %v2065_v30, %v2064_v14  ;;  %v2026_v0 = vpop.permute.xlu0 %2025  ;;  %v2048_v10 = vadd.f32 %v2030_v37, %v2008_v32  ;;  %v2099_v50 = vsel %vm2053_vm2, %v2088_v57, 0.0  ;;  %v6104_v37 = vld [vmem:[#allocation25_spill] sm:$0xff]  ;;  %v6105_v57 = vld [vmem:[#allocation34_spill] sm:$0xff] }
 0x241   : > { %v2095_v52 = vsel %vm2053_vm2, %v2086_v22, 0.0  ;;  %v2046_v26 = vadd.f32 %v2026_v0, %v2006_v58  ;;  %v2336_v0 = vadd.f32 %v5542_v8, %v6104_v37 }
 0x242   : > { %v2096_v63 = vadd.f32 %v2095_v52, %v2094_v9  ;;  %2059 = vst.msk [vmem:[%s5601_s28 + $0x28] sm:$0xff] %vm2053_vm2, %v2048_v10  ;;  %v2089_v61 = vmul.f32 %v2048_v10, %v2048_v10  ;;  %v2071_v2 = vsel %vm2053_vm2, %v2048_v10, 0.0  ;;  %v6103_v9 = vld [vmem:[#allocation22_spill] sm:$0xff] }
 0x243   : > { %2057 = vst.msk [vmem:[%s5601_s28 + $0x18] sm:$0xff] %vm2053_vm2, %v2046_v26  ;;  %v2067_v13 = vsel %vm2053_vm2, %v2046_v26, 0.0  ;;  %v2087_v16 = vmul.f32 %v2046_v26, %v2046_v26  ;;  %v2339_v30 = vadd.f32 %v5542_v8, %v6103_v9 }
 0x244   : > { %v2068_v40 = vadd.f32 %v2067_v13, %v2066_v21  ;;  %v2101_v55 = vsel %vm2053_vm2, %v2089_v61, 0.0  ;;  %v2340_v13 = vadd.f32 %v5542_v8, %v6105_v57 }
 0x245   : > { %v2097_v38 = vsel %vm2053_vm2, %v2087_v16, 0.0 }
 0x246   : > { %v2070_v60 = vadd.f32 %v2069_v20, %v2068_v40  ;;  %v2098_v28 = vadd.f32 %v2097_v38, %v2096_v63 }
 0x248   : > { %v2100_v34 = vadd.f32 %v2099_v50, %v2098_v28  ;;  %v2032_v42 = vpop.permute.xlu1 %2031  ;;  %v2072_v35 = vadd.f32 %v2071_v2, %v2070_v60 }
 0x249   : > { %v2049_v33 = vadd.f32 %v2032_v42, %v2009_v36  ;;  %v2337_v36 = vadd.f32 %v5542_v8, %v6106_v27  ;;  %v2342_v27 = vadd.f32 %v5542_v8, %v5370_v51 }
 0x24a   : > { %v2102_v25 = vadd.f32 %v2101_v55, %v2100_v34 }
 0x24b   : > { %2060 = vst.msk [vmem:[%s5601_s28 + $0x30] sm:$0xff] %vm2053_vm2, %v2049_v33  ;;  %v2073_v56 = vsel %vm2053_vm2, %v2049_v33, 0.0  ;;  %v2090_v1 = vmul.f32 %v2049_v33, %v2049_v33 }
 0x24c   : > { %v2074_v41 = vadd.f32 %v2073_v56, %v2072_v35  ;;  %v2352_v47 = vpop.permute.xlu1 %2351  ;;  %v6107_v35 = vld [vmem:[#allocation26_spill] sm:$0xff] }
 0x24d   : > { %v2103_v14 = vsel %vm2053_vm2, %v2090_v1, 0.0  ;;  %v2375_v62 = vadd.f32 %v2352_v47, %v2335_v12  ;;  %v2341_v55 = vadd.f32 %v5542_v8, %v6107_v35  ;;  %v6108_v47 = vld [vmem:[#allocation27_spill] sm:$0xff] }
 0x24e   : > { %v2104_v5 = vadd.f32 %v2103_v14, %v2102_v25  ;;  %v2338_v14 = vadd.f32 %v5542_v8, %v6108_v47 }
 0x24f   : > { %3420 = vst.msk [vmem:[%s5601_s28 + $0x40] sm:$0xff] %vm2053_vm2, %v2375_v62  ;;  %v2415_v26 = vmul.f32 %v2375_v62, %v2375_v62  ;;  %v2393_v40 = vsel %vm2053_vm2, %v2375_v62, 0.0 }
 0x250   : > { %v2034_v54 = vpop.permute.xlu1 %2033 }
 0x251   : > { %v2050_v43 = vadd.f32 %v2034_v54, %v2010_v3  ;;  %v2423_v28 = vsel %vm2053_vm2, %v2415_v26, 0.0  ;;  %v2666_v54 = vadd.f32 %v5542_v8, %v5328_v17 }
 0x253   : > { %2061 = vst.msk [vmem:[%s5601_s28 + $0x38] sm:$0xff] %vm2053_vm2, %v2050_v43  ;;  %v2075_v22 = vsel %vm2053_vm2, %v2050_v43, 0.0  ;;  %v2091_v45 = vmul.f32 %v2050_v43, %v2050_v43 }
 0x254   : > { %v2360_v32 = vpop.permute.xlu0 %2359  ;;  %v2076_v44 = vadd.f32 %v2075_v22, %v2074_v41 }
 0x255   : > { %v2379_v58 = vadd.f32 %v2360_v32, %v2339_v30  ;;  %v2105_v21 = vsel %vm2053_vm2, %v2091_v45, 0.0 }
 0x256   : > { %v5657_v52 = vadd.f32 %v2105_v21, %v2104_v5  ;;  %v2077_v29 = vrot.slane %v2076_v44, 4 }
 0x257   : > { %3424 = vst.msk [vmem:[%s5601_s28 + $0x60] sm:$0xff] %vm2053_vm2, %v2379_v58  ;;  %v2354_v10 = vpop.permute.xlu1 %2353  ;;  %v2419_v3 = vmul.f32 %v2379_v58, %v2379_v58  ;;  %v2400_v21 = vsel %vm2053_vm2, %v2379_v58, 0.0 }
 0x258   : > { %v2376_v63 = vadd.f32 %v2354_v10, %v2336_v0  ;;  %v2667_v0 = vadd.f32 %v5542_v8, %v5344_v59  ;;  %v2078_v10 = vadd.f32 %v2077_v29, %v2076_v44  ;;  %v2107_v58 = vrot.slane %v5657_v52, 4 }
 0x259   : > { %v2430_v17 = vsel %vm2053_vm2, %v2419_v3, 0.0 }
 0x25a   : > { %v2362_v16 = vpop.permute.xlu0 %2361  ;;  %3421 = vst.msk [vmem:[%s5601_s28 + $0x48] sm:$0xff] %vm2053_vm2, %v2376_v63  ;;  %v2394_v20 = vsel %vm2053_vm2, %v2376_v63, 0.0  ;;  %v2416_v61 = vmul.f32 %v2376_v63, %v2376_v63 }
 0x25b   : > { %v2380_v38 = vadd.f32 %v2362_v16, %v2340_v13  ;;  %v2395_v60 = vadd.f32 %v2394_v20, %v2393_v40 }
 0x25c   : > { %v2424_v50 = vsel %vm2053_vm2, %v2416_v61, 0.0 }
 0x25d   : > { %3425 = vst.msk [vmem:[%s5601_s28 + $0x68] sm:$0xff] %vm2053_vm2, %v2380_v38  ;;  %v2425_v2 = vadd.f32 %v2424_v50, %v2423_v28  ;;  %v2420_v22 = vmul.f32 %v2380_v38, %v2380_v38  ;;  %v2402_v13 = vsel %vm2053_vm2, %v2380_v38, 0.0 }
 0x25f   : > { %v2432_v61 = vsel %vm2053_vm2, %v2420_v22, 0.0 }
 0x260   : > { %v2356_v34 = vpop.permute.xlu1 %2355 }
 0x261   : > { %v2377_v42 = vadd.f32 %v2356_v34, %v2337_v36 }
 0x262   : > { %v2364_v56 = vpop.permute.xlu0 %2363 }
 0x263   : > { %3422 = vst.msk [vmem:[%s5601_s28 + $0x50] sm:$0xff] %vm2053_vm2, %v2377_v42  ;;  %v2396_v33 = vsel %vm2053_vm2, %v2377_v42, 0.0  ;;  %v2417_v25 = vmul.f32 %v2377_v42, %v2377_v42  ;;  %v2381_v15 = vadd.f32 %v2364_v56, %v2341_v55  ;;  %v2079_v42 = vrot.slane %v2078_v10, 2 }
 0x264   : > { %v2397_v1 = vadd.f32 %v2396_v33, %v2395_v60  ;;  %v2108_v56 = vadd.f32 %v2107_v58, %v5657_v52 }
 0x265   : > { %v2426_v12 = vsel %vm2053_vm2, %v2417_v25, 0.0  ;;  %3426 = vst.msk [vmem:[%s5601_s28 + $0x70] sm:$0xff] %vm2053_vm2, %v2381_v15  ;;  %v2421_v16 = vmul.f32 %v2381_v15, %v2381_v15  ;;  %v2404_v44 = vsel %vm2053_vm2, %v2381_v15, 0.0 }
 0x266   : > { %v2427_v41 = vadd.f32 %v2426_v12, %v2425_v2 }
 0x267   : > { %v2358_v62 = vpop.permute.xlu1 %2357  ;;  %v2434_v35 = vsel %vm2053_vm2, %v2421_v16, 0.0 }
 0x268   : > { %v2378_v5 = vadd.f32 %v2358_v62, %v2338_v14  ;;  %v2080_v62 = vadd.f32 %v2079_v42, %v2078_v10 }
 0x26a   : > { %3423 = vst.msk [vmem:[%s5601_s28 + $0x58] sm:$0xff] %vm2053_vm2, %v2378_v5  ;;  %v2398_v43 = vsel %vm2053_vm2, %v2378_v5, 0.0  ;;  %v2418_v9 = vmul.f32 %v2378_v5, %v2378_v5  ;;  %v2683_v30 = vpop.permute.xlu0 %2682 }
 0x26b   : > { %v2399_v45 = vadd.f32 %v2398_v43, %v2397_v1  ;;  %v2706_v32 = vadd.f32 %v2683_v30, %v2666_v54  ;;  %v2109_v54 = vrot.slane %v2108_v56, 2 }
 0x26c   : > { %v2428_v37 = vsel %vm2053_vm2, %v2418_v9, 0.0 }
 0x26d   : > { %v2401_v26 = vadd.f32 %v2400_v21, %v2399_v45  ;;  %v2429_v63 = vadd.f32 %v2428_v37, %v2427_v41  ;;  %3428 = vst.msk [vmem:[%s5601_s28 + $0x80] sm:$0xff] %vm2053_vm2, %v2706_v32  ;;  %v2685_v57 = vpop.permute.xlu1 %2684  ;;  %v2746_v40 = vmul.f32 %v2706_v32, %v2706_v32  ;;  %v2724_v28 = vsel %vm2053_vm2, %v2706_v32, 0.0 }
 0x26e   : > { %v2707_v20 = vadd.f32 %v2685_v57, %v2667_v0  ;;  %v2669_v41 = vadd.f32 %v5542_v8, %v5385_v19  ;;  %v2081_v32 = vrot.slane %v2080_v62, 1  ;;  %v2110_v10 = vadd.f32 %v2109_v54, %v2108_v56 }
 0x26f   : > { %v2431_v60 = vadd.f32 %v2430_v17, %v2429_v63  ;;  %v2403_v59 = vadd.f32 %v2402_v13, %v2401_v26  ;;  %v2754_v55 = vsel %vm2053_vm2, %v2746_v40, 0.0 }
 0x270   : > { %3429 = vst.msk [vmem:[%s5601_s28 + $0x88] sm:$0xff] %vm2053_vm2, %v2707_v20  ;;  %v2725_v50 = vsel %vm2053_vm2, %v2707_v20, 0.0  ;;  %v2747_v2 = vmul.f32 %v2707_v20, %v2707_v20 }
 0x271   : > { %v2726_v38 = vadd.f32 %v2725_v50, %v2724_v28  ;;  %v2405_v36 = vadd.f32 %v2404_v44, %v2403_v59  ;;  %v2433_v34 = vadd.f32 %v2432_v61, %v2431_v60 }
 0x272   : > { %v2755_v33 = vsel %vm2053_vm2, %v2747_v2, 0.0  ;;  %v2366_v25 = vpop.permute.xlu0 %2365 }
 0x273   : > { %v2756_v1 = vadd.f32 %v2755_v33, %v2754_v55  ;;  %v2435_v15 = vadd.f32 %v2434_v35, %v2433_v34  ;;  %v2382_v12 = vadd.f32 %v2366_v25, %v2342_v27  ;;  %v2111_v27 = vrot.slane %v2110_v10, 1 }
 0x274   : > { %v2082_v25 = vadd.f32 %v2081_v32, %v2080_v62 }
 0x275   : > { %3427 = vst.msk [vmem:[%s5601_s28 + $0x78] sm:$0xff] %vm2053_vm2, %v2382_v12  ;;  %v2406_v51 = vsel %vm2053_vm2, %v2382_v12, 0.0  ;;  %v2422_v47 = vmul.f32 %v2382_v12, %v2382_v12 }
 0x276   : > { %v2689_v14 = vpop.permute.xlu1 %2688  ;;  %v2407_v5 = vadd.f32 %v2406_v51, %v2405_v36 }
 0x277   : > { %v2709_v29 = vadd.f32 %v2689_v14, %v2669_v41  ;;  %v2687_v3 = vpop.permute.xlu0 %2686  ;;  %v2436_v52 = vsel %vm2053_vm2, %v2422_v47, 0.0 }
 0x278   : > { %v2708_v43 = vadd.f32 %v2687_v3, %v5547_v4  ;;  %v2408_v9 = vrot.slane %v2407_v5, 4  ;;  %v2437_v30 = vadd.f32 %v2436_v52, %v2435_v15 }
 0x279   : > { %3431 = vst.msk [vmem:[%s5601_s28 + $0x98] sm:$0xff] %vm2053_vm2, %v2709_v29  ;;  %v2749_v19 = vmul.f32 %v2709_v29, %v2709_v29  ;;  %v2729_v17 = vsel %vm2053_vm2, %v2709_v29, 0.0 }
 0x27a   : > { %3430 = vst.msk [vmem:[%s5601_s28 + $0x90] sm:$0xff] %vm2053_vm2, %v2708_v43  ;;  %v2727_v8 = vsel %vm2053_vm2, %v2708_v43, 0.0  ;;  %v2748_v22 = vmul.f32 %v2708_v43, %v2708_v43  ;;  %v2691_v45 = vpop.permute.xlu1 %2690  ;;  %v2409_v21 = vadd.f32 %v2408_v9, %v2407_v5  ;;  %v2438_v37 = vrot.slane %v2437_v30, 4 }
 0x27b   : > { %v2728_v0 = vadd.f32 %v2727_v8, %v2726_v38  ;;  %v2710_v26 = vadd.f32 %v2691_v45, %v5551_v24  ;;  %v3016_v63 = vpop.permute.xlu0 %3015  ;;  %v2759_v20 = vsel %vm2053_vm2, %v2749_v19, 0.0 }
 0x27c   : > { %v2757_v4 = vsel %vm2053_vm2, %v2748_v22, 0.0  ;;  %v2410_v57 = vrot.slane %v2409_v21, 2  ;;  %v2439_v13 = vadd.f32 %v2438_v37, %v2437_v30  ;;  %v3038_v60 = vadd.f32 %v3016_v63, %v5555_v31 }
 0x27d   : > { %v2758_v16 = vadd.f32 %v2757_v4, %v2756_v1  ;;  %v2730_v40 = vadd.f32 %v2729_v17, %v2728_v0  ;;  %3432 = vst.msk [vmem:[%s5601_s28 + $0xa0] sm:$0xff] %vm2053_vm2, %v2710_v26  ;;  %v2731_v58 = vsel %vm2053_vm2, %v2710_v26, 0.0  ;;  %v2750_v61 = vmul.f32 %v2710_v26, %v2710_v26 }
 0x27e   : > { %v2411_v59 = vadd.f32 %v2410_v57, %v2409_v21  ;;  %v2440_v44 = vrot.slane %v2439_v13, 2  ;;  %3437 = vst.msk [vmem:[%s5601_s28 + $0xc8] sm:$0xff] %vm2053_vm2, %v3038_v60  ;;  %v3078_v5 = vmul.f32 %v3038_v60, %v3038_v60  ;;  %v3056_v62 = vsel %vm2053_vm2, %v3038_v60, 0.0 }
 0x27f   : > { %v2732_v28 = vadd.f32 %v2731_v58, %v2730_v40  ;;  %v2760_v24 = vadd.f32 %v2759_v20, %v2758_v16  ;;  %v2693_v50 = vpop.permute.xlu1 %2692  ;;  %v2761_v2 = vsel %vm2053_vm2, %v2750_v61, 0.0 }
 0x280   : > { %v2711_v38 = vadd.f32 %v2693_v50, %v5559_v11  ;;  %v2412_v36 = vrot.slane %v2411_v59, 1  ;;  %v2441_v34 = vadd.f32 %v2440_v44, %v2439_v13  ;;  %v3018_v35 = vpop.permute.xlu0 %3017  ;;  %v2112_v11 = vadd.f32 %v2111_v27, %v2110_v10 }
 0x281   : > { %v2762_v42 = vadd.f32 %v2761_v2, %v2760_v24  ;;  %v3039_v33 = vadd.f32 %v3018_v35, %v5563_v6  ;;  %v3086_v19 = vsel %vm2053_vm2, %v3078_v5, 0.0 }
 0x282   : > { %3433 = vst.msk [vmem:[%s5601_s28 + $0xa8] sm:$0xff] %vm2053_vm2, %v2711_v38  ;;  %v2733_v31 = vsel %vm2053_vm2, %v2711_v38, 0.0  ;;  %v2751_v55 = vmul.f32 %v2711_v38, %v2711_v38  ;;  %v2413_v56 = vadd.f32 %v2412_v36, %v2411_v59  ;;  %v2442_v1 = vrot.slane %v2441_v34, 1 }
 0x283   : > { %v2734_v15 = vadd.f32 %v2733_v31, %v2732_v28  ;;  %3438 = vst.msk [vmem:[%s5601_s28 + $0xd0] sm:$0xff] %vm2053_vm2, %v3039_v33  ;;  %v3079_v3 = vmul.f32 %v3039_v33, %v3039_v33  ;;  %v3058_v8 = vsel %vm2053_vm2, %v3039_v33, 0.0 }
 0x284   : > { %v2763_v12 = vsel %vm2053_vm2, %v2751_v55, 0.0  ;;  %v5740_v41 = vadd.f32 %v2413_v56, %v2082_v25  ;;  %v2443_v51 = vadd.f32 %v2442_v1, %v2441_v34 }
 0x285   : > { %v2764_v47 = vadd.f32 %v2763_v12, %v2762_v42  ;;  %v3014_v14 = vpop.permute.xlu1 %3013  ;;  %v3088_v37 = vsel %vm2053_vm2, %v3079_v3, 0.0 }
 0x286   : > { %v3037_v29 = vadd.f32 %v3014_v14, %v5568_v7  ;;  %v5743_v6 = vadd.f32 %v2443_v51, %v2112_v11 }
 0x288   : > { %3436 = vst.msk [vmem:[%s5601_s28 + $0xc0] sm:$0xff] %vm2053_vm2, %v3037_v29  ;;  %v3055_v54 = vsel %vm2053_vm2, %v3037_v29, 0.0  ;;  %v3077_v52 = vmul.f32 %v3037_v29, %v3037_v29  ;;  %v3020_v43 = vpop.permute.xlu0 %3019 }
 0x289   : > { %v3057_v9 = vadd.f32 %v3056_v62, %v3055_v54  ;;  %v3040_v30 = vadd.f32 %v3020_v43, %v5572_v18 }
 0x28a   : > { %v3085_v7 = vsel %vm2053_vm2, %v3077_v52, 0.0  ;;  %v2695_v21 = vpop.permute.xlu1 %2694 }
 0x28b   : > { %v3087_v22 = vadd.f32 %v3086_v19, %v3085_v7  ;;  %v3059_v45 = vadd.f32 %v3058_v8, %v3057_v9  ;;  %3439 = vst.msk [vmem:[%s5601_s28 + $0xd8] sm:$0xff] %vm2053_vm2, %v3040_v30  ;;  %v3080_v32 = vmul.f32 %v3040_v30, %v3040_v30  ;;  %v3060_v0 = vsel %vm2053_vm2, %v3040_v30, 0.0 }
 0x28c   : > { %v2712_v10 = vadd.f32 %v2695_v21, %v5576_v49 }
 0x28d   : > { %v3089_v18 = vadd.f32 %v3088_v37, %v3087_v22  ;;  %v3061_v17 = vadd.f32 %v3060_v0, %v3059_v45  ;;  %v3090_v4 = vsel %vm2053_vm2, %v3080_v32, 0.0 }
 0x28e   : > { %3434 = vst.msk [vmem:[%s5601_s28 + $0xb0] sm:$0xff] %vm2053_vm2, %v2712_v10  ;;  %v2735_v26 = vsel %vm2053_vm2, %v2712_v10, 0.0  ;;  %v2752_v63 = vmul.f32 %v2712_v10, %v2712_v10  ;;  %v3022_v57 = vpop.permute.xlu0 %3021 }
 0x28f   : > { %v3091_v13 = vadd.f32 %v3090_v4, %v3089_v18  ;;  %v2736_v16 = vadd.f32 %v2735_v26, %v2734_v15  ;;  %v3041_v40 = vadd.f32 %v3022_v57, %v5579_v23 }
 0x290   : > { %v2765_v20 = vsel %vm2053_vm2, %v2752_v63, 0.0 }
 0x291   : > { %v2766_v58 = vadd.f32 %v2765_v20, %v2764_v47  ;;  %3440 = vst.msk [vmem:[%s5601_s28 + $0xe0] sm:$0xff] %vm2053_vm2, %v3041_v40  ;;  %v3062_v49 = vsel %vm2053_vm2, %v3041_v40, 0.0  ;;  %v3081_v61 = vmul.f32 %v3041_v40, %v3041_v40  ;;  %v2697_v59 = vpop.permute.xlu1 %2696 }
 0x292   : > { %v3063_v60 = vadd.f32 %v3062_v49, %v3061_v17  ;;  %v2713_v28 = vadd.f32 %v2697_v59, %v5582_v39 }
 0x293   : > { %v3092_v44 = vsel %vm2053_vm2, %v3081_v61, 0.0 }
 0x294   : > { %v3093_v24 = vadd.f32 %v3092_v44, %v3091_v13  ;;  %v3024_v50 = vpop.permute.xlu0 %3023  ;;  %3435 = vst.msk [vmem:[%s5601_s28 + $0xb8] sm:$0xff] %vm2053_vm2, %v2713_v28  ;;  %v2737_v23 = vsel %vm2053_vm2, %v2713_v28, 0.0  ;;  %v2753_v2 = vmul.f32 %v2713_v28, %v2713_v28 }
 0x295   : > { %v3042_v38 = vadd.f32 %v3024_v50, %v5585_v53  ;;  %v2738_v27 = vadd.f32 %v2737_v23, %v2736_v16 }
 0x296   : > { %v2767_v36 = vsel %vm2053_vm2, %v2753_v2, 0.0 }
 0x297   : > { %3441 = vst.msk [vmem:[%s5601_s28 + $0xe8] sm:$0xff] %vm2053_vm2, %v3042_v38  ;;  %v3064_v34 = vsel %vm2053_vm2, %v3042_v38, 0.0  ;;  %v3082_v42 = vmul.f32 %v3042_v38, %v3042_v38  ;;  %v2739_v35 = vrot.slane %v2738_v27, 4  ;;  %v2768_v39 = vadd.f32 %v2767_v36, %v2766_v58 }
 0x298   : > { %v3065_v31 = vadd.f32 %v3064_v34, %v3063_v60 }
 0x299   : > { %v3094_v55 = vsel %vm2053_vm2, %v3082_v42, 0.0  ;;  %v3028_v33 = vpop.permute.xlu1 %3027  ;;  %v2740_v25 = vadd.f32 %v2739_v35, %v2738_v27  ;;  %v2769_v56 = vrot.slane %v2768_v39, 4 }
 0x29a   : > { %v3095_v1 = vadd.f32 %v3094_v55, %v3093_v24  ;;  %v3044_v53 = vadd.f32 %v3028_v33, %v5588_v48 }
 0x29b   : > { %v2741_v15 = vrot.slane %v2740_v25, 2  ;;  %v2770_v12 = vadd.f32 %v2769_v56, %v2768_v39 }
 0x29c   : > { %3443 = vst.msk [vmem:[%s5601_s28 + $0xf8] sm:$0xff] %vm2053_vm2, %v3044_v53  ;;  %v3084_v62 = vmul.f32 %v3044_v53, %v3044_v53  ;;  %v3068_v19 = vsel %vm2053_vm2, %v3044_v53, 0.0 }
 0x29d   : > { %v2742_v11 = vadd.f32 %v2741_v15, %v2740_v25  ;;  %v2771_v51 = vrot.slane %v2770_v12, 2 }
 0x29e   : > { %v3026_v47 = vpop.permute.xlu0 %3025  ;;  %v3098_v45 = vsel %vm2053_vm2, %v3084_v62, 0.0 }
 0x29f   : > { %v2743_v14 = vrot.slane %v2742_v11, 1  ;;  %v2772_v5 = vadd.f32 %v2771_v51, %v2770_v12  ;;  %v3043_v29 = vadd.f32 %v3026_v47, %v5593_v46 }
 0x2a1   : > { %v2744_v3 = vadd.f32 %v2743_v14, %v2742_v11  ;;  %v2773_v54 = vrot.slane %v2772_v5, 1  ;;  %3442 = vst.msk [vmem:[%s5601_s28 + $0xf0] sm:$0xff] %vm2053_vm2, %v3043_v29  ;;  %v3066_v52 = vsel %vm2053_vm2, %v3043_v29, 0.0  ;;  %v3083_v43 = vmul.f32 %v3043_v29, %v3043_v29 }
 0x2a2   : > { %v3067_v48 = vadd.f32 %v3066_v52, %v3065_v31 }
 0x2a3   : > { %v2745_v9 = vadd.f32 %v2744_v3, %v5740_v41  ;;  %v2774_v30 = vadd.f32 %v2773_v54, %v2772_v5  ;;  %v3096_v8 = vsel %vm2053_vm2, %v3083_v43, 0.0 }
 0x2a4   : > { %v3069_v7 = vadd.f32 %v3068_v19, %v3067_v48  ;;  %v3097_v22 = vadd.f32 %v3096_v8, %v3095_v1 }
 0x2a5   : > { %v2775_v46 = vadd.f32 %v2774_v30, %v5743_v6 }
 0x2a6   : > { %v3070_v32 = vrot.slane %v3069_v7, 4  ;;  %v3099_v21 = vadd.f32 %v3098_v45, %v3097_v22 }
 0x2a8   : > { %v3071_v37 = vadd.f32 %v3070_v32, %v3069_v7  ;;  %v3100_v0 = vrot.slane %v3099_v21, 4 }
 0x2aa   : > { %v3072_v10 = vrot.slane %v3071_v37, 2  ;;  %v3101_v18 = vadd.f32 %v3100_v0, %v3099_v21 }
 0x2ac   : > { %v3073_v17 = vadd.f32 %v3072_v10, %v3071_v37  ;;  %v3102_v41 = vrot.slane %v3101_v18, 2 }
 0x2ae   : > { %v3074_v4 = vrot.slane %v3073_v17, 1  ;;  %v3103_v26 = vadd.f32 %v3102_v41, %v3101_v18 }
 0x2b0   : > { %v3075_v63 = vadd.f32 %v3074_v4, %v3073_v17  ;;  %v3104_v57 = vrot.slane %v3103_v26, 1 }
 0x2b2   : > { %v3076_v6 = vadd.f32 %v3075_v63, %v2745_v9  ;;  %v3105_v13 = vadd.f32 %v3104_v57, %v3103_v26 }
 0x2b4   : > { %v3106_v16 = vadd.f32 %v3105_v13, %v2775_v46  ;;  %3108 = vst.msk [vmem:[%s315_s11] sm:$0x1] %vm3107_vm3, %v3076_v6 }
 0x2b6   : > { %3109 = vst.msk [vmem:[%s315_s11 + $0x1] sm:$0x1] %vm3107_vm3, %v3106_v16 }
 0x2b7 PF: > { %s20_s21 = sadd.s32 1, %s3906_s21  }
 0x2b8   : > { %p17_p6 = scmp.ge.s32.totalorder %s20_s21, 4  }
 0x2ba   :  { %19 = sbr.rel (!%p17_p6) target bundleno = 3 (0x3), region = 134 }
 0x2c1   :  { %3145 = vsyncpa [#allocation4], 1 }
 0x2c2   :  { %3147 = vsyncpa [#allocation4 + $0x1], 1 }
 0x2c3   :  { %3148 = vsyncpa [#allocation6], 1 }
 0x2c4   :  { %3149 = vsyncpa [#allocation9], 1 }

// kernel: rank_falcon_simplenet_forward.5
= control target key start
LH: loop header
LB: loop body
LE: loop exit
PB: predicated region body
PF: predicated region fallthrough
CT: control target
= control target key end

     0   :  { %v50_v38 = vlaneseq  ;;  %v10223_v40 = vmov 1983009808   ;;  %s13286_s0 = inlined_call_operand.vmem [shape: f32[2,4096], index: 0, kind: input, shape index: {}]   ;;  %s13287_s1 = inlined_call_operand.vmem [shape: f32[1,4096], index: 1, kind: input, shape index: {}]   ;;  %s13288_s2 = inlined_call_operand.vmem [shape: f32[1,4096], index: 2, kind: input, shape index: {}]   ;;  %s13289_s3 = inlined_call_operand.vmem [shape: bf16[4096,384], index: 3, kind: input, shape index: {}]   ;;  %s13290_s4 = inlined_call_operand.vmem [shape: f32[1,384], index: 4, kind: input, shape index: {}]   ;;  %s13291_s5 = inlined_call_operand.vmem [shape: bf16[384,192], index: 5, kind: input, shape index: {}]   ;;  %s13292_s6 = inlined_call_operand.vmem [shape: f32[1,192], index: 6, kind: input, shape index: {}]   ;;  %s13293_s7 = inlined_call_operand.vmem [shape: bf16[192,10], index: 7, kind: input, shape index: {}]   ;;  %s13294_s8 = inlined_call_operand.vmem [shape: f32[1,10], index: 8, kind: input, shape index: {}]   ;;  %s13295_s9 = inlined_call_operand.hbm [shape: f32[2,10], index: 9, kind: output, shape index: {}]  }
   0x1   :  { %v9084_v0 = vld [vmem:[%s13289_s3 + $0x4] ss:$12 sps:$4 sm:$0xff]   ;;  %v9088_v2 = vld [vmem:[%s13289_s3] ss:$12 sps:$4 sm:$0xff]   ;;  %v9090_v4 = vld [vmem:[%s13289_s3 + $0x1c] ss:$12 sps:$4 sm:$0xff]   ;;  %v181_v41 = vunpack.c.l.s4 %v10223_v40 }
   0x2   :  { %v9086_v1 = vld [vmem:[%s13289_s3 + $0x484] ss:$12 sps:$4 sm:$0xff]   ;;  %5971 = vmatprep.subr.bf16.mxu1 %v9084_v0  ;;  %v9089_v3 = vld [vmem:[%s13289_s3 + $0x480] ss:$12 sps:$4 sm:$0xff]   ;;  %v9092_v5 = vld [vmem:[%s13289_s3 + $0x49c] ss:$12 sps:$4 sm:$0xff]  }
   0x3   :  { %6094 = vmatprep.subr.bf16.mxu0 %v9086_v1  ;;  %5972 = vmatpush1.bf16.msra.mxu1 %v9088_v2  ;;  %v9094_v6 = vld [vmem:[%s13289_s3 + $0x18] ss:$12 sps:$4 sm:$0xff]   ;;  %v9096_v8 = vld [vmem:[%s13289_s3 + $0x34] ss:$12 sps:$4 sm:$0xff]   ;;  %v9100_v10 = vld [vmem:[%s13289_s3 + $0x30] ss:$12 sps:$4 sm:$0xff]   ;;  %v182_v49 = vunpack.c.0.s8 %v181_v41 }
   0x4   :  { %6095 = vmatpush1.bf16.msra.mxu0 %v9089_v3  ;;  %5973 = vmatprep.subr.bf16.mxu1 %v9090_v4  ;;  %v9095_v7 = vld [vmem:[%s13289_s3 + $0x498] ss:$12 sps:$4 sm:$0xff]   ;;  %v9098_v9 = vld [vmem:[%s13289_s3 + $0x4b4] ss:$12 sps:$4 sm:$0xff]   ;;  %v9101_v11 = vld [vmem:[%s13289_s3 + $0x4b0] ss:$12 sps:$4 sm:$0xff]  }
   0x5   :  { %6096 = vmatprep.subr.bf16.mxu0 %v9092_v5  ;;  %v9102_v12 = vld [vmem:[%s13289_s3 + $0x4c] ss:$12 sps:$4 sm:$0xff]   ;;  %v9106_v14 = vld [vmem:[%s13289_s3 + $0x48] ss:$12 sps:$4 sm:$0xff]   ;;  %v9108_v16 = vld [vmem:[%s13289_s3 + $0x64] ss:$12 sps:$4 sm:$0xff]  }
   0x6   :  { %v9104_v13 = vld [vmem:[%s13289_s3 + $0x4cc] ss:$12 sps:$4 sm:$0xff]   ;;  %v9107_v15 = vld [vmem:[%s13289_s3 + $0x4c8] ss:$12 sps:$4 sm:$0xff]   ;;  %v9110_v17 = vld [vmem:[%s13289_s3 + $0x4e4] ss:$12 sps:$4 sm:$0xff]  }
   0x7   :  { %5974 = vmatpush1.bf16.msra.mxu1 %v9094_v6  ;;  %v9112_v18 = vld [vmem:[%s13289_s3 + $0x60] ss:$12 sps:$4 sm:$0xff]   ;;  %v9114_v20 = vld [vmem:[%s13289_s3 + $0x7c] ss:$12 sps:$4 sm:$0xff]   ;;  %v9118_v22 = vld [vmem:[%s13289_s3 + $0x78] ss:$12 sps:$4 sm:$0xff]  }
   0x8   :  { %6097 = vmatpush1.bf16.msra.mxu0 %v9095_v7  ;;  %5975 = vmatprep.subr.bf16.mxu1 %v9096_v8  ;;  %v9113_v19 = vld [vmem:[%s13289_s3 + $0x4e0] ss:$12 sps:$4 sm:$0xff]   ;;  %v9116_v21 = vld [vmem:[%s13289_s3 + $0x4fc] ss:$12 sps:$4 sm:$0xff]   ;;  %v9119_v23 = vld [vmem:[%s13289_s3 + $0x4f8] ss:$12 sps:$4 sm:$0xff]  }
   0x9   :  { %6098 = vmatprep.subr.bf16.mxu0 %v9098_v9  ;;  %v9120_v24 = vld [vmem:[%s13289_s3 + $0x94] ss:$12 sps:$4 sm:$0xff]   ;;  %v9124_v26 = vld [vmem:[%s13289_s3 + $0x90] ss:$12 sps:$4 sm:$0xff]   ;;  %v9126_v28 = vld [vmem:[%s13289_s3 + $0xac] ss:$12 sps:$4 sm:$0xff]  }
   0xa   :  { %v9122_v25 = vld [vmem:[%s13289_s3 + $0x514] ss:$12 sps:$4 sm:$0xff]   ;;  %v9125_v27 = vld [vmem:[%s13289_s3 + $0x510] ss:$12 sps:$4 sm:$0xff]   ;;  %v9128_v29 = vld [vmem:[%s13289_s3 + $0x52c] ss:$12 sps:$4 sm:$0xff]  }
   0xb   :  { %5976 = vmatpush1.bf16.msra.mxu1 %v9100_v10  ;;  %v9130_v30 = vld [vmem:[%s13289_s3 + $0xa8] ss:$12 sps:$4 sm:$0xff]   ;;  %v9132_v32 = vld [vmem:[%s13289_s3 + $0xc4] ss:$12 sps:$4 sm:$0xff]   ;;  %v9136_v34 = vld [vmem:[%s13289_s3 + $0xc0] ss:$12 sps:$4 sm:$0xff]  }
   0xc   :  { %6099 = vmatpush1.bf16.msra.mxu0 %v9101_v11  ;;  %5977 = vmatprep.subr.bf16.mxu1 %v9102_v12  ;;  %v9131_v31 = vld [vmem:[%s13289_s3 + $0x528] ss:$12 sps:$4 sm:$0xff]   ;;  %v9134_v33 = vld [vmem:[%s13289_s3 + $0x544] ss:$12 sps:$4 sm:$0xff]   ;;  %v9137_v35 = vld [vmem:[%s13289_s3 + $0x540] ss:$12 sps:$4 sm:$0xff]  }
   0xd   :  { %6100 = vmatprep.subr.bf16.mxu0 %v9104_v13  ;;  %v9138_v36 = vld [vmem:[%s13289_s3 + $0xdc] ss:$12 sps:$4 sm:$0xff]   ;;  %v9142_v39 = vld [vmem:[%s13289_s3 + $0xd8] ss:$12 sps:$4 sm:$0xff]   ;;  %v9144_v43 = vld [vmem:[%s13289_s3 + $0xf4] ss:$12 sps:$4 sm:$0xff]  }
   0xe   :  { %v9140_v37 = vld [vmem:[%s13289_s3 + $0x55c] ss:$12 sps:$4 sm:$0xff]   ;;  %v9143_v42 = vld [vmem:[%s13289_s3 + $0x558] ss:$12 sps:$4 sm:$0xff]   ;;  %v9146_v44 = vld [vmem:[%s13289_s3 + $0x574] ss:$12 sps:$4 sm:$0xff]  }
   0xf   :  { %5978 = vmatpush1.bf16.msra.mxu1 %v9106_v14  ;;  %v51_v45 = vshrl.u32 %v50_v38, 7  ;;  %v9148_v46 = vld [vmem:[%s13289_s3 + $0xf0] ss:$12 sps:$4 sm:$0xff]   ;;  %v9150_v50 = vld [vmem:[%s13289_s3 + $0x10c] ss:$12 sps:$4 sm:$0xff]   ;;  %v42_v58 = vld [vmem:[%s13287_s1] sm:$0xff] }
  0x10   :  { %6101 = vmatpush1.bf16.msra.mxu0 %v9107_v15  ;;  %5979 = vmatprep.subr.bf16.mxu1 %v9108_v16  ;;  %v9149_v47 = vld [vmem:[%s13289_s3 + $0x570] ss:$12 sps:$4 sm:$0xff]   ;;  %v9152_v53 = vld [vmem:[%s13289_s3 + $0x58c] ss:$12 sps:$4 sm:$0xff]   ;;  %v9154_v55 = vld [vmem:[%s13289_s3 + $0x108] ss:$12 sps:$4 sm:$0xff]  }
  0x11   :  { %6102 = vmatprep.subr.bf16.mxu0 %v9110_v17  ;;  %v10408_v48 = vsub.s32 0, %v51_v45  ;;  %v10413_v51 = vsub.s32 1, %v51_v45  ;;  %v10415_v52 = vsub.s32 2, %v51_v45  ;;  %v10420_v54 = vsub.s32 3, %v51_v45  ;;  %v9155_v57 = vld [vmem:[%s13289_s3 + $0x588] ss:$12 sps:$4 sm:$0xff]  }
  0x12   :  { %v10425_v56 = vsub.s32 4, %v51_v45  ;;  %v10433_v59 = vsub.s32 %v182_v49, %v51_v45  ;;  %v10435_v60 = vsub.s32 5, %v51_v45  ;;  %v10437_v61 = vsub.s32 6, %v51_v45  ;;  %v9156_v62 = vld [vmem:[%s13289_s3 + $0x124] ss:$12 sps:$4 sm:$0xff]  }
  0x13   :  { %5980 = vmatpush1.bf16.msra.mxu1 %v9112_v18  ;;  %v53_v63 = vrot.slane %v42_v58, %v10408_v48  ;;  %v57_v0 = vrot.slane %v42_v58, %v10413_v51  ;;  %v61_v1 = vrot.slane %v42_v58, %v10415_v52  ;;  %v330_v2 = vld [vmem:[%s13288_s2] sm:$0xff]  ;;  %v10448_v3 = vsub.s32 7, %v51_v45  ;;  %v9162_v18 = vld [vmem:[%s13289_s3 + $0x13c] ss:$12 sps:$4 sm:$0xff]  }
  0x14   :  { %6103 = vmatpush1.bf16.msra.mxu0 %v9113_v19  ;;  %5981 = vmatprep.subr.bf16.mxu1 %v9114_v20  ;;  %v9158_v4 = vld [vmem:[%s13289_s3 + $0x5a4] ss:$12 sps:$4 sm:$0xff]   ;;  %v65_v5 = vrot.slane %v42_v58, %v10420_v54  ;;  %v341_v6 = vrot.slane %v330_v2, %v10408_v48  ;;  %v345_v7 = vrot.slane %v330_v2, %v10413_v51  ;;  %v9160_v12 = vld [vmem:[%s13289_s3 + $0x120] ss:$12 sps:$4 sm:$0xff]  }
  0x15   :  { %6104 = vmatprep.subr.bf16.mxu0 %v9116_v21  ;;  %v178_v8 = vcombine.low %v53_v63, %v57_v0  ;;  %v349_v9 = vrot.slane %v330_v2, %v10415_v52  ;;  %v353_v10 = vrot.slane %v330_v2, %v10420_v54  ;;  %v69_v11 = vrot.slane %v42_v58, %v10425_v56  ;;  %v9161_v13 = vld [vmem:[%s13289_s3 + $0x5a0] ss:$12 sps:$4 sm:$0xff]   ;;  %v9173_v49 = vld [vmem:[%s13289_s3 + $0x5d0] ss:$12 sps:$4 sm:$0xff]   ;;  %v9178_v0 = vld [vmem:[%s13289_s3 + $0x168] ss:$12 sps:$4 sm:$0xff]  }
  0x16   :  { %v179_v14 = vcombine.low %v61_v1, %v65_v5  ;;  %v466_v15 = vcombine.low %v341_v6, %v345_v7  ;;  %v73_v16 = vrot.slane %v42_v58, %v10435_v60  ;;  %v77_v17 = vrot.slane %v42_v58, %v10437_v61  ;;  %v9170_v38 = vld [vmem:[%s13289_s3 + $0x5d4] ss:$12 sps:$4 sm:$0xff]   ;;  %v9182_v7 = vld [vmem:[%s13289_s3 + $0x184] ss:$12 sps:$4 sm:$0xff]  }
  0x17   :  { %5982 = vmatpush1.bf16.msra.mxu1 %v9118_v22  ;;  %v186_v19 = vrot.slane %v178_v8, %v10433_v59  ;;  %v467_v20 = vcombine.low %v349_v9, %v353_v10  ;;  %v81_v21 = vrot.slane %v42_v58, %v10448_v3  ;;  %v9164_v22 = vld [vmem:[%s13289_s3 + $0x5bc] ss:$12 sps:$4 sm:$0xff]   ;;  %v9176_v58 = vld [vmem:[%s13289_s3 + $0x5ec] ss:$12 sps:$4 sm:$0xff]   ;;  %v9185_v10 = vld [vmem:[%s13289_s3 + $0x604] ss:$12 sps:$4 sm:$0xff]  }
  0x18   :  { %6105 = vmatpush1.bf16.msra.mxu0 %v9119_v23  ;;  %5983 = vmatprep.subr.bf16.mxu1 %v9120_v24  ;;  %v193_v23 = vrot.slane %v179_v14, %v10433_v59  ;;  %v474_v24 = vrot.slane %v466_v15, %v10433_v59  ;;  %v9179_v5 = vld [vmem:[%s13289_s3 + $0x5e8] ss:$12 sps:$4 sm:$0xff]   ;;  %v9180_v15 = vld [vmem:[%s13289_s3 + $0x180] ss:$12 sps:$4 sm:$0xff]  }
  0x19   :  { %6106 = vmatprep.subr.bf16.mxu0 %v9122_v25  ;;  %v195_v25 = vcombine.low %v69_v11, %v73_v16 }
  0x1b   :  { %5984 = vmatpush1.bf16.msra.mxu1 %v9124_v26  ;;  %v9166_v26 = vld [vmem:[%s13289_s3 + $0x138] ss:$12 sps:$4 sm:$0xff]  }
  0x1c   :  { %6107 = vmatpush1.bf16.msra.mxu0 %v9125_v27  ;;  %5985 = vmatprep.subr.bf16.mxu1 %v9126_v28  ;;  %v34_v27 = vld [vmem:[%s13286_s0] sm:$0xff]  ;;  %v481_v28 = vrot.slane %v467_v20, %v10433_v59 }
  0x1d   :  { %6108 = vmatprep.subr.bf16.mxu0 %v9128_v29  ;;  %v196_v29 = vcombine.low %v77_v17, %v81_v21  ;;  %v9188_v17 = vld [vmem:[%s13289_s3 + $0x19c] ss:$12 sps:$4 sm:$0xff]   ;;  %v9183_v20 = vld [vmem:[%s13289_s3 + $0x600] ss:$12 sps:$4 sm:$0xff]  }
  0x1f   :  { %5986 = vmatpush1.bf16.msra.mxu1 %v9130_v30  ;;  %v357_v30 = vrot.slane %v330_v2, %v10425_v56  ;;  %v210_v40 = vrot.slane %v196_v29, %v10433_v59  ;;  %v9197_v29 = vld [vmem:[%s13289_s3 + $0x634] ss:$12 sps:$4 sm:$0xff]  }
  0x20   :  { %6109 = vmatpush1.bf16.msra.mxu0 %v9131_v31  ;;  %5987 = vmatprep.subr.bf16.mxu1 %v9132_v32  ;;  %v361_v31 = vrot.slane %v330_v2, %v10435_v60  ;;  %v9167_v32 = vld [vmem:[%s13289_s3 + $0x5b8] ss:$12 sps:$4 sm:$0xff]  }
  0x21   :  { %6110 = vmatprep.subr.bf16.mxu0 %v9134_v33  ;;  %v9168_v33 = vld [vmem:[%s13289_s3 + $0x154] ss:$12 sps:$4 sm:$0xff]  }
  0x22   :  { %v483_v41 = vcombine.low %v357_v30, %v361_v31  ;;  %v9195_v30 = vld [vmem:[%s13289_s3 + $0x630] ss:$12 sps:$4 sm:$0xff]   ;;  %v9198_v31 = vld [vmem:[%s13289_s3 + $0x1c8] ss:$12 sps:$4 sm:$0xff]  }
  0x23   :  { %5988 = vmatpush1.bf16.msra.mxu1 %v9136_v34  ;;  %v194_v34 = vcombine.low %v186_v19, %v193_v23 }
  0x24   :  { %6111 = vmatpush1.bf16.msra.mxu0 %v9137_v35  ;;  %5989 = vmatprep.subr.bf16.mxu1 %v9138_v36  ;;  %v203_v35 = vrot.slane %v195_v25, %v10433_v59  ;;  %v365_v36 = vrot.slane %v330_v2, %v10437_v61  ;;  %v9191_v25 = vld [vmem:[%s13289_s3 + $0x61c] ss:$12 sps:$4 sm:$0xff]  }
  0x25   :  { %6112 = vmatprep.subr.bf16.mxu0 %v9140_v37  ;;  %v369_v37 = vrot.slane %v330_v2, %v10448_v3 }
  0x26   :  { %v211_v45 = vcombine.low %v203_v35, %v210_v40  ;;  %v9204_v35 = vld [vmem:[%s13289_s3 + $0x1e0] ss:$12 sps:$4 sm:$0xff]  }
  0x27   :  { %5990 = vmatpush1.bf16.msra.mxu1 %v9142_v39  ;;  %v482_v39 = vcombine.low %v474_v24, %v481_v28  ;;  %v9194_v24 = vld [vmem:[%s13289_s3 + $0x1b4] ss:$12 sps:$4 sm:$0xff]   ;;  %v9200_v28 = vld [vmem:[%s13289_s3 + $0x1cc] ss:$12 sps:$4 sm:$0xff]  }
  0x28   :  { %6113 = vmatpush1.bf16.msra.mxu0 %v9143_v42  ;;  %5991 = vmatprep.subr.bf16.mxu1 %v9144_v43  ;;  %v322_v42 = vmul.f32 %v194_v34, %v34_v27  ;;  %v35_v43 = vld [vmem:[%s13286_s0 + $0x8] sm:$0xff]  ;;  %v9192_v27 = vld [vmem:[%s13289_s3 + $0x1b0] ss:$12 sps:$4 sm:$0xff]   ;;  %v9218_v40 = vld [vmem:[%s13289_s3 + $0x214] ss:$12 sps:$4 sm:$0xff]  }
  0x29   :  { %6114 = vmatprep.subr.bf16.mxu0 %v9146_v44  ;;  %v484_v44 = vcombine.low %v365_v36, %v369_v37  ;;  %v9201_v34 = vld [vmem:[%s13289_s3 + $0x648] ss:$12 sps:$4 sm:$0xff]   ;;  %v9209_v37 = vld [vmem:[%s13289_s3 + $0x664] ss:$12 sps:$4 sm:$0xff]  }
  0x2a   :  { %v9212_v36 = vld [vmem:[%s13289_s3 + $0x1fc] ss:$12 sps:$4 sm:$0xff]  }
  0x2b   :  { %5992 = vmatpush1.bf16.msra.mxu1 %v9148_v46  ;;  %v491_v46 = vrot.slane %v483_v41, %v10433_v59  ;;  %v9215_v41 = vld [vmem:[%s13289_s3 + $0x67c] ss:$12 sps:$4 sm:$0xff]  }
  0x2c   :  { %6115 = vmatpush1.bf16.msra.mxu0 %v9149_v47  ;;  %5993 = vmatprep.subr.bf16.mxu1 %v9150_v50  ;;  %v9172_v47 = vld [vmem:[%s13289_s3 + $0x150] ss:$12 sps:$4 sm:$0xff]   ;;  %v610_v50 = vadd.f32 %v482_v39, %v322_v42  ;;  %v9210_v39 = vld [vmem:[%s13289_s3 + $0x1f8] ss:$12 sps:$4 sm:$0xff]  }
  0x2d   :  { %6116 = vmatprep.subr.bf16.mxu0 %v9152_v53  ;;  %v498_v53 = vrot.slane %v484_v44, %v10433_v59  ;;  %v9213_v42 = vld [vmem:[%s13289_s3 + $0x678] ss:$12 sps:$4 sm:$0xff]   ;;  %v10629_v44 = vld [vmem:[%s13287_s1 + $0x8] sm:$0xff] }
  0x2f   :  { %5994 = vmatpush1.bf16.msra.mxu1 %v9154_v55  ;;  %v9174_v55 = vld [vmem:[%s13289_s3 + $0x16c] ss:$12 sps:$4 sm:$0xff]   ;;  %v499_v63 = vcombine.low %v491_v46, %v498_v53  ;;  %v9221_v53 = vld [vmem:[%s13289_s3 + $0x694] ss:$12 sps:$4 sm:$0xff]  }
  0x30   :  { %6117 = vmatpush1.bf16.msra.mxu0 %v9155_v57  ;;  %5995 = vmatprep.subr.bf16.mxu1 %v9156_v62  ;;  %v323_v57 = vmul.f32 %v211_v45, %v35_v43  ;;  %v618_v62 = vmax.f32 %v610_v50, 0.0  ;;  %v9216_v43 = vld [vmem:[%s13289_s3 + $0x210] ss:$12 sps:$4 sm:$0xff]   ;;  %v10634_v45 = vld [vmem:[%s13288_s2 + $0x8] sm:$0xff]  ;;  %v93_v50 = vrot.slane %v10629_v44, %v10415_v52 }
  0x31   :  { %6118 = vmatprep.subr.bf16.mxu0 %v9158_v4  ;;  %v9224_v46 = vld [vmem:[%s13289_s3 + $0x22c] ss:$12 sps:$4 sm:$0xff]  }
  0x32   :  { %v634_v1 = vcombine.high %v618_v62, %v618_v62  ;;  %v641_v2 = vrot.slane %v618_v62, %v10433_v59  ;;  %v611_v4 = vadd.f32 %v499_v63, %v323_v57  ;;  %v373_v57 = vrot.slane %v10634_v45, %v10408_v48 }
  0x33   :  { %5996 = vmatpush1.bf16.msra.mxu1 %v9160_v12  ;;  %v381_v62 = vrot.slane %v10634_v45, %v10415_v52 }
  0x34   :  { %6119 = vmatpush1.bf16.msra.mxu0 %v9161_v13  ;;  %5997 = vmatprep.subr.bf16.mxu1 %v9162_v18  ;;  %v649_v6 = vcombine.high %v641_v2, %v641_v2  ;;  %v10526_v8 = vmax.f32 %v611_v4, 0.0  ;;  %v10529_v9 = vrot.slane %v634_v1, %v10433_v59  ;;  %v10538_v13 = vpack.c.bf16 %v641_v2, %v641_v2  ;;  %v9219_v1 = vld [vmem:[%s13289_s3 + $0x690] ss:$12 sps:$4 sm:$0xff]   ;;  %v9222_v2 = vld [vmem:[%s13289_s3 + $0x228] ss:$12 sps:$4 sm:$0xff]  }
  0x35   :  { %6120 = vmatprep.subr.bf16.mxu0 %v9164_v22  ;;  %v9186_v22 = vld [vmem:[%s13289_s3 + $0x198] ss:$12 sps:$4 sm:$0xff]  }
  0x36   :  { %v10534_v11 = vpack.c.bf16 %v649_v6, %v649_v6  ;;  %v651_v12 = vcombine.high %v10526_v8, %v10526_v8  ;;  %v650_v14 = vcombine.high %v10529_v9, %v10529_v9  ;;  %v9230_v6 = vld [vmem:[%s13289_s3 + $0x244] ss:$12 sps:$4 sm:$0xff]  }
  0x37   :  { %5998 = vmatpush1.bf16.msra.mxu1 %v9166_v26  ;;  %v9189_v26 = vld [vmem:[%s13289_s3 + $0x618] ss:$12 sps:$4 sm:$0xff]  }
  0x38   :  { %6121 = vmatpush1.bf16.msra.mxu0 %v9167_v32  ;;  %5999 = vmatprep.subr.bf16.mxu1 %v9168_v33  ;;  %v665_v16 = vrot.slane %v651_v12, %v10433_v59  ;;  %v10550_v18 = vpack.c.bf16 %v650_v14, %v650_v14  ;;  %v9206_v32 = vld [vmem:[%s13289_s3 + $0x1e4] ss:$12 sps:$4 sm:$0xff]   ;;  %v9203_v33 = vld [vmem:[%s13289_s3 + $0x64c] ss:$12 sps:$4 sm:$0xff]  }
  0x39   :  { %6122 = vmatprep.subr.bf16.mxu0 %v9170_v38  ;;  %6003 = vmatprep.mubr.bf16.mxu1 %v10534_v11  ;;  %v9207_v38 = vld [vmem:[%s13289_s3 + $0x660] ss:$12 sps:$4 sm:$0xff]  }
  0x3a   :  { %v667_v19 = vcombine.high %v665_v16, %v665_v16  ;;  %v10556_v21 = vpack.c.bf16 %v665_v16, %v665_v16  ;;  %v9227_v12 = vld [vmem:[%s13289_s3 + $0x6ac] ss:$12 sps:$4 sm:$0xff]   ;;  %v36_v16 = vld [vmem:[%s13286_s0 + $0x10] sm:$0xff] }
  0x3b   :  { %6000 = vmatpush1.bf16.msra.mxu1 %v9172_v47  ;;  %v85_v47 = vrot.slane %v10629_v44, %v10408_v48 }
  0x3c   :  { %6123 = vmatpush1.bf16.msra.mxu0 %v9173_v49  ;;  %6001 = vmatprep.subr.bf16.mxu1 %v9174_v55  ;;  %v10562_v23 = vpack.c.bf16 %v667_v19, %v667_v19  ;;  %v89_v49 = vrot.slane %v10629_v44, %v10413_v51  ;;  %v97_v55 = vrot.slane %v10629_v44, %v10420_v54  ;;  %v9225_v19 = vld [vmem:[%s13289_s3 + $0x6a8] ss:$12 sps:$4 sm:$0xff]  }
  0x3d   :  { %6124 = vmatprep.subr.bf16.mxu0 %v9176_v58  ;;  %v377_v58 = vrot.slane %v10634_v45, %v10413_v51 }
  0x3e   :  { %6126 = vmatprep.mubr.bf16.mxu0 %v10562_v23  ;;  %v212_v63 = vcombine.low %v85_v47, %v89_v49  ;;  %v213_v4 = vcombine.low %v93_v50, %v97_v55  ;;  %v9249_v47 = vld [vmem:[%s13289_s3 + $0x708] ss:$12 sps:$4 sm:$0xff]   ;;  %v9252_v49 = vld [vmem:[%s13289_s3 + $0x2a0] ss:$12 sps:$4 sm:$0xff]  }
  0x3f   :  { %6002 = vmatpush1.bf16.msra.mxu1 %v9178_v0  ;;  %v385_v0 = vrot.slane %v10634_v45, %v10420_v54  ;;  %v9260_v50 = vld [vmem:[%s13289_s3 + $0x2bc] ss:$12 sps:$4 sm:$0xff]   ;;  %v9255_v55 = vld [vmem:[%s13289_s3 + $0x720] ss:$12 sps:$4 sm:$0xff]  }
  0x40   :  { %6125 = vmatpush1.bf16.msra.mxu0 %v9179_v5  ;;  %6012 = vmatprep.subr.bf16.mxu1 %v9182_v7  ;;  %v500_v5 = vcombine.low %v373_v57, %v377_v58  ;;  %v220_v7 = vrot.slane %v212_v63, %v10433_v59  ;;  %v227_v14 = vrot.slane %v213_v4, %v10433_v59  ;;  %v9258_v57 = vld [vmem:[%s13289_s3 + $0x2b8] ss:$12 sps:$4 sm:$0xff]   ;;  %v9266_v58 = vld [vmem:[%s13289_s3 + $0x2d4] ss:$12 sps:$4 sm:$0xff]  }
  0x41   :  { %6135 = vmatprep.subr.bf16.mxu0 %v9185_v10  ;;  %v501_v10 = vcombine.low %v381_v62, %v385_v0  ;;  %v9263_v62 = vld [vmem:[%s13289_s3 + $0x73c] ss:$12 sps:$4 sm:$0xff]   ;;  %v9261_v63 = vld [vmem:[%s13289_s3 + $0x738] ss:$12 sps:$4 sm:$0xff]   ;;  %v9269_v4 = vld [vmem:[%s13289_s3 + $0x754] ss:$12 sps:$4 sm:$0xff]  }
  0x42   :  { %6004 = vmatmul.mubr.bf16.vlgmr.msra.gmra.mrb[0].mxu1 %v10538_v13  ;;  %v9264_v0 = vld [vmem:[%s13289_s3 + $0x2d0] ss:$12 sps:$4 sm:$0xff]  }
  0x43   :  { %6013 = vmatpush1.bf16.msra.mxu1 %v9180_v15  ;;  %6044 = vmatprep.mubr.bf16.mxu1 %v10550_v18  ;;  %v508_v15 = vrot.slane %v500_v5, %v10433_v59 }
  0x44   :  { %6014 = vmatprep.subr.bf16.mxu1 %v9188_v17  ;;  %6127 = vmatmul.mubr.bf16.vlgmr.msra.gmra.mrb[0].mxu0 %v10556_v21  ;;  %v515_v17 = vrot.slane %v501_v10, %v10433_v59  ;;  %v9278_v10 = vld [vmem:[%s13289_s3 + $0x304] ss:$12 sps:$4 sm:$0xff]  }
  0x45   :  { %6136 = vmatpush1.bf16.msra.mxu0 %v9183_v20  ;;  %v9228_v20 = vld [vmem:[%s13289_s3 + $0x240] ss:$12 sps:$4 sm:$0xff]  }
  0x46   :  { %6137 = vmatprep.subr.bf16.mxu0 %v9191_v25  ;;  %v516_v25 = vcombine.low %v508_v15, %v515_v17  ;;  %v10792_v15 = vpack.c.bf16 %v10529_v9, %v10529_v9  ;;  %v9276_v17 = vld [vmem:[%s13289_s3 + $0x300] ss:$12 sps:$4 sm:$0xff]   ;;  %v9281_v9 = vld [vmem:[%s13289_s3 + $0x784] ss:$12 sps:$4 sm:$0xff]  }
  0x47   :  { %6015 = vmatpush1.bf16.msra.mxu1 %v9186_v22  ;;  %v228_v22 = vcombine.low %v220_v7, %v227_v14 }
  0x48   :  { %6016 = vmatprep.subr.bf16.mxu1 %v9194_v24  ;;  %v9236_v24 = vld [vmem:[%s13289_s3 + $0x25c] ss:$12 sps:$4 sm:$0xff]  }
  0x49   :  { %6138 = vmatpush1.bf16.msra.mxu0 %v9189_v26  ;;  %v9233_v26 = vld [vmem:[%s13289_s3 + $0x6c4] ss:$12 sps:$4 sm:$0xff]  }
  0x4a   :  { %6139 = vmatprep.subr.bf16.mxu0 %v9197_v29  ;;  %v9234_v29 = vld [vmem:[%s13289_s3 + $0x258] ss:$12 sps:$4 sm:$0xff]  }
  0x4b   :  { %6017 = vmatpush1.bf16.msra.mxu1 %v9192_v27  ;;  %v324_v27 = vmul.f32 %v228_v22, %v36_v16  ;;  %v9273_v16 = vld [vmem:[%s13289_s3 + $0x768] ss:$12 sps:$4 sm:$0xff]  }
  0x4c   :  { %6018 = vmatprep.subr.bf16.mxu1 %v9200_v28  ;;  %v9231_v28 = vld [vmem:[%s13289_s3 + $0x6c0] ss:$12 sps:$4 sm:$0xff]  }
  0x4d   :  { %6140 = vmatpush1.bf16.msra.mxu0 %v9195_v30  ;;  %v612_v30 = vadd.f32 %v516_v25, %v324_v27  ;;  %v9290_v27 = vld [vmem:[%s13289_s3 + $0x334] ss:$12 sps:$4 sm:$0xff]  }
  0x4e   :  { %6141 = vmatprep.subr.bf16.mxu0 %v9203_v33 }
  0x4f   :  { %6019 = vmatpush1.bf16.msra.mxu1 %v9198_v31  ;;  %v9242_v31 = vld [vmem:[%s13289_s3 + $0x274] ss:$12 sps:$4 sm:$0xff]   ;;  %v620_v33 = vmax.f32 %v612_v30, 0.0  ;;  %v9285_v30 = vld [vmem:[%s13289_s3 + $0x798] ss:$12 sps:$4 sm:$0xff]  }
  0x50   :  { %6020 = vmatprep.subr.bf16.mxu1 %v9206_v32  ;;  %v9239_v32 = vld [vmem:[%s13289_s3 + $0x6dc] ss:$12 sps:$4 sm:$0xff]  }
  0x51   :  { %6142 = vmatpush1.bf16.msra.mxu0 %v9201_v34  ;;  %v9237_v34 = vld [vmem:[%s13289_s3 + $0x6d8] ss:$12 sps:$4 sm:$0xff]   ;;  %v668_v5 = vcombine.high %v620_v33, %v620_v33 }
  0x52   :  { %6143 = vmatprep.subr.bf16.mxu0 %v9209_v37  ;;  %v9248_v37 = vld [vmem:[%s13289_s3 + $0x28c] ss:$12 sps:$4 sm:$0xff]  }
  0x53   :  { %6021 = vmatpush1.bf16.msra.mxu1 %v9204_v35  ;;  %v9240_v35 = vld [vmem:[%s13289_s3 + $0x270] ss:$12 sps:$4 sm:$0xff]   ;;  %v10788_v14 = vrot.slane %v668_v5, %v10433_v59 }
  0x54   :  { %6022 = vmatprep.subr.bf16.mxu1 %v9212_v36  ;;  %v10708_v36 = vrot.slane %v620_v33, %v10433_v59  ;;  %v9293_v33 = vld [vmem:[%s13289_s3 + $0x7b4] ss:$12 sps:$4 sm:$0xff]   ;;  %v9332_v5 = vld [vmem:[%s13289_s3 + $0x3dc] ss:$12 sps:$4 sm:$0xff]  }
  0x55   :  { %6144 = vmatpush1.bf16.msra.mxu0 %v9207_v38  ;;  %v9245_v38 = vld [vmem:[%s13289_s3 + $0x6f4] ss:$12 sps:$4 sm:$0xff]   ;;  %v684_v22 = vcombine.high %v10788_v14, %v10788_v14 }
  0x56   :  { %6145 = vmatprep.subr.bf16.mxu0 %v9215_v41  ;;  %v9246_v41 = vld [vmem:[%s13289_s3 + $0x288] ss:$12 sps:$4 sm:$0xff]   ;;  %v10816_v25 = vpack.c.bf16 %v10708_v36, %v10708_v36 }
  0x57   :  { %6023 = vmatpush1.bf16.msra.mxu1 %v9210_v39  ;;  %v683_v39 = vcombine.high %v10708_v36, %v10708_v36  ;;  %v9302_v36 = vld [vmem:[%s13289_s3 + $0x364] ss:$12 sps:$4 sm:$0xff]  }
  0x58   :  { %6024 = vmatprep.subr.bf16.mxu1 %v9218_v40  ;;  %v9243_v40 = vld [vmem:[%s13289_s3 + $0x6f0] ss:$12 sps:$4 sm:$0xff]  }
  0x59   :  { %6146 = vmatpush1.bf16.msra.mxu0 %v9213_v42  ;;  %v10724_v42 = vpack.c.bf16 %v683_v39, %v683_v39  ;;  %v9300_v39 = vld [vmem:[%s13289_s3 + $0x360] ss:$12 sps:$4 sm:$0xff]  }
  0x5a   :  { %6147 = vmatprep.subr.bf16.mxu0 %v9221_v53  ;;  %v9257_v53 = vld [vmem:[%s13289_s3 + $0x724] ss:$12 sps:$4 sm:$0xff]  }
  0x5b   :  { %6025 = vmatpush1.bf16.msra.mxu1 %v9216_v43  ;;  %v9254_v43 = vld [vmem:[%s13289_s3 + $0x2a4] ss:$12 sps:$4 sm:$0xff]   ;;  %6167 = vmatprep.mubr.bf16.mxu0 %v10724_v42 }
  0x5c   :  { %6026 = vmatprep.subr.bf16.mxu1 %v9224_v46  ;;  %v9251_v46 = vld [vmem:[%s13289_s3 + $0x70c] ss:$12 sps:$4 sm:$0xff]  }
  0x5d   :  { %6148 = vmatpush1.bf16.msra.mxu0 %v9219_v1  ;;  %v10765_v1 = vrot.slane %v10526_v8, %v10433_v59  ;;  %v9270_v8 = vld [vmem:[%s13289_s3 + $0x2e8] ss:$12 sps:$4 sm:$0xff]  }
  0x5e   :  { %6149 = vmatprep.subr.bf16.mxu0 %v9227_v12  ;;  %v9275_v12 = vld [vmem:[%s13289_s3 + $0x76c] ss:$12 sps:$4 sm:$0xff]  }
  0x5f   :  { %6027 = vmatpush1.bf16.msra.mxu1 %v9222_v2  ;;  %v9272_v2 = vld [vmem:[%s13289_s3 + $0x2ec] ss:$12 sps:$4 sm:$0xff]   ;;  %v666_v7 = vcombine.high %v10765_v1, %v10765_v1 }
  0x60   :  { %6028 = vmatprep.subr.bf16.mxu1 %v9230_v6  ;;  %v9267_v6 = vld [vmem:[%s13289_s3 + $0x750] ss:$12 sps:$4 sm:$0xff]  }
  0x61   :  { %6150 = vmatpush1.bf16.msra.mxu0 %v9225_v19  ;;  %v10800_v19 = vpack.c.bf16 %v666_v7, %v666_v7  ;;  %v9330_v7 = vld [vmem:[%s13289_s3 + $0x3d8] ss:$12 sps:$4 sm:$0xff]  }
  0x62   :  { %6151 = vmatprep.subr.bf16.mxu0 %v9233_v26  ;;  %v9282_v26 = vld [vmem:[%s13289_s3 + $0x318] ss:$12 sps:$4 sm:$0xff]  }
  0x63   :  { %6029 = vmatpush1.bf16.msra.mxu1 %v9228_v20  ;;  %v9284_v20 = vld [vmem:[%s13289_s3 + $0x31c] ss:$12 sps:$4 sm:$0xff]  }
  0x64   :  { %6030 = vmatprep.subr.bf16.mxu1 %v9236_v24  ;;  %v9279_v24 = vld [vmem:[%s13289_s3 + $0x780] ss:$12 sps:$4 sm:$0xff]  }
  0x65   :  { %6152 = vmatpush1.bf16.msra.mxu0 %v9231_v28  ;;  %v9287_v28 = vld [vmem:[%s13289_s3 + $0x79c] ss:$12 sps:$4 sm:$0xff]  }
  0x66   :  { %6153 = vmatprep.subr.bf16.mxu0 %v9239_v32  ;;  %v9296_v32 = vld [vmem:[%s13289_s3 + $0x34c] ss:$12 sps:$4 sm:$0xff]  }
  0x67   :  { %6031 = vmatpush1.bf16.msra.mxu1 %v9234_v29  ;;  %v10828_v29 = vpack.c.bf16 %v684_v22, %v684_v22  ;;  %v109_v22 = vrot.slane %v10629_v44, %v10437_v61 }
  0x68   :  { %6032 = vmatprep.subr.bf16.mxu1 %v9242_v31  ;;  %v9288_v31 = vld [vmem:[%s13289_s3 + $0x330] ss:$12 sps:$4 sm:$0xff]  }
  0x69   :  { %6154 = vmatpush1.bf16.msra.mxu0 %v9237_v34  ;;  %v9294_v34 = vld [vmem:[%s13289_s3 + $0x348] ss:$12 sps:$4 sm:$0xff]  }
  0x6a   :  { %6155 = vmatprep.subr.bf16.mxu0 %v9245_v38  ;;  %v9297_v38 = vld [vmem:[%s13289_s3 + $0x7c8] ss:$12 sps:$4 sm:$0xff]  }
  0x6b   :  { %6033 = vmatpush1.bf16.msra.mxu1 %v9240_v35  ;;  %v9291_v35 = vld [vmem:[%s13289_s3 + $0x7b0] ss:$12 sps:$4 sm:$0xff]  }
  0x6c   :  { %6034 = vmatprep.subr.bf16.mxu1 %v9248_v37  ;;  %v9299_v37 = vld [vmem:[%s13289_s3 + $0x7cc] ss:$12 sps:$4 sm:$0xff]  }
  0x6d   :  { %6156 = vmatpush1.bf16.msra.mxu0 %v9243_v40  ;;  %v9308_v40 = vld [vmem:[%s13289_s3 + $0x37c] ss:$12 sps:$4 sm:$0xff]  }
  0x6e   :  { %6157 = vmatprep.subr.bf16.mxu0 %v9251_v46  ;;  %v9306_v46 = vld [vmem:[%s13289_s3 + $0x378] ss:$12 sps:$4 sm:$0xff]  }
  0x6f   :  { %6035 = vmatpush1.bf16.msra.mxu1 %v9246_v41  ;;  %v9305_v41 = vld [vmem:[%s13289_s3 + $0x7e4] ss:$12 sps:$4 sm:$0xff]  }
  0x70   :  { %6036 = vmatprep.subr.bf16.mxu1 %v9254_v43  ;;  %v9303_v43 = vld [vmem:[%s13289_s3 + $0x7e0] ss:$12 sps:$4 sm:$0xff]  }
  0x71   :  { %6158 = vmatpush1.bf16.msra.mxu0 %v9249_v47  ;;  %v9314_v47 = vld [vmem:[%s13289_s3 + $0x394] ss:$12 sps:$4 sm:$0xff]  }
  0x72   :  { %6159 = vmatprep.subr.bf16.mxu0 %v9257_v53  ;;  %v9312_v53 = vld [vmem:[%s13289_s3 + $0x390] ss:$12 sps:$4 sm:$0xff]  }
  0x73   :  { %6037 = vmatpush1.bf16.msra.mxu1 %v9252_v49  ;;  %v9311_v49 = vld [vmem:[%s13289_s3 + $0x7fc] ss:$12 sps:$4 sm:$0xff]  }
  0x74   :  { %6038 = vmatprep.subr.bf16.mxu1 %v9260_v50  ;;  %v9309_v50 = vld [vmem:[%s13289_s3 + $0x7f8] ss:$12 sps:$4 sm:$0xff]  }
  0x75   :  { %6160 = vmatpush1.bf16.msra.mxu0 %v9255_v55  ;;  %v9320_v55 = vld [vmem:[%s13289_s3 + $0x3ac] ss:$12 sps:$4 sm:$0xff]  }
  0x76   :  { %6161 = vmatprep.subr.bf16.mxu0 %v9263_v62  ;;  %v9318_v62 = vld [vmem:[%s13289_s3 + $0x3a8] ss:$12 sps:$4 sm:$0xff]  }
  0x77   :  { %6039 = vmatpush1.bf16.msra.mxu1 %v9258_v57  ;;  %v9317_v57 = vld [vmem:[%s13289_s3 + $0x814] ss:$12 sps:$4 sm:$0xff]  }
  0x78   :  { %6040 = vmatprep.subr.bf16.mxu1 %v9266_v58  ;;  %v9315_v58 = vld [vmem:[%s13289_s3 + $0x810] ss:$12 sps:$4 sm:$0xff]  }
  0x79   :  { %6162 = vmatpush1.bf16.msra.mxu0 %v9261_v63  ;;  %v9326_v63 = vld [vmem:[%s13289_s3 + $0x3c4] ss:$12 sps:$4 sm:$0xff]  }
  0x7a   :  { %6163 = vmatprep.subr.bf16.mxu0 %v9269_v4  ;;  %v9321_v4 = vld [vmem:[%s13289_s3 + $0x828] ss:$12 sps:$4 sm:$0xff]  }
  0x7b   :  { %6041 = vmatpush1.bf16.msra.mxu1 %v9264_v0  ;;  %v9323_v0 = vld [vmem:[%s13289_s3 + $0x82c] ss:$12 sps:$4 sm:$0xff]  }
  0x7c   :  { %6042 = vmatprep.subr.bf16.mxu1 %v9272_v2  ;;  %v9324_v2 = vld [vmem:[%s13289_s3 + $0x3c0] ss:$12 sps:$4 sm:$0xff]  }
  0x7d   :  { %6164 = vmatpush1.bf16.msra.mxu0 %v9267_v6  ;;  %v9329_v6 = vld [vmem:[%s13289_s3 + $0x844] ss:$12 sps:$4 sm:$0xff]  }
  0x7e   :  { %6165 = vmatprep.subr.bf16.mxu0 %v9275_v12  ;;  %v9335_v12 = vld [vmem:[%s13289_s3 + $0x85c] ss:$12 sps:$4 sm:$0xff]  }
  0x7f   :  { %6043 = vmatpush1.bf16.msra.mxu1 %v9270_v8  ;;  %v9327_v8 = vld [vmem:[%s13289_s3 + $0x840] ss:$12 sps:$4 sm:$0xff]  }
  0x80   :  { %6053 = vmatprep.subr.bf16.mxu1 %v9278_v10  ;;  %v9338_v10 = vld [vmem:[%s13289_s3 + $0x3f4] ss:$12 sps:$4 sm:$0xff]  }
  0x81   :  { %6166 = vmatpush1.bf16.msra.mxu0 %v9273_v16  ;;  %v9333_v16 = vld [vmem:[%s13289_s3 + $0x858] ss:$12 sps:$4 sm:$0xff]  }
  0x82   :  { %6045 = vmatmul.mubr.bf16.vlgmr.msra.gmra.mrb[0].mxu1 %v10792_v15  ;;  %6176 = vmatprep.subr.bf16.mxu0 %v9281_v9  ;;  %v105_v9 = vrot.slane %v10629_v44, %v10435_v60 }
  0x83   :  { %6054 = vmatpush1.bf16.msra.mxu1 %v9276_v17  ;;  %6085 = vmatprep.mubr.bf16.mxu1 %v10800_v19  ;;  %v9336_v17 = vld [vmem:[%s13289_s3 + $0x3f0] ss:$12 sps:$4 sm:$0xff]  }
  0x84   :  { %6055 = vmatprep.subr.bf16.mxu1 %v9284_v20  ;;  %6168 = vmatmul.mubr.bf16.vlgmr.msra.gmra.mrb[0].mxu0 %v10816_v25  ;;  %v101_v20 = vrot.slane %v10629_v44, %v10425_v56 }
  0x85   :  { %6177 = vmatpush1.bf16.msra.mxu0 %v9279_v24  ;;  %6208 = vmatprep.mubr.bf16.mxu0 %v10828_v29  ;;  %v113_v24 = vrot.slane %v10629_v44, %v10448_v3  ;;  %v397_v44 = vrot.slane %v10634_v45, %v10437_v61 }
  0x86   :  { %6178 = vmatprep.subr.bf16.mxu0 %v9287_v28  ;;  %v389_v28 = vrot.slane %v10634_v45, %v10425_v56 }
  0x87   :  { %6056 = vmatpush1.bf16.msra.mxu1 %v9282_v26  ;;  %v9344_v26 = vld [vmem:[%s13289_s3 + $0x40c] ss:$12 sps:$4 sm:$0xff]  }
  0x88   :  { %6057 = vmatprep.subr.bf16.mxu1 %v9290_v27  ;;  %v9341_v27 = vld [vmem:[%s13289_s3 + $0x874] ss:$12 sps:$4 sm:$0xff]  }
  0x89   :  { %6179 = vmatpush1.bf16.msra.mxu0 %v9285_v30  ;;  %v393_v30 = vrot.slane %v10634_v45, %v10435_v60 }
  0x8a   :  { %6180 = vmatprep.subr.bf16.mxu0 %v9293_v33  ;;  %v9342_v33 = vld [vmem:[%s13289_s3 + $0x408] ss:$12 sps:$4 sm:$0xff]  }
  0x8b   :  { %6058 = vmatpush1.bf16.msra.mxu1 %v9288_v31  ;;  %v401_v31 = vrot.slane %v10634_v45, %v10448_v3  ;;  %v9347_v45 = vld [vmem:[%s13289_s3 + $0x88c] ss:$12 sps:$4 sm:$0xff]  }
  0x8c   :  { %6059 = vmatprep.subr.bf16.mxu1 %v9296_v32  ;;  %v9339_v32 = vld [vmem:[%s13289_s3 + $0x870] ss:$12 sps:$4 sm:$0xff]  }
  0x8d   :  { %6181 = vmatpush1.bf16.msra.mxu0 %v9291_v35  ;;  %v230_v35 = vcombine.low %v109_v22, %v113_v24  ;;  %v9369_v22 = vld [vmem:[%s13289_s3 + $0x8e8] ss:$12 sps:$4 sm:$0xff]   ;;  %v11034_v24 = vpack.c.bf16 %v10765_v1, %v10765_v1 }
  0x8e   :  { %6182 = vmatprep.subr.bf16.mxu0 %v9299_v37  ;;  %v517_v37 = vcombine.low %v389_v28, %v393_v30  ;;  %v9374_v28 = vld [vmem:[%s13289_s3 + $0x904] ss:$12 sps:$4 sm:$0xff]   ;;  %v9372_v30 = vld [vmem:[%s13289_s3 + $0x900] ss:$12 sps:$4 sm:$0xff]  }
  0x8f   :  { %6060 = vmatpush1.bf16.msra.mxu1 %v9294_v34  ;;  %v229_v34 = vcombine.low %v101_v20, %v105_v9  ;;  %v9371_v20 = vld [vmem:[%s13289_s3 + $0x8ec] ss:$12 sps:$4 sm:$0xff]  }
  0x90   :  { %6061 = vmatprep.subr.bf16.mxu1 %v9302_v36  ;;  %v9350_v36 = vld [vmem:[%s13289_s3 + $0x424] ss:$12 sps:$4 sm:$0xff]  }
  0x91   :  { %6183 = vmatpush1.bf16.msra.mxu0 %v9297_v38  ;;  %v518_v38 = vcombine.low %v397_v44, %v401_v31  ;;  %v11053_v44 = vpack.c.bf16 %v10788_v14, %v10788_v14  ;;  %v9381_v31 = vld [vmem:[%s13289_s3 + $0x20] ss:$12 sps:$4 sm:$0xff]  }
  0x92   :  { %6184 = vmatprep.subr.bf16.mxu0 %v9305_v41  ;;  %v237_v41 = vrot.slane %v229_v34, %v10433_v59  ;;  %v9377_v34 = vld [vmem:[%s13289_s3 + $0x918] ss:$12 sps:$4 sm:$0xff]  }
  0x93   :  { %6062 = vmatpush1.bf16.msra.mxu1 %v9300_v39  ;;  %v9345_v39 = vld [vmem:[%s13289_s3 + $0x888] ss:$12 sps:$4 sm:$0xff]  }
  0x94   :  { %6063 = vmatprep.subr.bf16.mxu1 %v9308_v40  ;;  %v9348_v40 = vld [vmem:[%s13289_s3 + $0x420] ss:$12 sps:$4 sm:$0xff]  }
  0x95   :  { %6185 = vmatpush1.bf16.msra.mxu0 %v9303_v43  ;;  %v244_v43 = vrot.slane %v230_v35, %v10433_v59  ;;  %v9390_v35 = vld [vmem:[%s13289_s3 + $0x110] ss:$12 sps:$4 sm:$0xff]  }
  0x96   :  { %6186 = vmatprep.subr.bf16.mxu0 %v9311_v49  ;;  %v525_v49 = vrot.slane %v517_v37, %v10433_v59  ;;  %v9391_v37 = vld [vmem:[%s13289_s3 + $0x50] ss:$12 sps:$4 sm:$0xff]  }
  0x97   :  { %6064 = vmatpush1.bf16.msra.mxu1 %v9306_v46  ;;  %v9356_v46 = vld [vmem:[%s13289_s3 + $0x43c] ss:$12 sps:$4 sm:$0xff]  }
  0x98   :  { %6065 = vmatprep.subr.bf16.mxu1 %v9314_v47  ;;  %v9353_v47 = vld [vmem:[%s13289_s3 + $0x8a4] ss:$12 sps:$4 sm:$0xff]  }
  0x99   :  { %6187 = vmatpush1.bf16.msra.mxu0 %v9309_v50  ;;  %v532_v50 = vrot.slane %v518_v38, %v10433_v59  ;;  %v9395_v38 = vld [vmem:[%s13289_s3 + $0x128] ss:$12 sps:$4 sm:$0xff]  }
  0x9a   :  { %6188 = vmatprep.subr.bf16.mxu0 %v9317_v57  ;;  %v9351_v57 = vld [vmem:[%s13289_s3 + $0x8a0] ss:$12 sps:$4 sm:$0xff]  }
  0x9b   :  { %6066 = vmatpush1.bf16.msra.mxu1 %v9312_v53  ;;  %v9354_v53 = vld [vmem:[%s13289_s3 + $0x438] ss:$12 sps:$4 sm:$0xff]  }
  0x9c   :  { %6067 = vmatprep.subr.bf16.mxu1 %v9320_v55  ;;  %v245_v55 = vcombine.low %v237_v41, %v244_v43  ;;  %v9396_v41 = vld [vmem:[%s13289_s3 + $0x68] ss:$12 sps:$4 sm:$0xff]   ;;  %v9400_v43 = vld [vmem:[%s13289_s3 + $0x140] ss:$12 sps:$4 sm:$0xff]  }
  0x9d   :  { %6189 = vmatpush1.bf16.msra.mxu0 %v9315_v58  ;;  %v9362_v58 = vld [vmem:[%s13289_s3 + $0x454] ss:$12 sps:$4 sm:$0xff]  }
  0x9e   :  { %6190 = vmatprep.subr.bf16.mxu0 %v9323_v0  ;;  %v9357_v0 = vld [vmem:[%s13289_s3 + $0x8b8] ss:$12 sps:$4 sm:$0xff]  }
  0x9f   :  { %6068 = vmatpush1.bf16.msra.mxu1 %v9318_v62  ;;  %v9359_v62 = vld [vmem:[%s13289_s3 + $0x8bc] ss:$12 sps:$4 sm:$0xff]  }
  0xa0   :  { %6069 = vmatprep.subr.bf16.mxu1 %v9326_v63  ;;  %v533_v63 = vcombine.low %v525_v49, %v532_v50  ;;  %v9401_v49 = vld [vmem:[%s13289_s3 + $0x80] ss:$12 sps:$4 sm:$0xff]   ;;  %v9405_v50 = vld [vmem:[%s13289_s3 + $0x158] ss:$12 sps:$4 sm:$0xff]  }
  0xa1   :  { %6191 = vmatpush1.bf16.msra.mxu0 %v9321_v4  ;;  %v9360_v4 = vld [vmem:[%s13289_s3 + $0x450] ss:$12 sps:$4 sm:$0xff]  }
  0xa2   :  { %6192 = vmatprep.subr.bf16.mxu0 %v9329_v6  ;;  %v9368_v6 = vld [vmem:[%s13289_s3 + $0x46c] ss:$12 sps:$4 sm:$0xff]  }
  0xa3   :  { %6070 = vmatpush1.bf16.msra.mxu1 %v9324_v2  ;;  %v37_v2 = vld [vmem:[%s13286_s0 + $0x18] sm:$0xff] }
  0xa4   :  { %6071 = vmatprep.subr.bf16.mxu1 %v9332_v5  ;;  %v325_v5 = vmul.f32 %v245_v55, %v37_v2  ;;  %v9397_v55 = vld [vmem:[%s13289_s3 + $0x978] ss:$12 sps:$4 sm:$0xff]   ;;  %v9415_v2 = vld [vmem:[%s13289_s3 + $0x248] ss:$12 sps:$4 sm:$0xff]  }
  0xa5   :  { %6193 = vmatpush1.bf16.msra.mxu0 %v9327_v8  ;;  %v9365_v8 = vld [vmem:[%s13289_s3 + $0x8d4] ss:$12 sps:$4 sm:$0xff]  }
  0xa6   :  { %6194 = vmatprep.subr.bf16.mxu0 %v9335_v12  ;;  %v9366_v12 = vld [vmem:[%s13289_s3 + $0x468] ss:$12 sps:$4 sm:$0xff]  }
  0xa7   :  { %6072 = vmatpush1.bf16.msra.mxu1 %v9330_v7  ;;  %v613_v7 = vadd.f32 %v533_v63, %v325_v5  ;;  %v9411_v63 = vld [vmem:[%s13289_s3 + $0xb0] ss:$12 sps:$4 sm:$0xff]   ;;  %v9407_v5 = vld [vmem:[%s13289_s3 + $0x9a8] ss:$12 sps:$4 sm:$0xff]  }
  0xa8   :  { %6073 = vmatprep.subr.bf16.mxu1 %v9338_v10  ;;  %v9363_v10 = vld [vmem:[%s13289_s3 + $0x8d0] ss:$12 sps:$4 sm:$0xff]  }
  0xa9   :  { %6195 = vmatpush1.bf16.msra.mxu0 %v9333_v16  ;;  %v11017_v16 = vmax.f32 %v613_v7, 0.0  ;;  %v9414_v7 = vld [vmem:[%s13289_s3 + $0x9c4] ss:$12 sps:$4 sm:$0xff]  }
  0xaa   :  { %6196 = vmatprep.subr.bf16.mxu0 %v9341_v27  ;;  %v9380_v27 = vld [vmem:[%s13289_s3 + $0xe0] ss:$12 sps:$4 sm:$0xff]  }
  0xab   :  { %6074 = vmatpush1.bf16.msra.mxu1 %v9336_v17  ;;  %v9375_v17 = vld [vmem:[%s13289_s3 + $0xc8] ss:$12 sps:$4 sm:$0xff]   ;;  %v11027_v9 = vrot.slane %v11017_v16, %v10433_v59 }
  0xac   :  { %6075 = vmatprep.subr.bf16.mxu1 %v9344_v26  ;;  %v9376_v26 = vld [vmem:[%s13289_s3 + $0x8] ss:$12 sps:$4 sm:$0xff]  }
  0xad   :  { %6197 = vmatpush1.bf16.msra.mxu0 %v9339_v32  ;;  %v700_v1 = vcombine.high %v11027_v9, %v11027_v9  ;;  %v9385_v32 = vld [vmem:[%s13289_s3 + $0xf8] ss:$12 sps:$4 sm:$0xff]  }
  0xae   :  { %6198 = vmatprep.subr.bf16.mxu0 %v9347_v45  ;;  %v9382_v45 = vld [vmem:[%s13289_s3 + $0x930] ss:$12 sps:$4 sm:$0xff]  }
  0xaf   :  { %6076 = vmatpush1.bf16.msra.mxu1 %v9342_v33  ;;  %v9379_v33 = vld [vmem:[%s13289_s3 + $0x91c] ss:$12 sps:$4 sm:$0xff]   ;;  %v11065_v14 = vpack.c.bf16 %v700_v1, %v700_v1 }
  0xb0   :  { %6077 = vmatprep.subr.bf16.mxu1 %v9350_v36  ;;  %v9384_v36 = vld [vmem:[%s13289_s3 + $0x934] ss:$12 sps:$4 sm:$0xff]  }
  0xb1   :  { %6199 = vmatpush1.bf16.msra.mxu0 %v9345_v39  ;;  %v9389_v39 = vld [vmem:[%s13289_s3 + $0x94c] ss:$12 sps:$4 sm:$0xff]   ;;  %v9435_v1 = vld [vmem:[%s13289_s3 + $0x2a8] ss:$12 sps:$4 sm:$0xff]  }
  0xb2   :  { %6200 = vmatprep.subr.bf16.mxu0 %v9353_v47  ;;  %v9392_v47 = vld [vmem:[%s13289_s3 + $0x960] ss:$12 sps:$4 sm:$0xff]  }
  0xb3   :  { %6078 = vmatpush1.bf16.msra.mxu1 %v9348_v40  ;;  %v9387_v40 = vld [vmem:[%s13289_s3 + $0x948] ss:$12 sps:$4 sm:$0xff]  }
  0xb4   :  { %6079 = vmatprep.subr.bf16.mxu1 %v9356_v46  ;;  %v9394_v46 = vld [vmem:[%s13289_s3 + $0x964] ss:$12 sps:$4 sm:$0xff]  }
  0xb5   :  { %6201 = vmatpush1.bf16.msra.mxu0 %v9351_v57  ;;  %v9406_v57 = vld [vmem:[%s13289_s3 + $0x98] ss:$12 sps:$4 sm:$0xff]  }
  0xb6   :  { %6202 = vmatprep.subr.bf16.mxu0 %v9359_v62  ;;  %v9404_v62 = vld [vmem:[%s13289_s3 + $0x994] ss:$12 sps:$4 sm:$0xff]  }
  0xb7   :  { %6080 = vmatpush1.bf16.msra.mxu1 %v9354_v53  ;;  %v9399_v53 = vld [vmem:[%s13289_s3 + $0x97c] ss:$12 sps:$4 sm:$0xff]  }
  0xb8   :  { %6081 = vmatprep.subr.bf16.mxu1 %v9362_v58  ;;  %v9410_v58 = vld [vmem:[%s13289_s3 + $0x170] ss:$12 sps:$4 sm:$0xff]  }
  0xb9   :  { %6203 = vmatpush1.bf16.msra.mxu0 %v9357_v0  ;;  %v9402_v0 = vld [vmem:[%s13289_s3 + $0x990] ss:$12 sps:$4 sm:$0xff]  }
  0xba   :  { %6204 = vmatprep.subr.bf16.mxu0 %v9365_v8  ;;  %v9420_v8 = vld [vmem:[%s13289_s3 + $0x260] ss:$12 sps:$4 sm:$0xff]  }
  0xbb   :  { %6082 = vmatpush1.bf16.msra.mxu1 %v9360_v4  ;;  %v9409_v4 = vld [vmem:[%s13289_s3 + $0x9ac] ss:$12 sps:$4 sm:$0xff]  }
  0xbc   :  { %6083 = vmatprep.subr.bf16.mxu1 %v9368_v6  ;;  %v9416_v6 = vld [vmem:[%s13289_s3 + $0x188] ss:$12 sps:$4 sm:$0xff]  }
  0xbd   :  { %6205 = vmatpush1.bf16.msra.mxu0 %v9363_v10  ;;  %v9412_v10 = vld [vmem:[%s13289_s3 + $0x9c0] ss:$12 sps:$4 sm:$0xff]  }
  0xbe   :  { %6206 = vmatprep.subr.bf16.mxu0 %v9371_v20  ;;  %v9417_v20 = vld [vmem:[%s13289_s3 + $0x9d8] ss:$12 sps:$4 sm:$0xff]  }
  0xbf   :  { %6084 = vmatpush1.bf16.msra.mxu1 %v9366_v12  ;;  %v9421_v12 = vld [vmem:[%s13289_s3 + $0x1a0] ss:$12 sps:$4 sm:$0xff]  }
  0xc0   :  { %8663 = vmatprep.subr.bf16.mxu1 %v9375_v17  ;;  %v9425_v17 = vld [vmem:[%s13289_s3 + $0x278] ss:$12 sps:$4 sm:$0xff]  }
  0xc1   :  { %6207 = vmatpush1.bf16.msra.mxu0 %v9369_v22  ;;  %v9430_v22 = vld [vmem:[%s13289_s3 + $0x290] ss:$12 sps:$4 sm:$0xff]  }
  0xc2   :  { %6086 = vmatmul.mubr.bf16.vlgmr.msra.gmra.mrb[0].mxu1 %v11034_v24  ;;  %6217 = vmatprep.subr.bf16.mxu0 %v9374_v28  ;;  %v9431_v28 = vld [vmem:[%s13289_s3 + $0x1d0] ss:$12 sps:$4 sm:$0xff]  }
  0xc3   :  { %8664 = vmatpush3.bf16.msra.mxu1 %v9376_v26  ;;  %6659 = vmatprep.mubr.bf16.mxu1 %v10534_v11  ;;  %v9386_v11 = vld [vmem:[%s13289_s3 + $0x38] ss:$12 sps:$4 sm:$0xff]   ;;  %v9424_v26 = vld [vmem:[%s13289_s3 + $0x9f4] ss:$12 sps:$4 sm:$0xff]  }
  0xc4   :  { %8665 = vmatprep.subr.bf16.mxu1 %v9380_v27  ;;  %6209 = vmatmul.mubr.bf16.vlgmr.msra.gmra.mrb[0].mxu0 %v11053_v44  ;;  %v9422_v27 = vld [vmem:[%s13289_s3 + $0x9f0] ss:$12 sps:$4 sm:$0xff]  }
  0xc5   :  { %6218 = vmatpush1.bf16.msra.mxu0 %v9372_v30  ;;  %6249 = vmatprep.mubr.bf16.mxu0 %v11065_v14  ;;  %v9429_v30 = vld [vmem:[%s13289_s3 + $0xa0c] ss:$12 sps:$4 sm:$0xff]  }
  0xc6   :  { %6219 = vmatprep.subr.bf16.mxu0 %v9379_v33  ;;  %v9440_v33 = vld [vmem:[%s13289_s3 + $0x2c0] ss:$12 sps:$4 sm:$0xff]  }
  0xc7   :  { %8666 = vmatpush3.bf16.msra.mxu1 %v9381_v31  ;;  %v9436_v31 = vld [vmem:[%s13289_s3 + $0x1e8] ss:$12 sps:$4 sm:$0xff]  }
  0xc8   :  { %8667 = vmatprep.subr.bf16.mxu1 %v9385_v32  ;;  %v9427_v32 = vld [vmem:[%s13289_s3 + $0xa08] ss:$12 sps:$4 sm:$0xff]  }
  0xc9   :  { %6220 = vmatpush1.bf16.msra.mxu0 %v9377_v34  ;;  %v9432_v34 = vld [vmem:[%s13289_s3 + $0xa20] ss:$12 sps:$4 sm:$0xff]  }
  0xca   :  { %6221 = vmatprep.subr.bf16.mxu0 %v9384_v36  ;;  %v9445_v36 = vld [vmem:[%s13289_s3 + $0x2d8] ss:$12 sps:$4 sm:$0xff]  }
  0xcb   :  { %8668 = vmatpush3.bf16.msra.mxu1 %v9386_v11  ;;  %v9434_v11 = vld [vmem:[%s13289_s3 + $0xa24] ss:$12 sps:$4 sm:$0xff]  }
  0xcc   :  { %8669 = vmatprep.subr.bf16.mxu1 %v9390_v35  ;;  %v9441_v35 = vld [vmem:[%s13289_s3 + $0x200] ss:$12 sps:$4 sm:$0xff]  }
  0xcd   :  { %6222 = vmatpush1.bf16.msra.mxu0 %v9382_v45  ;;  %v9439_v45 = vld [vmem:[%s13289_s3 + $0xa3c] ss:$12 sps:$4 sm:$0xff]  }
  0xce   :  { %6223 = vmatprep.subr.bf16.mxu0 %v9389_v39  ;;  %v9450_v39 = vld [vmem:[%s13289_s3 + $0x2f0] ss:$12 sps:$4 sm:$0xff]  }
  0xcf   :  { %8670 = vmatpush3.bf16.msra.mxu1 %v9391_v37  ;;  %v9437_v37 = vld [vmem:[%s13289_s3 + $0xa38] ss:$12 sps:$4 sm:$0xff]  }
  0xd0   :  { %8671 = vmatprep.subr.bf16.mxu1 %v9395_v38  ;;  %v9446_v38 = vld [vmem:[%s13289_s3 + $0x218] ss:$12 sps:$4 sm:$0xff]  }
  0xd1   :  { %6224 = vmatpush1.bf16.msra.mxu0 %v9387_v40  ;;  %v9444_v40 = vld [vmem:[%s13289_s3 + $0xa54] ss:$12 sps:$4 sm:$0xff]  }
  0xd2   :  { %6225 = vmatprep.subr.bf16.mxu0 %v9394_v46  ;;  %v9451_v46 = vld [vmem:[%s13289_s3 + $0x230] ss:$12 sps:$4 sm:$0xff]  }
  0xd3   :  { %8672 = vmatpush3.bf16.msra.mxu1 %v9396_v41  ;;  %v685_v41 = vcombine.high %v11017_v16, %v11017_v16  ;;  %v9449_v16 = vld [vmem:[%s13289_s3 + $0xa6c] ss:$12 sps:$4 sm:$0xff]  }
  0xd4   :  { %8673 = vmatprep.subr.bf16.mxu1 %v9400_v43  ;;  %v9442_v43 = vld [vmem:[%s13289_s3 + $0xa50] ss:$12 sps:$4 sm:$0xff]  }
  0xd5   :  { %6226 = vmatpush1.bf16.msra.mxu0 %v9392_v47  ;;  %v9455_v47 = vld [vmem:[%s13289_s3 + $0x3c8] ss:$12 sps:$4 sm:$0xff]  }
  0xd6   :  { %6227 = vmatprep.subr.bf16.mxu0 %v9399_v53  ;;  %v9456_v53 = vld [vmem:[%s13289_s3 + $0x308] ss:$12 sps:$4 sm:$0xff]  }
  0xd7   :  { %8674 = vmatpush3.bf16.msra.mxu1 %v9401_v49  ;;  %v11242_v49 = vrot.slane %v685_v41, %v10433_v59  ;;  %v9492_v41 = vld [vmem:[%s13289_s3 + $0xb40] ss:$12 sps:$4 sm:$0xff]  }
  0xd8   :  { %8675 = vmatprep.subr.bf16.mxu1 %v9405_v50  ;;  %v9447_v50 = vld [vmem:[%s13289_s3 + $0xa68] ss:$12 sps:$4 sm:$0xff]  }
  0xd9   :  { %6228 = vmatpush1.bf16.msra.mxu0 %v9397_v55  ;;  %v9460_v55 = vld [vmem:[%s13289_s3 + $0x3e0] ss:$12 sps:$4 sm:$0xff]  }
  0xda   :  { %6229 = vmatprep.subr.bf16.mxu0 %v9404_v62  ;;  %v11261_v62 = vpack.c.bf16 %v11027_v9, %v11027_v9  ;;  %v9459_v9 = vld [vmem:[%s13289_s3 + $0xa9c] ss:$12 sps:$4 sm:$0xff]  }
  0xdb   :  { %8676 = vmatpush3.bf16.msra.mxu1 %v9406_v57  ;;  %v9454_v57 = vld [vmem:[%s13289_s3 + $0xa84] ss:$12 sps:$4 sm:$0xff]  }
  0xdc   :  { %8677 = vmatprep.subr.bf16.mxu1 %v9410_v58  ;;  %v701_v58 = vcombine.high %v11242_v49, %v11242_v49 }
  0xdd   :  { %6230 = vmatpush1.bf16.msra.mxu0 %v9402_v0  ;;  %v9452_v0 = vld [vmem:[%s13289_s3 + $0xa80] ss:$12 sps:$4 sm:$0xff]  }
  0xde   :  { %6231 = vmatprep.subr.bf16.mxu0 %v9409_v4  ;;  %v9466_v4 = vld [vmem:[%s13289_s3 + $0x338] ss:$12 sps:$4 sm:$0xff]  }
  0xdf   :  { %8678 = vmatpush3.bf16.msra.mxu1 %v9411_v63  ;;  %v9461_v63 = vld [vmem:[%s13289_s3 + $0x320] ss:$12 sps:$4 sm:$0xff]  }
  0xe0   :  { %8685 = vmatprep.subr.bf16.mxu1 %v9415_v2  ;;  %v11276_v2 = vpack.c.bf16 %v701_v58, %v701_v58 }
  0xe1   :  { %6232 = vmatpush1.bf16.msra.mxu0 %v9407_v5  ;;  %v9470_v5 = vld [vmem:[%s13289_s3 + $0x410] ss:$12 sps:$4 sm:$0xff]  }
  0xe2   :  { %6660 = vmatmul.mubr.bf16.vlgmr.msra.gmra.mrb[4].mxu1 %v10538_v13  ;;  %6233 = vmatprep.subr.bf16.mxu0 %v9414_v7  ;;  %v9419_v13 = vld [vmem:[%s13289_s3 + $0x9dc] ss:$12 sps:$4 sm:$0xff]  }
  0xe3   :  { %8686 = vmatpush3.bf16.msra.mxu1 %v9416_v6  ;;  %6699 = vmatprep.mubr.bf16.mxu1 %v10550_v18  ;;  %v9426_v18 = vld [vmem:[%s13289_s3 + $0x1b8] ss:$12 sps:$4 sm:$0xff]   ;;  %v9464_v6 = vld [vmem:[%s13289_s3 + $0xab4] ss:$12 sps:$4 sm:$0xff]   ;;  %v9471_v7 = vld [vmem:[%s13289_s3 + $0x350] ss:$12 sps:$4 sm:$0xff]  }
  0xe4   :  { %8687 = vmatprep.subr.bf16.mxu1 %v9420_v8  ;;  %v9462_v8 = vld [vmem:[%s13289_s3 + $0xab0] ss:$12 sps:$4 sm:$0xff]  }
  0xe5   :  { %6234 = vmatpush1.bf16.msra.mxu0 %v9412_v10  ;;  %v9475_v10 = vld [vmem:[%s13289_s3 + $0x428] ss:$12 sps:$4 sm:$0xff]  }
  0xe6   :  { %6235 = vmatprep.subr.bf16.mxu0 %v9419_v13  ;;  %v9476_v13 = vld [vmem:[%s13289_s3 + $0x368] ss:$12 sps:$4 sm:$0xff]  }
  0xe7   :  { %8688 = vmatpush3.bf16.msra.mxu1 %v9421_v12  ;;  %v9469_v12 = vld [vmem:[%s13289_s3 + $0xacc] ss:$12 sps:$4 sm:$0xff]  }
  0xe8   :  { %8689 = vmatprep.subr.bf16.mxu1 %v9425_v17  ;;  %v9467_v17 = vld [vmem:[%s13289_s3 + $0xac8] ss:$12 sps:$4 sm:$0xff]  }
  0xe9   :  { %6236 = vmatpush1.bf16.msra.mxu0 %v9417_v20  ;;  %v9480_v20 = vld [vmem:[%s13289_s3 + $0x440] ss:$12 sps:$4 sm:$0xff]  }
  0xea   :  { %6237 = vmatprep.subr.bf16.mxu0 %v9424_v26  ;;  %v9481_v26 = vld [vmem:[%s13289_s3 + $0x380] ss:$12 sps:$4 sm:$0xff]  }
  0xeb   :  { %8690 = vmatpush3.bf16.msra.mxu1 %v9426_v18  ;;  %v9474_v18 = vld [vmem:[%s13289_s3 + $0xae4] ss:$12 sps:$4 sm:$0xff]  }
  0xec   :  { %8691 = vmatprep.subr.bf16.mxu1 %v9430_v22  ;;  %v9472_v22 = vld [vmem:[%s13289_s3 + $0xae0] ss:$12 sps:$4 sm:$0xff]  }
  0xed   :  { %6238 = vmatpush1.bf16.msra.mxu0 %v9422_v27  ;;  %v9485_v27 = vld [vmem:[%s13289_s3 + $0x458] ss:$12 sps:$4 sm:$0xff]  }
  0xee   :  { %6239 = vmatprep.subr.bf16.mxu0 %v9429_v30  ;;  %v9477_v30 = vld [vmem:[%s13289_s3 + $0xaf8] ss:$12 sps:$4 sm:$0xff]  }
  0xef   :  { %8692 = vmatpush3.bf16.msra.mxu1 %v9431_v28  ;;  %v9479_v28 = vld [vmem:[%s13289_s3 + $0xafc] ss:$12 sps:$4 sm:$0xff]  }
  0xf0   :  { %8693 = vmatprep.subr.bf16.mxu1 %v9435_v1  ;;  %v9486_v1 = vld [vmem:[%s13289_s3 + $0x398] ss:$12 sps:$4 sm:$0xff]  }
  0xf1   :  { %6240 = vmatpush1.bf16.msra.mxu0 %v9427_v32  ;;  %v9484_v32 = vld [vmem:[%s13289_s3 + $0xb14] ss:$12 sps:$4 sm:$0xff]  }
  0xf2   :  { %6241 = vmatprep.subr.bf16.mxu0 %v9434_v11  ;;  %v9491_v11 = vld [vmem:[%s13289_s3 + $0x3b0] ss:$12 sps:$4 sm:$0xff]  }
  0xf3   :  { %8694 = vmatpush3.bf16.msra.mxu1 %v9436_v31  ;;  %v9490_v31 = vld [vmem:[%s13289_s3 + $0x470] ss:$12 sps:$4 sm:$0xff]  }
  0xf4   :  { %8695 = vmatprep.subr.bf16.mxu1 %v9440_v33  ;;  %v9482_v33 = vld [vmem:[%s13289_s3 + $0xb10] ss:$12 sps:$4 sm:$0xff]  }
  0xf5   :  { %6242 = vmatpush1.bf16.msra.mxu0 %v9432_v34  ;;  %v9495_v34 = vld [vmem:[%s13289_s3 + $0x548] ss:$12 sps:$4 sm:$0xff]  }
  0xf6   :  { %6243 = vmatprep.subr.bf16.mxu0 %v9439_v45  ;;  %v9496_v45 = vld [vmem:[%s13289_s3 + $0x488] ss:$12 sps:$4 sm:$0xff]  }
  0xf7   :  { %8696 = vmatpush3.bf16.msra.mxu1 %v9441_v35  ;;  %v9489_v35 = vld [vmem:[%s13289_s3 + $0xb2c] ss:$12 sps:$4 sm:$0xff]  }
  0xf8   :  { %8697 = vmatprep.subr.bf16.mxu1 %v9445_v36  ;;  %v9487_v36 = vld [vmem:[%s13289_s3 + $0xb28] ss:$12 sps:$4 sm:$0xff]  }
  0xf9   :  { %6244 = vmatpush1.bf16.msra.mxu0 %v9437_v37  ;;  %v9500_v37 = vld [vmem:[%s13289_s3 + $0x560] ss:$12 sps:$4 sm:$0xff]  }
  0xfa   :  { %6245 = vmatprep.subr.bf16.mxu0 %v9444_v40  ;;  %v332_v40 = vld [vmem:[%s13288_s2 + $0x10] sm:$0xff] }
  0xfb   :  { %8698 = vmatpush3.bf16.msra.mxu1 %v9446_v38  ;;  %v9494_v38 = vld [vmem:[%s13289_s3 + $0xb44] ss:$12 sps:$4 sm:$0xff]   ;;  %v413_v58 = vrot.slane %v332_v40, %v10415_v52 }
  0xfc   :  { %8699 = vmatprep.subr.bf16.mxu1 %v9450_v39  ;;  %v44_v39 = vld [vmem:[%s13287_s1 + $0x10] sm:$0xff] }
  0xfd   :  { %6246 = vmatpush1.bf16.msra.mxu0 %v9442_v43  ;;  %v9501_v43 = vld [vmem:[%s13289_s3 + $0x4a0] ss:$12 sps:$4 sm:$0xff]  }
  0xfe   :  { %6247 = vmatprep.subr.bf16.mxu0 %v9449_v16  ;;  %v9505_v16 = vld [vmem:[%s13289_s3 + $0x578] ss:$12 sps:$4 sm:$0xff]  }
  0xff   :  { %8700 = vmatpush3.bf16.msra.mxu1 %v9451_v46  ;;  %v121_v46 = vrot.slane %v44_v39, %v10413_v51 }
 0x100   :  { %8707 = vmatprep.subr.bf16.mxu1 %v9455_v47  ;;  %v125_v47 = vrot.slane %v44_v39, %v10415_v52 }
 0x101   :  { %6248 = vmatpush1.bf16.msra.mxu0 %v9447_v50  ;;  %v129_v50 = vrot.slane %v44_v39, %v10420_v54 }
 0x102   :  { %6700 = vmatmul.mubr.bf16.vlgmr.msra.gmra.mrb[8].mxu1 %v10792_v15  ;;  %v9465_v15 = vld [vmem:[%s13289_s3 + $0x3f8] ss:$12 sps:$4 sm:$0xff]   ;;  %6258 = vmatprep.subr.bf16.mxu0 %v9454_v57  ;;  %v409_v57 = vrot.slane %v332_v40, %v10413_v51 }
 0x103   :  { %8708 = vmatpush3.bf16.msra.mxu1 %v9456_v53  ;;  %6739 = vmatprep.mubr.bf16.mxu1 %v10800_v19  ;;  %v9457_v19 = vld [vmem:[%s13289_s3 + $0xa98] ss:$12 sps:$4 sm:$0xff]   ;;  %v405_v53 = vrot.slane %v332_v40, %v10408_v48 }
 0x104   :  { %8709 = vmatprep.subr.bf16.mxu1 %v9460_v55  ;;  %6250 = vmatmul.mubr.bf16.vlgmr.msra.gmra.mrb[0].mxu0 %v11261_v62 }
 0x105   :  { %6259 = vmatpush1.bf16.msra.mxu0 %v9452_v0  ;;  %6290 = vmatprep.mubr.bf16.mxu0 %v11276_v2  ;;  %v9497_v0 = vld [vmem:[%s13289_s3 + $0xb58] ss:$12 sps:$4 sm:$0xff]  }
 0x106   :  { %6260 = vmatprep.subr.bf16.mxu0 %v9459_v9  ;;  %v9506_v9 = vld [vmem:[%s13289_s3 + $0x4b8] ss:$12 sps:$4 sm:$0xff]  }
 0x107   :  { %8710 = vmatpush3.bf16.msra.mxu1 %v9461_v63  ;;  %v417_v63 = vrot.slane %v332_v40, %v10420_v54 }
 0x108   :  { %8711 = vmatprep.subr.bf16.mxu1 %v9465_v15  ;;  %v247_v15 = vcombine.low %v125_v47, %v129_v50  ;;  %v9536_v50 = vld [vmem:[%s13289_s3 + $0x608] ss:$12 sps:$4 sm:$0xff]  }
 0x109   :  { %6261 = vmatpush1.bf16.msra.mxu0 %v9457_v19  ;;  %v9510_v19 = vld [vmem:[%s13289_s3 + $0x590] ss:$12 sps:$4 sm:$0xff]  }
 0x10a   :  { %6262 = vmatprep.subr.bf16.mxu0 %v9464_v6  ;;  %v261_v6 = vrot.slane %v247_v15, %v10433_v59  ;;  %v9537_v15 = vld [vmem:[%s13289_s3 + $0xc18] ss:$12 sps:$4 sm:$0xff]  }
 0x10b   :  { %8712 = vmatpush3.bf16.msra.mxu1 %v9466_v4  ;;  %v9504_v4 = vld [vmem:[%s13289_s3 + $0xb74] ss:$12 sps:$4 sm:$0xff]  }
 0x10c   :  { %8713 = vmatprep.subr.bf16.mxu1 %v9470_v5 }
 0x10d   :  { %6263 = vmatpush1.bf16.msra.mxu0 %v9462_v8  ;;  %v534_v8 = vcombine.low %v405_v53, %v409_v57  ;;  %v9540_v53 = vld [vmem:[%s13289_s3 + $0x6e0] ss:$12 sps:$4 sm:$0xff]  }
 0x10e   :  { %6264 = vmatprep.subr.bf16.mxu0 %v9469_v12  ;;  %v9511_v12 = vld [vmem:[%s13289_s3 + $0x4d0] ss:$12 sps:$4 sm:$0xff]   ;;  %v9532_v57 = vld [vmem:[%s13289_s3 + $0xc00] ss:$12 sps:$4 sm:$0xff]  }
 0x10f   :  { %8714 = vmatpush3.bf16.msra.mxu1 %v9471_v7  ;;  %v535_v7 = vcombine.low %v413_v58, %v417_v63  ;;  %v11497_v58 = vpack.c.bf16 %v11242_v49, %v11242_v49  ;;  %v9541_v63 = vld [vmem:[%s13289_s3 + $0x620] ss:$12 sps:$4 sm:$0xff]  }
 0x110   :  { %8715 = vmatprep.subr.bf16.mxu1 %v9475_v10  ;;  %v9502_v10 = vld [vmem:[%s13289_s3 + $0xb70] ss:$12 sps:$4 sm:$0xff]  }
 0x111   :  { %6265 = vmatpush1.bf16.msra.mxu0 %v9467_v17  ;;  %v9515_v17 = vld [vmem:[%s13289_s3 + $0x5a8] ss:$12 sps:$4 sm:$0xff]  }
 0x112   :  { %6266 = vmatprep.subr.bf16.mxu0 %v9474_v18  ;;  %v542_v18 = vrot.slane %v534_v8, %v10433_v59  ;;  %v9549_v8 = vld [vmem:[%s13289_s3 + $0xc4c] ss:$12 sps:$4 sm:$0xff]  }
 0x113   :  { %8716 = vmatpush3.bf16.msra.mxu1 %v9476_v13  ;;  %v9509_v13 = vld [vmem:[%s13289_s3 + $0xb8c] ss:$12 sps:$4 sm:$0xff]  }
 0x114   :  { %8717 = vmatprep.subr.bf16.mxu1 %v9480_v20 }
 0x115   :  { %6267 = vmatpush1.bf16.msra.mxu0 %v9472_v22  ;;  %v549_v22 = vrot.slane %v535_v7, %v10433_v59  ;;  %v9547_v7 = vld [vmem:[%s13289_s3 + $0xc48] ss:$12 sps:$4 sm:$0xff]  }
 0x116   :  { %6268 = vmatprep.subr.bf16.mxu0 %v9479_v28  ;;  %v9516_v28 = vld [vmem:[%s13289_s3 + $0x4e8] ss:$12 sps:$4 sm:$0xff]  }
 0x117   :  { %8718 = vmatpush3.bf16.msra.mxu1 %v9481_v26  ;;  %v9507_v26 = vld [vmem:[%s13289_s3 + $0xb88] ss:$12 sps:$4 sm:$0xff]  }
 0x118   :  { %8719 = vmatprep.subr.bf16.mxu1 %v9485_v27  ;;  %v38_v27 = vld [vmem:[%s13286_s0 + $0x20] sm:$0xff] }
 0x119   :  { %6269 = vmatpush1.bf16.msra.mxu0 %v9477_v30  ;;  %v9514_v30 = vld [vmem:[%s13289_s3 + $0xba4] ss:$12 sps:$4 sm:$0xff]  }
 0x11a   :  { %6270 = vmatprep.subr.bf16.mxu0 %v9484_v32  ;;  %v550_v32 = vcombine.low %v542_v18, %v549_v22  ;;  %v9565_v18 = vld [vmem:[%s13289_s3 + $0x758] ss:$12 sps:$4 sm:$0xff]   ;;  %v9559_v22 = vld [vmem:[%s13289_s3 + $0xc7c] ss:$12 sps:$4 sm:$0xff]  }
 0x11b   :  { %8720 = vmatpush3.bf16.msra.mxu1 %v9486_v1  ;;  %v9520_v1 = vld [vmem:[%s13289_s3 + $0x5c0] ss:$12 sps:$4 sm:$0xff]  }
 0x11c   :  { %8721 = vmatprep.subr.bf16.mxu1 %v9490_v31 }
 0x11d   :  { %6271 = vmatpush1.bf16.msra.mxu0 %v9482_v33  ;;  %v9521_v33 = vld [vmem:[%s13289_s3 + $0x500] ss:$12 sps:$4 sm:$0xff]  }
 0x11e   :  { %6272 = vmatprep.subr.bf16.mxu0 %v9489_v35  ;;  %v9519_v35 = vld [vmem:[%s13289_s3 + $0xbbc] ss:$12 sps:$4 sm:$0xff]  }
 0x11f   :  { %8722 = vmatpush3.bf16.msra.mxu1 %v9491_v11  ;;  %v9512_v11 = vld [vmem:[%s13289_s3 + $0xba0] ss:$12 sps:$4 sm:$0xff]  }
 0x120   :  { %8729 = vmatprep.subr.bf16.mxu1 %v9495_v34  ;;  %v9525_v34 = vld [vmem:[%s13289_s3 + $0x5d8] ss:$12 sps:$4 sm:$0xff]  }
 0x121   :  { %6273 = vmatpush1.bf16.msra.mxu0 %v9487_v36 }
 0x122   :  { %6740 = vmatmul.mubr.bf16.vlgmr.msra.gmra.mrb[12].mxu1 %v11034_v24  ;;  %v117_v24 = vrot.slane %v44_v39, %v10408_v48  ;;  %6274 = vmatprep.subr.bf16.mxu0 %v9494_v38  ;;  %v9526_v38 = vld [vmem:[%s13289_s3 + $0x518] ss:$12 sps:$4 sm:$0xff]   ;;  %v9530_v39 = vld [vmem:[%s13289_s3 + $0x5f0] ss:$12 sps:$4 sm:$0xff]  }
 0x123   :  { %8730 = vmatpush3.bf16.msra.mxu1 %v9496_v45  ;;  %6779 = vmatprep.mubr.bf16.mxu1 %v10562_v23  ;;  %v9499_v23 = vld [vmem:[%s13289_s3 + $0xb5c] ss:$12 sps:$4 sm:$0xff]   ;;  %v9517_v45 = vld [vmem:[%s13289_s3 + $0xbb8] ss:$12 sps:$4 sm:$0xff]  }
 0x124   :  { %8731 = vmatprep.subr.bf16.mxu1 %v9500_v37  ;;  %v246_v55 = vcombine.low %v117_v24, %v121_v46  ;;  %v9524_v37 = vld [vmem:[%s13289_s3 + $0xbd4] ss:$12 sps:$4 sm:$0xff]   ;;  %v9529_v46 = vld [vmem:[%s13289_s3 + $0xbec] ss:$12 sps:$4 sm:$0xff]  }
 0x125   :  { %6275 = vmatpush1.bf16.msra.mxu0 %v9492_v41  ;;  %v9522_v41 = vld [vmem:[%s13289_s3 + $0xbd0] ss:$12 sps:$4 sm:$0xff]   ;;  %v9535_v24 = vld [vmem:[%s13289_s3 + $0x6c8] ss:$12 sps:$4 sm:$0xff]  }
 0x126   :  { %6276 = vmatprep.subr.bf16.mxu0 %v9499_v23  ;;  %v254_v5 = vrot.slane %v246_v55, %v10433_v59  ;;  %v9534_v23 = vld [vmem:[%s13289_s3 + $0xc04] ss:$12 sps:$4 sm:$0xff]  }
 0x127   :  { %8732 = vmatpush3.bf16.msra.mxu1 %v9501_v43  ;;  %v9531_v43 = vld [vmem:[%s13289_s3 + $0x530] ss:$12 sps:$4 sm:$0xff]  }
 0x128   :  { %8733 = vmatprep.subr.bf16.mxu1 %v9505_v16  ;;  %v262_v20 = vcombine.low %v254_v5, %v261_v6  ;;  %v9527_v16 = vld [vmem:[%s13289_s3 + $0xbe8] ss:$12 sps:$4 sm:$0xff]   ;;  %v9551_v5 = vld [vmem:[%s13289_s3 + $0x650] ss:$12 sps:$4 sm:$0xff]  }
 0x129   :  { %6277 = vmatpush1.bf16.msra.mxu0 %v9497_v0  ;;  %v9545_v0 = vld [vmem:[%s13289_s3 + $0x6f8] ss:$12 sps:$4 sm:$0xff]   ;;  %v9555_v6 = vld [vmem:[%s13289_s3 + $0x728] ss:$12 sps:$4 sm:$0xff]  }
 0x12a   :  { %6278 = vmatprep.subr.bf16.mxu0 %v9504_v4  ;;  %v326_v31 = vmul.f32 %v262_v20, %v38_v27  ;;  %v9542_v4 = vld [vmem:[%s13289_s3 + $0xc30] ss:$12 sps:$4 sm:$0xff]   ;;  %v9561_v20 = vld [vmem:[%s13289_s3 + $0x680] ss:$12 sps:$4 sm:$0xff]   ;;  %v9566_v27 = vld [vmem:[%s13289_s3 + $0x698] ss:$12 sps:$4 sm:$0xff]  }
 0x12b   :  { %8734 = vmatpush3.bf16.msra.mxu1 %v9506_v9  ;;  %v9550_v9 = vld [vmem:[%s13289_s3 + $0x710] ss:$12 sps:$4 sm:$0xff]  }
 0x12c   :  { %8735 = vmatprep.subr.bf16.mxu1 %v9510_v19  ;;  %v614_v36 = vadd.f32 %v550_v32, %v326_v31  ;;  %v9544_v19 = vld [vmem:[%s13289_s3 + $0xc34] ss:$12 sps:$4 sm:$0xff]   ;;  %v9562_v31 = vld [vmem:[%s13289_s3 + $0xc90] ss:$12 sps:$4 sm:$0xff]  }
 0x12d   :  { %6279 = vmatpush1.bf16.msra.mxu0 %v9502_v10  ;;  %v9556_v10 = vld [vmem:[%s13289_s3 + $0x668] ss:$12 sps:$4 sm:$0xff]  }
 0x12e   :  { %6280 = vmatprep.subr.bf16.mxu0 %v9509_v13  ;;  %v11459_v40 = vmax.f32 %v614_v36, 0.0  ;;  %v9552_v13 = vld [vmem:[%s13289_s3 + $0xc60] ss:$12 sps:$4 sm:$0xff]   ;;  %v9575_v32 = vld [vmem:[%s13289_s3 + $0x848] ss:$12 sps:$4 sm:$0xff]  }
 0x12f   :  { %8736 = vmatpush3.bf16.msra.mxu1 %v9511_v12  ;;  %v9560_v12 = vld [vmem:[%s13289_s3 + $0x740] ss:$12 sps:$4 sm:$0xff]   ;;  %v9574_v36 = vld [vmem:[%s13289_s3 + $0xcc4] ss:$12 sps:$4 sm:$0xff]  }
 0x130   :  { %8737 = vmatprep.subr.bf16.mxu1 %v9515_v17  ;;  %v11475_v47 = vrot.slane %v11459_v40, %v10433_v59  ;;  %v9554_v17 = vld [vmem:[%s13289_s3 + $0xc64] ss:$12 sps:$4 sm:$0xff]  }
 0x131   :  { %6281 = vmatpush1.bf16.msra.mxu0 %v9507_v26  ;;  %v9557_v26 = vld [vmem:[%s13289_s3 + $0xc78] ss:$12 sps:$4 sm:$0xff]  }
 0x132   :  { %6282 = vmatprep.subr.bf16.mxu0 %v9514_v30  ;;  %v717_v55 = vcombine.high %v11475_v47, %v11475_v47  ;;  %v9571_v30 = vld [vmem:[%s13289_s3 + $0x6b0] ss:$12 sps:$4 sm:$0xff]  }
 0x133   :  { %8738 = vmatpush3.bf16.msra.mxu1 %v9516_v28  ;;  %v9570_v28 = vld [vmem:[%s13289_s3 + $0x770] ss:$12 sps:$4 sm:$0xff]  }
 0x134   :  { %8739 = vmatprep.subr.bf16.mxu1 %v9520_v1  ;;  %v11509_v49 = vpack.c.bf16 %v717_v55, %v717_v55  ;;  %v9564_v1 = vld [vmem:[%s13289_s3 + $0xc94] ss:$12 sps:$4 sm:$0xff]  }
 0x135   :  { %6283 = vmatpush1.bf16.msra.mxu0 %v9512_v11  ;;  %v9567_v11 = vld [vmem:[%s13289_s3 + $0xca8] ss:$12 sps:$4 sm:$0xff]   ;;  %v9600_v55 = vld [vmem:[%s13289_s3 + $0x8c0] ss:$12 sps:$4 sm:$0xff]  }
 0x136   :  { %6284 = vmatprep.subr.bf16.mxu0 %v9519_v35  ;;  %v9580_v35 = vld [vmem:[%s13289_s3 + $0x860] ss:$12 sps:$4 sm:$0xff]  }
 0x137   :  { %8740 = vmatpush3.bf16.msra.mxu1 %v9521_v33  ;;  %v9569_v33 = vld [vmem:[%s13289_s3 + $0xcac] ss:$12 sps:$4 sm:$0xff]  }
 0x138   :  { %8741 = vmatprep.subr.bf16.mxu1 %v9525_v34  ;;  %v9576_v34 = vld [vmem:[%s13289_s3 + $0x788] ss:$12 sps:$4 sm:$0xff]  }
 0x139   :  { %6285 = vmatpush1.bf16.msra.mxu0 %v9517_v45  ;;  %v9572_v45 = vld [vmem:[%s13289_s3 + $0xcc0] ss:$12 sps:$4 sm:$0xff]  }
 0x13a   :  { %6286 = vmatprep.subr.bf16.mxu0 %v9524_v37  ;;  %v9581_v37 = vld [vmem:[%s13289_s3 + $0x7a0] ss:$12 sps:$4 sm:$0xff]  }
 0x13b   :  { %8742 = vmatpush3.bf16.msra.mxu1 %v9526_v38  ;;  %v9585_v38 = vld [vmem:[%s13289_s3 + $0x878] ss:$12 sps:$4 sm:$0xff]  }
 0x13c   :  { %8743 = vmatprep.subr.bf16.mxu1 %v9530_v39  ;;  %v9577_v39 = vld [vmem:[%s13289_s3 + $0xcd8] ss:$12 sps:$4 sm:$0xff]  }
 0x13d   :  { %6287 = vmatpush1.bf16.msra.mxu0 %v9522_v41  ;;  %v9590_v41 = vld [vmem:[%s13289_s3 + $0x890] ss:$12 sps:$4 sm:$0xff]  }
 0x13e   :  { %6288 = vmatprep.subr.bf16.mxu0 %v9529_v46  ;;  %v9591_v46 = vld [vmem:[%s13289_s3 + $0x7d0] ss:$12 sps:$4 sm:$0xff]  }
 0x13f   :  { %8744 = vmatpush3.bf16.msra.mxu1 %v9531_v43  ;;  %v9584_v43 = vld [vmem:[%s13289_s3 + $0xcf4] ss:$12 sps:$4 sm:$0xff]  }
 0x140   :  { %8751 = vmatprep.subr.bf16.mxu1 %v9535_v24  ;;  %v9582_v24 = vld [vmem:[%s13289_s3 + $0xcf0] ss:$12 sps:$4 sm:$0xff]  }
 0x141   :  { %6289 = vmatpush1.bf16.msra.mxu0 %v9527_v16  ;;  %v9595_v16 = vld [vmem:[%s13289_s3 + $0x8a8] ss:$12 sps:$4 sm:$0xff]  }
 0x142   :  { %6780 = vmatmul.mubr.bf16.vlgmr.msra.gmra.mrb[16].mxu1 %v10556_v21  ;;  %6299 = vmatprep.subr.bf16.mxu0 %v9534_v23  ;;  %v9539_v21 = vld [vmem:[%s13289_s3 + $0xc1c] ss:$12 sps:$4 sm:$0xff]  }
 0x143   :  { %8752 = vmatpush3.bf16.msra.mxu1 %v9536_v50  ;;  %6819 = vmatprep.mubr.bf16.mxu1 %v10724_v42  ;;  %v9546_v42 = vld [vmem:[%s13289_s3 + $0x638] ss:$12 sps:$4 sm:$0xff]   ;;  %v9587_v23 = vld [vmem:[%s13289_s3 + $0xd08] ss:$12 sps:$4 sm:$0xff]  }
 0x144   :  { %8753 = vmatprep.subr.bf16.mxu1 %v9540_v53  ;;  %6291 = vmatmul.mubr.bf16.vlgmr.msra.gmra.mrb[0].mxu0 %v11497_v58  ;;  %v9589_v50 = vld [vmem:[%s13289_s3 + $0xd0c] ss:$12 sps:$4 sm:$0xff]   ;;  %v9596_v53 = vld [vmem:[%s13289_s3 + $0x7e8] ss:$12 sps:$4 sm:$0xff]  }
 0x145   :  { %6300 = vmatpush1.bf16.msra.mxu0 %v9532_v57  ;;  %6331 = vmatprep.mubr.bf16.mxu0 %v11509_v49  ;;  %v9594_v57 = vld [vmem:[%s13289_s3 + $0xd24] ss:$12 sps:$4 sm:$0xff]  }
 0x146   :  { %6301 = vmatprep.subr.bf16.mxu0 %v9539_v21  ;;  %v9605_v21 = vld [vmem:[%s13289_s3 + $0x8d8] ss:$12 sps:$4 sm:$0xff]  }
 0x147   :  { %8754 = vmatpush3.bf16.msra.mxu1 %v9541_v63  ;;  %v9592_v63 = vld [vmem:[%s13289_s3 + $0xd20] ss:$12 sps:$4 sm:$0xff]  }
 0x148   :  { %8755 = vmatprep.subr.bf16.mxu1 %v9545_v0  ;;  %v9601_v0 = vld [vmem:[%s13289_s3 + $0x800] ss:$12 sps:$4 sm:$0xff]  }
 0x149   :  { %6302 = vmatpush1.bf16.msra.mxu0 %v9537_v15  ;;  %v9597_v15 = vld [vmem:[%s13289_s3 + $0xd38] ss:$12 sps:$4 sm:$0xff]  }
 0x14a   :  { %6303 = vmatprep.subr.bf16.mxu0 %v9544_v19  ;;  %v9610_v19 = vld [vmem:[%s13289_s3 + $0x8f0] ss:$12 sps:$4 sm:$0xff]  }
 0x14b   :  { %8756 = vmatpush3.bf16.msra.mxu1 %v9546_v42  ;;  %v9599_v42 = vld [vmem:[%s13289_s3 + $0xd3c] ss:$12 sps:$4 sm:$0xff]  }
 0x14c   :  { %8757 = vmatprep.subr.bf16.mxu1 %v9550_v9  ;;  %v9606_v9 = vld [vmem:[%s13289_s3 + $0x818] ss:$12 sps:$4 sm:$0xff]  }
 0x14d   :  { %6304 = vmatpush1.bf16.msra.mxu0 %v9542_v4  ;;  %v9604_v4 = vld [vmem:[%s13289_s3 + $0xd54] ss:$12 sps:$4 sm:$0xff]  }
 0x14e   :  { %6305 = vmatprep.subr.bf16.mxu0 %v9549_v8  ;;  %v9611_v8 = vld [vmem:[%s13289_s3 + $0x830] ss:$12 sps:$4 sm:$0xff]  }
 0x14f   :  { %8758 = vmatpush3.bf16.msra.mxu1 %v9551_v5  ;;  %v702_v5 = vcombine.high %v11459_v40, %v11459_v40  ;;  %v9609_v40 = vld [vmem:[%s13289_s3 + $0xd6c] ss:$12 sps:$4 sm:$0xff]  }
 0x150   :  { %8759 = vmatprep.subr.bf16.mxu1 %v9555_v6  ;;  %v9602_v6 = vld [vmem:[%s13289_s3 + $0xd50] ss:$12 sps:$4 sm:$0xff]  }
 0x151   :  { %6306 = vmatpush1.bf16.msra.mxu0 %v9547_v7  ;;  %v9615_v7 = vld [vmem:[%s13289_s3 + $0x9c8] ss:$12 sps:$4 sm:$0xff]  }
 0x152   :  { %6307 = vmatprep.subr.bf16.mxu0 %v9554_v17  ;;  %v9616_v17 = vld [vmem:[%s13289_s3 + $0x908] ss:$12 sps:$4 sm:$0xff]  }
 0x153   :  { %8760 = vmatpush3.bf16.msra.mxu1 %v9556_v10  ;;  %v11686_v10 = vrot.slane %v702_v5, %v10433_v59 }
 0x154   :  { %8761 = vmatprep.subr.bf16.mxu1 %v9560_v12  ;;  %v9607_v12 = vld [vmem:[%s13289_s3 + $0xd68] ss:$12 sps:$4 sm:$0xff]  }
 0x155   :  { %6308 = vmatpush1.bf16.msra.mxu0 %v9552_v13  ;;  %v9620_v13 = vld [vmem:[%s13289_s3 + $0x9e0] ss:$12 sps:$4 sm:$0xff]  }
 0x156   :  { %6309 = vmatprep.subr.bf16.mxu0 %v9559_v22  ;;  %v11705_v22 = vpack.c.bf16 %v11475_v47, %v11475_v47  ;;  %v9619_v47 = vld [vmem:[%s13289_s3 + $0xd9c] ss:$12 sps:$4 sm:$0xff]  }
 0x157   :  { %8762 = vmatpush3.bf16.msra.mxu1 %v9561_v20  ;;  %v9614_v20 = vld [vmem:[%s13289_s3 + $0xd84] ss:$12 sps:$4 sm:$0xff]  }
 0x158   :  { %8763 = vmatprep.subr.bf16.mxu1 %v9565_v18  ;;  %v718_v18 = vcombine.high %v11686_v10, %v11686_v10 }
 0x159   :  { %6310 = vmatpush1.bf16.msra.mxu0 %v9557_v26  ;;  %v9621_v26 = vld [vmem:[%s13289_s3 + $0x920] ss:$12 sps:$4 sm:$0xff]  }
 0x15a   :  { %6311 = vmatprep.subr.bf16.mxu0 %v9564_v1  ;;  %v9626_v1 = vld [vmem:[%s13289_s3 + $0x938] ss:$12 sps:$4 sm:$0xff]  }
 0x15b   :  { %8764 = vmatpush3.bf16.msra.mxu1 %v9566_v27  ;;  %v9612_v27 = vld [vmem:[%s13289_s3 + $0xd80] ss:$12 sps:$4 sm:$0xff]  }
 0x15c   :  { %8765 = vmatprep.subr.bf16.mxu1 %v9570_v28  ;;  %v11720_v28 = vpack.c.bf16 %v718_v18, %v718_v18 }
 0x15d   :  { %6312 = vmatpush1.bf16.msra.mxu0 %v9562_v31  ;;  %v9624_v31 = vld [vmem:[%s13289_s3 + $0xdb4] ss:$12 sps:$4 sm:$0xff]  }
 0x15e   :  { %6313 = vmatprep.subr.bf16.mxu0 %v9569_v33  ;;  %v9631_v33 = vld [vmem:[%s13289_s3 + $0x950] ss:$12 sps:$4 sm:$0xff]  }
 0x15f   :  { %8766 = vmatpush3.bf16.msra.mxu1 %v9571_v30  ;;  %v9630_v30 = vld [vmem:[%s13289_s3 + $0xa10] ss:$12 sps:$4 sm:$0xff]  }
 0x160   :  { %8773 = vmatprep.subr.bf16.mxu1 %v9575_v32  ;;  %v9622_v32 = vld [vmem:[%s13289_s3 + $0xdb0] ss:$12 sps:$4 sm:$0xff]  }
 0x161   :  { %6314 = vmatpush1.bf16.msra.mxu0 %v9567_v11  ;;  %v9635_v11 = vld [vmem:[%s13289_s3 + $0xa28] ss:$12 sps:$4 sm:$0xff]  }
 0x162   :  { %6820 = vmatmul.mubr.bf16.vlgmr.msra.gmra.mrb[20].mxu1 %v10816_v25  ;;  %6315 = vmatprep.subr.bf16.mxu0 %v9574_v36  ;;  %v9579_v25 = vld [vmem:[%s13289_s3 + $0xcdc] ss:$12 sps:$4 sm:$0xff]  }
 0x163   :  { %8774 = vmatpush3.bf16.msra.mxu1 %v9576_v34  ;;  %6859 = vmatprep.mubr.bf16.mxu1 %v10828_v29  ;;  %v9586_v29 = vld [vmem:[%s13289_s3 + $0x7b8] ss:$12 sps:$4 sm:$0xff]   ;;  %v9636_v36 = vld [vmem:[%s13289_s3 + $0x968] ss:$12 sps:$4 sm:$0xff]  }
 0x164   :  { %8775 = vmatprep.subr.bf16.mxu1 %v9580_v35  ;;  %v9629_v34 = vld [vmem:[%s13289_s3 + $0xdcc] ss:$12 sps:$4 sm:$0xff]   ;;  %v9627_v35 = vld [vmem:[%s13289_s3 + $0xdc8] ss:$12 sps:$4 sm:$0xff]  }
 0x165   :  { %6316 = vmatpush1.bf16.msra.mxu0 %v9572_v45  ;;  %v9640_v45 = vld [vmem:[%s13289_s3 + $0xa40] ss:$12 sps:$4 sm:$0xff]  }
 0x166   :  { %6317 = vmatprep.subr.bf16.mxu0 %v9579_v25  ;;  %v9641_v25 = vld [vmem:[%s13289_s3 + $0x980] ss:$12 sps:$4 sm:$0xff]  }
 0x167   :  { %8776 = vmatpush3.bf16.msra.mxu1 %v9581_v37  ;;  %v9634_v37 = vld [vmem:[%s13289_s3 + $0xde4] ss:$12 sps:$4 sm:$0xff]  }
 0x168   :  { %8777 = vmatprep.subr.bf16.mxu1 %v9585_v38  ;;  %v9632_v38 = vld [vmem:[%s13289_s3 + $0xde0] ss:$12 sps:$4 sm:$0xff]  }
 0x169   :  { %6318 = vmatpush1.bf16.msra.mxu0 %v9577_v39  ;;  %v9645_v39 = vld [vmem:[%s13289_s3 + $0xa58] ss:$12 sps:$4 sm:$0xff]  }
 0x16a   :  { %6319 = vmatprep.subr.bf16.mxu0 %v9584_v43  ;;  %v9637_v43 = vld [vmem:[%s13289_s3 + $0xdf8] ss:$12 sps:$4 sm:$0xff]  }
 0x16b   :  { %8778 = vmatpush3.bf16.msra.mxu1 %v9586_v29  ;;  %v9639_v29 = vld [vmem:[%s13289_s3 + $0xdfc] ss:$12 sps:$4 sm:$0xff]  }
 0x16c   :  { %8779 = vmatprep.subr.bf16.mxu1 %v9590_v41 }
 0x16d   :  { %6320 = vmatpush1.bf16.msra.mxu0 %v9582_v24 }
 0x16e   :  { %6321 = vmatprep.subr.bf16.mxu0 %v9589_v50  ;;  %v9650_v50 = vld [vmem:[%s13289_s3 + $0xa70] ss:$12 sps:$4 sm:$0xff]  }
 0x16f   :  { %8780 = vmatpush3.bf16.msra.mxu1 %v9591_v46  ;;  %v9646_v46 = vld [vmem:[%s13289_s3 + $0x998] ss:$12 sps:$4 sm:$0xff]  }
 0x170   :  { %8781 = vmatprep.subr.bf16.mxu1 %v9595_v16 }
 0x171   :  { %6322 = vmatpush1.bf16.msra.mxu0 %v9587_v23  ;;  %v9644_v23 = vld [vmem:[%s13289_s3 + $0xe14] ss:$12 sps:$4 sm:$0xff]  }
 0x172   :  { %6323 = vmatprep.subr.bf16.mxu0 %v9594_v57  ;;  %v9642_v57 = vld [vmem:[%s13289_s3 + $0xe10] ss:$12 sps:$4 sm:$0xff]  }
 0x173   :  { %8782 = vmatpush3.bf16.msra.mxu1 %v9596_v53 }
 0x174   :  { %8783 = vmatprep.subr.bf16.mxu1 %v9600_v55  ;;  %v9651_v55 = vld [vmem:[%s13289_s3 + $0x9b0] ss:$12 sps:$4 sm:$0xff]  }
 0x175   :  { %6324 = vmatpush1.bf16.msra.mxu0 %v9592_v63  ;;  %v9655_v63 = vld [vmem:[%s13289_s3 + $0xb48] ss:$12 sps:$4 sm:$0xff]  }
 0x176   :  { %6325 = vmatprep.subr.bf16.mxu0 %v9599_v42  ;;  %v9656_v42 = vld [vmem:[%s13289_s3 + $0xa88] ss:$12 sps:$4 sm:$0xff]  }
 0x177   :  { %8784 = vmatpush3.bf16.msra.mxu1 %v9601_v0  ;;  %v9649_v0 = vld [vmem:[%s13289_s3 + $0xe2c] ss:$12 sps:$4 sm:$0xff]  }
 0x178   :  { %8785 = vmatprep.subr.bf16.mxu1 %v9605_v21  ;;  %v9647_v21 = vld [vmem:[%s13289_s3 + $0xe28] ss:$12 sps:$4 sm:$0xff]  }
 0x179   :  { %6326 = vmatpush1.bf16.msra.mxu0 %v9597_v15  ;;  %v10196_v15 = vld [vmem:[%s13287_s1 + $0x10] sm:$0xff] }
 0x17a   :  { %6327 = vmatprep.subr.bf16.mxu0 %v9604_v4  ;;  %v137_v4 = vrot.slane %v10196_v15, %v10435_v60  ;;  %v141_v5 = vrot.slane %v10196_v15, %v10437_v61 }
 0x17b   :  { %8786 = vmatpush3.bf16.msra.mxu1 %v9606_v9  ;;  %v133_v9 = vrot.slane %v10196_v15, %v10425_v56 }
 0x17c   :  { %8787 = vmatprep.subr.bf16.mxu1 %v9610_v19  ;;  %v9660_v19 = vld [vmem:[%s13289_s3 + $0xb60] ss:$12 sps:$4 sm:$0xff]  }
 0x17d   :  { %6328 = vmatpush1.bf16.msra.mxu0 %v9602_v6  ;;  %v145_v6 = vrot.slane %v10196_v15, %v10448_v3  ;;  %v9684_v15 = vld [vmem:[%s13289_s3 + $0xed4] ss:$12 sps:$4 sm:$0xff]  }
 0x17e   :  { %6329 = vmatprep.subr.bf16.mxu0 %v9609_v40  ;;  %v9661_v40 = vld [vmem:[%s13289_s3 + $0xaa0] ss:$12 sps:$4 sm:$0xff]  }
 0x17f   :  { %8788 = vmatpush3.bf16.msra.mxu1 %v9611_v8  ;;  %v9654_v8 = vld [vmem:[%s13289_s3 + $0xe44] ss:$12 sps:$4 sm:$0xff]  }
 0x180   :  { %8795 = vmatprep.subr.bf16.mxu1 %v9615_v7  ;;  %v9652_v7 = vld [vmem:[%s13289_s3 + $0xe40] ss:$12 sps:$4 sm:$0xff]  }
 0x181   :  { %6330 = vmatpush1.bf16.msra.mxu0 %v9607_v12  ;;  %v9665_v12 = vld [vmem:[%s13289_s3 + $0xb78] ss:$12 sps:$4 sm:$0xff]  }
 0x182   :  { %6860 = vmatmul.mubr.bf16.vlgmr.msra.gmra.mrb[24].mxu1 %v11053_v44  ;;  %v9625_v44 = vld [vmem:[%s13289_s3 + $0x9f8] ss:$12 sps:$4 sm:$0xff]   ;;  %6340 = vmatprep.subr.bf16.mxu0 %v9614_v20  ;;  %v10197_v20 = vld [vmem:[%s13288_s2 + $0x10] sm:$0xff] }
 0x183   :  { %8796 = vmatpush3.bf16.msra.mxu1 %v9616_v17  ;;  %6899 = vmatprep.mubr.bf16.mxu1 %v11065_v14  ;;  %v9617_v14 = vld [vmem:[%s13289_s3 + $0xd98] ss:$12 sps:$4 sm:$0xff]   ;;  %v263_v17 = vcombine.low %v133_v9, %v137_v4  ;;  %v421_v18 = vrot.slane %v10197_v20, %v10425_v56  ;;  %v9691_v4 = vld [vmem:[%s13289_s3 + $0xb30] ss:$12 sps:$4 sm:$0xff]  }
 0x184   :  { %8797 = vmatprep.subr.bf16.mxu1 %v9620_v13  ;;  %6332 = vmatmul.mubr.bf16.vlgmr.msra.gmra.mrb[0].mxu0 %v11705_v22  ;;  %v264_v13 = vcombine.low %v141_v5, %v145_v6  ;;  %v9695_v5 = vld [vmem:[%s13289_s3 + $0xcc8] ss:$12 sps:$4 sm:$0xff]   ;;  %v9689_v6 = vld [vmem:[%s13289_s3 + $0xeec] ss:$12 sps:$4 sm:$0xff]  }
 0x185   :  { %6341 = vmatpush1.bf16.msra.mxu0 %v9612_v27  ;;  %6372 = vmatprep.mubr.bf16.mxu0 %v11720_v28  ;;  %v433_v27 = vrot.slane %v10197_v20, %v10448_v3 }
 0x186   :  { %6342 = vmatprep.subr.bf16.mxu0 %v9619_v47  ;;  %v9666_v47 = vld [vmem:[%s13289_s3 + $0xab8] ss:$12 sps:$4 sm:$0xff]  }
 0x187   :  { %8798 = vmatpush3.bf16.msra.mxu1 %v9621_v26  ;;  %v429_v26 = vrot.slane %v10197_v20, %v10437_v61 }
 0x188   :  { %8799 = vmatprep.subr.bf16.mxu1 %v9625_v44  ;;  %v9657_v44 = vld [vmem:[%s13289_s3 + $0xe58] ss:$12 sps:$4 sm:$0xff]  }
 0x189   :  { %6343 = vmatpush1.bf16.msra.mxu0 %v9617_v14  ;;  %v9670_v14 = vld [vmem:[%s13289_s3 + $0xb90] ss:$12 sps:$4 sm:$0xff]  }
 0x18a   :  { %6344 = vmatprep.subr.bf16.mxu0 %v9624_v31  ;;  %v278_v31 = vrot.slane %v264_v13, %v10433_v59 }
 0x18b   :  { %8800 = vmatpush3.bf16.msra.mxu1 %v9626_v1  ;;  %v9664_v1 = vld [vmem:[%s13289_s3 + $0xe74] ss:$12 sps:$4 sm:$0xff]  }
 0x18c   :  { %8801 = vmatprep.subr.bf16.mxu1 %v9630_v30  ;;  %v271_v30 = vrot.slane %v263_v17, %v10433_v59  ;;  %v9694_v17 = vld [vmem:[%s13289_s3 + $0xf04] ss:$12 sps:$4 sm:$0xff]  }
 0x18d   :  { %6345 = vmatpush1.bf16.msra.mxu0 %v9622_v32 }
 0x18e   :  { %6346 = vmatprep.subr.bf16.mxu0 %v9629_v34  ;;  %v9671_v34 = vld [vmem:[%s13289_s3 + $0xad0] ss:$12 sps:$4 sm:$0xff]  }
 0x18f   :  { %8802 = vmatpush3.bf16.msra.mxu1 %v9631_v33  ;;  %v552_v33 = vcombine.low %v429_v26, %v433_v27  ;;  %v9697_v26 = vld [vmem:[%s13289_s3 + $0xf18] ss:$12 sps:$4 sm:$0xff]   ;;  %v9710_v27 = vld [vmem:[%s13289_s3 + $0xd10] ss:$12 sps:$4 sm:$0xff]  }
 0x190   :  { %8803 = vmatprep.subr.bf16.mxu1 %v9635_v11  ;;  %v9662_v11 = vld [vmem:[%s13289_s3 + $0xe70] ss:$12 sps:$4 sm:$0xff]  }
 0x191   :  { %6347 = vmatpush1.bf16.msra.mxu0 %v9627_v35  ;;  %v9675_v35 = vld [vmem:[%s13289_s3 + $0xba8] ss:$12 sps:$4 sm:$0xff]  }
 0x192   :  { %6348 = vmatprep.subr.bf16.mxu0 %v9634_v37 }
 0x193   :  { %8804 = vmatpush3.bf16.msra.mxu1 %v9636_v36  ;;  %v9669_v36 = vld [vmem:[%s13289_s3 + $0xe8c] ss:$12 sps:$4 sm:$0xff]  }
 0x194   :  { %8805 = vmatprep.subr.bf16.mxu1 %v9640_v45  ;;  %v279_v45 = vcombine.low %v271_v30, %v278_v31  ;;  %v9709_v31 = vld [vmem:[%s13289_s3 + $0xf4c] ss:$12 sps:$4 sm:$0xff]  }
 0x195   :  { %v11772_v41 = vpop.f32.mrb[0].mxu1  ;;  %6349 = vmatpush1.bf16.msra.mxu0 %v9632_v38  ;;  %v566_v38 = vrot.slane %v552_v33, %v10433_v59  ;;  %v1858_v33 = vld [vmem:[%s13290_s4] sm:$0x7] }
 0x196   :  { %v11777_v24 = vpop.f32.mrb[1].mxu1  ;;  %6350 = vmatprep.subr.bf16.mxu0 %v9639_v29  ;;  %v9667_v29 = vld [vmem:[%s13289_s3 + $0xe88] ss:$12 sps:$4 sm:$0xff]  }
 0x197   :  { %8806 = vmatpush3.bf16.msra.mxu1 %v9641_v25  ;;  %v6091_v16 = vpop.f32.mrb[2].mxu1  ;;  %v39_v25 = vld [vmem:[%s13286_s0 + $0x28] sm:$0xff] }
 0x198   :  { %8807 = vmatprep.subr.bf16.mxu1 %v9645_v39  ;;  %v6092_v53 = vpop.f32.mrb[3].mxu1  ;;  %v9676_v39 = vld [vmem:[%s13289_s3 + $0xae8] ss:$12 sps:$4 sm:$0xff]   ;;  %v327_v16 = vmul.f32 %v279_v45, %v39_v25  ;;  %v1871_v25 = vrot.slane %v1858_v33, %v10415_v52  ;;  %v9752_v33 = vld [vmem:[%s13289_s3 + $0x1020] ss:$12 sps:$4 sm:$0xff]  }
 0x199   :  { %6351 = vmatpush1.bf16.msra.mxu0 %v9637_v43  ;;  %v9680_v43 = vld [vmem:[%s13289_s3 + $0xbc0] ss:$12 sps:$4 sm:$0xff]   ;;  %v9707_v45 = vld [vmem:[%s13289_s3 + $0xf48] ss:$12 sps:$4 sm:$0xff]  }
 0x19a   :  { %6352 = vmatprep.subr.bf16.mxu0 %v9644_v23  ;;  %v9672_v53 = vld [vmem:[%s13289_s3 + $0xea0] ss:$12 sps:$4 sm:$0xff]  }
 0x19b   :  { %8808 = vmatpush3.bf16.msra.mxu1 %v9646_v46  ;;  %v9674_v46 = vld [vmem:[%s13289_s3 + $0xea4] ss:$12 sps:$4 sm:$0xff]   ;;  %v9681_v23 = vld [vmem:[%s13289_s3 + $0xb00] ss:$12 sps:$4 sm:$0xff]  }
 0x19c   :  { %8809 = vmatprep.subr.bf16.mxu1 %v9650_v50 }
 0x19d   :  { %6353 = vmatpush1.bf16.msra.mxu0 %v9642_v57  ;;  %v9679_v57 = vld [vmem:[%s13289_s3 + $0xebc] ss:$12 sps:$4 sm:$0xff]  }
 0x19e   :  { %6354 = vmatprep.subr.bf16.mxu0 %v9649_v0  ;;  %v9677_v0 = vld [vmem:[%s13289_s3 + $0xeb8] ss:$12 sps:$4 sm:$0xff]  }
 0x19f   :  { %8810 = vmatpush3.bf16.msra.mxu1 %v9651_v55  ;;  %v9685_v55 = vld [vmem:[%s13289_s3 + $0xbd8] ss:$12 sps:$4 sm:$0xff]  }
 0x1a0   :  { %8817 = vmatprep.subr.bf16.mxu1 %v9655_v63 }
 0x1a1   :  { %6355 = vmatpush1.bf16.msra.mxu0 %v9647_v21  ;;  %v9686_v21 = vld [vmem:[%s13289_s3 + $0xb18] ss:$12 sps:$4 sm:$0xff]  }
 0x1a2   :  { %6900 = vmatmul.mubr.bf16.vlgmr.msra.gmra.mrb[28].mxu1 %v11261_v62  ;;  %6356 = vmatprep.subr.bf16.mxu0 %v9654_v8  ;;  %v9659_v62 = vld [vmem:[%s13289_s3 + $0xe5c] ss:$12 sps:$4 sm:$0xff]  }
 0x1a3   :  { %8818 = vmatpush3.bf16.msra.mxu1 %v9656_v42  ;;  %6939 = vmatprep.mubr.bf16.mxu1 %v11276_v2  ;;  %v425_v2 = vrot.slane %v10197_v20, %v10435_v60  ;;  %v9690_v42 = vld [vmem:[%s13289_s3 + $0xbf0] ss:$12 sps:$4 sm:$0xff]   ;;  %v9701_v20 = vld [vmem:[%s13289_s3 + $0xc20] ss:$12 sps:$4 sm:$0xff]  }
 0x1a4   :  { %8819 = vmatprep.subr.bf16.mxu1 %v9660_v19  ;;  %v9682_v19 = vld [vmem:[%s13289_s3 + $0xed0] ss:$12 sps:$4 sm:$0xff]  }
 0x1a5   :  { %6357 = vmatpush1.bf16.msra.mxu0 %v9652_v7  ;;  %v551_v32 = vcombine.low %v421_v18, %v425_v2  ;;  %v9687_v7 = vld [vmem:[%s13289_s3 + $0xee8] ss:$12 sps:$4 sm:$0xff]   ;;  %v9692_v18 = vld [vmem:[%s13289_s3 + $0xf00] ss:$12 sps:$4 sm:$0xff]  }
 0x1a6   :  { %6358 = vmatprep.subr.bf16.mxu0 %v9659_v62  ;;  %v11942_v62 = vpack.c.bf16 %v11686_v10, %v11686_v10  ;;  %v9699_v10 = vld [vmem:[%s13289_s3 + $0xf1c] ss:$12 sps:$4 sm:$0xff]  }
 0x1a7   :  { %8820 = vmatpush3.bf16.msra.mxu1 %v9661_v40  ;;  %v559_v37 = vrot.slane %v551_v32, %v10433_v59  ;;  %v9696_v40 = vld [vmem:[%s13289_s3 + $0xc08] ss:$12 sps:$4 sm:$0xff]  }
 0x1a8   :  { %8821 = vmatprep.subr.bf16.mxu1 %v9665_v12  ;;  %v9700_v12 = vld [vmem:[%s13289_s3 + $0xce0] ss:$12 sps:$4 sm:$0xff]  }
 0x1a9   :  { %6359 = vmatpush1.bf16.msra.mxu0 %v9657_v44  ;;  %v567_v50 = vcombine.low %v559_v37, %v566_v38  ;;  %v9704_v44 = vld [vmem:[%s13289_s3 + $0xf34] ss:$12 sps:$4 sm:$0xff]   ;;  %v9714_v38 = vld [vmem:[%s13289_s3 + $0xf64] ss:$12 sps:$4 sm:$0xff]  }
 0x1aa   :  { %6360 = vmatprep.subr.bf16.mxu0 %v9664_v1  ;;  %v9715_v1 = vld [vmem:[%s13289_s3 + $0xd28] ss:$12 sps:$4 sm:$0xff]   ;;  %v9720_v37 = vld [vmem:[%s13289_s3 + $0xd40] ss:$12 sps:$4 sm:$0xff]  }
 0x1ab   :  { %8822 = vmatpush3.bf16.msra.mxu1 %v9666_v47  ;;  %v615_v63 = vadd.f32 %v567_v50, %v327_v16  ;;  %v9711_v47 = vld [vmem:[%s13289_s3 + $0xc50] ss:$12 sps:$4 sm:$0xff]  }
 0x1ac   :  { %8823 = vmatprep.subr.bf16.mxu1 %v9670_v14  ;;  %v9702_v14 = vld [vmem:[%s13289_s3 + $0xf30] ss:$12 sps:$4 sm:$0xff]  }
 0x1ad   :  { %6361 = vmatpush1.bf16.msra.mxu0 %v9662_v11  ;;  %v11907_v9 = vmax.f32 %v615_v63, 0.0  ;;  %v9716_v11 = vld [vmem:[%s13289_s3 + $0xc68] ss:$12 sps:$4 sm:$0xff]   ;;  %v9717_v63 = vld [vmem:[%s13289_s3 + $0xf78] ss:$12 sps:$4 sm:$0xff]  }
 0x1ae   :  { %6362 = vmatprep.subr.bf16.mxu0 %v9669_v36 }
 0x1af   :  { %8824 = vmatpush3.bf16.msra.mxu1 %v9671_v34  ;;  %v11923_v8 = vrot.slane %v11907_v9, %v10433_v59 }
 0x1b0   :  { %8825 = vmatprep.subr.bf16.mxu1 %v9675_v35 }
 0x1b1   :  { %6363 = vmatpush1.bf16.msra.mxu0 %v9667_v29  ;;  %v734_v13 = vcombine.high %v11923_v8, %v11923_v8  ;;  %v9712_v29 = vld [vmem:[%s13289_s3 + $0xf60] ss:$12 sps:$4 sm:$0xff]  }
 0x1b2   :  { %6364 = vmatprep.subr.bf16.mxu0 %v9674_v46  ;;  %v9719_v46 = vld [vmem:[%s13289_s3 + $0xf7c] ss:$12 sps:$4 sm:$0xff]  }
 0x1b3   :  { %8826 = vmatpush3.bf16.msra.mxu1 %v9676_v39  ;;  %v11957_v2 = vpack.c.bf16 %v734_v13, %v734_v13  ;;  %v9721_v39 = vld [vmem:[%s13289_s3 + $0xc80] ss:$12 sps:$4 sm:$0xff]  }
 0x1b4   :  { %8827 = vmatprep.subr.bf16.mxu1 %v9680_v43  ;;  %v9725_v43 = vld [vmem:[%s13289_s3 + $0xd58] ss:$12 sps:$4 sm:$0xff]   ;;  %v9741_v13 = vld [vmem:[%s13289_s3 + $0xda0] ss:$12 sps:$4 sm:$0xff]  }
 0x1b5   :  { %6365 = vmatpush1.bf16.msra.mxu0 %v9672_v53  ;;  %v8679_v30 = vpop.f32.mrb[4].mxu1  ;;  %v9726_v53 = vld [vmem:[%s13289_s3 + $0xc98] ss:$12 sps:$4 sm:$0xff]  }
 0x1b6   :  { %6366 = vmatprep.subr.bf16.mxu0 %v9679_v57  ;;  %v8680_v32 = vpop.f32.mrb[5].mxu1 }
 0x1b7   :  { %8828 = vmatpush3.bf16.msra.mxu1 %v9681_v23  ;;  %v8681_v34 = vadd.f32 %v8680_v32, %v8679_v30  ;;  %v8682_v35 = vpop.f32.mrb[6].mxu1  ;;  %v9760_v30 = vld [vmem:[%s13289_s3 + $0xec0] ss:$12 sps:$4 sm:$0xff]  }
 0x1b8   :  { %8829 = vmatprep.subr.bf16.mxu1 %v9685_v55  ;;  %v8683_v36 = vpop.f32.mrb[7].mxu1  ;;  %v9761_v32 = vld [vmem:[%s13289_s3 + $0xe00] ss:$12 sps:$4 sm:$0xff]  }
 0x1b9   :  { %6367 = vmatpush1.bf16.msra.mxu0 %v9677_v0  ;;  %v6662_v16 = vadd.f32 %v8681_v34, %v1871_v25  ;;  %v9730_v0 = vld [vmem:[%s13289_s3 + $0xd70] ss:$12 sps:$4 sm:$0xff]   ;;  %v9766_v36 = vld [vmem:[%s13289_s3 + $0xe18] ss:$12 sps:$4 sm:$0xff]  }
 0x1ba   :  { %6368 = vmatprep.subr.bf16.mxu0 %v9684_v15  ;;  %v9759_v34 = vld [vmem:[%s13289_s3 + $0x103c] ss:$12 sps:$4 sm:$0xff]   ;;  %v9757_v25 = vld [vmem:[%s13289_s3 + $0x1038] ss:$12 sps:$4 sm:$0xff]  }
 0x1bb   :  { %8830 = vmatpush3.bf16.msra.mxu1 %v9686_v21 }
 0x1bc   :  { %8831 = vmatprep.subr.bf16.mxu1 %v9690_v42  ;;  %v9724_v42 = vld [vmem:[%s13289_s3 + $0xf94] ss:$12 sps:$4 sm:$0xff]  }
 0x1bd   :  { %6369 = vmatpush1.bf16.msra.mxu0 %v9682_v19  ;;  %v9731_v19 = vld [vmem:[%s13289_s3 + $0xcb0] ss:$12 sps:$4 sm:$0xff]  }
 0x1be   :  { %6370 = vmatprep.subr.bf16.mxu0 %v9689_v6  ;;  %v9729_v6 = vld [vmem:[%s13289_s3 + $0xfac] ss:$12 sps:$4 sm:$0xff]  }
 0x1bf   :  { %8832 = vmatpush3.bf16.msra.mxu1 %v9691_v4  ;;  %v9722_v4 = vld [vmem:[%s13289_s3 + $0xf90] ss:$12 sps:$4 sm:$0xff]  }
 0x1c0   :  { %8839 = vmatprep.subr.bf16.mxu1 %v9695_v5  ;;  %v9735_v5 = vld [vmem:[%s13289_s3 + $0xe48] ss:$12 sps:$4 sm:$0xff]  }
 0x1c1   :  { %6371 = vmatpush1.bf16.msra.mxu0 %v9687_v7  ;;  %v9736_v7 = vld [vmem:[%s13289_s3 + $0xd88] ss:$12 sps:$4 sm:$0xff]  }
 0x1c2   :  { %6940 = vmatmul.mubr.bf16.vlgmr.msra.gmra.mrb[32].mxu1 %v11497_v58  ;;  %v9705_v58 = vld [vmem:[%s13289_s3 + $0xcf8] ss:$12 sps:$4 sm:$0xff]   ;;  %6381 = vmatprep.subr.bf16.mxu0 %v9694_v17 }
 0x1c3   :  { %8840 = vmatpush3.bf16.msra.mxu1 %v9696_v40  ;;  %6979 = vmatprep.mubr.bf16.mxu1 %v11509_v49  ;;  %v9706_v49 = vld [vmem:[%s13289_s3 + $0xc38] ss:$12 sps:$4 sm:$0xff]   ;;  %v9727_v40 = vld [vmem:[%s13289_s3 + $0xfa8] ss:$12 sps:$4 sm:$0xff]  }
 0x1c4   :  { %8841 = vmatprep.subr.bf16.mxu1 %v9700_v12  ;;  %6373 = vmatmul.mubr.bf16.vlgmr.msra.gmra.mrb[0].mxu0 %v11942_v62  ;;  %v9740_v12 = vld [vmem:[%s13289_s3 + $0xe60] ss:$12 sps:$4 sm:$0xff]   ;;  %v9734_v17 = vld [vmem:[%s13289_s3 + $0xfc4] ss:$12 sps:$4 sm:$0xff]  }
 0x1c5   :  { %6382 = vmatpush1.bf16.msra.mxu0 %v9692_v18  ;;  %6413 = vmatprep.mubr.bf16.mxu0 %v11957_v2  ;;  %v9745_v18 = vld [vmem:[%s13289_s3 + $0xe78] ss:$12 sps:$4 sm:$0xff]  }
 0x1c6   :  { %6383 = vmatprep.subr.bf16.mxu0 %v9699_v10  ;;  %v9750_v10 = vld [vmem:[%s13289_s3 + $0xe90] ss:$12 sps:$4 sm:$0xff]  }
 0x1c7   :  { %8842 = vmatpush3.bf16.msra.mxu1 %v9701_v20  ;;  %v9732_v20 = vld [vmem:[%s13289_s3 + $0xfc0] ss:$12 sps:$4 sm:$0xff]  }
 0x1c8   :  { %8843 = vmatprep.subr.bf16.mxu1 %v9705_v58  ;;  %v9746_v58 = vld [vmem:[%s13289_s3 + $0xdb8] ss:$12 sps:$4 sm:$0xff]  }
 0x1c9   :  { %6384 = vmatpush1.bf16.msra.mxu0 %v9697_v26  ;;  %v9751_v26 = vld [vmem:[%s13289_s3 + $0xdd0] ss:$12 sps:$4 sm:$0xff]  }
 0x1ca   :  { %6385 = vmatprep.subr.bf16.mxu0 %v9704_v44  ;;  %v9755_v44 = vld [vmem:[%s13289_s3 + $0xea8] ss:$12 sps:$4 sm:$0xff]  }
 0x1cb   :  { %8844 = vmatpush3.bf16.msra.mxu1 %v9706_v49  ;;  %v9744_v49 = vld [vmem:[%s13289_s3 + $0xff4] ss:$12 sps:$4 sm:$0xff]  }
 0x1cc   :  { %8845 = vmatprep.subr.bf16.mxu1 %v9710_v27  ;;  %v9742_v27 = vld [vmem:[%s13289_s3 + $0xff0] ss:$12 sps:$4 sm:$0xff]  }
 0x1cd   :  { %6386 = vmatpush1.bf16.msra.mxu0 %v9702_v14  ;;  %v9756_v14 = vld [vmem:[%s13289_s3 + $0xde8] ss:$12 sps:$4 sm:$0xff]  }
 0x1ce   :  { %6387 = vmatprep.subr.bf16.mxu0 %v9709_v31  ;;  %v9754_v31 = vld [vmem:[%s13289_s3 + $0x1024] ss:$12 sps:$4 sm:$0xff]  }
 0x1cf   :  { %8846 = vmatpush3.bf16.msra.mxu1 %v9711_v47  ;;  %v9749_v47 = vld [vmem:[%s13289_s3 + $0x100c] ss:$12 sps:$4 sm:$0xff]  }
 0x1d0   :  { %8847 = vmatprep.subr.bf16.mxu1 %v9715_v1  ;;  %v9747_v1 = vld [vmem:[%s13289_s3 + $0x1008] ss:$12 sps:$4 sm:$0xff]  }
 0x1d1   :  { %6388 = vmatpush1.bf16.msra.mxu0 %v9707_v45 }
 0x1d2   :  { %6389 = vmatprep.subr.bf16.mxu0 %v9714_v38 }
 0x1d3   :  { %8848 = vmatpush3.bf16.msra.mxu1 %v9716_v11  ;;  %v9765_v11 = vld [vmem:[%s13289_s3 + $0xed8] ss:$12 sps:$4 sm:$0xff]  }
 0x1d4   :  { %8849 = vmatprep.subr.bf16.mxu1 %v9720_v37 }
 0x1d5   :  { %v8701_v50 = vpop.f32.mrb[8].mxu1  ;;  %6390 = vmatpush1.bf16.msra.mxu0 %v9712_v29 }
 0x1d6   :  { %v8702_v23 = vpop.f32.mrb[9].mxu1  ;;  %6391 = vmatprep.subr.bf16.mxu0 %v9719_v46  ;;  %v719_v46 = vcombine.high %v11907_v9, %v11907_v9  ;;  %v9769_v9 = vld [vmem:[%s13289_s3 + $0x106c] ss:$12 sps:$4 sm:$0xff]  }
 0x1d7   :  { %8850 = vmatpush3.bf16.msra.mxu1 %v9721_v39  ;;  %v8703_v55 = vadd.f32 %v8702_v23, %v8701_v50  ;;  %v8704_v57 = vpop.f32.mrb[10].mxu1  ;;  %v9770_v39 = vld [vmem:[%s13289_s3 + $0xef0] ss:$12 sps:$4 sm:$0xff]   ;;  %v9775_v23 = vld [vmem:[%s13289_s3 + $0xfc8] ss:$12 sps:$4 sm:$0xff]  }
 0x1d8   :  { %8851 = vmatprep.subr.bf16.mxu1 %v9725_v43  ;;  %v8705_v21 = vpop.f32.mrb[11].mxu1  ;;  %v9764_v43 = vld [vmem:[%s13289_s3 + $0x1054] ss:$12 sps:$4 sm:$0xff]   ;;  %v9771_v50 = vld [vmem:[%s13289_s3 + $0xe30] ss:$12 sps:$4 sm:$0xff]  }
 0x1d9   :  { %v12025_v15 = vadd.f32 %v8703_v55, %v6662_v16  ;;  %6392 = vmatpush1.bf16.msra.mxu0 %v9717_v63  ;;  %v12143_v55 = vrot.slane %v719_v46, %v10433_v59  ;;  %v9776_v57 = vld [vmem:[%s13289_s3 + $0xf08] ss:$12 sps:$4 sm:$0xff]   ;;  %v9774_v21 = vld [vmem:[%s13289_s3 + $0x1084] ss:$12 sps:$4 sm:$0xff]  }
 0x1da   :  { %6393 = vmatprep.subr.bf16.mxu0 %v9724_v42  ;;  %v9767_v63 = vld [vmem:[%s13289_s3 + $0x1068] ss:$12 sps:$4 sm:$0xff]  }
 0x1db   :  { %8852 = vmatpush3.bf16.msra.mxu1 %v9726_v53  ;;  %v9762_v53 = vld [vmem:[%s13289_s3 + $0x1050] ss:$12 sps:$4 sm:$0xff]   ;;  %v735_v42 = vcombine.high %v12143_v55, %v12143_v55 }
 0x1dc   :  { %8853 = vmatprep.subr.bf16.mxu1 %v9730_v0  ;;  %v9780_v0 = vld [vmem:[%s13289_s3 + $0xfe0] ss:$12 sps:$4 sm:$0xff]  }
 0x1dd   :  { %6394 = vmatpush1.bf16.msra.mxu0 %v9722_v4  ;;  %v9772_v4 = vld [vmem:[%s13289_s3 + $0x1080] ss:$12 sps:$4 sm:$0xff]  }
 0x1de   :  { %6395 = vmatprep.subr.bf16.mxu0 %v9729_v6  ;;  %v9777_v6 = vld [vmem:[%s13289_s3 + $0x1098] ss:$12 sps:$4 sm:$0xff]  }
 0x1df   :  { %8854 = vmatpush3.bf16.msra.mxu1 %v9731_v19  ;;  %v12165_v19 = vpack.c.bf16 %v11923_v8, %v11923_v8  ;;  %v12177_v8 = vpack.c.bf16 %v735_v42, %v735_v42 }
 0x1e0   :  { %8861 = vmatprep.subr.bf16.mxu1 %v9735_v5  ;;  %v9779_v5 = vld [vmem:[%s13289_s3 + $0x109c] ss:$12 sps:$4 sm:$0xff]  }
 0x1e1   :  { %6396 = vmatpush1.bf16.msra.mxu0 %v9727_v40  ;;  %v9784_v40 = vld [vmem:[%s13289_s3 + $0x10b4] ss:$12 sps:$4 sm:$0xff]  }
 0x1e2   :  { %6980 = vmatmul.mubr.bf16.vlgmr.msra.gmra.mrb[36].mxu1 %v11705_v22  ;;  %6397 = vmatprep.subr.bf16.mxu0 %v9734_v17  ;;  %v9739_v22 = vld [vmem:[%s13289_s3 + $0xfdc] ss:$12 sps:$4 sm:$0xff]  }
 0x1e3   :  { %8862 = vmatpush3.bf16.msra.mxu1 %v9736_v7  ;;  %7019 = vmatprep.mubr.bf16.mxu1 %v11720_v28  ;;  %v9737_v28 = vld [vmem:[%s13289_s3 + $0xfd8] ss:$12 sps:$4 sm:$0xff]   ;;  %v9790_v7 = vld [vmem:[%s13289_s3 + $0x1010] ss:$12 sps:$4 sm:$0xff]  }
 0x1e4   :  { %8863 = vmatprep.subr.bf16.mxu1 %v9740_v12  ;;  %v9791_v12 = vld [vmem:[%s13289_s3 + $0xf50] ss:$12 sps:$4 sm:$0xff]  }
 0x1e5   :  { %6398 = vmatpush1.bf16.msra.mxu0 %v9732_v20  ;;  %v9782_v17 = vld [vmem:[%s13289_s3 + $0x10b0] ss:$12 sps:$4 sm:$0xff]   ;;  %v9789_v20 = vld [vmem:[%s13289_s3 + $0x10cc] ss:$12 sps:$4 sm:$0xff]  }
 0x1e6   :  { %6399 = vmatprep.subr.bf16.mxu0 %v9739_v22  ;;  %v9796_v22 = vld [vmem:[%s13289_s3 + $0xf68] ss:$12 sps:$4 sm:$0xff]  }
 0x1e7   :  { %8864 = vmatpush3.bf16.msra.mxu1 %v9741_v13  ;;  %v9795_v13 = vld [vmem:[%s13289_s3 + $0x1028] ss:$12 sps:$4 sm:$0xff]  }
 0x1e8   :  { %8865 = vmatprep.subr.bf16.mxu1 %v9745_v18  ;;  %v9787_v18 = vld [vmem:[%s13289_s3 + $0x10c8] ss:$12 sps:$4 sm:$0xff]  }
 0x1e9   :  { %6400 = vmatpush1.bf16.msra.mxu0 %v9737_v28  ;;  %v9800_v28 = vld [vmem:[%s13289_s3 + $0x1040] ss:$12 sps:$4 sm:$0xff]  }
 0x1ea   :  { %6401 = vmatprep.subr.bf16.mxu0 %v9744_v49  ;;  %v45_v49 = vld [vmem:[%s13287_s1 + $0x18] sm:$0xff] }
 0x1eb   :  { %8866 = vmatpush3.bf16.msra.mxu1 %v9746_v58  ;;  %v9794_v58 = vld [vmem:[%s13289_s3 + $0x10e4] ss:$12 sps:$4 sm:$0xff]  }
 0x1ec   :  { %8867 = vmatprep.subr.bf16.mxu1 %v9750_v10  ;;  %v9801_v10 = vld [vmem:[%s13289_s3 + $0xf80] ss:$12 sps:$4 sm:$0xff]  }
 0x1ed   :  { %6402 = vmatpush1.bf16.msra.mxu0 %v9742_v27  ;;  %v165_v27 = vrot.slane %v45_v49, %v10425_v56 }
 0x1ee   :  { %6403 = vmatprep.subr.bf16.mxu0 %v9749_v47  ;;  %v173_v47 = vrot.slane %v45_v49, %v10437_v61 }
 0x1ef   :  { %8868 = vmatpush3.bf16.msra.mxu1 %v9751_v26  ;;  %v12226_v26 = vld [vmem:[%s13288_s2 + $0x18] sm:$0xff] }
 0x1f0   :  { %8869 = vmatprep.subr.bf16.mxu1 %v9755_v44  ;;  %v169_v44 = vrot.slane %v45_v49, %v10435_v60 }
 0x1f1   :  { %6404 = vmatpush1.bf16.msra.mxu0 %v9747_v1  ;;  %v9792_v1 = vld [vmem:[%s13289_s3 + $0x10e0] ss:$12 sps:$4 sm:$0xff]  }
 0x1f2   :  { %6405 = vmatprep.subr.bf16.mxu0 %v9754_v31  ;;  %v297_v31 = vcombine.low %v165_v27, %v169_v44  ;;  %v9812_v44 = vld [vmem:[%s13289_s3 + $0x1140] ss:$12 sps:$4 sm:$0xff]  }
 0x1f3   :  { %8870 = vmatpush3.bf16.msra.mxu1 %v9756_v14  ;;  %v177_v14 = vrot.slane %v45_v49, %v10448_v3 }
 0x1f4   :  { %8871 = vmatprep.subr.bf16.mxu1 %v9760_v30  ;;  %v9805_v30 = vld [vmem:[%s13289_s3 + $0x1058] ss:$12 sps:$4 sm:$0xff]  }
 0x1f5   :  { %v8723_v35 = vpop.f32.mrb[12].mxu1  ;;  %6406 = vmatpush1.bf16.msra.mxu0 %v9752_v33  ;;  %v453_v33 = vrot.slane %v12226_v26, %v10425_v56 }
 0x1f6   :  { %v8724_v45 = vpop.f32.mrb[13].mxu1  ;;  %6407 = vmatprep.subr.bf16.mxu0 %v9759_v34 }
 0x1f7   :  { %8872 = vmatpush3.bf16.msra.mxu1 %v9761_v32  ;;  %v8725_v37 = vadd.f32 %v8724_v45, %v8723_v35  ;;  %v8726_v38 = vpop.f32.mrb[14].mxu1  ;;  %v298_v32 = vcombine.low %v173_v47, %v177_v14  ;;  %v457_v35 = vrot.slane %v12226_v26, %v10435_v60  ;;  %v465_v45 = vrot.slane %v12226_v26, %v10448_v3  ;;  %v9810_v3 = vld [vmem:[%s13289_s3 + $0x1070] ss:$12 sps:$4 sm:$0xff]   ;;  %v9817_v47 = vld [vmem:[%s13289_s3 + $0x1158] ss:$12 sps:$4 sm:$0xff]  }
 0x1f8   :  { %8873 = vmatprep.subr.bf16.mxu1 %v9765_v11  ;;  %v8727_v29 = vpop.f32.mrb[15].mxu1  ;;  %v9799_v11 = vld [vmem:[%s13289_s3 + $0x10fc] ss:$12 sps:$4 sm:$0xff]   ;;  %v305_v38 = vrot.slane %v297_v31, %v10433_v59  ;;  %v9826_v14 = vld [vmem:[%s13289_s3 + $0x10b8] ss:$12 sps:$4 sm:$0xff]  }
 0x1f9   :  { %v12128_v16 = vadd.f32 %v8725_v37, %v12025_v15  ;;  %6408 = vmatpush1.bf16.msra.mxu0 %v9757_v25  ;;  %v9781_v15 = vld [vmem:[%s13289_s3 + $0xf20] ss:$12 sps:$4 sm:$0xff]   ;;  %v9806_v37 = vld [vmem:[%s13289_s3 + $0xf98] ss:$12 sps:$4 sm:$0xff]   ;;  %v312_v25 = vrot.slane %v298_v32, %v10433_v59  ;;  %v9830_v32 = vld [vmem:[%s13289_s3 + $0x1190] ss:$12 sps:$4 sm:$0xff]  }
 0x1fa   :  { %6409 = vmatprep.subr.bf16.mxu0 %v9764_v43  ;;  %v585_v43 = vcombine.low %v453_v33, %v457_v35  ;;  %v40_v33 = vld [vmem:[%s13286_s0 + $0x30] sm:$0xff] }
 0x1fb   :  { %8874 = vmatpush3.bf16.msra.mxu1 %v9766_v36  ;;  %v461_v36 = vrot.slane %v12226_v26, %v10437_v61  ;;  %v9797_v61 = vld [vmem:[%s13289_s3 + $0x10f8] ss:$12 sps:$4 sm:$0xff]  }
 0x1fc   :  { %8875 = vmatprep.subr.bf16.mxu1 %v9770_v39 }
 0x1fd   :  { %6410 = vmatpush1.bf16.msra.mxu0 %v9762_v53  ;;  %v586_v60 = vcombine.low %v461_v36, %v465_v45  ;;  %v9804_v53 = vld [vmem:[%s13289_s3 + $0x1114] ss:$12 sps:$4 sm:$0xff]   ;;  %v9822_v45 = vld [vmem:[%s13289_s3 + $0x1170] ss:$12 sps:$4 sm:$0xff]  }
 0x1fe   :  { %6411 = vmatprep.subr.bf16.mxu0 %v9769_v9  ;;  %v41_v9 = vld [vmem:[%s13286_s0 + $0x38] sm:$0xff] }
 0x1ff   :  { %8876 = vmatpush3.bf16.msra.mxu1 %v9771_v50  ;;  %v313_v50 = vcombine.low %v305_v38, %v312_v25  ;;  %v9836_v38 = vld [vmem:[%s13289_s3 + $0x10e8] ss:$12 sps:$4 sm:$0xff]  }
 0x200   :  { %8883 = vmatprep.subr.bf16.mxu1 %v9775_v23 }
 0x201   :  { %6412 = vmatpush1.bf16.msra.mxu0 %v9767_v63  ;;  %v600_v63 = vrot.slane %v586_v60, %v10433_v59  ;;  %v329_v42 = vmul.f32 %v313_v50, %v41_v9  ;;  %v9841_v60 = vld [vmem:[%s13289_s3 + $0x1100] ss:$12 sps:$4 sm:$0xff]   ;;  %v9839_v50 = vld [vmem:[%s13289_s3 + $0x11bc] ss:$12 sps:$4 sm:$0xff]   ;;  %v9846_v9 = vld [vmem:[%s13289_s3 + $0x1118] ss:$12 sps:$4 sm:$0xff]  }
 0x202   :  { %7020 = vmatmul.mubr.bf16.vlgmr.msra.gmra.mrb[40].mxu1 %v11942_v62  ;;  %v9785_v62 = vld [vmem:[%s13289_s3 + $0xff8] ss:$12 sps:$4 sm:$0xff]   ;;  %6422 = vmatprep.subr.bf16.mxu0 %v9774_v21  ;;  %v149_v21 = vrot.slane %v45_v49, %v10408_v48 }
 0x203   :  { %8884 = vmatpush3.bf16.msra.mxu1 %v9776_v57  ;;  %7059 = vmatprep.mubr.bf16.mxu1 %v11957_v2  ;;  %v9786_v2 = vld [vmem:[%s13289_s3 + $0xf38] ss:$12 sps:$4 sm:$0xff]   ;;  %v593_v57 = vrot.slane %v585_v43, %v10433_v59 }
 0x204   :  { %8885 = vmatprep.subr.bf16.mxu1 %v9780_v0  ;;  %6414 = vmatmul.mubr.bf16.vlgmr.msra.gmra.mrb[0].mxu0 %v12165_v19  ;;  %v9811_v0 = vld [vmem:[%s13289_s3 + $0xfb0] ss:$12 sps:$4 sm:$0xff]  }
 0x205   :  { %6423 = vmatpush1.bf16.msra.mxu0 %v9772_v4  ;;  %6454 = vmatprep.mubr.bf16.mxu0 %v12177_v8  ;;  %v161_v4 = vrot.slane %v45_v49, %v10420_v54  ;;  %v9834_v43 = vld [vmem:[%s13289_s3 + $0x11a4] ss:$12 sps:$4 sm:$0xff]  }
 0x206   :  { %6424 = vmatprep.subr.bf16.mxu0 %v9779_v5  ;;  %v9802_v5 = vld [vmem:[%s13289_s3 + $0x1110] ss:$12 sps:$4 sm:$0xff]  }
 0x207   :  { %8886 = vmatpush3.bf16.msra.mxu1 %v9781_v15  ;;  %v153_v15 = vrot.slane %v45_v49, %v10413_v51 }
 0x208   :  { %8887 = vmatprep.subr.bf16.mxu1 %v9785_v62  ;;  %v601_v62 = vcombine.low %v593_v57, %v600_v63 }
 0x209   :  { %6425 = vmatpush1.bf16.msra.mxu0 %v9777_v6  ;;  %v9809_v6 = vld [vmem:[%s13289_s3 + $0x112c] ss:$12 sps:$4 sm:$0xff]  }
 0x20a   :  { %6426 = vmatprep.subr.bf16.mxu0 %v9784_v40  ;;  %v9816_v40 = vld [vmem:[%s13289_s3 + $0x1088] ss:$12 sps:$4 sm:$0xff]  }
 0x20b   :  { %8888 = vmatpush3.bf16.msra.mxu1 %v9786_v2  ;;  %v9815_v2 = vld [vmem:[%s13289_s3 + $0x1148] ss:$12 sps:$4 sm:$0xff]  }
 0x20c   :  { %8889 = vmatprep.subr.bf16.mxu1 %v9790_v7  ;;  %v12287_v7 = vadd.f32 %v601_v62, %v329_v42  ;;  %v9837_v42 = vld [vmem:[%s13289_s3 + $0x11b8] ss:$12 sps:$4 sm:$0xff]  }
 0x20d   :  { %6427 = vmatpush1.bf16.msra.mxu0 %v9782_v17  ;;  %v441_v17 = vrot.slane %v12226_v26, %v10413_v51 }
 0x20e   :  { %6428 = vmatprep.subr.bf16.mxu0 %v9789_v20 }
 0x20f   :  { %8890 = vmatpush3.bf16.msra.mxu1 %v9791_v12  ;;  %v437_v12 = vrot.slane %v12226_v26, %v10408_v48 }
 0x210   :  { %8891 = vmatprep.subr.bf16.mxu1 %v9795_v13  ;;  %v280_v13 = vcombine.low %v149_v21, %v153_v15  ;;  %v9850_v15 = vld [vmem:[%s13289_s3 + $0x11f0] ss:$12 sps:$4 sm:$0xff]  }
 0x211   :  { %6429 = vmatpush1.bf16.msra.mxu0 %v9787_v18  ;;  %v445_v18 = vrot.slane %v12226_v26, %v10415_v52 }
 0x212   :  { %6430 = vmatprep.subr.bf16.mxu0 %v9794_v58  ;;  %v9807_v58 = vld [vmem:[%s13289_s3 + $0x1128] ss:$12 sps:$4 sm:$0xff]  }
 0x213   :  { %8892 = vmatpush3.bf16.msra.mxu1 %v9796_v22  ;;  %v449_v22 = vrot.slane %v12226_v26, %v10420_v54  ;;  %v568_v54 = vcombine.low %v437_v12, %v441_v17  ;;  %v824_v12 = vpack.c.bf16 %v12143_v55, %v12143_v55  ;;  %v9856_v17 = vld [vmem:[%s13289_s3 + $0x1208] ss:$12 sps:$4 sm:$0xff]   ;;  %v9854_v55 = vld [vmem:[%s13289_s3 + $0x1204] ss:$12 sps:$4 sm:$0xff]  }
 0x214   :  { %8893 = vmatprep.subr.bf16.mxu1 %v9800_v28  ;;  %v9820_v28 = vld [vmem:[%s13289_s3 + $0x1160] ss:$12 sps:$4 sm:$0xff]  }
 0x215   :  { %v8745_v34 = vpop.f32.mrb[16].mxu1  ;;  %6431 = vmatpush1.bf16.msra.mxu0 %v9792_v1  ;;  %v569_v27 = vcombine.low %v445_v18, %v449_v22  ;;  %v9860_v18 = vld [vmem:[%s13289_s3 + $0x12e0] ss:$12 sps:$4 sm:$0xff]  }
 0x216   :  { %v8746_v56 = vpop.f32.mrb[17].mxu1  ;;  %6432 = vmatprep.subr.bf16.mxu0 %v9799_v11  ;;  %v9824_v11 = vld [vmem:[%s13289_s3 + $0x1174] ss:$12 sps:$4 sm:$0xff]  }
 0x217   :  { %8894 = vmatpush3.bf16.msra.mxu1 %v9801_v10  ;;  %v8747_v39 = vadd.f32 %v8746_v56, %v8745_v34  ;;  %v8748_v29 = vpop.f32.mrb[18].mxu1  ;;  %v9814_v10 = vld [vmem:[%s13289_s3 + $0x1144] ss:$12 sps:$4 sm:$0xff]   ;;  %v583_v31 = vrot.slane %v569_v27, %v10433_v59  ;;  %v9829_v56 = vld [vmem:[%s13289_s3 + $0x118c] ss:$12 sps:$4 sm:$0xff]  }
 0x218   :  { %8895 = vmatprep.subr.bf16.mxu1 %v9805_v30  ;;  %v8749_v46 = vpop.f32.mrb[19].mxu1  ;;  %v576_v30 = vrot.slane %v568_v54, %v10433_v59  ;;  %v9831_v34 = vld [vmem:[%s13289_s3 + $0x10d0] ss:$12 sps:$4 sm:$0xff]   ;;  %v9840_v29 = vld [vmem:[%s13289_s3 + $0x11c0] ss:$12 sps:$4 sm:$0xff]  }
 0x219   :  { %v12264_v23 = vadd.f32 %v8747_v39, %v12128_v16  ;;  %v157_v16 = vrot.slane %v45_v49, %v10415_v52  ;;  %6433 = vmatpush1.bf16.msra.mxu0 %v9797_v61  ;;  %v9821_v52 = vld [vmem:[%s13289_s3 + $0x10a0] ss:$12 sps:$4 sm:$0xff]   ;;  %v288_v49 = vrot.slane %v280_v13, %v10433_v59  ;;  %v9827_v39 = vld [vmem:[%s13289_s3 + $0x1188] ss:$12 sps:$4 sm:$0xff]   ;;  %v9845_v46 = vld [vmem:[%s13289_s3 + $0x11d8] ss:$12 sps:$4 sm:$0xff]  }
 0x21a   :  { %6434 = vmatprep.subr.bf16.mxu0 %v9804_v53  ;;  %v584_v36 = vcombine.low %v576_v30, %v583_v31  ;;  %v9852_v22 = vld [vmem:[%s13289_s3 + $0x1200] ss:$12 sps:$4 sm:$0xff]   ;;  %v9857_v54 = vld [vmem:[%s13289_s3 + $0x1218] ss:$12 sps:$4 sm:$0xff]   ;;  %v9871_v27 = vld [vmem:[%s13289_s3 + $0x1250] ss:$12 sps:$4 sm:$0xff]  }
 0x21b   :  { %8896 = vmatpush3.bf16.msra.mxu1 %v9806_v37  ;;  %v281_v20 = vcombine.low %v157_v16, %v161_v4  ;;  %v9835_v37 = vld [vmem:[%s13289_s3 + $0x11a8] ss:$12 sps:$4 sm:$0xff]   ;;  %v9880_v30 = vld [vmem:[%s13289_s3 + $0x1340] ss:$12 sps:$4 sm:$0xff]  }
 0x21c   :  { %8897 = vmatprep.subr.bf16.mxu1 %v9810_v3  ;;  %v9832_v3 = vld [vmem:[%s13289_s3 + $0x11a0] ss:$12 sps:$4 sm:$0xff]  }
 0x21d   :  { %6435 = vmatpush1.bf16.msra.mxu0 %v9802_v5  ;;  %v295_v26 = vrot.slane %v281_v20, %v10433_v59  ;;  %v9844_v4 = vld [vmem:[%s13289_s3 + $0x11d4] ss:$12 sps:$4 sm:$0xff]   ;;  %v9851_v5 = vld [vmem:[%s13289_s3 + $0x1130] ss:$12 sps:$4 sm:$0xff]  }
 0x21e   :  { %6436 = vmatprep.subr.bf16.mxu0 %v9809_v6  ;;  %v9842_v6 = vld [vmem:[%s13289_s3 + $0x11d0] ss:$12 sps:$4 sm:$0xff]   ;;  %v9847_v20 = vld [vmem:[%s13289_s3 + $0x11e8] ss:$12 sps:$4 sm:$0xff]   ;;  %v9881_v31 = vld [vmem:[%s13289_s3 + $0x1280] ss:$12 sps:$4 sm:$0xff]  }
 0x21f   :  { %8898 = vmatpush3.bf16.msra.mxu1 %v9811_v0  ;;  %v296_v1 = vcombine.low %v288_v49, %v295_v26  ;;  %v9864_v49 = vld [vmem:[%s13289_s3 + $0x1234] ss:$12 sps:$4 sm:$0xff]   ;;  %v9870_v26 = vld [vmem:[%s13289_s3 + $0x1310] ss:$12 sps:$4 sm:$0xff]  }
 0x220   :  { %8905 = vmatprep.subr.bf16.mxu1 %v9815_v2 }
 0x221   :  { %6437 = vmatpush1.bf16.msra.mxu0 %v9807_v58  ;;  %v328_v35 = vmul.f32 %v296_v1, %v40_v33  ;;  %v9861_v58 = vld [vmem:[%s13289_s3 + $0x1220] ss:$12 sps:$4 sm:$0xff]   ;;  %v9874_v1 = vld [vmem:[%s13289_s3 + $0x1264] ss:$12 sps:$4 sm:$0xff]  }
 0x222   :  { %7060 = vmatmul.mubr.bf16.vlgmr.msra.gmra.mrb[44].mxu1 %v12165_v19  ;;  %v9825_v19 = vld [vmem:[%s13289_s3 + $0x1178] ss:$12 sps:$4 sm:$0xff]   ;;  %6438 = vmatprep.subr.bf16.mxu0 %v9814_v10 }
 0x223   :  { %8906 = vmatpush3.bf16.msra.mxu1 %v9816_v40  ;;  %7099 = vmatprep.mubr.bf16.mxu1 %v12177_v8  ;;  %v9819_v8 = vld [vmem:[%s13289_s3 + $0x115c] ss:$12 sps:$4 sm:$0xff]   ;;  %v616_v25 = vadd.f32 %v584_v36, %v328_v35  ;;  %v9865_v10 = vld [vmem:[%s13289_s3 + $0x12f8] ss:$12 sps:$4 sm:$0xff]  }
 0x224   :  { %8907 = vmatprep.subr.bf16.mxu1 %v9820_v28  ;;  %v9855_v40 = vld [vmem:[%s13289_s3 + $0x12c8] ss:$12 sps:$4 sm:$0xff]   ;;  %v9886_v35 = vld [vmem:[%s13289_s3 + $0x1298] ss:$12 sps:$4 sm:$0xff]  }
 0x225   :  { %6439 = vmatpush1.bf16.msra.mxu0 %v9812_v44  ;;  %v12369_v61 = vmax.f32 %v616_v25, 0.0  ;;  %v9859_v28 = vld [vmem:[%s13289_s3 + $0x121c] ss:$12 sps:$4 sm:$0xff]  }
 0x226   :  { %6440 = vmatprep.subr.bf16.mxu0 %v9819_v8  ;;  %v9862_v44 = vld [vmem:[%s13289_s3 + $0x1230] ss:$12 sps:$4 sm:$0xff]   ;;  %v9875_v8 = vld [vmem:[%s13289_s3 + $0x1328] ss:$12 sps:$4 sm:$0xff]  }
 0x227   :  { %8908 = vmatpush3.bf16.msra.mxu1 %v9821_v52  ;;  %v12385_v21 = vrot.slane %v12369_v61, %v10433_v59  ;;  %v9866_v52 = vld [vmem:[%s13289_s3 + $0x1238] ss:$12 sps:$4 sm:$0xff]   ;;  %v736_v33 = vcombine.high %v12369_v61, %v12369_v61  ;;  %v9891_v61 = vld [vmem:[%s13289_s3 + $0x12b0] ss:$12 sps:$4 sm:$0xff]  }
 0x228   :  { %8909 = vmatprep.subr.bf16.mxu1 %v9825_v19  ;;  %v9869_v19 = vld [vmem:[%s13289_s3 + $0x124c] ss:$12 sps:$4 sm:$0xff]  }
 0x229   :  { %6441 = vmatpush1.bf16.msra.mxu0 %v9817_v47  ;;  %v751_v2 = vcombine.high %v12385_v21, %v12385_v21  ;;  %v9876_v47 = vld [vmem:[%s13289_s3 + $0x1268] ss:$12 sps:$4 sm:$0xff]   ;;  %v12496_v25 = vrot.slane %v736_v33, %v10433_v59 }
 0x22a   :  { %6442 = vmatprep.subr.bf16.mxu0 %v9824_v11  ;;  %v9879_v11 = vld [vmem:[%s13289_s3 + $0x127c] ss:$12 sps:$4 sm:$0xff]  }
 0x22b   :  { %8910 = vmatpush3.bf16.msra.mxu1 %v9826_v14  ;;  %v827_v13 = vpack.c.bf16 %v751_v2, %v751_v2  ;;  %v9867_v14 = vld [vmem:[%s13289_s3 + $0x1248] ss:$12 sps:$4 sm:$0xff]  }
 0x22c   :  { %8911 = vmatprep.subr.bf16.mxu1 %v9830_v32  ;;  %v9872_v32 = vld [vmem:[%s13289_s3 + $0x1260] ss:$12 sps:$4 sm:$0xff]  }
 0x22d   :  { %6443 = vmatpush1.bf16.msra.mxu0 %v9822_v45  ;;  %v9877_v45 = vld [vmem:[%s13289_s3 + $0x1278] ss:$12 sps:$4 sm:$0xff]  }
 0x22e   :  { %6444 = vmatprep.subr.bf16.mxu0 %v9829_v56 }
 0x22f   :  { %8912 = vmatpush3.bf16.msra.mxu1 %v9831_v34  ;;  %v9885_v34 = vld [vmem:[%s13289_s3 + $0x1358] ss:$12 sps:$4 sm:$0xff]  }
 0x230   :  { %8913 = vmatprep.subr.bf16.mxu1 %v9835_v37 }
 0x231   :  { %6445 = vmatpush1.bf16.msra.mxu0 %v9827_v39  ;;  %v9884_v39 = vld [vmem:[%s13289_s3 + $0x1294] ss:$12 sps:$4 sm:$0xff]  }
 0x232   :  { %6446 = vmatprep.subr.bf16.mxu0 %v9834_v43 }
 0x233   :  { %8914 = vmatpush3.bf16.msra.mxu1 %v9836_v38 }
 0x234   :  { %8915 = vmatprep.subr.bf16.mxu1 %v9840_v29  ;;  %v9890_v29 = vld [vmem:[%s13289_s3 + $0x1370] ss:$12 sps:$4 sm:$0xff]  }
 0x235   :  { %v8767_v53 = vpop.f32.mrb[20].mxu1  ;;  %6447 = vmatpush1.bf16.msra.mxu0 %v9832_v3  ;;  %v9882_v3 = vld [vmem:[%s13289_s3 + $0x1290] ss:$12 sps:$4 sm:$0xff]  }
 0x236   :  { %v8768_v57 = vpop.f32.mrb[21].mxu1  ;;  %6448 = vmatprep.subr.bf16.mxu0 %v9839_v50  ;;  %v9889_v50 = vld [vmem:[%s13289_s3 + $0x12ac] ss:$12 sps:$4 sm:$0xff]  }
 0x237   :  { %8916 = vmatpush3.bf16.msra.mxu1 %v9841_v60  ;;  %v8769_v63 = vadd.f32 %v8768_v57, %v8767_v53  ;;  %v8770_v0 = vpop.f32.mrb[22].mxu1  ;;  %v9895_v53 = vld [vmem:[%s13289_s3 + $0x1448] ss:$12 sps:$4 sm:$0xff]  }
 0x238   :  { %8917 = vmatprep.subr.bf16.mxu1 %v9845_v46  ;;  %v8771_v16 = vpop.f32.mrb[23].mxu1  ;;  %v752_v46 = vcombine.high %v12496_v25, %v12496_v25  ;;  %v9887_v57 = vld [vmem:[%s13289_s3 + $0x12a8] ss:$12 sps:$4 sm:$0xff]  }
 0x239   :  { %v12397_v62 = vadd.f32 %v8769_v63, %v12264_v23  ;;  %6449 = vmatpush1.bf16.msra.mxu0 %v9837_v42  ;;  %v9849_v23 = vld [vmem:[%s13289_s3 + $0x11ec] ss:$12 sps:$4 sm:$0xff]   ;;  %v12529_v63 = vpack.c.bf16 %v12385_v21, %v12385_v21  ;;  %v9894_v42 = vld [vmem:[%s13289_s3 + $0x12c4] ss:$12 sps:$4 sm:$0xff]  }
 0x23a   :  { %6450 = vmatprep.subr.bf16.mxu0 %v9844_v4  ;;  %v12531_v0 = vpack.c.bf16 %v752_v46, %v752_v46 }
 0x23b   :  { %8918 = vmatpush3.bf16.msra.mxu1 %v9846_v9  ;;  %v9896_v9 = vld [vmem:[%s13289_s3 + $0x1388] ss:$12 sps:$4 sm:$0xff]  }
 0x23c   :  { %8919 = vmatprep.subr.bf16.mxu1 %v9850_v15  ;;  %v9900_v15 = vld [vmem:[%s13289_s3 + $0x1460] ss:$12 sps:$4 sm:$0xff]  }
 0x23d   :  { %6451 = vmatpush1.bf16.msra.mxu0 %v9842_v6 }
 0x23e   :  { %6452 = vmatprep.subr.bf16.mxu0 %v9849_v23 }
 0x23f   :  { %8920 = vmatpush3.bf16.msra.mxu1 %v9851_v5 }
 0x240   :  { %8927 = vmatprep.subr.bf16.mxu1 %v9855_v40 }
 0x241   :  { %6453 = vmatpush1.bf16.msra.mxu0 %v9847_v20 }
 0x242   :  { %7100 = vmatmul.mubr.bf16.vlgmr.msra.gmra.mrb[48].mxu1 %v824_v12  ;;  %6463 = vmatprep.subr.bf16.mxu0 %v9854_v55 }
 0x243   :  { %8928 = vmatpush3.bf16.msra.mxu1 %v9856_v17  ;;  %7139 = vmatprep.mubr.bf16.mxu1 %v827_v13 }
 0x244   :  { %8929 = vmatprep.subr.bf16.mxu1 %v9860_v18  ;;  %6455 = vmatmul.mubr.bf16.vlgmr.msra.gmra.mrb[0].mxu0 %v824_v12 }
 0x245   :  { %6464 = vmatpush1.bf16.msra.mxu0 %v9852_v22  ;;  %6495 = vmatprep.mubr.bf16.mxu0 %v827_v13 }
 0x246   :  { %6465 = vmatprep.subr.bf16.mxu0 %v9859_v28 }
 0x247   :  { %8930 = vmatpush3.bf16.msra.mxu1 %v9861_v58 }
 0x248   :  { %8931 = vmatprep.subr.bf16.mxu1 %v9865_v10 }
 0x249   :  { %6466 = vmatpush1.bf16.msra.mxu0 %v9857_v54 }
 0x24a   :  { %6467 = vmatprep.subr.bf16.mxu0 %v9864_v49 }
 0x24b   :  { %8932 = vmatpush3.bf16.msra.mxu1 %v9866_v52 }
 0x24c   :  { %8933 = vmatprep.subr.bf16.mxu1 %v9870_v26 }
 0x24d   :  { %6468 = vmatpush1.bf16.msra.mxu0 %v9862_v44 }
 0x24e   :  { %6469 = vmatprep.subr.bf16.mxu0 %v9869_v19 }
 0x24f   :  { %8934 = vmatpush3.bf16.msra.mxu1 %v9871_v27 }
 0x250   :  { %8935 = vmatprep.subr.bf16.mxu1 %v9875_v8 }
 0x251   :  { %6470 = vmatpush1.bf16.msra.mxu0 %v9867_v14 }
 0x252   :  { %6471 = vmatprep.subr.bf16.mxu0 %v9874_v1 }
 0x253   :  { %8936 = vmatpush3.bf16.msra.mxu1 %v9876_v47 }
 0x254   :  { %8937 = vmatprep.subr.bf16.mxu1 %v9880_v30 }
 0x255   :  { %v8789_v36 = vpop.f32.mrb[24].mxu1  ;;  %6472 = vmatpush1.bf16.msra.mxu0 %v9872_v32 }
 0x256   :  { %v8790_v37 = vpop.f32.mrb[25].mxu1  ;;  %6473 = vmatprep.subr.bf16.mxu0 %v9879_v11 }
 0x257   :  { %8938 = vmatpush3.bf16.msra.mxu1 %v9881_v31  ;;  %v8791_v56 = vadd.f32 %v8790_v37, %v8789_v36  ;;  %v8792_v38 = vpop.f32.mrb[26].mxu1 }
 0x258   :  { %8939 = vmatprep.subr.bf16.mxu1 %v9885_v34  ;;  %v8793_v43 = vpop.f32.mrb[27].mxu1 }
 0x259   :  { %v12505_v60 = vadd.f32 %v8791_v56, %v12397_v62  ;;  %6474 = vmatpush1.bf16.msra.mxu0 %v9877_v45 }
 0x25a   :  { %6475 = vmatprep.subr.bf16.mxu0 %v9884_v39 }
 0x25b   :  { %8940 = vmatpush3.bf16.msra.mxu1 %v9886_v35 }
 0x25c   :  { %8941 = vmatprep.subr.bf16.mxu1 %v9890_v29 }
 0x25d   :  { %6476 = vmatpush1.bf16.msra.mxu0 %v9882_v3 }
 0x25e   :  { %6477 = vmatprep.subr.bf16.mxu0 %v9889_v50 }
 0x25f   :  { %8942 = vmatpush3.bf16.msra.mxu1 %v9891_v61 }
 0x260   :  { %8949 = vmatprep.subr.bf16.mxu1 %v9895_v53 }
 0x262   :  { %7140 = vmatmul.mubr.bf16.vlgmr.msra.gmra.mrb[52].mxu1 %v12529_v63 }
 0x263   :  { %14 = vsyncpa [#allocation3], 0  ;;  %8950 = vmatpush3.bf16.msra.mxu1 %v9896_v9  ;;  %v9901_v21 = vld [vmem:[%s13289_s3 + $0x13a0] ss:$12 sps:$4 sm:$0xff]   ;;  %7179 = vmatprep.mubr.bf16.mxu1 %v12531_v0  ;;  %v9905_v4 = vld [vmem:[%s13289_s3 + $0x1478] ss:$12 sps:$4 sm:$0xff]   ;;  %v12639_v35 = vpack.c.bf16 %v12496_v25, %v12496_v25 }
 0x264   :  { %6478 = vmatpush1.bf16.msra.mxu0 %v9887_v57  ;;  %v9892_v16 = vld [vmem:[%s13289_s3 + $0x12c0] ss:$12 sps:$4 sm:$0xff]   ;;  %8951 = vmatprep.subr.bf16.mxu1 %v9900_v15  ;;  %v9899_v62 = vld [vmem:[%s13289_s3 + $0x12dc] ss:$12 sps:$4 sm:$0xff]   ;;  %v9906_v5 = vld [vmem:[%s13289_s3 + $0x13b8] ss:$12 sps:$4 sm:$0xff]  }
 0x265   :  { %6479 = vmatprep.subr.bf16.mxu0 %v9894_v42  ;;  %v9897_v2 = vld [vmem:[%s13289_s3 + $0x12d8] ss:$12 sps:$4 sm:$0xff]   ;;  %v9910_v6 = vld [vmem:[%s13289_s3 + $0x1490] ss:$12 sps:$4 sm:$0xff]   ;;  %v9904_v40 = vld [vmem:[%s13289_s3 + $0x12f4] ss:$12 sps:$4 sm:$0xff]  }
 0x266   :  { %v9911_v23 = vld [vmem:[%s13289_s3 + $0x13d0] ss:$12 sps:$4 sm:$0xff]   ;;  %v9915_v17 = vld [vmem:[%s13289_s3 + $0x14a8] ss:$12 sps:$4 sm:$0xff]   ;;  %v9909_v13 = vld [vmem:[%s13289_s3 + $0x130c] ss:$12 sps:$4 sm:$0xff]  }
 0x267   :  { %8952 = vmatpush3.bf16.msra.mxu1 %v9901_v21  ;;  %v9902_v12 = vld [vmem:[%s13289_s3 + $0x12f0] ss:$12 sps:$4 sm:$0xff]   ;;  %v9916_v20 = vld [vmem:[%s13289_s3 + $0x13e8] ss:$12 sps:$4 sm:$0xff]   ;;  %v9920_v55 = vld [vmem:[%s13289_s3 + $0x14c0] ss:$12 sps:$4 sm:$0xff]  }
 0x268   :  { %6480 = vmatpush1.bf16.msra.mxu0 %v9892_v16  ;;  %8953 = vmatprep.subr.bf16.mxu1 %v9905_v4  ;;  %v9907_v18 = vld [vmem:[%s13289_s3 + $0x1308] ss:$12 sps:$4 sm:$0xff]   ;;  %v9914_v22 = vld [vmem:[%s13289_s3 + $0x1324] ss:$12 sps:$4 sm:$0xff]   ;;  %v9921_v58 = vld [vmem:[%s13289_s3 + $0x1400] ss:$12 sps:$4 sm:$0xff]  }
 0x269   :  { %6481 = vmatprep.subr.bf16.mxu0 %v9899_v62  ;;  %v12593_v28 = vmax.f32 %v12287_v7, 0.0  ;;  %v9912_v10 = vld [vmem:[%s13289_s3 + $0x1320] ss:$12 sps:$4 sm:$0xff]   ;;  %v9925_v52 = vld [vmem:[%s13289_s3 + $0x14d8] ss:$12 sps:$4 sm:$0xff]   ;;  %vm7762_vm0 = vcmask 523264  }
 0x26a   :  { %v9919_v49 = vld [vmem:[%s13289_s3 + $0x133c] ss:$12 sps:$4 sm:$0xff]   ;;  %v9926_v7 = vld [vmem:[%s13289_s3 + $0x1418] ss:$12 sps:$4 sm:$0xff]   ;;  %v9924_v30 = vld [vmem:[%s13289_s3 + $0x1354] ss:$12 sps:$4 sm:$0xff]  }
 0x26b   :  { %8954 = vmatpush3.bf16.msra.mxu1 %v9906_v5  ;;  %v12609_v19 = vrot.slane %v12593_v28, %v10433_v59  ;;  %v9917_v8 = vld [vmem:[%s13289_s3 + $0x1338] ss:$12 sps:$4 sm:$0xff]   ;;  %v9930_v47 = vld [vmem:[%s13289_s3 + $0x14f0] ss:$12 sps:$4 sm:$0xff]   ;;  %v9935_v11 = vld [vmem:[%s13289_s3 + $0x15c8] ss:$12 sps:$4 sm:$0xff]   ;;  %v753_v16 = vcombine.high %v12593_v28, %v12593_v28 }
 0x26c   :  { %6482 = vmatpush1.bf16.msra.mxu0 %v9897_v2  ;;  %8955 = vmatprep.subr.bf16.mxu1 %v9910_v6  ;;  %v9931_v31 = vld [vmem:[%s13289_s3 + $0x1430] ss:$12 sps:$4 sm:$0xff]   ;;  %v9929_v34 = vld [vmem:[%s13289_s3 + $0x136c] ss:$12 sps:$4 sm:$0xff]   ;;  %v9936_v36 = vld [vmem:[%s13289_s3 + $0x1508] ss:$12 sps:$4 sm:$0xff]  }
 0x26d   :  { %6483 = vmatprep.subr.bf16.mxu0 %v9904_v40  ;;  %v768_v32 = vcombine.high %v12609_v19, %v12609_v19  ;;  %v9922_v33 = vld [vmem:[%s13289_s3 + $0x1350] ss:$12 sps:$4 sm:$0xff]   ;;  %v9927_v37 = vld [vmem:[%s13289_s3 + $0x1368] ss:$12 sps:$4 sm:$0xff]   ;;  %v9940_v56 = vld [vmem:[%s13289_s3 + $0x15e0] ss:$12 sps:$4 sm:$0xff]  }
 0x26e   :  { %v9934_v38 = vld [vmem:[%s13289_s3 + $0x1384] ss:$12 sps:$4 sm:$0xff]   ;;  %v9941_v25 = vld [vmem:[%s13289_s3 + $0x1520] ss:$12 sps:$4 sm:$0xff]   ;;  %v9939_v43 = vld [vmem:[%s13289_s3 + $0x139c] ss:$12 sps:$4 sm:$0xff]  }
 0x26f   :  { %8956 = vmatpush3.bf16.msra.mxu1 %v9911_v23  ;;  %v12644_v45 = vpack.c.bf16 %v768_v32, %v768_v32  ;;  %v9932_v39 = vld [vmem:[%s13289_s3 + $0x1380] ss:$12 sps:$4 sm:$0xff]   ;;  %v9945_v29 = vld [vmem:[%s13289_s3 + $0x15f8] ss:$12 sps:$4 sm:$0xff]   ;;  %v9950_v3 = vld [vmem:[%s13289_s3 + $0x1610] ss:$12 sps:$4 sm:$0xff]  }
 0x270   :  { %6484 = vmatpush1.bf16.msra.mxu0 %v9902_v12  ;;  %8957 = vmatprep.subr.bf16.mxu1 %v9915_v17  ;;  %v9937_v61 = vld [vmem:[%s13289_s3 + $0x1398] ss:$12 sps:$4 sm:$0xff]   ;;  %v9944_v46 = vld [vmem:[%s13289_s3 + $0x13b4] ss:$12 sps:$4 sm:$0xff]   ;;  %v9951_v50 = vld [vmem:[%s13289_s3 + $0x1550] ss:$12 sps:$4 sm:$0xff]   ;;  %v12725_v17 = vrot.slane %v753_v16, %v10433_v59 }
 0x271   :  { %6485 = vmatprep.subr.bf16.mxu0 %v9909_v13  ;;  %v9942_v53 = vld [vmem:[%s13289_s3 + $0x13b0] ss:$12 sps:$4 sm:$0xff]   ;;  %v9955_v9 = vld [vmem:[%s13289_s3 + $0x1628] ss:$12 sps:$4 sm:$0xff]   ;;  %v9949_v57 = vld [vmem:[%s13289_s3 + $0x13cc] ss:$12 sps:$4 sm:$0xff]  }
 0x272   :  { %v9960_v42 = vld [vmem:[%s13289_s3 + $0x1640] ss:$12 sps:$4 sm:$0xff]   ;;  %v9954_v15 = vld [vmem:[%s13289_s3 + $0x13e4] ss:$12 sps:$4 sm:$0xff]   ;;  %v9959_v2 = vld [vmem:[%s13289_s3 + $0x13fc] ss:$12 sps:$4 sm:$0xff]  }
 0x273   :  { %8958 = vmatpush3.bf16.msra.mxu1 %v9916_v20  ;;  %v9961_v21 = vld [vmem:[%s13289_s3 + $0x1580] ss:$12 sps:$4 sm:$0xff]   ;;  %v9965_v62 = vld [vmem:[%s13289_s3 + $0x1658] ss:$12 sps:$4 sm:$0xff]   ;;  %v9970_v20 = vld [vmem:[%s13289_s3 + $0x1670] ss:$12 sps:$4 sm:$0xff]  }
 0x274   :  { %6486 = vmatpush1.bf16.msra.mxu0 %v9907_v18  ;;  %8959 = vmatprep.subr.bf16.mxu1 %v9920_v55  ;;  %v9952_v4 = vld [vmem:[%s13289_s3 + $0x13e0] ss:$12 sps:$4 sm:$0xff]   ;;  %v9966_v23 = vld [vmem:[%s13289_s3 + $0x1598] ss:$12 sps:$4 sm:$0xff]   ;;  %v9962_v28 = vld [vmem:[%s13289_s3 + $0x1410] ss:$12 sps:$4 sm:$0xff]  }
 0x275   :  { %6487 = vmatprep.subr.bf16.mxu0 %v9914_v22  ;;  %v8811_v54 = vpop.f32.mrb[28].mxu1  ;;  %v9957_v13 = vld [vmem:[%s13289_s3 + $0x13f8] ss:$12 sps:$4 sm:$0xff]   ;;  %v9964_v59 = vld [vmem:[%s13289_s3 + $0x1414] ss:$12 sps:$4 sm:$0xff]   ;;  %vm7806_vm1 = vcmask 74752  }
 0x276   :  { %v8812_v26 = vpop.f32.mrb[29].mxu1  ;;  %v9971_v22 = vld [vmem:[%s13289_s3 + $0x15b0] ss:$12 sps:$4 sm:$0xff]   ;;  %v9984_v32 = vld [vmem:[%s13289_s3 + $0x1474] ss:$12 sps:$4 sm:$0xff]  }
 0x277   :  { %v8813_v27 = vadd.f32 %v8812_v26, %v8811_v54  ;;  %8960 = vmatpush3.bf16.msra.mxu1 %v9921_v58  ;;  %v8814_v44 = vpop.f32.mrb[30].mxu1  ;;  %v769_v58 = vcombine.high %v12725_v17, %v12725_v17  ;;  %v12755_v54 = vpack.c.bf16 %v12609_v19, %v12609_v19  ;;  %v9981_v19 = vld [vmem:[%s13289_s3 + $0x16a0] ss:$12 sps:$4 sm:$0xff]  }
 0x278   :  { %6488 = vmatpush1.bf16.msra.mxu0 %v9912_v10  ;;  %8961 = vmatprep.subr.bf16.mxu1 %v9925_v52  ;;  %v8815_v14 = vpop.f32.mrb[31].mxu1  ;;  %v9975_v10 = vld [vmem:[%s13289_s3 + $0x1748] ss:$12 sps:$4 sm:$0xff]   ;;  %v9969_v52 = vld [vmem:[%s13289_s3 + $0x142c] ss:$12 sps:$4 sm:$0xff]  }
 0x279   :  { %6489 = vmatprep.subr.bf16.mxu0 %v9919_v49  ;;  %v12618_v1 = vadd.f32 %v8813_v27, %v12505_v60  ;;  %v9946_v60 = vld [vmem:[%s13289_s3 + $0x1538] ss:$12 sps:$4 sm:$0xff]   ;;  %v9976_v49 = vld [vmem:[%s13289_s3 + $0x1688] ss:$12 sps:$4 sm:$0xff]   ;;  %v12760_v26 = vpack.c.bf16 %v769_v58, %v769_v58 }
 0x27a   :  { %v9967_v27 = vld [vmem:[%s13289_s3 + $0x1428] ss:$12 sps:$4 sm:$0xff]   ;;  %v9974_v44 = vld [vmem:[%s13289_s3 + $0x1444] ss:$12 sps:$4 sm:$0xff]   ;;  %v10009_v16 = vld [vmem:[%s13289_s3 + $0x14ec] ss:$12 sps:$4 sm:$0xff]  }
 0x27b   :  { %8962 = vmatpush3.bf16.msra.mxu1 %v9926_v7  ;;  %v9980_v7 = vld [vmem:[%s13289_s3 + $0x1760] ss:$12 sps:$4 sm:$0xff]   ;;  %v9979_v14 = vld [vmem:[%s13289_s3 + $0x145c] ss:$12 sps:$4 sm:$0xff]   ;;  %v10027_v58 = vld [vmem:[%s13289_s3 + $0x1578] ss:$12 sps:$4 sm:$0xff]  }
 0x27c   :  { %6490 = vmatpush1.bf16.msra.mxu0 %v9917_v8  ;;  %8963 = vmatprep.subr.bf16.mxu1 %v9930_v47  ;;  %v9972_v8 = vld [vmem:[%s13289_s3 + $0x1440] ss:$12 sps:$4 sm:$0xff]   ;;  %v9985_v47 = vld [vmem:[%s13289_s3 + $0x1778] ss:$12 sps:$4 sm:$0xff]  }
 0x27d   :  { %6491 = vmatprep.subr.bf16.mxu0 %v9924_v30  ;;  %v9977_v30 = vld [vmem:[%s13289_s3 + $0x1458] ss:$12 sps:$4 sm:$0xff]  }
 0x27f   :  { %8964 = vmatpush3.bf16.msra.mxu1 %v9931_v31  ;;  %v9990_v31 = vld [vmem:[%s13289_s3 + $0x1790] ss:$12 sps:$4 sm:$0xff]  }
 0x280   :  { %6492 = vmatpush1.bf16.msra.mxu0 %v9922_v33  ;;  %8971 = vmatprep.subr.bf16.mxu1 %v9935_v11  ;;  %v9991_v33 = vld [vmem:[%s13289_s3 + $0x16d0] ss:$12 sps:$4 sm:$0xff]  }
 0x281   :  { %6493 = vmatprep.subr.bf16.mxu0 %v9929_v34  ;;  %v9982_v11 = vld [vmem:[%s13289_s3 + $0x1470] ss:$12 sps:$4 sm:$0xff]   ;;  %v9995_v34 = vld [vmem:[%s13289_s3 + $0x17a8] ss:$12 sps:$4 sm:$0xff]  }
 0x282   :  { %7180 = vmatmul.mubr.bf16.vlgmr.msra.gmra.mrb[56].mxu1 %v12639_v35 }
 0x283   :  { %8972 = vmatpush3.bf16.msra.mxu1 %v9936_v36  ;;  %7219 = vmatprep.mubr.bf16.mxu1 %v12644_v45  ;;  %v9989_v36 = vld [vmem:[%s13289_s3 + $0x148c] ss:$12 sps:$4 sm:$0xff]  }
 0x284   :  { %6494 = vmatpush1.bf16.msra.mxu0 %v9927_v37  ;;  %8973 = vmatprep.subr.bf16.mxu1 %v9940_v56  ;;  %v9996_v37 = vld [vmem:[%s13289_s3 + $0x16e8] ss:$12 sps:$4 sm:$0xff]  }
 0x285   :  { %6504 = vmatprep.subr.bf16.mxu0 %v9934_v38  ;;  %v9987_v56 = vld [vmem:[%s13289_s3 + $0x1488] ss:$12 sps:$4 sm:$0xff]   ;;  %v10000_v38 = vld [vmem:[%s13289_s3 + $0x17c0] ss:$12 sps:$4 sm:$0xff]  }
 0x287   :  { %6496 = vmatmul.mubr.bf16.vlgmr.msra.gmra.mrb[0].mxu0 %v12529_v63  ;;  %8974 = vmatpush3.bf16.msra.mxu1 %v9941_v25  ;;  %v9956_v63 = vld [vmem:[%s13289_s3 + $0x1568] ss:$12 sps:$4 sm:$0xff]   ;;  %v9994_v25 = vld [vmem:[%s13289_s3 + $0x14a4] ss:$12 sps:$4 sm:$0xff]  }
 0x288   :  { %6505 = vmatpush1.bf16.msra.mxu0 %v9932_v39  ;;  %8975 = vmatprep.subr.bf16.mxu1 %v9945_v29  ;;  %v10001_v39 = vld [vmem:[%s13289_s3 + $0x1700] ss:$12 sps:$4 sm:$0xff]  }
 0x289   :  { %6506 = vmatprep.subr.bf16.mxu0 %v9939_v43  ;;  %6536 = vmatprep.mubr.bf16.mxu0 %v12531_v0  ;;  %v9947_v0 = vld [vmem:[%s13289_s3 + $0x13c8] ss:$12 sps:$4 sm:$0xff]   ;;  %v9992_v29 = vld [vmem:[%s13289_s3 + $0x14a0] ss:$12 sps:$4 sm:$0xff]   ;;  %v10005_v43 = vld [vmem:[%s13289_s3 + $0x17d8] ss:$12 sps:$4 sm:$0xff]  }
 0x28b   :  { %8976 = vmatpush3.bf16.msra.mxu1 %v9946_v60 }
 0x28c   :  { %6507 = vmatpush1.bf16.msra.mxu0 %v9937_v61  ;;  %8977 = vmatprep.subr.bf16.mxu1 %v9950_v3  ;;  %v9999_v61 = vld [vmem:[%s13289_s3 + $0x14bc] ss:$12 sps:$4 sm:$0xff]  }
 0x28d   :  { %6508 = vmatprep.subr.bf16.mxu0 %v9944_v46 }
 0x28f   :  { %8978 = vmatpush3.bf16.msra.mxu1 %v9951_v50  ;;  %v10006_v50 = vld [vmem:[%s13289_s3 + $0x1718] ss:$12 sps:$4 sm:$0xff]  }
 0x290   :  { %6509 = vmatpush1.bf16.msra.mxu0 %v9942_v53  ;;  %8979 = vmatprep.subr.bf16.mxu1 %v9955_v9  ;;  %v9997_v9 = vld [vmem:[%s13289_s3 + $0x14b8] ss:$12 sps:$4 sm:$0xff]  }
 0x291   :  { %6510 = vmatprep.subr.bf16.mxu0 %v9949_v57  ;;  %v10010_v57 = vld [vmem:[%s13289_s3 + $0x17f0] ss:$12 sps:$4 sm:$0xff]  }
 0x293   :  { %8980 = vmatpush3.bf16.msra.mxu1 %v9956_v63 }
 0x294   :  { %6511 = vmatpush1.bf16.msra.mxu0 %v9947_v0  ;;  %8981 = vmatprep.subr.bf16.mxu1 %v9960_v42  ;;  %v10004_v42 = vld [vmem:[%s13289_s3 + $0x14d4] ss:$12 sps:$4 sm:$0xff]  }
 0x295   :  { %6512 = vmatprep.subr.bf16.mxu0 %v9954_v15  ;;  %v8833_v5 = vpop.f32.mrb[32].mxu1  ;;  %v10011_v15 = vld [vmem:[%s13289_s3 + $0x1730] ss:$12 sps:$4 sm:$0xff]  }
 0x296   :  { %v8834_v6 = vpop.f32.mrb[33].mxu1 }
 0x297   :  { %v8835_v40 = vadd.f32 %v8834_v6, %v8833_v5  ;;  %8982 = vmatpush3.bf16.msra.mxu1 %v9961_v21  ;;  %v8836_v12 = vpop.f32.mrb[34].mxu1  ;;  %v10002_v21 = vld [vmem:[%s13289_s3 + $0x14d0] ss:$12 sps:$4 sm:$0xff]  }
 0x298   :  { %6513 = vmatpush1.bf16.msra.mxu0 %v9952_v4  ;;  %8983 = vmatprep.subr.bf16.mxu1 %v9965_v62  ;;  %v8837_v18 = vpop.f32.mrb[35].mxu1  ;;  %v12857_v4 = vpack.c.bf16 %v12725_v17, %v12725_v17  ;;  %v10007_v62 = vld [vmem:[%s13289_s3 + $0x14e8] ss:$12 sps:$4 sm:$0xff]   ;;  %v10014_v5 = vld [vmem:[%s13289_s3 + $0x1504] ss:$12 sps:$4 sm:$0xff]  }
 0x299   :  { %6514 = vmatprep.subr.bf16.mxu0 %v9959_v2  ;;  %v12734_v55 = vadd.f32 %v8835_v40, %v12618_v1  ;;  %v9986_v1 = vld [vmem:[%s13289_s3 + $0x16b8] ss:$12 sps:$4 sm:$0xff]   ;;  %v10012_v2 = vld [vmem:[%s13289_s3 + $0x1500] ss:$12 sps:$4 sm:$0xff]   ;;  %v10017_v6 = vld [vmem:[%s13289_s3 + $0x151c] ss:$12 sps:$4 sm:$0xff]  }
 0x29a   :  { %v10015_v40 = vld [vmem:[%s13289_s3 + $0x1518] ss:$12 sps:$4 sm:$0xff]   ;;  %v10018_v12 = vld [vmem:[%s13289_s3 + $0x1530] ss:$12 sps:$4 sm:$0xff]  }
 0x29b   :  { %8984 = vmatpush3.bf16.msra.mxu1 %v9966_v23  ;;  %v10020_v23 = vld [vmem:[%s13289_s3 + $0x1534] ss:$12 sps:$4 sm:$0xff]   ;;  %v10026_v17 = vld [vmem:[%s13289_s3 + $0x1564] ss:$12 sps:$4 sm:$0xff]   ;;  %v10029_v18 = vld [vmem:[%s13289_s3 + $0x157c] ss:$12 sps:$4 sm:$0xff]  }
 0x29c   :  { %6515 = vmatpush1.bf16.msra.mxu0 %v9957_v13  ;;  %8985 = vmatprep.subr.bf16.mxu1 %v9970_v20  ;;  %v10024_v13 = vld [vmem:[%s13289_s3 + $0x1560] ss:$12 sps:$4 sm:$0xff]  }
 0x29d   :  { %6516 = vmatprep.subr.bf16.mxu0 %v9964_v59 }
 0x29f   :  { %8986 = vmatpush3.bf16.msra.mxu1 %v9971_v22 }
 0x2a0   :  { %6517 = vmatpush1.bf16.msra.mxu0 %v9962_v28  ;;  %8993 = vmatprep.subr.bf16.mxu1 %v9975_v10 }
 0x2a1   :  { %6518 = vmatprep.subr.bf16.mxu0 %v9969_v52  ;;  %v10032_v52 = vld [vmem:[%s13289_s3 + $0x1594] ss:$12 sps:$4 sm:$0xff]  }
 0x2a2   :  { %7220 = vmatmul.mubr.bf16.vlgmr.msra.gmra.mrb[60].mxu1 %v12755_v54 }
 0x2a3   :  { %8994 = vmatpush3.bf16.msra.mxu1 %v9976_v49  ;;  %7259 = vmatprep.mubr.bf16.mxu1 %v12760_v26  ;;  %v10030_v49 = vld [vmem:[%s13289_s3 + $0x1590] ss:$12 sps:$4 sm:$0xff]  }
 0x2a4   :  { %6519 = vmatpush1.bf16.msra.mxu0 %v9967_v27  ;;  %8995 = vmatprep.subr.bf16.mxu1 %v9980_v7  ;;  %v10035_v27 = vld [vmem:[%s13289_s3 + $0x15ac] ss:$12 sps:$4 sm:$0xff]   ;;  %v10033_v7 = vld [vmem:[%s13289_s3 + $0x15a8] ss:$12 sps:$4 sm:$0xff]  }
 0x2a5   :  { %6520 = vmatprep.subr.bf16.mxu0 %v9974_v44  ;;  %v10038_v44 = vld [vmem:[%s13289_s3 + $0x15c4] ss:$12 sps:$4 sm:$0xff]  }
 0x2a7   :  { %8996 = vmatpush3.bf16.msra.mxu1 %v9981_v19  ;;  %v10036_v19 = vld [vmem:[%s13289_s3 + $0x15c0] ss:$12 sps:$4 sm:$0xff]  }
 0x2a8   :  { %6521 = vmatpush1.bf16.msra.mxu0 %v9972_v8  ;;  %8997 = vmatprep.subr.bf16.mxu1 %v9985_v47  ;;  %v10041_v8 = vld [vmem:[%s13289_s3 + $0x15dc] ss:$12 sps:$4 sm:$0xff]   ;;  %v10039_v47 = vld [vmem:[%s13289_s3 + $0x15d8] ss:$12 sps:$4 sm:$0xff]  }
 0x2a9   :  { %6522 = vmatprep.subr.bf16.mxu0 %v9979_v14  ;;  %v10044_v14 = vld [vmem:[%s13289_s3 + $0x15f4] ss:$12 sps:$4 sm:$0xff]  }
 0x2ab   :  { %8998 = vmatpush3.bf16.msra.mxu1 %v9986_v1  ;;  %v10042_v1 = vld [vmem:[%s13289_s3 + $0x15f0] ss:$12 sps:$4 sm:$0xff]  }
 0x2ac   :  { %6523 = vmatpush1.bf16.msra.mxu0 %v9977_v30  ;;  %8999 = vmatprep.subr.bf16.mxu1 %v9990_v31  ;;  %v10047_v30 = vld [vmem:[%s13289_s3 + $0x160c] ss:$12 sps:$4 sm:$0xff]   ;;  %v10045_v31 = vld [vmem:[%s13289_s3 + $0x1608] ss:$12 sps:$4 sm:$0xff]  }
 0x2ad   :  { %6524 = vmatprep.subr.bf16.mxu0 %v9984_v32  ;;  %v10050_v32 = vld [vmem:[%s13289_s3 + $0x1624] ss:$12 sps:$4 sm:$0xff]  }
 0x2af   :  { %9000 = vmatpush3.bf16.msra.mxu1 %v9991_v33  ;;  %v10048_v33 = vld [vmem:[%s13289_s3 + $0x1620] ss:$12 sps:$4 sm:$0xff]  }
 0x2b0   :  { %6525 = vmatpush1.bf16.msra.mxu0 %v9982_v11  ;;  %9001 = vmatprep.subr.bf16.mxu1 %v9995_v34  ;;  %v10053_v34 = vld [vmem:[%s13289_s3 + $0x163c] ss:$12 sps:$4 sm:$0xff]  }
 0x2b1   :  { %6526 = vmatprep.subr.bf16.mxu0 %v9989_v36 }
 0x2b3   :  { %9002 = vmatpush3.bf16.msra.mxu1 %v9996_v37 }
 0x2b4   :  { %6527 = vmatpush1.bf16.msra.mxu0 %v9987_v56  ;;  %9003 = vmatprep.subr.bf16.mxu1 %v10000_v38  ;;  %v10051_v38 = vld [vmem:[%s13289_s3 + $0x1638] ss:$12 sps:$4 sm:$0xff]  }
 0x2b5   :  { %6528 = vmatprep.subr.bf16.mxu0 %v9994_v25  ;;  %v8855_v60 = vpop.f32.mrb[36].mxu1 }
 0x2b6   :  { %v8856_v3 = vpop.f32.mrb[37].mxu1 }
 0x2b7   :  { %v8857_v46 = vadd.f32 %v8856_v3, %v8855_v60  ;;  %9004 = vmatpush3.bf16.msra.mxu1 %v10001_v39  ;;  %v8858_v53 = vpop.f32.mrb[38].mxu1  ;;  %v10059_v60 = vld [vmem:[%s13289_s3 + $0x166c] ss:$12 sps:$4 sm:$0xff]   ;;  %v10062_v3 = vld [vmem:[%s13289_s3 + $0x1684] ss:$12 sps:$4 sm:$0xff]  }
 0x2b8   :  { %6529 = vmatpush1.bf16.msra.mxu0 %v9992_v29  ;;  %9005 = vmatprep.subr.bf16.mxu1 %v10005_v43  ;;  %v8859_v63 = vpop.f32.mrb[39].mxu1  ;;  %v10056_v29 = vld [vmem:[%s13289_s3 + $0x1654] ss:$12 sps:$4 sm:$0xff]   ;;  %v10054_v43 = vld [vmem:[%s13289_s3 + $0x1650] ss:$12 sps:$4 sm:$0xff]  }
 0x2b9   :  { %6530 = vmatprep.subr.bf16.mxu0 %v9999_v61  ;;  %v6982_v0 = vadd.f32 %v8857_v46, %v12734_v55  ;;  %v10057_v61 = vld [vmem:[%s13289_s3 + $0x1668] ss:$12 sps:$4 sm:$0xff]   ;;  %v10060_v46 = vld [vmem:[%s13289_s3 + $0x1680] ss:$12 sps:$4 sm:$0xff]   ;;  %v10063_v53 = vld [vmem:[%s13289_s3 + $0x1698] ss:$12 sps:$4 sm:$0xff]  }
 0x2ba   :  { %v10074_v63 = vld [vmem:[%s13289_s3 + $0x16e4] ss:$12 sps:$4 sm:$0xff]  }
 0x2bb   :  { %9006 = vmatpush3.bf16.msra.mxu1 %v10006_v50  ;;  %v10065_v50 = vld [vmem:[%s13289_s3 + $0x169c] ss:$12 sps:$4 sm:$0xff]  }
 0x2bc   :  { %6531 = vmatpush1.bf16.msra.mxu0 %v9997_v9  ;;  %9007 = vmatprep.subr.bf16.mxu1 %v10010_v57  ;;  %v10068_v9 = vld [vmem:[%s13289_s3 + $0x16b4] ss:$12 sps:$4 sm:$0xff]   ;;  %v10066_v57 = vld [vmem:[%s13289_s3 + $0x16b0] ss:$12 sps:$4 sm:$0xff]  }
 0x2bd   :  { %6532 = vmatprep.subr.bf16.mxu0 %v10004_v42 }
 0x2bf   :  { %9008 = vmatpush3.bf16.msra.mxu1 %v10011_v15  ;;  %v10077_v15 = vld [vmem:[%s13289_s3 + $0x16fc] ss:$12 sps:$4 sm:$0xff]  }
 0x2c0   :  { %6533 = vmatpush1.bf16.msra.mxu0 %v10002_v21 }
 0x2c1   :  { %6534 = vmatprep.subr.bf16.mxu0 %v10009_v16 }
 0x2c2   :  { %7260 = vmatmul.mubr.bf16.vlgmr.msra.gmra.mrb[64].mxu1 %v12857_v4 }
 0x2c4   :  { %6535 = vmatpush1.bf16.msra.mxu0 %v10007_v62 }
 0x2c5   :  { %6545 = vmatprep.subr.bf16.mxu0 %v10014_v5  ;;  %v10075_v5 = vld [vmem:[%s13289_s3 + $0x16f8] ss:$12 sps:$4 sm:$0xff]  }
 0x2c7   :  { %6537 = vmatmul.mubr.bf16.vlgmr.msra.gmra.mrb[0].mxu0 %v12639_v35  ;;  %v10023_v35 = vld [vmem:[%s13289_s3 + $0x154c] ss:$12 sps:$4 sm:$0xff]  }
 0x2c8   :  { %6546 = vmatpush1.bf16.msra.mxu0 %v10012_v2  ;;  %6577 = vmatprep.mubr.bf16.mxu0 %v12644_v45  ;;  %v10021_v45 = vld [vmem:[%s13289_s3 + $0x1548] ss:$12 sps:$4 sm:$0xff]  }
 0x2c9   :  { %6547 = vmatprep.subr.bf16.mxu0 %v10017_v6 }
 0x2cc   :  { %6548 = vmatpush1.bf16.msra.mxu0 %v10015_v40  ;;  %v10080_v40 = vld [vmem:[%s13289_s3 + $0x1714] ss:$12 sps:$4 sm:$0xff]  }
 0x2cd   :  { %6549 = vmatprep.subr.bf16.mxu0 %v10020_v23  ;;  %v10078_v23 = vld [vmem:[%s13289_s3 + $0x1710] ss:$12 sps:$4 sm:$0xff]  }
 0x2d0   :  { %6550 = vmatpush1.bf16.msra.mxu0 %v10018_v12  ;;  %v10083_v12 = vld [vmem:[%s13289_s3 + $0x172c] ss:$12 sps:$4 sm:$0xff]  }
 0x2d1   :  { %6551 = vmatprep.subr.bf16.mxu0 %v10023_v35  ;;  %v10108_v35 = vld [vmem:[%s13291_s5] ss:$8 sps:$4 sm:$0xff]  }
 0x2d4   :  { %6552 = vmatpush1.bf16.msra.mxu0 %v10021_v45  ;;  %v10110_v45 = vld [vmem:[%s13291_s5 + $0x4] ss:$8 sps:$4 sm:$0xff]  }
 0x2d5   :  { %6553 = vmatprep.subr.bf16.mxu0 %v10026_v17  ;;  %v8877_v20 = vpop.f32.mrb[40].mxu1  ;;  %v10113_v17 = vld [vmem:[%s13291_s5 + $0x14] ss:$8 sps:$4 sm:$0xff]   ;;  %7573 = vmatprep.subr.bf16.mxu1 %v10110_v45 }
 0x2d6   :  { %v8878_v55 = vpop.f32.mrb[41].mxu1  ;;  %7574 = vmatpush1.bf16.msra.mxu1 %v10108_v35 }
 0x2d7   :  { %v8879_v59 = vadd.f32 %v8878_v55, %v8877_v20  ;;  %v8880_v22 = vpop.f32.mrb[42].mxu1  ;;  %v10111_v20 = vld [vmem:[%s13291_s5 + $0x10] ss:$8 sps:$4 sm:$0xff]   ;;  %7575 = vmatprep.subr.bf16.mxu1 %v10113_v17  ;;  %v10116_v55 = vld [vmem:[%s13291_s5 + $0x24] ss:$8 sps:$4 sm:$0xff]  }
 0x2d8   :  { %6554 = vmatpush1.bf16.msra.mxu0 %v10024_v13  ;;  %v8881_v28 = vpop.f32.mrb[43].mxu1  ;;  %v10081_v13 = vld [vmem:[%s13289_s3 + $0x1728] ss:$12 sps:$4 sm:$0xff]  }
 0x2d9   :  { %6555 = vmatprep.subr.bf16.mxu0 %v10029_v18  ;;  %v7022_v10 = vadd.f32 %v8879_v59, %v6982_v0  ;;  %v10072_v0 = vld [vmem:[%s13289_s3 + $0x16e0] ss:$12 sps:$4 sm:$0xff]   ;;  %v10086_v18 = vld [vmem:[%s13289_s3 + $0x1744] ss:$12 sps:$4 sm:$0xff]   ;;  %v10119_v28 = vld [vmem:[%s13291_s5 + $0x34] ss:$8 sps:$4 sm:$0xff]  }
 0x2da   :  { %v10084_v59 = vld [vmem:[%s13289_s3 + $0x1740] ss:$12 sps:$4 sm:$0xff]   ;;  %7576 = vmatpush1.bf16.msra.mxu1 %v10111_v20 }
 0x2db   :  { %v10114_v22 = vld [vmem:[%s13291_s5 + $0x20] ss:$8 sps:$4 sm:$0xff]   ;;  %7577 = vmatprep.subr.bf16.mxu1 %v10116_v55 }
 0x2dc   :  { %6556 = vmatpush1.bf16.msra.mxu0 %v10027_v58  ;;  %v10089_v58 = vld [vmem:[%s13289_s3 + $0x175c] ss:$12 sps:$4 sm:$0xff]  }
 0x2dd   :  { %6557 = vmatprep.subr.bf16.mxu0 %v10032_v52  ;;  %v10117_v52 = vld [vmem:[%s13291_s5 + $0x30] ss:$8 sps:$4 sm:$0xff]  }
 0x2de   :  { %7578 = vmatpush1.bf16.msra.mxu1 %v10114_v22 }
 0x2df   :  { %7579 = vmatprep.subr.bf16.mxu1 %v10119_v28  ;;  %v10150_v28 = vld [vmem:[%s13291_s5 + $0xe0] ss:$8 sps:$4 sm:$0xff]  }
 0x2e0   :  { %6558 = vmatpush1.bf16.msra.mxu0 %v10030_v49  ;;  %v10092_v49 = vld [vmem:[%s13289_s3 + $0x1774] ss:$12 sps:$4 sm:$0xff]  }
 0x2e1   :  { %6559 = vmatprep.subr.bf16.mxu0 %v10035_v27  ;;  %v10122_v27 = vld [vmem:[%s13291_s5 + $0x44] ss:$8 sps:$4 sm:$0xff]  }
 0x2e2   :  { %7580 = vmatpush1.bf16.msra.mxu1 %v10117_v52  ;;  %v10153_v52 = vld [vmem:[%s13291_s5 + $0xf0] ss:$8 sps:$4 sm:$0xff]  }
 0x2e3   :  { %7581 = vmatprep.subr.bf16.mxu1 %v10122_v27  ;;  %v10198_v27 = vld [vmem:[%s13290_s4] sm:$0x7] }
 0x2e4   :  { %6560 = vmatpush1.bf16.msra.mxu0 %v10033_v7  ;;  %v10090_v7 = vld [vmem:[%s13289_s3 + $0x1770] ss:$12 sps:$4 sm:$0xff]  }
 0x2e5   :  { %6561 = vmatprep.subr.bf16.mxu0 %v10038_v44  ;;  %v10120_v44 = vld [vmem:[%s13291_s5 + $0x40] ss:$8 sps:$4 sm:$0xff]  }
 0x2e6   :  { %7582 = vmatpush1.bf16.msra.mxu1 %v10120_v44  ;;  %v1867_v44 = vrot.slane %v10198_v27, %v10413_v51 }
 0x2e8   :  { %6562 = vmatpush1.bf16.msra.mxu0 %v10036_v19  ;;  %v10095_v19 = vld [vmem:[%s13289_s3 + $0x178c] ss:$12 sps:$4 sm:$0xff]  }
 0x2e9   :  { %6563 = vmatprep.subr.bf16.mxu0 %v10041_v8  ;;  %v10125_v8 = vld [vmem:[%s13291_s5 + $0x54] ss:$8 sps:$4 sm:$0xff]  }
 0x2ea   :  { %7583 = vmatprep.subr.bf16.mxu1 %v10125_v8  ;;  %v9017_v8 = vadd.f32 %v11777_v24, %v1867_v44  ;;  %v10159_v24 = vld [vmem:[%s13291_s5 + $0x110] ss:$8 sps:$4 sm:$0xff]  }
 0x2ec   :  { %6564 = vmatpush1.bf16.msra.mxu0 %v10039_v47  ;;  %v10093_v47 = vld [vmem:[%s13289_s3 + $0x1788] ss:$12 sps:$4 sm:$0xff]  }
 0x2ed   :  { %6565 = vmatprep.subr.bf16.mxu0 %v10044_v14  ;;  %v10123_v14 = vld [vmem:[%s13291_s5 + $0x50] ss:$8 sps:$4 sm:$0xff]  }
 0x2ee   :  { %7584 = vmatpush1.bf16.msra.mxu1 %v10123_v14 }
 0x2f0   :  { %6566 = vmatpush1.bf16.msra.mxu0 %v10042_v1  ;;  %v10098_v1 = vld [vmem:[%s13289_s3 + $0x17a4] ss:$12 sps:$4 sm:$0xff]  }
 0x2f1   :  { %6567 = vmatprep.subr.bf16.mxu0 %v10047_v30  ;;  %v10128_v30 = vld [vmem:[%s13291_s5 + $0x64] ss:$8 sps:$4 sm:$0xff]  }
 0x2f2   :  { %7585 = vmatprep.subr.bf16.mxu1 %v10128_v30 }
 0x2f4   :  { %6568 = vmatpush1.bf16.msra.mxu0 %v10045_v31  ;;  %v10096_v31 = vld [vmem:[%s13289_s3 + $0x17a0] ss:$12 sps:$4 sm:$0xff]  }
 0x2f5   :  { %6569 = vmatprep.subr.bf16.mxu0 %v10050_v32  ;;  %v8899_v11 = vpop.f32.mrb[44].mxu1  ;;  %v10126_v32 = vld [vmem:[%s13291_s5 + $0x60] ss:$8 sps:$4 sm:$0xff]  }
 0x2f6   :  { %v8900_v36 = vpop.f32.mrb[45].mxu1  ;;  %7586 = vmatpush1.bf16.msra.mxu1 %v10126_v32 }
 0x2f7   :  { %v8901_v37 = vadd.f32 %v8900_v36, %v8899_v11  ;;  %v8902_v56 = vpop.f32.mrb[46].mxu1  ;;  %v10101_v11 = vld [vmem:[%s13289_s3 + $0x17bc] ss:$12 sps:$4 sm:$0xff]  }
 0x2f8   :  { %6570 = vmatpush1.bf16.msra.mxu0 %v10048_v33  ;;  %v8903_v25 = vpop.f32.mrb[47].mxu1 }
 0x2f9   :  { %6571 = vmatprep.subr.bf16.mxu0 %v10053_v34  ;;  %v7062_v39 = vadd.f32 %v8901_v37, %v7022_v10  ;;  %v10087_v10 = vld [vmem:[%s13289_s3 + $0x1758] ss:$12 sps:$4 sm:$0xff]   ;;  %v10131_v34 = vld [vmem:[%s13291_s5 + $0x74] ss:$8 sps:$4 sm:$0xff]  }
 0x2fa   :  { %7587 = vmatprep.subr.bf16.mxu1 %v10131_v34 }
 0x2fc   :  { %6572 = vmatpush1.bf16.msra.mxu0 %v10051_v38  ;;  %v10099_v38 = vld [vmem:[%s13289_s3 + $0x17b8] ss:$12 sps:$4 sm:$0xff]  }
 0x2fd   :  { %6573 = vmatprep.subr.bf16.mxu0 %v10056_v29 }
 0x300   :  { %6574 = vmatpush1.bf16.msra.mxu0 %v10054_v43  ;;  %v10104_v43 = vld [vmem:[%s13289_s3 + $0x17d4] ss:$12 sps:$4 sm:$0xff]  }
 0x301   :  { %6575 = vmatprep.subr.bf16.mxu0 %v10059_v60  ;;  %v10134_v60 = vld [vmem:[%s13291_s5 + $0x84] ss:$8 sps:$4 sm:$0xff]  }
 0x304   :  { %6576 = vmatpush1.bf16.msra.mxu0 %v10057_v61  ;;  %v10102_v61 = vld [vmem:[%s13289_s3 + $0x17d0] ss:$12 sps:$4 sm:$0xff]  }
 0x305   :  { %6586 = vmatprep.subr.bf16.mxu0 %v10062_v3  ;;  %v10132_v3 = vld [vmem:[%s13291_s5 + $0x80] ss:$8 sps:$4 sm:$0xff]  }
 0x307   :  { %6578 = vmatmul.mubr.bf16.vlgmr.msra.gmra.mrb[0].mxu0 %v12755_v54  ;;  %v10071_v54 = vld [vmem:[%s13289_s3 + $0x16cc] ss:$12 sps:$4 sm:$0xff]  }
 0x308   :  { %6587 = vmatpush1.bf16.msra.mxu0 %v10060_v46  ;;  %6618 = vmatprep.mubr.bf16.mxu0 %v12760_v26  ;;  %v10069_v26 = vld [vmem:[%s13289_s3 + $0x16c8] ss:$12 sps:$4 sm:$0xff]   ;;  %v10107_v46 = vld [vmem:[%s13289_s3 + $0x17ec] ss:$12 sps:$4 sm:$0xff]  }
 0x309   :  { %6588 = vmatprep.subr.bf16.mxu0 %v10065_v50  ;;  %v10137_v50 = vld [vmem:[%s13291_s5 + $0x94] ss:$8 sps:$4 sm:$0xff]  }
 0x30c   :  { %6589 = vmatpush1.bf16.msra.mxu0 %v10063_v53  ;;  %v10105_v53 = vld [vmem:[%s13289_s3 + $0x17e8] ss:$12 sps:$4 sm:$0xff]  }
 0x30d   :  { %6590 = vmatprep.subr.bf16.mxu0 %v10068_v9  ;;  %v10135_v9 = vld [vmem:[%s13291_s5 + $0x90] ss:$8 sps:$4 sm:$0xff]  }
 0x310   :  { %6591 = vmatpush1.bf16.msra.mxu0 %v10066_v57  ;;  %v10140_v57 = vld [vmem:[%s13291_s5 + $0xa4] ss:$8 sps:$4 sm:$0xff]  }
 0x311   :  { %6592 = vmatprep.subr.bf16.mxu0 %v10071_v54  ;;  %v10138_v54 = vld [vmem:[%s13291_s5 + $0xa0] ss:$8 sps:$4 sm:$0xff]  }
 0x314   :  { %6593 = vmatpush1.bf16.msra.mxu0 %v10069_v26  ;;  %v10143_v26 = vld [vmem:[%s13291_s5 + $0xb4] ss:$8 sps:$4 sm:$0xff]  }
 0x315   :  { %6594 = vmatprep.subr.bf16.mxu0 %v10074_v63  ;;  %v8921_v42 = vpop.f32.mrb[48].mxu1  ;;  %v10141_v63 = vld [vmem:[%s13291_s5 + $0xb0] ss:$8 sps:$4 sm:$0xff]  }
 0x316   :  { %v8922_v21 = vpop.f32.mrb[49].mxu1 }
 0x317   :  { %v8923_v16 = vadd.f32 %v8922_v21, %v8921_v42  ;;  %v8924_v62 = vpop.f32.mrb[50].mxu1  ;;  %v10144_v42 = vld [vmem:[%s13291_s5 + $0xc0] ss:$8 sps:$4 sm:$0xff]  }
 0x318   :  { %6595 = vmatpush1.bf16.msra.mxu0 %v10072_v0  ;;  %v8925_v2 = vpop.f32.mrb[51].mxu1  ;;  %v10146_v0 = vld [vmem:[%s13291_s5 + $0xc4] ss:$8 sps:$4 sm:$0xff]  }
 0x319   :  { %6596 = vmatprep.subr.bf16.mxu0 %v10077_v15  ;;  %v12999_v6 = vadd.f32 %v8923_v16, %v7062_v39  ;;  %v10129_v39 = vld [vmem:[%s13291_s5 + $0x70] ss:$8 sps:$4 sm:$0xff]  }
 0x31a   :  { %7588 = vmatpush1.bf16.msra.mxu1 %v10129_v39  ;;  %v10147_v15 = vld [vmem:[%s13291_s5 + $0xd0] ss:$8 sps:$4 sm:$0xff]   ;;  %v10167_v39 = vld [vmem:[%s13291_s5 + $0x134] ss:$8 sps:$4 sm:$0xff]  }
 0x31b   :  { %7589 = vmatprep.subr.bf16.mxu1 %v10134_v60  ;;  %v10168_v60 = vld [vmem:[%s13291_s5 + $0x140] ss:$8 sps:$4 sm:$0xff]  }
 0x31c   :  { %6597 = vmatpush1.bf16.msra.mxu0 %v10075_v5 }
 0x31d   :  { %6598 = vmatprep.subr.bf16.mxu0 %v10080_v40 }
 0x31e   :  { %7590 = vmatpush1.bf16.msra.mxu1 %v10132_v3  ;;  %v10171_v3 = vld [vmem:[%s13291_s5 + $0x150] ss:$8 sps:$4 sm:$0xff]  }
 0x31f   :  { %7591 = vmatprep.subr.bf16.mxu1 %v10137_v50  ;;  %v10174_v50 = vld [vmem:[%s13291_s5 + $0x160] ss:$8 sps:$4 sm:$0xff]  }
 0x320   :  { %6599 = vmatpush1.bf16.msra.mxu0 %v10078_v23 }
 0x321   :  { %6600 = vmatprep.subr.bf16.mxu0 %v10083_v12 }
 0x322   :  { %7592 = vmatpush1.bf16.msra.mxu1 %v10135_v9  ;;  %v10177_v9 = vld [vmem:[%s13291_s5 + $0x170] ss:$8 sps:$4 sm:$0xff]  }
 0x323   :  { %7593 = vmatprep.subr.bf16.mxu1 %v10140_v57 }
 0x324   :  { %6601 = vmatpush1.bf16.msra.mxu0 %v10081_v13 }
 0x325   :  { %6602 = vmatprep.subr.bf16.mxu0 %v10086_v18 }
 0x326   :  { %7594 = vmatpush1.bf16.msra.mxu1 %v10138_v54  ;;  %v10180_v54 = vld [vmem:[%s13293_s7] sm:$0xff]  }
 0x327   :  { %7595 = vmatprep.subr.bf16.mxu1 %v10143_v26 }
 0x328   :  { %6603 = vmatpush1.bf16.msra.mxu0 %v10084_v59  ;;  %v10152_v59 = vld [vmem:[%s13291_s5 + $0xe4] ss:$8 sps:$4 sm:$0xff]  }
 0x329   :  { %6604 = vmatprep.subr.bf16.mxu0 %v10089_v58 }
 0x32a   :  { %7596 = vmatpush1.bf16.msra.mxu1 %v10141_v63  ;;  %v10181_v63 = vld [vmem:[%s13293_s7 + $0x8] sm:$0xff]  }
 0x32b   :  { %7597 = vmatprep.subr.bf16.mxu1 %v10146_v0  ;;  %v10182_v0 = vld [vmem:[%s13293_s7 + $0x10] sm:$0xff]  }
 0x32c   :  { %6605 = vmatpush1.bf16.msra.mxu0 %v10087_v10  ;;  %v10155_v10 = vld [vmem:[%s13291_s5 + $0xf4] ss:$8 sps:$4 sm:$0xff]  }
 0x32d   :  { %6606 = vmatprep.subr.bf16.mxu0 %v10092_v49  ;;  %v10158_v49 = vld [vmem:[%s13291_s5 + $0x104] ss:$8 sps:$4 sm:$0xff]  }
 0x32e   :  { %7598 = vmatpush1.bf16.msra.mxu1 %v10144_v42  ;;  %v10183_v42 = vld [vmem:[%s13293_s7 + $0x18] sm:$0xff]  }
 0x330   :  { %6607 = vmatpush1.bf16.msra.mxu0 %v10090_v7  ;;  %v1863_v7 = vrot.slane %v10198_v27, %v10408_v48 }
 0x331   :  { %6608 = vmatprep.subr.bf16.mxu0 %v10095_v19 }
 0x332   :  { %v9015_v19 = vadd.f32 %v11772_v41, %v1863_v7  ;;  %v10161_v41 = vld [vmem:[%s13291_s5 + $0x114] ss:$8 sps:$4 sm:$0xff]  }
 0x334   :  { %6609 = vmatpush1.bf16.msra.mxu0 %v10093_v47 }
 0x335   :  { %6610 = vmatprep.subr.bf16.mxu0 %v10098_v1  ;;  %v8943_v33 = vpop.f32.mrb[52].mxu1 }
 0x336   :  { %v8944_v36 = vpop.f32.mrb[53].mxu1 }
 0x337   :  { %v8945_v37 = vadd.f32 %v8944_v36, %v8943_v33  ;;  %v8946_v56 = vpop.f32.mrb[54].mxu1  ;;  %v10156_v36 = vld [vmem:[%s13291_s5 + $0x100] ss:$8 sps:$4 sm:$0xff]  }
 0x338   :  { %6611 = vmatpush1.bf16.msra.mxu0 %v10096_v31  ;;  %v8947_v25 = vpop.f32.mrb[55].mxu1  ;;  %v10224_v56 = vmov 0  }
 0x339   :  { %6612 = vmatprep.subr.bf16.mxu0 %v10101_v11  ;;  %v7142_v29 = vadd.f32 %v8945_v37, %v12999_v6  ;;  %v10162_v25 = vld [vmem:[%s13291_s5 + $0x120] ss:$8 sps:$4 sm:$0xff]  }
 0x33c   :  { %6613 = vmatpush1.bf16.msra.mxu0 %v10099_v38  ;;  %v10164_v38 = vld [vmem:[%s13291_s5 + $0x124] ss:$8 sps:$4 sm:$0xff]  }
 0x33d   :  { %6614 = vmatprep.subr.bf16.mxu0 %v10104_v43  ;;  %v10170_v43 = vld [vmem:[%s13291_s5 + $0x144] ss:$8 sps:$4 sm:$0xff]  }
 0x340   :  { %6615 = vmatpush1.bf16.msra.mxu0 %v10102_v61  ;;  %v10173_v61 = vld [vmem:[%s13291_s5 + $0x154] ss:$8 sps:$4 sm:$0xff]  }
 0x341   :  { %6616 = vmatprep.subr.bf16.mxu0 %v10107_v46  ;;  %v10176_v46 = vld [vmem:[%s13291_s5 + $0x164] ss:$8 sps:$4 sm:$0xff]  }
 0x344   :  { %6617 = vmatpush1.bf16.msra.mxu0 %v10105_v53  ;;  %v10179_v53 = vld [vmem:[%s13291_s5 + $0x174] ss:$8 sps:$4 sm:$0xff]  }
 0x347   :  { %6619 = vmatmul.mubr.bf16.vlgmr.msra.gmra.mrb[0].mxu0 %v12857_v4  ;;  %v10149_v4 = vld [vmem:[%s13291_s5 + $0xd4] ss:$8 sps:$4 sm:$0xff]  }
 0x348   :  { %7599 = vmatprep.subr.bf16.mxu1 %v10149_v4  ;;  %v10184_v4 = vld [vmem:[%s13293_s7 + $0x20] sm:$0xff]  }
 0x349   :  { %7600 = vmatpush1.bf16.msra.mxu1 %v10147_v15  ;;  %v10185_v15 = vld [vmem:[%s13293_s7 + $0x28] sm:$0xff]  }
 0x34a   :  { %7601 = vmatprep.subr.bf16.mxu1 %v10152_v59 }
 0x34d   :  { %7602 = vmatpush1.bf16.msra.mxu1 %v10150_v28  ;;  %v8649_v28 = vld [vmem:[%s13294_s8] ss:$0 sm:$0xff] }
 0x34e   :  { %7603 = vmatprep.subr.bf16.mxu1 %v10155_v10 }
 0x351   :  { %7604 = vmatpush1.bf16.msra.mxu1 %v10153_v52 }
 0x352   :  { %7614 = vmatprep.subr.bf16.mxu1 %v10158_v49 }
 0x355   :  { %v8965_v21 = vpop.f32.mrb[56].mxu1 }
 0x356   :  { %v8966_v16 = vpop.f32.mrb[57].mxu1 }
 0x357   :  { %v8967_v62 = vadd.f32 %v8966_v16, %v8965_v21  ;;  %v8968_v5 = vpop.f32.mrb[58].mxu1  ;;  %v10186_v21 = vld [vmem:[%s13293_s7 + $0x30] sm:$0xff]   ;;  %v10187_v16 = vld [vmem:[%s13293_s7 + $0x38] sm:$0xff]  }
 0x358   :  { %v8969_v2 = vpop.f32.mrb[59].mxu1  ;;  %v10189_v5 = vld [vmem:[%s13293_s7 + $0x48] sm:$0xff]  }
 0x359   :  { %v7182_v6 = vadd.f32 %v8967_v62, %v7142_v29  ;;  %v10165_v29 = vld [vmem:[%s13291_s5 + $0x130] ss:$8 sps:$4 sm:$0xff]   ;;  %v10188_v62 = vld [vmem:[%s13293_s7 + $0x40] sm:$0xff]  }
 0x35a   :  { %v10190_v2 = vld [vmem:[%s13293_s7 + $0x50] sm:$0xff]  }
 0x375   :  { %v8987_v40 = vpop.f32.mrb[60].mxu1 }
 0x376   :  { %v8988_v23 = vpop.f32.mrb[61].mxu1 }
 0x377   :  { %v8989_v12 = vadd.f32 %v8988_v23, %v8987_v40  ;;  %v8990_v35 = vpop.f32.mrb[62].mxu1  ;;  %v7321_v40 = vld [vmem:[%s13292_s6] sm:$0x3]  ;;  %s10225_s6 = smov [#allocation2]  }
 0x378   :  { %v8991_v45 = vpop.f32.mrb[63].mxu1  ;;  %v7326_v23 = vrot.slane %v7321_v40, %v10408_v48  ;;  %s7825_s8 = sshll.u32 %s10225_s6, 4  ;;  %s7826_s8 = int_to_ptr.vmem [resolvable:$true] %s7825_s8 }
 0x379   :  { %v7222_v17 = vadd.f32 %v8989_v12, %v7182_v6  ;;  %v10191_v6 = vld [vmem:[%s13293_s7 + $0x58] sm:$0xff]   ;;  %v7330_v12 = vrot.slane %v7321_v40, %v10413_v51  ;;  %s10199_s10 = scalar_lea.vmem %s7826_s8, 32  ;;  %p10204_p1 = scmp.lt.s32.totalorder %s7826_s8, %s7826_s8 }
 0x37a   :  { %p10200_p0 = scmp.ne.s32.totalorder %s7826_s8, %s10199_s10  ;;  %p10205_p2 = scmp.lt.s32.totalorder %s10199_s10, %s10199_s10 }
 0x37c   :  { %p10206_p3 = por %p10205_p2, %p10204_p1 }
 0x37e   :  { %p10207_p4 = pnand %p10206_p3, %p10200_p0 }
 0x395   :  { %v9009_v13 = vpop.f32.mrb[64].mxu1 }
 0x396   :  { %v9010_v20 = vpop.f32.mrb[65].mxu1 }
 0x397   :  { %v9011_v18 = vadd.f32 %v9010_v20, %v9009_v13  ;;  %v9012_v55 = vpop.f32.mrb[66].mxu1 }
 0x398   :  { %v9013_v22 = vpop.f32.mrb[67].mxu1 }
 0x399   :  { %v7262_v58 = vadd.f32 %v9011_v18, %v7222_v17 }
 0x39b   :  { %v7269_v57 = vmax.f32 %v7262_v58, 0.0 }
 0x39d   :  { %v7272_v26 = vpack.c.bf16 %v7269_v57, %v7269_v57 }
 0x41a   :  { %v6620_v47 = vpop.f32.mrb[0].mxu0 }
 0x41b   :  { %v9016_v14 = vadd.f32 %v9015_v19, %v6620_v47  ;;  %v6622_v1 = vpop.f32.mrb[1].mxu0 }
 0x41c   :  { %v9018_v30 = vadd.f32 %v9017_v8, %v6622_v1  ;;  %v6624_v31 = vpop.f32.mrb[2].mxu0 }
 0x41d   :  { %v7267_v32 = vmax.f32 %v9016_v14, 0.0  ;;  %v6625_v33 = vpop.f32.mrb[3].mxu0 }
 0x41e   :  { %v7268_v11 = vmax.f32 %v9018_v30, 0.0 }
 0x41f   :  { %v7270_v37 = vpack.c.bf16 %v7267_v32, %v7267_v32 }
 0x420   :  { %v7271_v34 = vpack.c.bf16 %v7268_v11, %v7268_v11 }
 0x422   :  { %7605 = vmatprep.mubr.bf16.mxu1 %v7271_v34 }
 0x423   :  { %7606 = vmatmul.mubr.bf16.vlgmr.msra.gmra.mrb[68].mxu1 %v7270_v37 }
 0x424   :  { %7615 = vmatpush1.bf16.msra.mxu1 %v10156_v36  ;;  %7646 = vmatprep.mubr.bf16.mxu1 %v10224_v56 }
 0x425   :  { %7616 = vmatprep.subr.bf16.mxu1 %v10161_v41 }
 0x428   :  { %7617 = vmatpush1.bf16.msra.mxu1 %v10159_v24 }
 0x429   :  { %7618 = vmatprep.subr.bf16.mxu1 %v10164_v38 }
 0x42c   :  { %7619 = vmatpush1.bf16.msra.mxu1 %v10162_v25 }
 0x42d   :  { %7620 = vmatprep.subr.bf16.mxu1 %v10167_v39 }
 0x430   :  { %7621 = vmatpush1.bf16.msra.mxu1 %v10165_v29 }
 0x431   :  { %7622 = vmatprep.subr.bf16.mxu1 %v10170_v43 }
 0x434   :  { %7623 = vmatpush1.bf16.msra.mxu1 %v10168_v60 }
 0x435   :  { %7624 = vmatprep.subr.bf16.mxu1 %v10173_v61 }
 0x438   :  { %7625 = vmatpush1.bf16.msra.mxu1 %v10171_v3 }
 0x439   :  { %7626 = vmatprep.subr.bf16.mxu1 %v10176_v46 }
 0x43c   :  { %7627 = vmatpush1.bf16.msra.mxu1 %v10174_v50 }
 0x43d   :  { %7628 = vmatprep.subr.bf16.mxu1 %v10179_v53 }
 0x440   :  { %7629 = vmatpush1.bf16.msra.mxu1 %v10177_v9 }
 0x441   :  { %7766 = vmatprep.subr.bf16.mxu1 %v10224_v56 }
 0x443   :  { %7647 = vmatmul.mubr.bf16.vlgmr.msra.gmra.mrb[68].mxu1 %v7272_v26 }
 0x444   :  { %7767 = vmatpush1.bf16.msra.mxu1 %v10180_v54 }
 0x445   :  { %7768 = vmatprep.subr.bf16.mxu1 %v10224_v56 }
 0x448   :  { %7769 = vmatpush1.bf16.msra.mxu1 %v10181_v63 }
 0x449   :  { %7770 = vmatprep.subr.bf16.mxu1 %v10224_v56 }
 0x44c   :  { %7771 = vmatpush1.bf16.msra.mxu1 %v10182_v0 }
 0x44d   :  { %7772 = vmatprep.subr.bf16.mxu1 %v10224_v56 }
 0x450   :  { %7773 = vmatpush1.bf16.msra.mxu1 %v10183_v42 }
 0x451   :  { %7774 = vmatprep.subr.bf16.mxu1 %v10224_v56 }
 0x454   :  { %7775 = vmatpush1.bf16.msra.mxu1 %v10184_v4 }
 0x455   :  { %7776 = vmatprep.subr.bf16.mxu1 %v10224_v56 }
 0x458   :  { %7777 = vmatpush1.bf16.msra.mxu1 %v10185_v15 }
 0x459   :  { %7778 = vmatprep.subr.bf16.mxu1 %v10224_v56 }
 0x45c   :  { %7779 = vmatpush1.bf16.msra.mxu1 %v10186_v21 }
 0x45d   :  { %7780 = vmatprep.subr.bf16.mxu1 %v10224_v56 }
 0x460   :  { %7781 = vmatpush1.bf16.msra.mxu1 %v10187_v16 }
 0x461   :  { %7782 = vmatprep.subr.bf16.mxu1 %v10224_v56 }
 0x464   :  { %7783 = vmatpush1.bf16.msra.mxu1 %v10188_v62 }
 0x465   :  { %7784 = vmatprep.subr.bf16.mxu1 %v10224_v56 }
 0x468   :  { %7785 = vmatpush1.bf16.msra.mxu1 %v10189_v5 }
 0x469   :  { %7786 = vmatprep.subr.bf16.mxu1 %v10224_v56 }
 0x46c   :  { %7787 = vmatpush1.bf16.msra.mxu1 %v10190_v2 }
 0x46d   :  { %7788 = vmatprep.subr.bf16.mxu1 %v10224_v56 }
 0x470   :  { %7789 = vmatpush1.bf16.msra.mxu1 %v10191_v6 }
 0x516   :  { %v7648_v35 = vpop.f32.mrb[68].mxu1 }
 0x517   :  { %v9019_v45 = vadd.f32 %v7648_v35, %v7326_v23  ;;  %v7650_v17 = vpop.f32.mrb[69].mxu1 }
 0x518   :  { %v9020_v13 = vadd.f32 %v7650_v17, %v7330_v12  ;;  %v7652_v20 = vpop.f32.mrb[70].mxu1 }
 0x519   :  { %v7655_v18 = vmax.f32 %v9019_v45, 0.0  ;;  %v7653_v55 = vpop.f32.mrb[71].mxu1 }
 0x51a   :  { %v7656_v59 = vmax.f32 %v9020_v13, 0.0 }
 0x51b   :  { %v7657_v58 = vpack.c.bf16 %v7655_v18, %v7655_v18 }
 0x51c   :  { %v7658_v22 = vpack.c.bf16 %v7656_v59, %v7656_v59 }
 0x51e   :  { %8662 = vmatprep.mubr.msk.bf16.mxu1 %vm7762_vm0, %v7658_v22 }
 0x51f   :  { %7799 = vmatmul.mubr.bf16.vlgmr.msra.gmra.mrb[72].mxu1 %v7657_v58 }
 0x5f2   :  { %v7800_v48 = vpop.f32.mrb[72].mxu1 }
 0x5f3   :  { %v7801_v51 = vadd.f32 %v8649_v28, %v7800_v48  ;;  %v7802_v10 = vpop.f32.mrb[73].mxu1 }
 0x5f4   :  { %v7803_v52 = vpop.f32.mrb[74].mxu1 }
 0x5f5   :  { %v7804_v49 = vpop.f32.mrb[75].mxu1  ;;  %v7807_v27 = vsel %vm7806_vm1, %v7801_v51, -inf }
 0x5f6   :  { %7808 = vmax.xlane.f32.xlu0 %v7807_v27 }
 0x683   :  { %v7809_v7 = vpop.xlane.xlu0 %7808 }
 0x684   :  { %v7810_v44 = vsub.f32 %v7801_v51, %v7809_v7 }
 0x686   :  { %v7811_v19 = vmul.f32 1.442695, %v7810_v44 }
 0x688   :  { %10192 = vpow2.f32 %v7811_v19 }
 0x692   :  { %v10193_v8 = vpop.eup %10192 }
 0x693   :  { %v7813_v47 = vsel %vm7806_vm1, %v10193_v8, 0.0 }
 0x694   :  { %7814 = vadd.xlane.f32.xlu0 %v7813_v47 }
 0x721   :  { %v7815_v14 = vpop.xlane.xlu0 %7814 }
 0x722   :  { %10194 = vrcp.f32 %v7815_v14 }
 0x72c   :  { %v10195_v1 = vpop.eup %10194 }
 0x72d   :  { %v7817_v30 = vmul.f32 %v10195_v1, %v10193_v8 }
 0x72f   :  { %7818 = vst.msk [vmem:[#allocation2] sm:$0x3] %vm7806_vm1, %v7817_v30 }
 0x730   :  { %10210 = shalt.err (!%p10207_p4)
}
 0x731   :  { %s10211_s13 = scalar_lea.hbm %s13295_s9, 32 }
 0x732   :  { %p10212_p5 = scmp.ne.s32.totalorder %s13295_s9, %s10211_s13  ;;  %p10215_p6 = scmp.lt.u32.totalorder %s10211_s13, %s13295_s9 }
 0x734   :  { %p10217_p7 = pnand %p10215_p6, %p10212_p5 }
 0x736   :  { %10220 = shalt.err (!%p10217_p7)
}
 0x737   :  { %7828 = dma.vmem_to_hbm [thread:$0]  %s7826_s8, 32, %s13295_s9, [#allocation3]  }
 0x738   :  { %10221 = dma.done.wait [#allocation3], 32  }
 0x739   :  { %10222 = vsyncadd [#allocation3], 4294967264 }
 0x73a   :  { %7832 = vsyncpa [#allocation3], 1 }

</bundles_post_ra>
